<compile_context>
chip_gen: v7x
topology: tpu7x:2x2x1
jax: 0.10.0
libtpu: 0.0.40
codegen_flags: <defaults>
</compile_context>

<pallas_src>
import functools

import numpy as np

import jax
import jax.numpy as jnp
from jax.experimental import pallas as pl
from jax.experimental.pallas import tpu as pltpu

# --- synthetic cfg constants (small shapes) --------------------------------
GF_DIM = 8              # cfg.GAN.GF_DIM
Z_DIM = 28              # cfg.Z_DIM
NGF = GF_DIM * 8        # self.gf_dim = 64   (ngf // 16 = 4)
EPS = 1e-5

_SPAT = [4, 8, 16, 32, 64]                               # per-stage input spatial
_CHAN = [NGF, NGF // 2, NGF // 4, NGF // 8, NGF // 16]   # 64, 32, 16, 8, 4


# ---------------------------------------------------------------------------
# Fused kernel: FC+BN1d+ReLU -> 4x (up2x+conv3x3+BN2d+ReLU) -> conv3x3+tanh
# Activation layout per stage: rows = b*H + y, lanes = x*C + c  (lane-dense 256).
# Conv layer L:  Y_out = sum_dy  A[dy] @ Y_in @ Bm[dy]
#   A[dy]  (B*2H, B*H)     : 0/1 row matrix = upsample+pad+window shift in H
#   Bm[dy] (H*Cin, 2H*Cout): banded weights = upsample+pad+window taps in W
# ---------------------------------------------------------------------------
def _generator_kernel(noise_ref, ccode_ref, wz_ref, wc_ref, fcg_ref, fcb_ref,
                      e_ref,
                      a1_ref, b1_ref, p1_ref, gb1_ref,
                      a2_ref, b2_ref, p2_ref, gb2_ref,
                      a3_ref, b3_ref, p3_ref, gb3_ref,
                      a4_ref, b4_ref, p4_ref, gb4_ref,
                      a5_ref, b5_ref,
                      out_ref,
                      y1_ref, y2_ref, y3_ref, y4_ref, y5_ref,
                      *, eps):
    f32 = jnp.float32
    nb = out_ref.shape[0]          # batch
    hw = out_ref.shape[2]          # 64

    # ---- fc (no bias) + BatchNorm1d (batch stats, two-pass) + ReLU --------
    h = (jnp.dot(noise_ref[...], wz_ref[...], preferred_element_type=f32) +
         jnp.dot(ccode_ref[...], wc_ref[...], preferred_element_type=f32))
    mu = jnp.mean(h, axis=0, keepdims=True)
    hc = h - mu
    var = jnp.mean(hc * hc, axis=0, keepdims=True)
    h = jnp.maximum(hc * (fcg_ref[...] * jax.lax.rsqrt(var + eps)) + fcb_ref[...],
                    0.0)

    # ---- h.view(B, ngf, 4, 4) -> (B*4, 4*ngf) rows/lanes via tiny selection
    #      matmuls (fc weight columns were pre-permuted to (y, x, c) order).
    npix = 4 * NGF                                     # 256 lanes per y-slice
    y0 = jnp.dot(e_ref[0], h[:, 0:npix], preferred_element_type=f32)
    for yy in range(1, 4):
        y0 = y0 + jnp.dot(e_ref[yy], h[:, yy * npix:(yy + 1) * npix],
                          preferred_element_type=f32)

    # ---- fused nearest-2x upsample + conv3x3 + BatchNorm2d + ReLU ---------
    def up_block(load_prev, a_ref, b_ref, p_ref, gb_ref, acc_ref):
        for dy in range(3):                       # accumulate conv into scratch
            t = jnp.dot(load_prev(), b_ref[dy], preferred_element_type=f32)
            t = jnp.dot(a_ref[dy], t, preferred_element_type=f32)
            if dy == 0:
                acc_ref[...] = t
            else:
                acc_ref[...] += t
        y = acc_ref[...]
        # BN with batch stats: colsum @ P gives the per-channel mean (and var)
        # already divided by n and broadcast back to the (x, c) lane layout.
        mean_b = jnp.dot(jnp.sum(y, axis=0, keepdims=True), p_ref[...],
                         preferred_element_type=f32)
        c0 = y - mean_b
        var_b = jnp.dot(jnp.sum(c0 * c0, axis=0, keepdims=True), p_ref[...],
                        preferred_element_type=f32)
        scale = gb_ref[0:1, :] * jax.lax.rsqrt(var_b + eps)
        acc_ref[...] = jnp.maximum(c0 * scale + gb_ref[1:2, :], 0.0)

    up_block(lambda: y0, a1_ref, b1_ref, p1_ref, gb1_ref, y1_ref)
    up_block(lambda: y1_ref[...], a2_ref, b2_ref, p2_ref, gb2_ref, y2_ref)
    up_block(lambda: y2_ref[...], a3_ref, b3_ref, p3_ref, gb3_ref, y3_ref)
    up_block(lambda: y3_ref[...], a4_ref, b4_ref, p4_ref, gb4_ref, y4_ref)

    # ---- final conv3x3 + tanh; lanes are channel-major (co*64 + x) so the
    #      NCHW output planes are aligned 2-D blocks of the result.
    for dy in range(3):
        t = jnp.dot(y4_ref[...], b5_ref[dy], preferred_element_type=f32)
        t = jnp.dot(a5_ref[dy], t, preferred_element_type=f32)
        if dy == 0:
            y5_ref[...] = t
        else:
            y5_ref[...] += t
    img = jnp.tanh(y5_ref[...])                        # (B*64, 3*64)
    for co in range(3):
        plane = img[:, co * hw:(co + 1) * hw]          # (B*64, 64)
        for b in range(nb):
            out_ref[b, co, :, :] = plane[b * hw:(b + 1) * hw, :]


# ---------------------------------------------------------------------------
# One-time packing of the parameters into the kernel's constant operators.
# ---------------------------------------------------------------------------
def _np32(x):
    return np.asarray(x, dtype=np.float32)


def prepare_operands(params, batch):
    nb = batch
    p = {k: _np32(v) for k, v in params.items()}
    ops = {}

    # fc weight: permute columns from NCHW-flat (c*16 + y*4 + x) to (y, x, c)
    # order so the fc output is already grouped by output row y.  BN1d is
    # per-column, so permuting gamma/beta identically keeps semantics exact.
    perm = np.empty(NGF * 16, dtype=np.int64)
    for y in range(4):
        for x in range(4):
            for c in range(NGF):
                perm[y * (4 * NGF) + x * NGF + c] = c * 16 + y * 4 + x
    fcw = p["fc_w"][:, perm]
    ops["wz"] = jnp.asarray(fcw[:Z_DIM])               # noise part of concat
    ops["wc"] = jnp.asarray(fcw[Z_DIM:])               # c_code part of concat
    ops["fc_g"] = jnp.asarray(p["fc_g"][:, perm])
    ops["fc_b"] = jnp.asarray(p["fc_b"][:, perm])

    # E[y, b*4+y, b] = 1 : scatters the y-slice of the fc output to its rows.
    e = np.zeros((4, nb * 4, nb), np.float32)
    for y in range(4):
        for b in range(nb):
            e[y, b * 4 + y, b] = 1.0
    ops["e"] = jnp.asarray(e)

    # upsample + conv3x3 + BN blocks.
    for i in range(4):
        hs, cin, cout = _SPAT[i], _CHAN[i], _CHAN[i + 1]
        h2 = 2 * hs
        w = p[f"up{i + 1}_w"]                          # (3, 3, cin, cout) HWIO
        a = np.zeros((3, nb * h2, nb * hs), np.float32)
        bm = np.zeros((3, hs * cin, h2 * cout), np.float32)
        for dy in range(3):
            for b in range(nb):
                for yp in range(h2):
                    r = yp + dy
                    if 1 <= r <= h2:                   # inside zero pad
                        a[dy, b * h2 + yp, b * hs + (r - 1) // 2] = 1.0
            for xp in range(h2):
                for dx in range(3):
                    wcol = xp + dx
                    if 1 <= wcol <= h2:
                        x = (wcol - 1) // 2            # nearest-2x source col
                        bm[dy, x * cin:(x + 1) * cin,
                           xp * cout:(xp + 1) * cout] += w[dy, dx]
        n = float(nb * h2 * h2)
        pmat = np.tile(np.eye(cout, dtype=np.float32) / n, (h2, h2))
        gb = np.stack([np.tile(p[f"up{i + 1}_g"], h2),
                       np.tile(p[f"up{i + 1}_b"], h2)]).astype(np.float32)
        ops[f"a{i + 1}"] = jnp.asarray(a)
        ops[f"b{i + 1}"] = jnp.asarray(bm)
        ops[f"p{i + 1}"] = jnp.asarray(pmat.astype(np.float32))
        ops[f"gb{i + 1}"] = jnp.asarray(gb)

    # final conv3x3 (pad only, no upsample); output lanes channel-major.
    hs, cin, cout = _SPAT[4], _CHAN[4], 3
    w = p["img_w"]
    a = np.zeros((3, nb * hs, nb * hs), np.float32)
    bm = np.zeros((3, hs * cin, cout * hs), np.float32)
    for dy in range(3):
        for b in range(nb):
            for yp in range(hs):
                r = yp + dy
                if 1 <= r <= hs:
                    a[dy, b * hs + yp, b * hs + (r - 1)] = 1.0
        for xp in range(hs):
            for dx in range(3):
                wcol = xp + dx
                if 1 <= wcol <= hs:
                    x = wcol - 1
                    for co in range(cout):
                        bm[dy, x * cin:(x + 1) * cin, co * hs + xp] += w[dy, dx, :, co]
    ops["a5"] = jnp.asarray(a)
    ops["b5"] = jnp.asarray(bm)
    return ops


# ---------------------------------------------------------------------------
# pallas_call wrapper
# ---------------------------------------------------------------------------
def _build_call(nb):
    n_inputs = 25
    return pl.pallas_call(
        functools.partial(_generator_kernel, eps=EPS),
        out_shape=jax.ShapeDtypeStruct((nb, 3, 64, 64), jnp.float32),
        in_specs=[pl.BlockSpec(memory_space=pltpu.MemorySpace.VMEM)] * n_inputs,
        out_specs=pl.BlockSpec(memory_space=pltpu.MemorySpace.VMEM),
        scratch_shapes=[
            pltpu.VMEM((nb * 8, 8 * _CHAN[1]), jnp.float32),     # (16, 256)
            pltpu.VMEM((nb * 16, 16 * _CHAN[2]), jnp.float32),   # (32, 256)
            pltpu.VMEM((nb * 32, 32 * _CHAN[3]), jnp.float32),   # (64, 256)
            pltpu.VMEM((nb * 64, 64 * _CHAN[4]), jnp.float32),   # (128, 256)
            pltpu.VMEM((nb * 64, 3 * 64), jnp.float32),          # (128, 192)
        ],
        compiler_params=pltpu.CompilerParams(
            vmem_limit_bytes=32 * 1024 * 1024),
    )


@jax.jit
def image_generator_forward(ops, c_code, noise):
    """forward(c_code, noise) -> fake_img  (B, 3, 64, 64), like the nn.Module."""
    nb = c_code.shape[0]
    call = _build_call(nb)
    return call(noise, c_code, ops["wz"], ops["wc"], ops["fc_g"], ops["fc_b"],
                ops["e"],
                ops["a1"], ops["b1"], ops["p1"], ops["gb1"],
                ops["a2"], ops["b2"], ops["p2"], ops["gb2"],
                ops["a3"], ops["b3"], ops["p3"], ops["gb3"],
                ops["a4"], ops["b4"], ops["p4"], ops["gb4"],
                ops["a5"], ops["b5"])


# ---------------------------------------------------------------------------
# Params + pure-JAX reference (for a correctness check of the fused kernel)
# ---------------------------------------------------------------------------
def init_params(key):
    ks = jax.random.split(key, 8)
    ninput = 300 + Z_DIM
    par = {}
    par["fc_w"] = jax.random.normal(ks[0], (ninput, NGF * 16), jnp.float32) * 0.05
    par["fc_g"] = jnp.ones((1, NGF * 16), jnp.float32)
    par["fc_b"] = jnp.zeros((1, NGF * 16), jnp.float32)
    for i in range(4):
        cin, cout = _CHAN[i], _CHAN[i + 1]
        par[f"up{i + 1}_w"] = (jax.random.normal(ks[1 + i], (3, 3, cin, cout),
                                                 jnp.float32) * 0.05)
        par[f"up{i + 1}_g"] = jnp.ones((cout,), jnp.float32)
        par[f"up{i + 1}_b"] = jnp.zeros((cout,), jnp.float32)
    par["img_w"] = jax.random.normal(ks[5], (3, 3, _CHAN[4], 3), jnp.float32) * 0.05
    # TODO(synk): self.l1 / self.l2 exist in the PyTorch module but are never used
    # in forward(); intentionally not materialized here.
    return par


def _reference_forward(params, c_code, noise):
    hp = jax.lax.Precision.HIGHEST
    z = jnp.concatenate([noise, c_code], axis=1)
    h = jnp.dot(z, params["fc_w"], precision=hp)
    mu = jnp.mean(h, axis=0, keepdims=True)
    var = jnp.mean((h - mu) ** 2, axis=0, keepdims=True)
    h = jnp.maximum((h - mu) * jax.lax.rsqrt(var + EPS) * params["fc_g"]
                    + params["fc_b"], 0.0)
    nb = h.shape[0]
    x = h.reshape(nb, NGF, 4, 4).transpose(0, 2, 3, 1)          # NHWC
    for i in range(1, 5):
        x = jnp.repeat(jnp.repeat(x, 2, axis=1), 2, axis=2)
        x = jax.lax.conv_general_dilated(
            x, params[f"up{i}_w"], (1, 1), "SAME",
            dimension_numbers=("NHWC", "HWIO", "NHWC"), precision=hp)
        mu = jnp.mean(x, axis=(0, 1, 2), keepdims=True)
        var = jnp.mean((x - mu) ** 2, axis=(0, 1, 2), keepdims=True)
        x = (x - mu) * jax.lax.rsqrt(var + EPS)
        x = jnp.maximum(x * params[f"up{i}_g"].reshape(1, 1, 1, -1)
                        + params[f"up{i}_b"].reshape(1, 1, 1, -1), 0.0)
    x = jax.lax.conv_general_dilated(
        x, params["img_w"], (1, 1), "SAME",
        dimension_numbers=("NHWC", "HWIO", "NHWC"), precision=hp)
    return jnp.tanh(x).transpose(0, 3, 1, 2)


if __name__ == "__main__":
    key = jax.random.PRNGKey(0)
    k1, k2, k3 = jax.random.split(key, 3)
    batch = 2
    c_code = jax.random.normal(k1, (batch, 300), jnp.float32)
    noise = jax.random.normal(k2, (batch, Z_DIM), jnp.float32)
    params = init_params(k3)
    ops = prepare_operands(params, batch)

    img = image_generator_forward(ops, c_code, noise)
    img = jax.block_until_ready(img)
    assert img.shape == (batch, 3, 64, 64), img.shape

    ref = jax.block_until_ready(_reference_forward(params, c_code, noise))
    np.testing.assert_allclose(np.asarray(img), np.asarray(ref),
                               rtol=5e-2, atol=5e-2)
    print("KERNEL_OK")
</pallas_src>

<mosaic_0001>
module attributes {stable_mosaic.version = 11 : i64} {
  func.func @_generator_kernel(%arg0: memref<2x28xf32, #tpu.memory_space<vmem>>, %arg1: memref<2x300xf32, #tpu.memory_space<vmem>>, %arg2: memref<28x1024xf32, #tpu.memory_space<vmem>>, %arg3: memref<300x1024xf32, #tpu.memory_space<vmem>>, %arg4: memref<1x1024xf32, #tpu.memory_space<vmem>>, %arg5: memref<1x1024xf32, #tpu.memory_space<vmem>>, %arg6: memref<4x8x2xf32, #tpu.memory_space<vmem>>, %arg7: memref<3x16x8xf32, #tpu.memory_space<vmem>>, %arg8: memref<3x256x256xf32, #tpu.memory_space<vmem>>, %arg9: memref<256x256xf32, #tpu.memory_space<vmem>>, %arg10: memref<2x256xf32, #tpu.memory_space<vmem>>, %arg11: memref<3x32x16xf32, #tpu.memory_space<vmem>>, %arg12: memref<3x256x256xf32, #tpu.memory_space<vmem>>, %arg13: memref<256x256xf32, #tpu.memory_space<vmem>>, %arg14: memref<2x256xf32, #tpu.memory_space<vmem>>, %arg15: memref<3x64x32xf32, #tpu.memory_space<vmem>>, %arg16: memref<3x256x256xf32, #tpu.memory_space<vmem>>, %arg17: memref<256x256xf32, #tpu.memory_space<vmem>>, %arg18: memref<2x256xf32, #tpu.memory_space<vmem>>, %arg19: memref<3x128x64xf32, #tpu.memory_space<vmem>>, %arg20: memref<3x256x256xf32, #tpu.memory_space<vmem>>, %arg21: memref<256x256xf32, #tpu.memory_space<vmem>>, %arg22: memref<2x256xf32, #tpu.memory_space<vmem>>, %arg23: memref<3x128x128xf32, #tpu.memory_space<vmem>>, %arg24: memref<3x256x192xf32, #tpu.memory_space<vmem>>, %arg25: memref<2x3x64x64xf32, #tpu.memory_space<vmem>>, %arg26: memref<16x256xf32, #tpu.memory_space<vmem>>, %arg27: memref<32x256xf32, #tpu.memory_space<vmem>>, %arg28: memref<64x256xf32, #tpu.memory_space<vmem>>, %arg29: memref<128x256xf32, #tpu.memory_space<vmem>>, %arg30: memref<128x192xf32, #tpu.memory_space<vmem>>) attributes {dimension_semantics = [], scalar_prefetch = 0 : i64, scratch_operands = 5 : i64, tpu.core_type = #tpu.core_type<tc>} {
    %c0 = arith.constant 0 : index
    %c0_0 = arith.constant 0 : index
    %0 = vector.load %arg0[%c0, %c0_0] : memref<2x28xf32, #tpu.memory_space<vmem>>, vector<2x28xf32>
    %c0_1 = arith.constant 0 : index
    %c0_2 = arith.constant 0 : index
    %1 = vector.load %arg2[%c0_1, %c0_2] : memref<28x1024xf32, #tpu.memory_space<vmem>>, vector<28x1024xf32>
    %cst = arith.constant dense<0.000000e+00> : vector<2x1024xf32>
    %2 = tpu.matmul %0, %1, %cst {dimension_numbers = #tpu.dot_dimension_numbers<[1], [0], [0], [1], [0, 0, 1, 1], [], []>} : vector<2x28xf32>, vector<28x1024xf32>, vector<2x1024xf32> -> vector<2x1024xf32>
    %c0_3 = arith.constant 0 : index
    %c0_4 = arith.constant 0 : index
    %3 = vector.load %arg1[%c0_3, %c0_4] : memref<2x300xf32, #tpu.memory_space<vmem>>, vector<2x300xf32>
    %c0_5 = arith.constant 0 : index
    %c0_6 = arith.constant 0 : index
    %4 = vector.load %arg3[%c0_5, %c0_6] : memref<300x1024xf32, #tpu.memory_space<vmem>>, vector<300x1024xf32>
    %cst_7 = arith.constant dense<0.000000e+00> : vector<2x1024xf32>
    %5 = tpu.matmul %3, %4, %cst_7 {dimension_numbers = #tpu.dot_dimension_numbers<[1], [0], [0], [1], [0, 0, 1, 1], [], []>} : vector<2x300xf32>, vector<300x1024xf32>, vector<2x1024xf32> -> vector<2x1024xf32>
    %6 = arith.addf %2, %5 : vector<2x1024xf32>
    %cst_8 = arith.constant dense<0.000000e+00> : vector<1024xf32>
    %7 = vector.multi_reduction <add>, %6, %cst_8 [0] : vector<2x1024xf32> to vector<1024xf32>
    %8 = vector.shape_cast %7 : vector<1024xf32> to vector<1x1024xf32>
    %cst_9 = arith.constant 2.000000e+00 : f32
    %9 = vector.broadcast %cst_9 : f32 to vector<1x1024xf32>
    %10 = arith.divf %8, %9 : vector<1x1024xf32>
    %11 = vector.broadcast %10 : vector<1x1024xf32> to vector<2x1024xf32>
    %12 = arith.subf %6, %11 : vector<2x1024xf32>
    %13 = arith.mulf %12, %12 : vector<2x1024xf32>
    %cst_10 = arith.constant dense<0.000000e+00> : vector<1024xf32>
    %14 = vector.multi_reduction <add>, %13, %cst_10 [0] : vector<2x1024xf32> to vector<1024xf32>
    %15 = vector.shape_cast %14 : vector<1024xf32> to vector<1x1024xf32>
    %cst_11 = arith.constant 2.000000e+00 : f32
    %16 = vector.broadcast %cst_11 : f32 to vector<1x1024xf32>
    %17 = arith.divf %15, %16 : vector<1x1024xf32>
    %c0_12 = arith.constant 0 : index
    %c0_13 = arith.constant 0 : index
    %18 = vector.load %arg4[%c0_12, %c0_13] : memref<1x1024xf32, #tpu.memory_space<vmem>>, vector<1x1024xf32>
    %cst_14 = arith.constant 9.99999974E-6 : f32
    %19 = vector.broadcast %cst_14 : f32 to vector<1x1024xf32>
    %20 = arith.addf %17, %19 : vector<1x1024xf32>
    %21 = math.rsqrt %20 : vector<1x1024xf32>
    %22 = arith.mulf %18, %21 : vector<1x1024xf32>
    %23 = vector.broadcast %22 : vector<1x1024xf32> to vector<2x1024xf32>
    %24 = arith.mulf %12, %23 : vector<2x1024xf32>
    %c0_15 = arith.constant 0 : index
    %c0_16 = arith.constant 0 : index
    %25 = vector.load %arg5[%c0_15, %c0_16] : memref<1x1024xf32, #tpu.memory_space<vmem>>, vector<1x1024xf32>
    %26 = vector.broadcast %25 : vector<1x1024xf32> to vector<2x1024xf32>
    %27 = arith.addf %24, %26 : vector<2x1024xf32>
    %cst_17 = arith.constant 0.000000e+00 : f32
    %28 = vector.broadcast %cst_17 : f32 to vector<2x1024xf32>
    %29 = arith.maximumf %27, %28 : vector<2x1024xf32>
    %c0_18 = arith.constant 0 : index
    %c0_19 = arith.constant 0 : index
    %c0_20 = arith.constant 0 : index
    %30 = vector.load %arg6[%c0_18, %c0_19, %c0_20] : memref<4x8x2xf32, #tpu.memory_space<vmem>>, vector<1x8x2xf32>
    %31 = vector.shape_cast %30 : vector<1x8x2xf32> to vector<8x2xf32>
    %32 = vector.extract_strided_slice %29 {offsets = [0, 0], sizes = [2, 256], strides = [1, 1]} : vector<2x1024xf32> to vector<2x256xf32>
    %cst_21 = arith.constant dense<0.000000e+00> : vector<8x256xf32>
    %33 = tpu.matmul %31, %32, %cst_21 {dimension_numbers = #tpu.dot_dimension_numbers<[1], [0], [0], [1], [0, 0, 1, 1], [], []>} : vector<8x2xf32>, vector<2x256xf32>, vector<8x256xf32> -> vector<8x256xf32>
    %c1 = arith.constant 1 : index
    %c0_22 = arith.constant 0 : index
    %c0_23 = arith.constant 0 : index
    %34 = vector.load %arg6[%c1, %c0_22, %c0_23] : memref<4x8x2xf32, #tpu.memory_space<vmem>>, vector<1x8x2xf32>
    %35 = vector.shape_cast %34 : vector<1x8x2xf32> to vector<8x2xf32>
    %36 = vector.extract_strided_slice %29 {offsets = [0, 256], sizes = [2, 256], strides = [1, 1]} : vector<2x1024xf32> to vector<2x256xf32>
    %cst_24 = arith.constant dense<0.000000e+00> : vector<8x256xf32>
    %37 = tpu.matmul %35, %36, %cst_24 {dimension_numbers = #tpu.dot_dimension_numbers<[1], [0], [0], [1], [0, 0, 1, 1], [], []>} : vector<8x2xf32>, vector<2x256xf32>, vector<8x256xf32> -> vector<8x256xf32>
    %38 = arith.addf %33, %37 : vector<8x256xf32>
    %c2 = arith.constant 2 : index
    %c0_25 = arith.constant 0 : index
    %c0_26 = arith.constant 0 : index
    %39 = vector.load %arg6[%c2, %c0_25, %c0_26] : memref<4x8x2xf32, #tpu.memory_space<vmem>>, vector<1x8x2xf32>
    %40 = vector.shape_cast %39 : vector<1x8x2xf32> to vector<8x2xf32>
    %41 = vector.extract_strided_slice %29 {offsets = [0, 512], sizes = [2, 256], strides = [1, 1]} : vector<2x1024xf32> to vector<2x256xf32>
    %cst_27 = arith.constant dense<0.000000e+00> : vector<8x256xf32>
    %42 = tpu.matmul %40, %41, %cst_27 {dimension_numbers = #tpu.dot_dimension_numbers<[1], [0], [0], [1], [0, 0, 1, 1], [], []>} : vector<8x2xf32>, vector<2x256xf32>, vector<8x256xf32> -> vector<8x256xf32>
    %43 = arith.addf %38, %42 : vector<8x256xf32>
    %c3 = arith.constant 3 : index
    %c0_28 = arith.constant 0 : index
    %c0_29 = arith.constant 0 : index
    %44 = vector.load %arg6[%c3, %c0_28, %c0_29] : memref<4x8x2xf32, #tpu.memory_space<vmem>>, vector<1x8x2xf32>
    %45 = vector.shape_cast %44 : vector<1x8x2xf32> to vector<8x2xf32>
    %46 = vector.extract_strided_slice %29 {offsets = [0, 768], sizes = [2, 256], strides = [1, 1]} : vector<2x1024xf32> to vector<2x256xf32>
    %cst_30 = arith.constant dense<0.000000e+00> : vector<8x256xf32>
    %47 = tpu.matmul %45, %46, %cst_30 {dimension_numbers = #tpu.dot_dimension_numbers<[1], [0], [0], [1], [0, 0, 1, 1], [], []>} : vector<8x2xf32>, vector<2x256xf32>, vector<8x256xf32> -> vector<8x256xf32>
    %48 = arith.addf %43, %47 : vector<8x256xf32>
    %c0_31 = arith.constant 0 : index
    %c0_32 = arith.constant 0 : index
    %c0_33 = arith.constant 0 : index
    %49 = vector.load %arg8[%c0_31, %c0_32, %c0_33] : memref<3x256x256xf32, #tpu.memory_space<vmem>>, vector<1x256x256xf32>
    %50 = vector.shape_cast %49 : vector<1x256x256xf32> to vector<256x256xf32>
    %cst_34 = arith.constant dense<0.000000e+00> : vector<8x256xf32>
    %51 = tpu.matmul %48, %50, %cst_34 {dimension_numbers = #tpu.dot_dimension_numbers<[1], [0], [0], [1], [0, 0, 1, 1], [], []>} : vector<8x256xf32>, vector<256x256xf32>, vector<8x256xf32> -> vector<8x256xf32>
    %c0_35 = arith.constant 0 : index
    %c0_36 = arith.constant 0 : index
    %c0_37 = arith.constant 0 : index
    %52 = vector.load %arg7[%c0_35, %c0_36, %c0_37] : memref<3x16x8xf32, #tpu.memory_space<vmem>>, vector<1x16x8xf32>
    %53 = vector.shape_cast %52 : vector<1x16x8xf32> to vector<16x8xf32>
    %cst_38 = arith.constant dense<0.000000e+00> : vector<16x256xf32>
    %54 = tpu.matmul %53, %51, %cst_38 {dimension_numbers = #tpu.dot_dimension_numbers<[1], [0], [0], [1], [0, 0, 1, 1], [], []>} : vector<16x8xf32>, vector<8x256xf32>, vector<16x256xf32> -> vector<16x256xf32>
    %c0_39 = arith.constant 0 : index
    %c0_40 = arith.constant 0 : index
    %55 = vector.load %arg26[%c0_39, %c0_40] : memref<16x256xf32, #tpu.memory_space<vmem>>, vector<16x256xf32>
    tpu.vector_store %arg26[%c0_39, %c0_40], %54 {strides = array<i32>} : memref<16x256xf32, #tpu.memory_space<vmem>>, vector<16x256xf32>,
    %c1_41 = arith.constant 1 : index
    %c0_42 = arith.constant 0 : index
    %c0_43 = arith.constant 0 : index
    %56 = vector.load %arg8[%c1_41, %c0_42, %c0_43] : memref<3x256x256xf32, #tpu.memory_space<vmem>>, vector<1x256x256xf32>
    %57 = vector.shape_cast %56 : vector<1x256x256xf32> to vector<256x256xf32>
    %cst_44 = arith.constant dense<0.000000e+00> : vector<8x256xf32>
    %58 = tpu.matmul %48, %57, %cst_44 {dimension_numbers = #tpu.dot_dimension_numbers<[1], [0], [0], [1], [0, 0, 1, 1], [], []>} : vector<8x256xf32>, vector<256x256xf32>, vector<8x256xf32> -> vector<8x256xf32>
    %c1_45 = arith.constant 1 : index
    %c0_46 = arith.constant 0 : index
    %c0_47 = arith.constant 0 : index
    %59 = vector.load %arg7[%c1_45, %c0_46, %c0_47] : memref<3x16x8xf32, #tpu.memory_space<vmem>>, vector<1x16x8xf32>
    %60 = vector.shape_cast %59 : vector<1x16x8xf32> to vector<16x8xf32>
    %cst_48 = arith.constant dense<0.000000e+00> : vector<16x256xf32>
    %61 = tpu.matmul %60, %58, %cst_48 {dimension_numbers = #tpu.dot_dimension_numbers<[1], [0], [0], [1], [0, 0, 1, 1], [], []>} : vector<16x8xf32>, vector<8x256xf32>, vector<16x256xf32> -> vector<16x256xf32>
    %c0_49 = arith.constant 0 : index
    %c0_50 = arith.constant 0 : index
    %62 = vector.load %arg26[%c0_49, %c0_50] : memref<16x256xf32, #tpu.memory_space<vmem>>, vector<16x256xf32>
    %63 = arith.addf %62, %61 : vector<16x256xf32>
    %c0_51 = arith.constant 0 : index
    %c0_52 = arith.constant 0 : index
    %64 = vector.load %arg26[%c0_51, %c0_52] : memref<16x256xf32, #tpu.memory_space<vmem>>, vector<16x256xf32>
    tpu.vector_store %arg26[%c0_51, %c0_52], %63 {strides = array<i32>} : memref<16x256xf32, #tpu.memory_space<vmem>>, vector<16x256xf32>,
    %c2_53 = arith.constant 2 : index
    %c0_54 = arith.constant 0 : index
    %c0_55 = arith.constant 0 : index
    %65 = vector.load %arg8[%c2_53, %c0_54, %c0_55] : memref<3x256x256xf32, #tpu.memory_space<vmem>>, vector<1x256x256xf32>
    %66 = vector.shape_cast %65 : vector<1x256x256xf32> to vector<256x256xf32>
    %cst_56 = arith.constant dense<0.000000e+00> : vector<8x256xf32>
    %67 = tpu.matmul %48, %66, %cst_56 {dimension_numbers = #tpu.dot_dimension_numbers<[1], [0], [0], [1], [0, 0, 1, 1], [], []>} : vector<8x256xf32>, vector<256x256xf32>, vector<8x256xf32> -> vector<8x256xf32>
    %c2_57 = arith.constant 2 : index
    %c0_58 = arith.constant 0 : index
    %c0_59 = arith.constant 0 : index
    %68 = vector.load %arg7[%c2_57, %c0_58, %c0_59] : memref<3x16x8xf32, #tpu.memory_space<vmem>>, vector<1x16x8xf32>
    %69 = vector.shape_cast %68 : vector<1x16x8xf32> to vector<16x8xf32>
    %cst_60 = arith.constant dense<0.000000e+00> : vector<16x256xf32>
    %70 = tpu.matmul %69, %67, %cst_60 {dimension_numbers = #tpu.dot_dimension_numbers<[1], [0], [0], [1], [0, 0, 1, 1], [], []>} : vector<16x8xf32>, vector<8x256xf32>, vector<16x256xf32> -> vector<16x256xf32>
    %c0_61 = arith.constant 0 : index
    %c0_62 = arith.constant 0 : index
    %71 = vector.load %arg26[%c0_61, %c0_62] : memref<16x256xf32, #tpu.memory_space<vmem>>, vector<16x256xf32>
    %72 = arith.addf %71, %70 : vector<16x256xf32>
    %c0_63 = arith.constant 0 : index
    %c0_64 = arith.constant 0 : index
    %73 = vector.load %arg26[%c0_63, %c0_64] : memref<16x256xf32, #tpu.memory_space<vmem>>, vector<16x256xf32>
    tpu.vector_store %arg26[%c0_63, %c0_64], %72 {strides = array<i32>} : memref<16x256xf32, #tpu.memory_space<vmem>>, vector<16x256xf32>,
    %c0_65 = arith.constant 0 : index
    %c0_66 = arith.constant 0 : index
    %74 = vector.load %arg26[%c0_65, %c0_66] : memref<16x256xf32, #tpu.memory_space<vmem>>, vector<16x256xf32>
    %cst_67 = arith.constant dense<0.000000e+00> : vector<256xf32>
    %75 = vector.multi_reduction <add>, %74, %cst_67 [0] : vector<16x256xf32> to vector<256xf32>
    %76 = vector.shape_cast %75 : vector<256xf32> to vector<1x256xf32>
    %c0_68 = arith.constant 0 : index
    %c0_69 = arith.constant 0 : index
    %77 = vector.load %arg9[%c0_68, %c0_69] : memref<256x256xf32, #tpu.memory_space<vmem>>, vector<256x256xf32>
    %cst_70 = arith.constant dense<0.000000e+00> : vector<1x256xf32>
    %78 = tpu.matmul %76, %77, %cst_70 {dimension_numbers = #tpu.dot_dimension_numbers<[1], [0], [0], [1], [0, 0, 1, 1], [], []>} : vector<1x256xf32>, vector<256x256xf32>, vector<1x256xf32> -> vector<1x256xf32>
    %79 = vector.broadcast %78 : vector<1x256xf32> to vector<16x256xf32>
    %80 = arith.subf %74, %79 : vector<16x256xf32>
    %81 = arith.mulf %80, %80 : vector<16x256xf32>
    %cst_71 = arith.constant dense<0.000000e+00> : vector<256xf32>
    %82 = vector.multi_reduction <add>, %81, %cst_71 [0] : vector<16x256xf32> to vector<256xf32>
    %83 = vector.shape_cast %82 : vector<256xf32> to vector<1x256xf32>
    %c0_72 = arith.constant 0 : index
    %c0_73 = arith.constant 0 : index
    %84 = vector.load %arg9[%c0_72, %c0_73] : memref<256x256xf32, #tpu.memory_space<vmem>>, vector<256x256xf32>
    %cst_74 = arith.constant dense<0.000000e+00> : vector<1x256xf32>
    %85 = tpu.matmul %83, %84, %cst_74 {dimension_numbers = #tpu.dot_dimension_numbers<[1], [0], [0], [1], [0, 0, 1, 1], [], []>} : vector<1x256xf32>, vector<256x256xf32>, vector<1x256xf32> -> vector<1x256xf32>
    %c0_75 = arith.constant 0 : index
    %c0_76 = arith.constant 0 : index
    %86 = vector.load %arg10[%c0_75, %c0_76] : memref<2x256xf32, #tpu.memory_space<vmem>>, vector<1x256xf32>
    %cst_77 = arith.constant 9.99999974E-6 : f32
    %87 = vector.broadcast %cst_77 : f32 to vector<1x256xf32>
    %88 = arith.addf %85, %87 : vector<1x256xf32>
    %89 = math.rsqrt %88 : vector<1x256xf32>
    %90 = arith.mulf %86, %89 : vector<1x256xf32>
    %91 = vector.broadcast %90 : vector<1x256xf32> to vector<16x256xf32>
    %92 = arith.mulf %80, %91 : vector<16x256xf32>
    %c1_78 = arith.constant 1 : index
    %c0_79 = arith.constant 0 : index
    %93 = vector.load %arg10[%c1_78, %c0_79] : memref<2x256xf32, #tpu.memory_space<vmem>>, vector<1x256xf32>
    %94 = vector.broadcast %93 : vector<1x256xf32> to vector<16x256xf32>
    %95 = arith.addf %92, %94 : vector<16x256xf32>
    %cst_80 = arith.constant 0.000000e+00 : f32
    %96 = vector.broadcast %cst_80 : f32 to vector<16x256xf32>
    %97 = arith.maximumf %95, %96 : vector<16x256xf32>
    %c0_81 = arith.constant 0 : index
    %c0_82 = arith.constant 0 : index
    %98 = vector.load %arg26[%c0_81, %c0_82] : memref<16x256xf32, #tpu.memory_space<vmem>>, vector<16x256xf32>
    tpu.vector_store %arg26[%c0_81, %c0_82], %97 {strides = array<i32>} : memref<16x256xf32, #tpu.memory_space<vmem>>, vector<16x256xf32>,
    %c0_83 = arith.constant 0 : index
    %c0_84 = arith.constant 0 : index
    %99 = vector.load %arg26[%c0_83, %c0_84] : memref<16x256xf32, #tpu.memory_space<vmem>>, vector<16x256xf32>
    %c0_85 = arith.constant 0 : index
    %c0_86 = arith.constant 0 : index
    %c0_87 = arith.constant 0 : index
    %100 = vector.load %arg12[%c0_85, %c0_86, %c0_87] : memref<3x256x256xf32, #tpu.memory_space<vmem>>, vector<1x256x256xf32>
    %101 = vector.shape_cast %100 : vector<1x256x256xf32> to vector<256x256xf32>
    %cst_88 = arith.constant dense<0.000000e+00> : vector<16x256xf32>
    %102 = tpu.matmul %99, %101, %cst_88 {dimension_numbers = #tpu.dot_dimension_numbers<[1], [0], [0], [1], [0, 0, 1, 1], [], []>} : vector<16x256xf32>, vector<256x256xf32>, vector<16x256xf32> -> vector<16x256xf32>
    %c0_89 = arith.constant 0 : index
    %c0_90 = arith.constant 0 : index
    %c0_91 = arith.constant 0 : index
    %103 = vector.load %arg11[%c0_89, %c0_90, %c0_91] : memref<3x32x16xf32, #tpu.memory_space<vmem>>, vector<1x32x16xf32>
    %104 = vector.shape_cast %103 : vector<1x32x16xf32> to vector<32x16xf32>
    %cst_92 = arith.constant dense<0.000000e+00> : vector<32x256xf32>
    %105 = tpu.matmul %104, %102, %cst_92 {dimension_numbers = #tpu.dot_dimension_numbers<[1], [0], [0], [1], [0, 0, 1, 1], [], []>} : vector<32x16xf32>, vector<16x256xf32>, vector<32x256xf32> -> vector<32x256xf32>
    %c0_93 = arith.constant 0 : index
    %c0_94 = arith.constant 0 : index
    %106 = vector.load %arg27[%c0_93, %c0_94] : memref<32x256xf32, #tpu.memory_space<vmem>>, vector<32x256xf32>
    tpu.vector_store %arg27[%c0_93, %c0_94], %105 {strides = array<i32>} : memref<32x256xf32, #tpu.memory_space<vmem>>, vector<32x256xf32>,
    %c0_95 = arith.constant 0 : index
    %c0_96 = arith.constant 0 : index
    %107 = vector.load %arg26[%c0_95, %c0_96] : memref<16x256xf32, #tpu.memory_space<vmem>>, vector<16x256xf32>
    %c1_97 = arith.constant 1 : index
    %c0_98 = arith.constant 0 : index
    %c0_99 = arith.constant 0 : index
    %108 = vector.load %arg12[%c1_97, %c0_98, %c0_99] : memref<3x256x256xf32, #tpu.memory_space<vmem>>, vector<1x256x256xf32>
    %109 = vector.shape_cast %108 : vector<1x256x256xf32> to vector<256x256xf32>
    %cst_100 = arith.constant dense<0.000000e+00> : vector<16x256xf32>
    %110 = tpu.matmul %107, %109, %cst_100 {dimension_numbers = #tpu.dot_dimension_numbers<[1], [0], [0], [1], [0, 0, 1, 1], [], []>} : vector<16x256xf32>, vector<256x256xf32>, vector<16x256xf32> -> vector<16x256xf32>
    %c1_101 = arith.constant 1 : index
    %c0_102 = arith.constant 0 : index
    %c0_103 = arith.constant 0 : index
    %111 = vector.load %arg11[%c1_101, %c0_102, %c0_103] : memref<3x32x16xf32, #tpu.memory_space<vmem>>, vector<1x32x16xf32>
    %112 = vector.shape_cast %111 : vector<1x32x16xf32> to vector<32x16xf32>
    %cst_104 = arith.constant dense<0.000000e+00> : vector<32x256xf32>
    %113 = tpu.matmul %112, %110, %cst_104 {dimension_numbers = #tpu.dot_dimension_numbers<[1], [0], [0], [1], [0, 0, 1, 1], [], []>} : vector<32x16xf32>, vector<16x256xf32>, vector<32x256xf32> -> vector<32x256xf32>
    %c0_105 = arith.constant 0 : index
    %c0_106 = arith.constant 0 : index
    %114 = vector.load %arg27[%c0_105, %c0_106] : memref<32x256xf32, #tpu.memory_space<vmem>>, vector<32x256xf32>
    %115 = arith.addf %114, %113 : vector<32x256xf32>
    %c0_107 = arith.constant 0 : index
    %c0_108 = arith.constant 0 : index
    %116 = vector.load %arg27[%c0_107, %c0_108] : memref<32x256xf32, #tpu.memory_space<vmem>>, vector<32x256xf32>
    tpu.vector_store %arg27[%c0_107, %c0_108], %115 {strides = array<i32>} : memref<32x256xf32, #tpu.memory_space<vmem>>, vector<32x256xf32>,
    %c0_109 = arith.constant 0 : index
    %c0_110 = arith.constant 0 : index
    %117 = vector.load %arg26[%c0_109, %c0_110] : memref<16x256xf32, #tpu.memory_space<vmem>>, vector<16x256xf32>
    %c2_111 = arith.constant 2 : index
    %c0_112 = arith.constant 0 : index
    %c0_113 = arith.constant 0 : index
    %118 = vector.load %arg12[%c2_111, %c0_112, %c0_113] : memref<3x256x256xf32, #tpu.memory_space<vmem>>, vector<1x256x256xf32>
    %119 = vector.shape_cast %118 : vector<1x256x256xf32> to vector<256x256xf32>
    %cst_114 = arith.constant dense<0.000000e+00> : vector<16x256xf32>
    %120 = tpu.matmul %117, %119, %cst_114 {dimension_numbers = #tpu.dot_dimension_numbers<[1], [0], [0], [1], [0, 0, 1, 1], [], []>} : vector<16x256xf32>, vector<256x256xf32>, vector<16x256xf32> -> vector<16x256xf32>
    %c2_115 = arith.constant 2 : index
    %c0_116 = arith.constant 0 : index
    %c0_117 = arith.constant 0 : index
    %121 = vector.load %arg11[%c2_115, %c0_116, %c0_117] : memref<3x32x16xf32, #tpu.memory_space<vmem>>, vector<1x32x16xf32>
    %122 = vector.shape_cast %121 : vector<1x32x16xf32> to vector<32x16xf32>
    %cst_118 = arith.constant dense<0.000000e+00> : vector<32x256xf32>
    %123 = tpu.matmul %122, %120, %cst_118 {dimension_numbers = #tpu.dot_dimension_numbers<[1], [0], [0], [1], [0, 0, 1, 1], [], []>} : vector<32x16xf32>, vector<16x256xf32>, vector<32x256xf32> -> vector<32x256xf32>
    %c0_119 = arith.constant 0 : index
    %c0_120 = arith.constant 0 : index
    %124 = vector.load %arg27[%c0_119, %c0_120] : memref<32x256xf32, #tpu.memory_space<vmem>>, vector<32x256xf32>
    %125 = arith.addf %124, %123 : vector<32x256xf32>
    %c0_121 = arith.constant 0 : index
    %c0_122 = arith.constant 0 : index
    %126 = vector.load %arg27[%c0_121, %c0_122] : memref<32x256xf32, #tpu.memory_space<vmem>>, vector<32x256xf32>
    tpu.vector_store %arg27[%c0_121, %c0_122], %125 {strides = array<i32>} : memref<32x256xf32, #tpu.memory_space<vmem>>, vector<32x256xf32>,
    %c0_123 = arith.constant 0 : index
    %c0_124 = arith.constant 0 : index
    %127 = vector.load %arg27[%c0_123, %c0_124] : memref<32x256xf32, #tpu.memory_space<vmem>>, vector<32x256xf32>
    %cst_125 = arith.constant dense<0.000000e+00> : vector<256xf32>
    %128 = vector.multi_reduction <add>, %127, %cst_125 [0] : vector<32x256xf32> to vector<256xf32>
    %129 = vector.shape_cast %128 : vector<256xf32> to vector<1x256xf32>
    %c0_126 = arith.constant 0 : index
    %c0_127 = arith.constant 0 : index
    %130 = vector.load %arg13[%c0_126, %c0_127] : memref<256x256xf32, #tpu.memory_space<vmem>>, vector<256x256xf32>
    %cst_128 = arith.constant dense<0.000000e+00> : vector<1x256xf32>
    %131 = tpu.matmul %129, %130, %cst_128 {dimension_numbers = #tpu.dot_dimension_numbers<[1], [0], [0], [1], [0, 0, 1, 1], [], []>} : vector<1x256xf32>, vector<256x256xf32>, vector<1x256xf32> -> vector<1x256xf32>
    %132 = vector.broadcast %131 : vector<1x256xf32> to vector<32x256xf32>
    %133 = arith.subf %127, %132 : vector<32x256xf32>
    %134 = arith.mulf %133, %133 : vector<32x256xf32>
    %cst_129 = arith.constant dense<0.000000e+00> : vector<256xf32>
    %135 = vector.multi_reduction <add>, %134, %cst_129 [0] : vector<32x256xf32> to vector<256xf32>
    %136 = vector.shape_cast %135 : vector<256xf32> to vector<1x256xf32>
    %c0_130 = arith.constant 0 : index
    %c0_131 = arith.constant 0 : index
    %137 = vector.load %arg13[%c0_130, %c0_131] : memref<256x256xf32, #tpu.memory_space<vmem>>, vector<256x256xf32>
    %cst_132 = arith.constant dense<0.000000e+00> : vector<1x256xf32>
    %138 = tpu.matmul %136, %137, %cst_132 {dimension_numbers = #tpu.dot_dimension_numbers<[1], [0], [0], [1], [0, 0, 1, 1], [], []>} : vector<1x256xf32>, vector<256x256xf32>, vector<1x256xf32> -> vector<1x256xf32>
    %c0_133 = arith.constant 0 : index
    %c0_134 = arith.constant 0 : index
    %139 = vector.load %arg14[%c0_133, %c0_134] : memref<2x256xf32, #tpu.memory_space<vmem>>, vector<1x256xf32>
    %cst_135 = arith.constant 9.99999974E-6 : f32
    %140 = vector.broadcast %cst_135 : f32 to vector<1x256xf32>
    %141 = arith.addf %138, %140 : vector<1x256xf32>
    %142 = math.rsqrt %141 : vector<1x256xf32>
    %143 = arith.mulf %139, %142 : vector<1x256xf32>
    %144 = vector.broadcast %143 : vector<1x256xf32> to vector<32x256xf32>
    %145 = arith.mulf %133, %144 : vector<32x256xf32>
    %c1_136 = arith.constant 1 : index
    %c0_137 = arith.constant 0 : index
    %146 = vector.load %arg14[%c1_136, %c0_137] : memref<2x256xf32, #tpu.memory_space<vmem>>, vector<1x256xf32>
    %147 = vector.broadcast %146 : vector<1x256xf32> to vector<32x256xf32>
    %148 = arith.addf %145, %147 : vector<32x256xf32>
    %cst_138 = arith.constant 0.000000e+00 : f32
    %149 = vector.broadcast %cst_138 : f32 to vector<32x256xf32>
    %150 = arith.maximumf %148, %149 : vector<32x256xf32>
    %c0_139 = arith.constant 0 : index
    %c0_140 = arith.constant 0 : index
    %151 = vector.load %arg27[%c0_139, %c0_140] : memref<32x256xf32, #tpu.memory_space<vmem>>, vector<32x256xf32>
    tpu.vector_store %arg27[%c0_139, %c0_140], %150 {strides = array<i32>} : memref<32x256xf32, #tpu.memory_space<vmem>>, vector<32x256xf32>,
    %c0_141 = arith.constant 0 : index
    %c0_142 = arith.constant 0 : index
    %152 = vector.load %arg27[%c0_141, %c0_142] : memref<32x256xf32, #tpu.memory_space<vmem>>, vector<32x256xf32>
    %c0_143 = arith.constant 0 : index
    %c0_144 = arith.constant 0 : index
    %c0_145 = arith.constant 0 : index
    %153 = vector.load %arg16[%c0_143, %c0_144, %c0_145] : memref<3x256x256xf32, #tpu.memory_space<vmem>>, vector<1x256x256xf32>
    %154 = vector.shape_cast %153 : vector<1x256x256xf32> to vector<256x256xf32>
    %cst_146 = arith.constant dense<0.000000e+00> : vector<32x256xf32>
    %155 = tpu.matmul %152, %154, %cst_146 {dimension_numbers = #tpu.dot_dimension_numbers<[1], [0], [0], [1], [0, 0, 1, 1], [], []>} : vector<32x256xf32>, vector<256x256xf32>, vector<32x256xf32> -> vector<32x256xf32>
    %c0_147 = arith.constant 0 : index
    %c0_148 = arith.constant 0 : index
    %c0_149 = arith.constant 0 : index
    %156 = vector.load %arg15[%c0_147, %c0_148, %c0_149] : memref<3x64x32xf32, #tpu.memory_space<vmem>>, vector<1x64x32xf32>
    %157 = vector.shape_cast %156 : vector<1x64x32xf32> to vector<64x32xf32>
    %cst_150 = arith.constant dense<0.000000e+00> : vector<64x256xf32>
    %158 = tpu.matmul %157, %155, %cst_150 {dimension_numbers = #tpu.dot_dimension_numbers<[1], [0], [0], [1], [0, 0, 1, 1], [], []>} : vector<64x32xf32>, vector<32x256xf32>, vector<64x256xf32> -> vector<64x256xf32>
    %c0_151 = arith.constant 0 : index
    %c0_152 = arith.constant 0 : index
    %159 = vector.load %arg28[%c0_151, %c0_152] : memref<64x256xf32, #tpu.memory_space<vmem>>, vector<64x256xf32>
    tpu.vector_store %arg28[%c0_151, %c0_152], %158 {strides = array<i32>} : memref<64x256xf32, #tpu.memory_space<vmem>>, vector<64x256xf32>,
    %c0_153 = arith.constant 0 : index
    %c0_154 = arith.constant 0 : index
    %160 = vector.load %arg27[%c0_153, %c0_154] : memref<32x256xf32, #tpu.memory_space<vmem>>, vector<32x256xf32>
    %c1_155 = arith.constant 1 : index
    %c0_156 = arith.constant 0 : index
    %c0_157 = arith.constant 0 : index
    %161 = vector.load %arg16[%c1_155, %c0_156, %c0_157] : memref<3x256x256xf32, #tpu.memory_space<vmem>>, vector<1x256x256xf32>
    %162 = vector.shape_cast %161 : vector<1x256x256xf32> to vector<256x256xf32>
    %cst_158 = arith.constant dense<0.000000e+00> : vector<32x256xf32>
    %163 = tpu.matmul %160, %162, %cst_158 {dimension_numbers = #tpu.dot_dimension_numbers<[1], [0], [0], [1], [0, 0, 1, 1], [], []>} : vector<32x256xf32>, vector<256x256xf32>, vector<32x256xf32> -> vector<32x256xf32>
    %c1_159 = arith.constant 1 : index
    %c0_160 = arith.constant 0 : index
    %c0_161 = arith.constant 0 : index
    %164 = vector.load %arg15[%c1_159, %c0_160, %c0_161] : memref<3x64x32xf32, #tpu.memory_space<vmem>>, vector<1x64x32xf32>
    %165 = vector.shape_cast %164 : vector<1x64x32xf32> to vector<64x32xf32>
    %cst_162 = arith.constant dense<0.000000e+00> : vector<64x256xf32>
    %166 = tpu.matmul %165, %163, %cst_162 {dimension_numbers = #tpu.dot_dimension_numbers<[1], [0], [0], [1], [0, 0, 1, 1], [], []>} : vector<64x32xf32>, vector<32x256xf32>, vector<64x256xf32> -> vector<64x256xf32>
    %c0_163 = arith.constant 0 : index
    %c0_164 = arith.constant 0 : index
    %167 = vector.load %arg28[%c0_163, %c0_164] : memref<64x256xf32, #tpu.memory_space<vmem>>, vector<64x256xf32>
    %168 = arith.addf %167, %166 : vector<64x256xf32>
    %c0_165 = arith.constant 0 : index
    %c0_166 = arith.constant 0 : index
    %169 = vector.load %arg28[%c0_165, %c0_166] : memref<64x256xf32, #tpu.memory_space<vmem>>, vector<64x256xf32>
    tpu.vector_store %arg28[%c0_165, %c0_166], %168 {strides = array<i32>} : memref<64x256xf32, #tpu.memory_space<vmem>>, vector<64x256xf32>,
    %c0_167 = arith.constant 0 : index
    %c0_168 = arith.constant 0 : index
    %170 = vector.load %arg27[%c0_167, %c0_168] : memref<32x256xf32, #tpu.memory_space<vmem>>, vector<32x256xf32>
    %c2_169 = arith.constant 2 : index
    %c0_170 = arith.constant 0 : index
    %c0_171 = arith.constant 0 : index
    %171 = vector.load %arg16[%c2_169, %c0_170, %c0_171] : memref<3x256x256xf32, #tpu.memory_space<vmem>>, vector<1x256x256xf32>
    %172 = vector.shape_cast %171 : vector<1x256x256xf32> to vector<256x256xf32>
    %cst_172 = arith.constant dense<0.000000e+00> : vector<32x256xf32>
    %173 = tpu.matmul %170, %172, %cst_172 {dimension_numbers = #tpu.dot_dimension_numbers<[1], [0], [0], [1], [0, 0, 1, 1], [], []>} : vector<32x256xf32>, vector<256x256xf32>, vector<32x256xf32> -> vector<32x256xf32>
    %c2_173 = arith.constant 2 : index
    %c0_174 = arith.constant 0 : index
    %c0_175 = arith.constant 0 : index
    %174 = vector.load %arg15[%c2_173, %c0_174, %c0_175] : memref<3x64x32xf32, #tpu.memory_space<vmem>>, vector<1x64x32xf32>
    %175 = vector.shape_cast %174 : vector<1x64x32xf32> to vector<64x32xf32>
    %cst_176 = arith.constant dense<0.000000e+00> : vector<64x256xf32>
    %176 = tpu.matmul %175, %173, %cst_176 {dimension_numbers = #tpu.dot_dimension_numbers<[1], [0], [0], [1], [0, 0, 1, 1], [], []>} : vector<64x32xf32>, vector<32x256xf32>, vector<64x256xf32> -> vector<64x256xf32>
    %c0_177 = arith.constant 0 : index
    %c0_178 = arith.constant 0 : index
    %177 = vector.load %arg28[%c0_177, %c0_178] : memref<64x256xf32, #tpu.memory_space<vmem>>, vector<64x256xf32>
    %178 = arith.addf %177, %176 : vector<64x256xf32>
    %c0_179 = arith.constant 0 : index
    %c0_180 = arith.constant 0 : index
    %179 = vector.load %arg28[%c0_179, %c0_180] : memref<64x256xf32, #tpu.memory_space<vmem>>, vector<64x256xf32>
    tpu.vector_store %arg28[%c0_179, %c0_180], %178 {strides = array<i32>} : memref<64x256xf32, #tpu.memory_space<vmem>>, vector<64x256xf32>,
    %c0_181 = arith.constant 0 : index
    %c0_182 = arith.constant 0 : index
    %180 = vector.load %arg28[%c0_181, %c0_182] : memref<64x256xf32, #tpu.memory_space<vmem>>, vector<64x256xf32>
    %cst_183 = arith.constant dense<0.000000e+00> : vector<256xf32>
    %181 = vector.multi_reduction <add>, %180, %cst_183 [0] : vector<64x256xf32> to vector<256xf32>
    %182 = vector.shape_cast %181 : vector<256xf32> to vector<1x256xf32>
    %c0_184 = arith.constant 0 : index
    %c0_185 = arith.constant 0 : index
    %183 = vector.load %arg17[%c0_184, %c0_185] : memref<256x256xf32, #tpu.memory_space<vmem>>, vector<256x256xf32>
    %cst_186 = arith.constant dense<0.000000e+00> : vector<1x256xf32>
    %184 = tpu.matmul %182, %183, %cst_186 {dimension_numbers = #tpu.dot_dimension_numbers<[1], [0], [0], [1], [0, 0, 1, 1], [], []>} : vector<1x256xf32>, vector<256x256xf32>, vector<1x256xf32> -> vector<1x256xf32>
    %185 = vector.broadcast %184 : vector<1x256xf32> to vector<64x256xf32>
    %186 = arith.subf %180, %185 : vector<64x256xf32>
    %187 = arith.mulf %186, %186 : vector<64x256xf32>
    %cst_187 = arith.constant dense<0.000000e+00> : vector<256xf32>
    %188 = vector.multi_reduction <add>, %187, %cst_187 [0] : vector<64x256xf32> to vector<256xf32>
    %189 = vector.shape_cast %188 : vector<256xf32> to vector<1x256xf32>
    %c0_188 = arith.constant 0 : index
    %c0_189 = arith.constant 0 : index
    %190 = vector.load %arg17[%c0_188, %c0_189] : memref<256x256xf32, #tpu.memory_space<vmem>>, vector<256x256xf32>
    %cst_190 = arith.constant dense<0.000000e+00> : vector<1x256xf32>
    %191 = tpu.matmul %189, %190, %cst_190 {dimension_numbers = #tpu.dot_dimension_numbers<[1], [0], [0], [1], [0, 0, 1, 1], [], []>} : vector<1x256xf32>, vector<256x256xf32>, vector<1x256xf32> -> vector<1x256xf32>
    %c0_191 = arith.constant 0 : index
    %c0_192 = arith.constant 0 : index
    %192 = vector.load %arg18[%c0_191, %c0_192] : memref<2x256xf32, #tpu.memory_space<vmem>>, vector<1x256xf32>
    %cst_193 = arith.constant 9.99999974E-6 : f32
    %193 = vector.broadcast %cst_193 : f32 to vector<1x256xf32>
    %194 = arith.addf %191, %193 : vector<1x256xf32>
    %195 = math.rsqrt %194 : vector<1x256xf32>
    %196 = arith.mulf %192, %195 : vector<1x256xf32>
    %197 = vector.broadcast %196 : vector<1x256xf32> to vector<64x256xf32>
    %198 = arith.mulf %186, %197 : vector<64x256xf32>
    %c1_194 = arith.constant 1 : index
    %c0_195 = arith.constant 0 : index
    %199 = vector.load %arg18[%c1_194, %c0_195] : memref<2x256xf32, #tpu.memory_space<vmem>>, vector<1x256xf32>
    %200 = vector.broadcast %199 : vector<1x256xf32> to vector<64x256xf32>
    %201 = arith.addf %198, %200 : vector<64x256xf32>
    %cst_196 = arith.constant 0.000000e+00 : f32
    %202 = vector.broadcast %cst_196 : f32 to vector<64x256xf32>
    %203 = arith.maximumf %201, %202 : vector<64x256xf32>
    %c0_197 = arith.constant 0 : index
    %c0_198 = arith.constant 0 : index
    %204 = vector.load %arg28[%c0_197, %c0_198] : memref<64x256xf32, #tpu.memory_space<vmem>>, vector<64x256xf32>
    tpu.vector_store %arg28[%c0_197, %c0_198], %203 {strides = array<i32>} : memref<64x256xf32, #tpu.memory_space<vmem>>, vector<64x256xf32>,
    %c0_199 = arith.constant 0 : index
    %c0_200 = arith.constant 0 : index
    %205 = vector.load %arg28[%c0_199, %c0_200] : memref<64x256xf32, #tpu.memory_space<vmem>>, vector<64x256xf32>
    %c0_201 = arith.constant 0 : index
    %c0_202 = arith.constant 0 : index
    %c0_203 = arith.constant 0 : index
    %206 = vector.load %arg20[%c0_201, %c0_202, %c0_203] : memref<3x256x256xf32, #tpu.memory_space<vmem>>, vector<1x256x256xf32>
    %207 = vector.shape_cast %206 : vector<1x256x256xf32> to vector<256x256xf32>
    %cst_204 = arith.constant dense<0.000000e+00> : vector<64x256xf32>
    %208 = tpu.matmul %205, %207, %cst_204 {dimension_numbers = #tpu.dot_dimension_numbers<[1], [0], [0], [1], [0, 0, 1, 1], [], []>} : vector<64x256xf32>, vector<256x256xf32>, vector<64x256xf32> -> vector<64x256xf32>
    %c0_205 = arith.constant 0 : index
    %c0_206 = arith.constant 0 : index
    %c0_207 = arith.constant 0 : index
    %209 = vector.load %arg19[%c0_205, %c0_206, %c0_207] : memref<3x128x64xf32, #tpu.memory_space<vmem>>, vector<1x128x64xf32>
    %210 = vector.shape_cast %209 : vector<1x128x64xf32> to vector<128x64xf32>
    %cst_208 = arith.constant dense<0.000000e+00> : vector<128x256xf32>
    %211 = tpu.matmul %210, %208, %cst_208 {dimension_numbers = #tpu.dot_dimension_numbers<[1], [0], [0], [1], [0, 0, 1, 1], [], []>} : vector<128x64xf32>, vector<64x256xf32>, vector<128x256xf32> -> vector<128x256xf32>
    %c0_209 = arith.constant 0 : index
    %c0_210 = arith.constant 0 : index
    %212 = vector.load %arg29[%c0_209, %c0_210] : memref<128x256xf32, #tpu.memory_space<vmem>>, vector<128x256xf32>
    tpu.vector_store %arg29[%c0_209, %c0_210], %211 {strides = array<i32>} : memref<128x256xf32, #tpu.memory_space<vmem>>, vector<128x256xf32>,
    %c0_211 = arith.constant 0 : index
    %c0_212 = arith.constant 0 : index
    %213 = vector.load %arg28[%c0_211, %c0_212] : memref<64x256xf32, #tpu.memory_space<vmem>>, vector<64x256xf32>
    %c1_213 = arith.constant 1 : index
    %c0_214 = arith.constant 0 : index
    %c0_215 = arith.constant 0 : index
    %214 = vector.load %arg20[%c1_213, %c0_214, %c0_215] : memref<3x256x256xf32, #tpu.memory_space<vmem>>, vector<1x256x256xf32>
    %215 = vector.shape_cast %214 : vector<1x256x256xf32> to vector<256x256xf32>
    %cst_216 = arith.constant dense<0.000000e+00> : vector<64x256xf32>
    %216 = tpu.matmul %213, %215, %cst_216 {dimension_numbers = #tpu.dot_dimension_numbers<[1], [0], [0], [1], [0, 0, 1, 1], [], []>} : vector<64x256xf32>, vector<256x256xf32>, vector<64x256xf32> -> vector<64x256xf32>
    %c1_217 = arith.constant 1 : index
    %c0_218 = arith.constant 0 : index
    %c0_219 = arith.constant 0 : index
    %217 = vector.load %arg19[%c1_217, %c0_218, %c0_219] : memref<3x128x64xf32, #tpu.memory_space<vmem>>, vector<1x128x64xf32>
    %218 = vector.shape_cast %217 : vector<1x128x64xf32> to vector<128x64xf32>
    %cst_220 = arith.constant dense<0.000000e+00> : vector<128x256xf32>
    %219 = tpu.matmul %218, %216, %cst_220 {dimension_numbers = #tpu.dot_dimension_numbers<[1], [0], [0], [1], [0, 0, 1, 1], [], []>} : vector<128x64xf32>, vector<64x256xf32>, vector<128x256xf32> -> vector<128x256xf32>
    %c0_221 = arith.constant 0 : index
    %c0_222 = arith.constant 0 : index
    %220 = vector.load %arg29[%c0_221, %c0_222] : memref<128x256xf32, #tpu.memory_space<vmem>>, vector<128x256xf32>
    %221 = arith.addf %220, %219 : vector<128x256xf32>
    %c0_223 = arith.constant 0 : index
    %c0_224 = arith.constant 0 : index
    %222 = vector.load %arg29[%c0_223, %c0_224] : memref<128x256xf32, #tpu.memory_space<vmem>>, vector<128x256xf32>
    tpu.vector_store %arg29[%c0_223, %c0_224], %221 {strides = array<i32>} : memref<128x256xf32, #tpu.memory_space<vmem>>, vector<128x256xf32>,
    %c0_225 = arith.constant 0 : index
    %c0_226 = arith.constant 0 : index
    %223 = vector.load %arg28[%c0_225, %c0_226] : memref<64x256xf32, #tpu.memory_space<vmem>>, vector<64x256xf32>
    %c2_227 = arith.constant 2 : index
    %c0_228 = arith.constant 0 : index
    %c0_229 = arith.constant 0 : index
    %224 = vector.load %arg20[%c2_227, %c0_228, %c0_229] : memref<3x256x256xf32, #tpu.memory_space<vmem>>, vector<1x256x256xf32>
    %225 = vector.shape_cast %224 : vector<1x256x256xf32> to vector<256x256xf32>
    %cst_230 = arith.constant dense<0.000000e+00> : vector<64x256xf32>
    %226 = tpu.matmul %223, %225, %cst_230 {dimension_numbers = #tpu.dot_dimension_numbers<[1], [0], [0], [1], [0, 0, 1, 1], [], []>} : vector<64x256xf32>, vector<256x256xf32>, vector<64x256xf32> -> vector<64x256xf32>
    %c2_231 = arith.constant 2 : index
    %c0_232 = arith.constant 0 : index
    %c0_233 = arith.constant 0 : index
    %227 = vector.load %arg19[%c2_231, %c0_232, %c0_233] : memref<3x128x64xf32, #tpu.memory_space<vmem>>, vector<1x128x64xf32>
    %228 = vector.shape_cast %227 : vector<1x128x64xf32> to vector<128x64xf32>
    %cst_234 = arith.constant dense<0.000000e+00> : vector<128x256xf32>
    %229 = tpu.matmul %228, %226, %cst_234 {dimension_numbers = #tpu.dot_dimension_numbers<[1], [0], [0], [1], [0, 0, 1, 1], [], []>} : vector<128x64xf32>, vector<64x256xf32>, vector<128x256xf32> -> vector<128x256xf32>
    %c0_235 = arith.constant 0 : index
    %c0_236 = arith.constant 0 : index
    %230 = vector.load %arg29[%c0_235, %c0_236] : memref<128x256xf32, #tpu.memory_space<vmem>>, vector<128x256xf32>
    %231 = arith.addf %230, %229 : vector<128x256xf32>
    %c0_237 = arith.constant 0 : index
    %c0_238 = arith.constant 0 : index
    %232 = vector.load %arg29[%c0_237, %c0_238] : memref<128x256xf32, #tpu.memory_space<vmem>>, vector<128x256xf32>
    tpu.vector_store %arg29[%c0_237, %c0_238], %231 {strides = array<i32>} : memref<128x256xf32, #tpu.memory_space<vmem>>, vector<128x256xf32>,
    %c0_239 = arith.constant 0 : index
    %c0_240 = arith.constant 0 : index
    %233 = vector.load %arg29[%c0_239, %c0_240] : memref<128x256xf32, #tpu.memory_space<vmem>>, vector<128x256xf32>
    %cst_241 = arith.constant dense<0.000000e+00> : vector<256xf32>
    %234 = vector.multi_reduction <add>, %233, %cst_241 [0] : vector<128x256xf32> to vector<256xf32>
    %235 = vector.shape_cast %234 : vector<256xf32> to vector<1x256xf32>
    %c0_242 = arith.constant 0 : index
    %c0_243 = arith.constant 0 : index
    %236 = vector.load %arg21[%c0_242, %c0_243] : memref<256x256xf32, #tpu.memory_space<vmem>>, vector<256x256xf32>
    %cst_244 = arith.constant dense<0.000000e+00> : vector<1x256xf32>
    %237 = tpu.matmul %235, %236, %cst_244 {dimension_numbers = #tpu.dot_dimension_numbers<[1], [0], [0], [1], [0, 0, 1, 1], [], []>} : vector<1x256xf32>, vector<256x256xf32>, vector<1x256xf32> -> vector<1x256xf32>
    %238 = vector.broadcast %237 : vector<1x256xf32> to vector<128x256xf32>
    %239 = arith.subf %233, %238 : vector<128x256xf32>
    %240 = arith.mulf %239, %239 : vector<128x256xf32>
    %cst_245 = arith.constant dense<0.000000e+00> : vector<256xf32>
    %241 = vector.multi_reduction <add>, %240, %cst_245 [0] : vector<128x256xf32> to vector<256xf32>
    %242 = vector.shape_cast %241 : vector<256xf32> to vector<1x256xf32>
    %c0_246 = arith.constant 0 : index
    %c0_247 = arith.constant 0 : index
    %243 = vector.load %arg21[%c0_246, %c0_247] : memref<256x256xf32, #tpu.memory_space<vmem>>, vector<256x256xf32>
    %cst_248 = arith.constant dense<0.000000e+00> : vector<1x256xf32>
    %244 = tpu.matmul %242, %243, %cst_248 {dimension_numbers = #tpu.dot_dimension_numbers<[1], [0], [0], [1], [0, 0, 1, 1], [], []>} : vector<1x256xf32>, vector<256x256xf32>, vector<1x256xf32> -> vector<1x256xf32>
    %c0_249 = arith.constant 0 : index
    %c0_250 = arith.constant 0 : index
    %245 = vector.load %arg22[%c0_249, %c0_250] : memref<2x256xf32, #tpu.memory_space<vmem>>, vector<1x256xf32>
    %cst_251 = arith.constant 9.99999974E-6 : f32
    %246 = vector.broadcast %cst_251 : f32 to vector<1x256xf32>
    %247 = arith.addf %244, %246 : vector<1x256xf32>
    %248 = math.rsqrt %247 : vector<1x256xf32>
    %249 = arith.mulf %245, %248 : vector<1x256xf32>
    %250 = vector.broadcast %249 : vector<1x256xf32> to vector<128x256xf32>
    %251 = arith.mulf %239, %250 : vector<128x256xf32>
    %c1_252 = arith.constant 1 : index
    %c0_253 = arith.constant 0 : index
    %252 = vector.load %arg22[%c1_252, %c0_253] : memref<2x256xf32, #tpu.memory_space<vmem>>, vector<1x256xf32>
    %253 = vector.broadcast %252 : vector<1x256xf32> to vector<128x256xf32>
    %254 = arith.addf %251, %253 : vector<128x256xf32>
    %cst_254 = arith.constant 0.000000e+00 : f32
    %255 = vector.broadcast %cst_254 : f32 to vector<128x256xf32>
    %256 = arith.maximumf %254, %255 : vector<128x256xf32>
    %c0_255 = arith.constant 0 : index
    %c0_256 = arith.constant 0 : index
    %257 = vector.load %arg29[%c0_255, %c0_256] : memref<128x256xf32, #tpu.memory_space<vmem>>, vector<128x256xf32>
    tpu.vector_store %arg29[%c0_255, %c0_256], %256 {strides = array<i32>} : memref<128x256xf32, #tpu.memory_space<vmem>>, vector<128x256xf32>,
    %c0_257 = arith.constant 0 : index
    %c0_258 = arith.constant 0 : index
    %258 = vector.load %arg29[%c0_257, %c0_258] : memref<128x256xf32, #tpu.memory_space<vmem>>, vector<128x256xf32>
    %c0_259 = arith.constant 0 : index
    %c0_260 = arith.constant 0 : index
    %c0_261 = arith.constant 0 : index
    %259 = vector.load %arg24[%c0_259, %c0_260, %c0_261] : memref<3x256x192xf32, #tpu.memory_space<vmem>>, vector<1x256x192xf32>
    %260 = vector.shape_cast %259 : vector<1x256x192xf32> to vector<256x192xf32>
    %cst_262 = arith.constant dense<0.000000e+00> : vector<128x192xf32>
    %261 = tpu.matmul %258, %260, %cst_262 {dimension_numbers = #tpu.dot_dimension_numbers<[1], [0], [0], [1], [0, 0, 1, 1], [], []>} : vector<128x256xf32>, vector<256x192xf32>, vector<128x192xf32> -> vector<128x192xf32>
    %c0_263 = arith.constant 0 : index
    %c0_264 = arith.constant 0 : index
    %c0_265 = arith.constant 0 : index
    %262 = vector.load %arg23[%c0_263, %c0_264, %c0_265] : memref<3x128x128xf32, #tpu.memory_space<vmem>>, vector<1x128x128xf32>
    %263 = vector.shape_cast %262 : vector<1x128x128xf32> to vector<128x128xf32>
    %cst_266 = arith.constant dense<0.000000e+00> : vector<128x192xf32>
    %264 = tpu.matmul %263, %261, %cst_266 {dimension_numbers = #tpu.dot_dimension_numbers<[1], [0], [0], [1], [0, 0, 1, 1], [], []>} : vector<128x128xf32>, vector<128x192xf32>, vector<128x192xf32> -> vector<128x192xf32>
    %c0_267 = arith.constant 0 : index
    %c0_268 = arith.constant 0 : index
    %265 = vector.load %arg30[%c0_267, %c0_268] : memref<128x192xf32, #tpu.memory_space<vmem>>, vector<128x192xf32>
    tpu.vector_store %arg30[%c0_267, %c0_268], %264 {strides = array<i32>} : memref<128x192xf32, #tpu.memory_space<vmem>>, vector<128x192xf32>,
    %c0_269 = arith.constant 0 : index
    %c0_270 = arith.constant 0 : index
    %266 = vector.load %arg29[%c0_269, %c0_270] : memref<128x256xf32, #tpu.memory_space<vmem>>, vector<128x256xf32>
    %c1_271 = arith.constant 1 : index
    %c0_272 = arith.constant 0 : index
    %c0_273 = arith.constant 0 : index
    %267 = vector.load %arg24[%c1_271, %c0_272, %c0_273] : memref<3x256x192xf32, #tpu.memory_space<vmem>>, vector<1x256x192xf32>
    %268 = vector.shape_cast %267 : vector<1x256x192xf32> to vector<256x192xf32>
    %cst_274 = arith.constant dense<0.000000e+00> : vector<128x192xf32>
    %269 = tpu.matmul %266, %268, %cst_274 {dimension_numbers = #tpu.dot_dimension_numbers<[1], [0], [0], [1], [0, 0, 1, 1], [], []>} : vector<128x256xf32>, vector<256x192xf32>, vector<128x192xf32> -> vector<128x192xf32>
    %c1_275 = arith.constant 1 : index
    %c0_276 = arith.constant 0 : index
    %c0_277 = arith.constant 0 : index
    %270 = vector.load %arg23[%c1_275, %c0_276, %c0_277] : memref<3x128x128xf32, #tpu.memory_space<vmem>>, vector<1x128x128xf32>
    %271 = vector.shape_cast %270 : vector<1x128x128xf32> to vector<128x128xf32>
    %cst_278 = arith.constant dense<0.000000e+00> : vector<128x192xf32>
    %272 = tpu.matmul %271, %269, %cst_278 {dimension_numbers = #tpu.dot_dimension_numbers<[1], [0], [0], [1], [0, 0, 1, 1], [], []>} : vector<128x128xf32>, vector<128x192xf32>, vector<128x192xf32> -> vector<128x192xf32>
    %c0_279 = arith.constant 0 : index
    %c0_280 = arith.constant 0 : index
    %273 = vector.load %arg30[%c0_279, %c0_280] : memref<128x192xf32, #tpu.memory_space<vmem>>, vector<128x192xf32>
    %274 = arith.addf %273, %272 : vector<128x192xf32>
    %c0_281 = arith.constant 0 : index
    %c0_282 = arith.constant 0 : index
    %275 = vector.load %arg30[%c0_281, %c0_282] : memref<128x192xf32, #tpu.memory_space<vmem>>, vector<128x192xf32>
    tpu.vector_store %arg30[%c0_281, %c0_282], %274 {strides = array<i32>} : memref<128x192xf32, #tpu.memory_space<vmem>>, vector<128x192xf32>,
    %c0_283 = arith.constant 0 : index
    %c0_284 = arith.constant 0 : index
    %276 = vector.load %arg29[%c0_283, %c0_284] : memref<128x256xf32, #tpu.memory_space<vmem>>, vector<128x256xf32>
    %c2_285 = arith.constant 2 : index
    %c0_286 = arith.constant 0 : index
    %c0_287 = arith.constant 0 : index
    %277 = vector.load %arg24[%c2_285, %c0_286, %c0_287] : memref<3x256x192xf32, #tpu.memory_space<vmem>>, vector<1x256x192xf32>
    %278 = vector.shape_cast %277 : vector<1x256x192xf32> to vector<256x192xf32>
    %cst_288 = arith.constant dense<0.000000e+00> : vector<128x192xf32>
    %279 = tpu.matmul %276, %278, %cst_288 {dimension_numbers = #tpu.dot_dimension_numbers<[1], [0], [0], [1], [0, 0, 1, 1], [], []>} : vector<128x256xf32>, vector<256x192xf32>, vector<128x192xf32> -> vector<128x192xf32>
    %c2_289 = arith.constant 2 : index
    %c0_290 = arith.constant 0 : index
    %c0_291 = arith.constant 0 : index
    %280 = vector.load %arg23[%c2_289, %c0_290, %c0_291] : memref<3x128x128xf32, #tpu.memory_space<vmem>>, vector<1x128x128xf32>
    %281 = vector.shape_cast %280 : vector<1x128x128xf32> to vector<128x128xf32>
    %cst_292 = arith.constant dense<0.000000e+00> : vector<128x192xf32>
    %282 = tpu.matmul %281, %279, %cst_292 {dimension_numbers = #tpu.dot_dimension_numbers<[1], [0], [0], [1], [0, 0, 1, 1], [], []>} : vector<128x128xf32>, vector<128x192xf32>, vector<128x192xf32> -> vector<128x192xf32>
    %c0_293 = arith.constant 0 : index
    %c0_294 = arith.constant 0 : index
    %283 = vector.load %arg30[%c0_293, %c0_294] : memref<128x192xf32, #tpu.memory_space<vmem>>, vector<128x192xf32>
    %284 = arith.addf %283, %282 : vector<128x192xf32>
    %c0_295 = arith.constant 0 : index
    %c0_296 = arith.constant 0 : index
    %285 = vector.load %arg30[%c0_295, %c0_296] : memref<128x192xf32, #tpu.memory_space<vmem>>, vector<128x192xf32>
    tpu.vector_store %arg30[%c0_295, %c0_296], %284 {strides = array<i32>} : memref<128x192xf32, #tpu.memory_space<vmem>>, vector<128x192xf32>,
    %c0_297 = arith.constant 0 : index
    %c0_298 = arith.constant 0 : index
    %286 = vector.load %arg30[%c0_297, %c0_298] : memref<128x192xf32, #tpu.memory_space<vmem>>, vector<128x192xf32>
    %287 = math.tanh %286 : vector<128x192xf32>
    %288 = vector.extract_strided_slice %287 {offsets = [0, 0], sizes = [128, 64], strides = [1, 1]} : vector<128x192xf32> to vector<128x64xf32>
    %289 = vector.extract_strided_slice %288 {offsets = [0, 0], sizes = [64, 64], strides = [1, 1]} : vector<128x64xf32> to vector<64x64xf32>
    %c0_299 = arith.constant 0 : index
    %c0_300 = arith.constant 0 : index
    %c0_301 = arith.constant 0 : index
    %c0_302 = arith.constant 0 : index
    %290 = vector.load %arg25[%c0_299, %c0_300, %c0_301, %c0_302] : memref<2x3x64x64xf32, #tpu.memory_space<vmem>>, vector<1x1x64x64xf32>
    %291 = vector.shape_cast %290 : vector<1x1x64x64xf32> to vector<64x64xf32>
    %292 = vector.shape_cast %289 : vector<64x64xf32> to vector<1x1x64x64xf32>
    tpu.vector_store %arg25[%c0_299, %c0_300, %c0_301, %c0_302], %292 {strides = array<i32>} : memref<2x3x64x64xf32, #tpu.memory_space<vmem>>, vector<1x1x64x64xf32>,
    %293 = vector.extract_strided_slice %288 {offsets = [64, 0], sizes = [64, 64], strides = [1, 1]} : vector<128x64xf32> to vector<64x64xf32>
    %c1_303 = arith.constant 1 : index
    %c0_304 = arith.constant 0 : index
    %c0_305 = arith.constant 0 : index
    %c0_306 = arith.constant 0 : index
    %294 = vector.load %arg25[%c1_303, %c0_304, %c0_305, %c0_306] : memref<2x3x64x64xf32, #tpu.memory_space<vmem>>, vector<1x1x64x64xf32>
    %295 = vector.shape_cast %294 : vector<1x1x64x64xf32> to vector<64x64xf32>
    %296 = vector.shape_cast %293 : vector<64x64xf32> to vector<1x1x64x64xf32>
    tpu.vector_store %arg25[%c1_303, %c0_304, %c0_305, %c0_306], %296 {strides = array<i32>} : memref<2x3x64x64xf32, #tpu.memory_space<vmem>>, vector<1x1x64x64xf32>,
    %297 = vector.extract_strided_slice %287 {offsets = [0, 64], sizes = [128, 64], strides = [1, 1]} : vector<128x192xf32> to vector<128x64xf32>
    %298 = vector.extract_strided_slice %297 {offsets = [0, 0], sizes = [64, 64], strides = [1, 1]} : vector<128x64xf32> to vector<64x64xf32>
    %c0_307 = arith.constant 0 : index
    %c1_308 = arith.constant 1 : index
    %c0_309 = arith.constant 0 : index
    %c0_310 = arith.constant 0 : index
    %299 = vector.load %arg25[%c0_307, %c1_308, %c0_309, %c0_310] : memref<2x3x64x64xf32, #tpu.memory_space<vmem>>, vector<1x1x64x64xf32>
    %300 = vector.shape_cast %299 : vector<1x1x64x64xf32> to vector<64x64xf32>
    %301 = vector.shape_cast %298 : vector<64x64xf32> to vector<1x1x64x64xf32>
    tpu.vector_store %arg25[%c0_307, %c1_308, %c0_309, %c0_310], %301 {strides = array<i32>} : memref<2x3x64x64xf32, #tpu.memory_space<vmem>>, vector<1x1x64x64xf32>,
    %302 = vector.extract_strided_slice %297 {offsets = [64, 0], sizes = [64, 64], strides = [1, 1]} : vector<128x64xf32> to vector<64x64xf32>
    %c1_311 = arith.constant 1 : index
    %c1_312 = arith.constant 1 : index
    %c0_313 = arith.constant 0 : index
    %c0_314 = arith.constant 0 : index
    %303 = vector.load %arg25[%c1_311, %c1_312, %c0_313, %c0_314] : memref<2x3x64x64xf32, #tpu.memory_space<vmem>>, vector<1x1x64x64xf32>
    %304 = vector.shape_cast %303 : vector<1x1x64x64xf32> to vector<64x64xf32>
    %305 = vector.shape_cast %302 : vector<64x64xf32> to vector<1x1x64x64xf32>
    tpu.vector_store %arg25[%c1_311, %c1_312, %c0_313, %c0_314], %305 {strides = array<i32>} : memref<2x3x64x64xf32, #tpu.memory_space<vmem>>, vector<1x1x64x64xf32>,
    %306 = vector.extract_strided_slice %287 {offsets = [0, 128], sizes = [128, 64], strides = [1, 1]} : vector<128x192xf32> to vector<128x64xf32>
    %307 = vector.extract_strided_slice %306 {offsets = [0, 0], sizes = [64, 64], strides = [1, 1]} : vector<128x64xf32> to vector<64x64xf32>
    %c0_315 = arith.constant 0 : index
    %c2_316 = arith.constant 2 : index
    %c0_317 = arith.constant 0 : index
    %c0_318 = arith.constant 0 : index
    %308 = vector.load %arg25[%c0_315, %c2_316, %c0_317, %c0_318] : memref<2x3x64x64xf32, #tpu.memory_space<vmem>>, vector<1x1x64x64xf32>
    %309 = vector.shape_cast %308 : vector<1x1x64x64xf32> to vector<64x64xf32>
    %310 = vector.shape_cast %307 : vector<64x64xf32> to vector<1x1x64x64xf32>
    tpu.vector_store %arg25[%c0_315, %c2_316, %c0_317, %c0_318], %310 {strides = array<i32>} : memref<2x3x64x64xf32, #tpu.memory_space<vmem>>, vector<1x1x64x64xf32>,
    %311 = vector.extract_strided_slice %306 {offsets = [64, 0], sizes = [64, 64], strides = [1, 1]} : vector<128x64xf32> to vector<64x64xf32>
    %c1_319 = arith.constant 1 : index
    %c2_320 = arith.constant 2 : index
    %c0_321 = arith.constant 0 : index
    %c0_322 = arith.constant 0 : index
    %312 = vector.load %arg25[%c1_319, %c2_320, %c0_321, %c0_322] : memref<2x3x64x64xf32, #tpu.memory_space<vmem>>, vector<1x1x64x64xf32>
    %313 = vector.shape_cast %312 : vector<1x1x64x64xf32> to vector<64x64xf32>
    %314 = vector.shape_cast %311 : vector<64x64xf32> to vector<1x1x64x64xf32>
    tpu.vector_store %arg25[%c1_319, %c2_320, %c0_321, %c0_322], %314 {strides = array<i32>} : memref<2x3x64x64xf32, #tpu.memory_space<vmem>>, vector<1x1x64x64xf32>,
    return
  }
}

</mosaic_0001>

<bundles_post_ra>
// kernel: image_generator_forward.1
= control target key start
LH: loop header
LB: loop body
LE: loop exit
PB: predicated region body
PF: predicated region fallthrough
CT: control target
= control target key end

     0   :  { %s17018_s0 = inlined_call_operand.vmem [shape: f32[2,28], index: 0, kind: input, shape index: {}]   ;;  %s17019_s1 = inlined_call_operand.vmem [shape: f32[2,300], index: 1, kind: input, shape index: {}]   ;;  %s17020_s2 = inlined_call_operand.hbm [shape: f32[28,1024], index: 2, kind: input, shape index: {}]   ;;  %s17021_s3 = inlined_call_operand.vmem [shape: f32[300,1024], index: 3, kind: input, shape index: {}]   ;;  %s17022_s4 = inlined_call_operand.vmem [shape: f32[1,1024], index: 4, kind: input, shape index: {}]   ;;  %s17023_s5 = inlined_call_operand.vmem [shape: f32[1,1024], index: 5, kind: input, shape index: {}]   ;;  %s17024_s6 = inlined_call_operand.vmem [shape: f32[4,8,2], index: 6, kind: input, shape index: {}]   ;;  %s17025_s7 = inlined_call_operand.vmem [shape: f32[3,16,8], index: 7, kind: input, shape index: {}]   ;;  %s17026_s8 = inlined_call_operand.hbm [shape: f32[3,256,256], index: 8, kind: input, shape index: {}]   ;;  %s17027_s9 = inlined_call_operand.vmem [shape: f32[256,256], index: 9, kind: input, shape index: {}]   ;;  %s17028_s10 = inlined_call_operand.vmem [shape: f32[2,256], index: 10, kind: input, shape index: {}]   ;;  %s17029_s11 = inlined_call_operand.vmem [shape: f32[3,32,16], index: 11, kind: input, shape index: {}]   ;;  %s17030_s12 = inlined_call_operand.hbm [shape: f32[3,256,256], index: 12, kind: input, shape index: {}]   ;;  %s17031_s13 = inlined_call_operand.vmem [shape: f32[256,256], index: 13, kind: input, shape index: {}]   ;;  %s17032_s14 = inlined_call_operand.vmem [shape: f32[2,256], index: 14, kind: input, shape index: {}]   ;;  %s17033_s15 = inlined_call_operand.vmem [shape: f32[3,64,32], index: 15, kind: input, shape index: {}]   ;;  %s17034_s16 = inlined_call_operand.hbm [shape: f32[3,256,256], index: 16, kind: input, shape index: {}]   ;;  %s17035_s17 = inlined_call_operand.hbm [shape: f32[256,256], index: 17, kind: input, shape index: {}]   ;;  %s17036_s18 = inlined_call_operand.vmem [shape: f32[2,256], index: 18, kind: input, shape index: {}]   ;;  %s17037_s19 = inlined_call_operand.vmem [shape: f32[3,128,64], index: 19, kind: input, shape index: {}]   ;;  %s17038_s20 = inlined_call_operand.hbm [shape: f32[3,256,256], index: 20, kind: input, shape index: {}]   ;;  %s17039_s21 = inlined_call_operand.hbm [shape: f32[256,256], index: 21, kind: input, shape index: {}]   ;;  %s17040_s22 = inlined_call_operand.vmem [shape: f32[2,256], index: 22, kind: input, shape index: {}]   ;;  %s17041_s23 = inlined_call_operand.vmem [shape: f32[3,128,128], index: 23, kind: input, shape index: {}]   ;;  %s17042_s24 = inlined_call_operand.vmem [shape: f32[3,256,192], index: 24, kind: input, shape index: {}]   ;;  %s17043_s25 = inlined_call_operand.hbm [shape: f32[2,3,64,64], index: 25, kind: output, shape index: {}]  }
   0x1   :  { %17058 = sst [smem:[#allocation28_spill]] %s17018_s0 }
   0x2   :  { %17059 = sst [smem:[#allocation29_spill]] %s17019_s1 }
   0x3   :  { %17060 = sst [smem:[#allocation30_spill]] %s17020_s2 }
   0x4   :  { %17061 = sst [smem:[#allocation31_spill]] %s17021_s3 }
   0x5   :  { %17062 = sst [smem:[#allocation32_spill]] %s17022_s4 }
   0x6   :  { %17063 = sst [smem:[#allocation33_spill]] %s17023_s5 }
   0x7   :  { %17064 = sst [smem:[#allocation34_spill]] %s17024_s6 }
   0x8   :  { %17065 = sst [smem:[#allocation35_spill]] %s17025_s7 }
   0x9   :  { %17066 = sst [smem:[#allocation36_spill]] %s17026_s8 }
   0xa   :  { %17067 = sst [smem:[#allocation37_spill]] %s17027_s9 }
   0xb   :  { %17068 = sst [smem:[#allocation38_spill]] %s17041_s23 }
   0xc   :  { %17069 = sst [smem:[#allocation39_spill]] %s17043_s25 }
   0xd   :  { %30 = vsyncpa [#allocation8], 0 }
   0xe   :  { %31 = vsyncpa [#allocation11], 0 }
   0xf   :  { %32 = vsyncpa [#allocation14], 0 }
  0x10   :  { %33 = vsyncpa [#allocation17], 0 }
  0x11   :  { %34 = vsyncpa [#allocation9], 0  ;;  %s12315_s29 = smov [#allocation10]   ;;  %s17070_s7 = sld [smem:[#allocation36_spill]] }
  0x12   :  { %s66_s2 = sshll.u32 %s12315_s29, 4  ;;  %s67_s2 = int_to_ptr.vmem [resolvable:$true] %s66_s2 }
  0x17   :  { %s12129_s3 = scalar_lea.hbm %s17070_s7, 24576 }
  0x18   :  { %p12130_p0 = scmp.ne.s32.totalorder %s17070_s7, %s12129_s3  ;;  %p12133_p1 = scmp.lt.u32.totalorder %s12129_s3, %s17070_s7 }
  0x1a   :  { %p12135_p2 = pnand %p12133_p1, %p12130_p0 }
  0x1c   :  { %12138 = shalt.err (!%p12135_p2)
}
  0x1d   :  { %s12139_s4 = scalar_lea.vmem %s67_s2, 24576  ;;  %p12144_p4 = scmp.lt.s32.totalorder %s67_s2, %s67_s2 }
  0x1e   :  { %p12140_p3 = scmp.ne.s32.totalorder %s67_s2, %s12139_s4  ;;  %p12145_p5 = scmp.lt.s32.totalorder %s12139_s4, %s12139_s4 }
  0x20   :  { %p12146_p6 = por %p12145_p5, %p12144_p4 }
  0x22   :  { %p12147_p7 = pnand %p12146_p6, %p12140_p3 }
  0x24   :  { %12150 = shalt.err (!%p12147_p7)
}
  0x25   :  { %s12316_s28 = smov 256   ;;  %s12317_s9 = smov 16  }
  0x26   :  { %72 = dma.hbm_to_vmem [thread:$0]  %s17070_s7, 24576, %s67_s2, [#allocation11], %s12316_s28, %s12316_s28, %s12317_s9  }
  0x27   :  { %s12318_s29 = smov [#allocation13]   ;;  %s12319_s30 = smov [#allocation16]  }
  0x28   :  { %s102_s6 = sshll.u32 %s12318_s29, 4  ;;  %s130_s3 = sshll.u32 %s12319_s30, 4  ;;  %s103_s6 = int_to_ptr.vmem [resolvable:$true] %s102_s6  ;;  %s131_s3 = int_to_ptr.vmem [resolvable:$true] %s130_s3 }
  0x29   :  { %s12151_s8 = scalar_lea.hbm %s17034_s16, 24576 }
  0x2a   :  { %p12152_p8 = scmp.ne.s32.totalorder %s17034_s16, %s12151_s8  ;;  %p12155_p9 = scmp.lt.u32.totalorder %s12151_s8, %s17034_s16 }
  0x2c   :  { %p12157_p10 = pnand %p12155_p9, %p12152_p8 }
  0x2e   :  { %12160 = shalt.err (!%p12157_p10)
}
  0x2f   :  { %s12161_s2 = scalar_lea.vmem %s103_s6, 24576  ;;  %p12166_p12 = scmp.lt.s32.totalorder %s103_s6, %s103_s6 }
  0x30   :  { %p12162_p11 = scmp.ne.s32.totalorder %s103_s6, %s12161_s2  ;;  %p12167_p13 = scmp.lt.s32.totalorder %s12161_s2, %s12161_s2 }
  0x32   :  { %p12168_p0 = por %p12167_p13, %p12166_p12 }
  0x34   :  { %p12169_p1 = pnand %p12168_p0, %p12162_p11 }
  0x36   :  { %12172 = shalt.err (!%p12169_p1)
}
  0x37   :  { %108 = dma.hbm_to_vmem [thread:$0]  %s17034_s16, 24576, %s103_s6, [#allocation14], %s12316_s28, %s12316_s28, %s12317_s9  }
  0x38   :  { %s12173_s25 = scalar_lea.hbm %s17038_s20, 24576 }
  0x39   :  { %p12174_p2 = scmp.ne.s32.totalorder %s17038_s20, %s12173_s25  ;;  %p12177_p3 = scmp.lt.u32.totalorder %s12173_s25, %s17038_s20 }
  0x3b   :  { %p12179_p4 = pnand %p12177_p3, %p12174_p2 }
  0x3d   :  { %12182 = shalt.err (!%p12179_p4)
}
  0x3e   :  { %s12183_s8 = scalar_lea.vmem %s131_s3, 24576  ;;  %p12188_p6 = scmp.lt.s32.totalorder %s131_s3, %s131_s3 }
  0x3f   :  { %p12184_p5 = scmp.ne.s32.totalorder %s131_s3, %s12183_s8  ;;  %p12189_p7 = scmp.lt.s32.totalorder %s12183_s8, %s12183_s8 }
  0x41   :  { %p12190_p8 = por %p12189_p7, %p12188_p6 }
  0x43   :  { %p12191_p9 = pnand %p12190_p8, %p12184_p5 }
  0x45   :  { %12194 = shalt.err (!%p12191_p9)
}
  0x46   :  { %136 = dma.hbm_to_vmem [thread:$0]  %s17038_s20, 24576, %s131_s3, [#allocation17], %s12316_s28, %s12316_s28, %s12317_s9  }
  0x47   :  { %s12320_s27 = smov [#allocation7]   ;;  %s17071_s5 = sld [smem:[#allocation30_spill]] }
  0x48   :  { %s44_s4 = sshll.u32 %s12320_s27, 4  ;;  %s45_s4 = int_to_ptr.vmem [resolvable:$true] %s44_s4 }
  0x4d   :  { %s12195_s0 = scalar_lea.hbm %s17071_s5, 4096 }
  0x4e   :  { %p12196_p10 = scmp.ne.s32.totalorder %s17071_s5, %s12195_s0  ;;  %p12199_p11 = scmp.lt.u32.totalorder %s12195_s0, %s17071_s5 }
  0x50   :  { %p12201_p12 = pnand %p12199_p11, %p12196_p10 }
  0x52   :  { %12204 = shalt.err (!%p12201_p12)
}
  0x53   :  { %s12205_s26 = scalar_lea.vmem %s45_s4, 4096  ;;  %p12210_p0 = scmp.lt.s32.totalorder %s45_s4, %s45_s4 }
  0x54   :  { %p12206_p13 = scmp.ne.s32.totalorder %s45_s4, %s12205_s26  ;;  %p12211_p1 = scmp.lt.s32.totalorder %s12205_s26, %s12205_s26 }
  0x56   :  { %p12212_p2 = por %p12211_p1, %p12210_p0 }
  0x58   :  { %p12213_p3 = pnand %p12212_p2, %p12206_p13 }
  0x5a   :  { %12216 = shalt.err (!%p12213_p3)
}
  0x5b   :  { %s12321_s20 = smov 1024   ;;  %s12322_s3 = smov 64  }
  0x5c   :  { %50 = dma.hbm_to_vmem [thread:$0]  %s17071_s5, 4096, %s45_s4, [#allocation8], %s12321_s20, %s12321_s20, %s12322_s3  }
  0x5d   :  { %s12323_s16 = smov [#allocation12]   ;;  %s12324_s27 = smov [#allocation15]  }
  0x5e   :  { %s84_s6 = sshll.u32 %s12323_s16, 4  ;;  %s114_s2 = sshll.u32 %s12324_s27, 4  ;;  %s85_s6 = int_to_ptr.vmem [resolvable:$true] %s84_s6  ;;  %s12521_s2 = int_to_ptr.vmem [resolvable:$true] %s114_s2 }
  0x5f   :  { %s12217_s23 = scalar_lea.hbm %s17030_s12, 24576 }
  0x60   :  { %p12218_p4 = scmp.ne.s32.totalorder %s17030_s12, %s12217_s23  ;;  %p12221_p5 = scmp.lt.u32.totalorder %s12217_s23, %s17030_s12 }
  0x62   :  { %p12223_p6 = pnand %p12221_p5, %p12218_p4 }
  0x64   :  { %12226 = shalt.err (!%p12223_p6)
}
  0x65   :  { %s12227_s4 = scalar_lea.vmem %s85_s6, 24576  ;;  %p12232_p8 = scmp.lt.s32.totalorder %s85_s6, %s85_s6 }
  0x66   :  { %p12228_p7 = scmp.ne.s32.totalorder %s85_s6, %s12227_s4  ;;  %p12233_p9 = scmp.lt.s32.totalorder %s12227_s4, %s12227_s4 }
  0x68   :  { %p12234_p10 = por %p12233_p9, %p12232_p8 }
  0x6a   :  { %p12235_p11 = pnand %p12234_p10, %p12228_p7 }
  0x6c   :  { %12238 = shalt.err (!%p12235_p11)
}
  0x6d   :  { %90 = dma.hbm_to_vmem [thread:$0]  %s17030_s12, 24576, %s85_s6, [#allocation11], %s12316_s28, %s12316_s28, %s12317_s9  }
  0x6e   :  { %s12239_s16 = scalar_lea.hbm %s17035_s17, 8192 }
  0x6f   :  { %p12240_p12 = scmp.ne.s32.totalorder %s17035_s17, %s12239_s16  ;;  %p12243_p13 = scmp.lt.u32.totalorder %s12239_s16, %s17035_s17 }
  0x71   :  { %p12245_p0 = pnand %p12243_p13, %p12240_p12 }
  0x73   :  { %12248 = shalt.err (!%p12245_p0)
}
  0x74   :  { %s12249_s25 = scalar_lea.vmem %s12521_s2, 8192  ;;  %p12254_p2 = scmp.lt.s32.totalorder %s12521_s2, %s12521_s2 }
  0x75   :  { %p12250_p1 = scmp.ne.s32.totalorder %s12521_s2, %s12249_s25  ;;  %p12255_p3 = scmp.lt.s32.totalorder %s12249_s25, %s12249_s25 }
  0x77   :  { %p12256_p4 = por %p12255_p3, %p12254_p2 }
  0x79   :  { %p12257_p5 = pnand %p12256_p4, %p12250_p1 }
  0x7b   :  { %12260 = shalt.err (!%p12257_p5)
}
  0x7c   :  { %120 = dma.hbm_to_vmem [thread:$0]  %s17035_s17, 8192, %s12521_s2, [#allocation14], %s12316_s28, %s12316_s28, %s12317_s9  }
  0x7d   :  { %s12325_s29 = smov [#allocation18]   ;;  %s12261_s5 = scalar_lea.hbm %s17039_s21, 8192 }
  0x7e   :  { %s142_s30 = sshll.u32 %s12325_s29, 4  ;;  %p12262_p6 = scmp.ne.s32.totalorder %s17039_s21, %s12261_s5  ;;  %s143_s30 = int_to_ptr.vmem [resolvable:$true] %s142_s30 }
  0x7f   :  { %p12265_p7 = scmp.lt.u32.totalorder %s12261_s5, %s17039_s21 }
  0x81   :  { %p12267_p8 = pnand %p12265_p7, %p12262_p6 }
  0x83   :  { %12270 = shalt.err (!%p12267_p8)
}
  0x84   :  { %s12271_s27 = scalar_lea.vmem %s143_s30, 8192  ;;  %p12276_p10 = scmp.lt.s32.totalorder %s143_s30, %s143_s30 }
  0x85   :  { %p12272_p9 = scmp.ne.s32.totalorder %s143_s30, %s12271_s27  ;;  %p12277_p11 = scmp.lt.s32.totalorder %s12271_s27, %s12271_s27 }
  0x87   :  { %p12278_p12 = por %p12277_p11, %p12276_p10 }
  0x89   :  { %p12279_p13 = pnand %p12278_p12, %p12272_p9 }
  0x8b   :  { %12282 = shalt.err (!%p12279_p13)
}
  0x8c   :  { %148 = dma.hbm_to_vmem [thread:$0]  %s17039_s21, 8192, %s143_s30, [#allocation17], %s12316_s28, %s12316_s28, %s12317_s9  }
  0x8d   :  { %12305 = dma.done.wait [#allocation8], 4096  }
  0x8e   :  { %12306 = vsyncadd [#allocation8], 4294963200 }
  0x8f   :  { %12307 = dma.done.wait [#allocation11], 49152  }
  0x90   :  { %12308 = vsyncadd [#allocation11], 4294918144 }
  0x91   :  { %12309 = dma.done.wait [#allocation14], 32768  }
  0x92   :  { %12310 = vsyncadd [#allocation14], 4294934528 }
  0x93   :  { %12311 = dma.done.wait [#allocation17], 32768  }
  0x94   :  { %12312 = vsyncadd [#allocation17], 4294934528  ;;  %s17072_s23 = sld [smem:[#allocation31_spill]]  ;;  %s17074_s17 = sld [smem:[#allocation29_spill]]  ;;  %vm536_vm0 = vcmask 1043456   ;;  %vm12327_vm1 = vmmov 1  }
  0x95   :  { %vm13039_vm2 = vmpackc.low %vm536_vm0, %vm12327_vm1  ;;  %vm533_vm3 = vcmask 359424   ;;  %s17077_s5 = sld [smem:[#allocation28_spill]]  ;;  %vm1129_vm4 = vcmask 228352   ;;  %vm1441_vm5 = vcmask 1041408   ;;  %s17097_s8 = sld [smem:[#allocation32_spill]]  ;;  %vm1773_vm6 = vcmask 15360  }
  0x96   :  { %s17099_s0 = sld [smem:[#allocation34_spill]]  ;;  %s17101_s26 = sld [smem:[#allocation35_spill]]  ;;  %vm2239_vm7 = vcmask 64512   ;;  %vm3260_vm8 = vcmask 130048   ;;  %vm4443_vm9 = vcmask 261120   ;;  %vm5942_vm10 = vcmask 523264  }
  0x97   :  { %s17102_s1 = sld [smem:[#allocation37_spill]] }
  0x9a   :  { %v211_v0 = vld [vmem:[%s17072_s23 + $0x8] sm:$0xff]  ;;  %v213_v2 = vld [vmem:[%s17072_s23 + $0x18] sm:$0xff]  ;;  %v210_v5 = vld [vmem:[%s17072_s23] sm:$0xff] }
  0x9b   :  { %v219_v1 = vld [vmem:[%s17072_s23 + $0x48] sm:$0xff]  ;;  %v221_v4 = vld [vmem:[%s17072_s23 + $0x58] sm:$0xff]  ;;  %v218_v6 = vld [vmem:[%s17072_s23 + $0x40] sm:$0xff] }
  0x9c   :  { %v9868_v3 = vpack.c.bf16 %v219_v1, %v211_v0  ;;  %v9946_v7 = vpack.c.bf16 %v221_v4, %v213_v2  ;;  %v9870_v8 = vpack.c.bf16 %v218_v6, %v210_v5  ;;  %v212_v9 = vld [vmem:[%s17072_s23 + $0x10] sm:$0xff]  ;;  %v227_v11 = vld [vmem:[%s17072_s23 + $0x88] sm:$0xff]  ;;  %v229_v14 = vld [vmem:[%s17072_s23 + $0x98] sm:$0xff] }
  0x9d   :  { %v220_v10 = vld [vmem:[%s17072_s23 + $0x50] sm:$0xff]  ;;  %v235_v13 = vld [vmem:[%s17072_s23 + $0xc8] sm:$0xff]  ;;  %v237_v15 = vld [vmem:[%s17072_s23 + $0xd8] sm:$0xff] }
  0x9e   :  { %9869 = vmatprep.subr.bf16.mxu0 %v9868_v3  ;;  %v9948_v12 = vpack.c.bf16 %v220_v10, %v212_v9  ;;  %9947 = vmatprep.subr.bf16.mxu1 %v9946_v7  ;;  %v9872_v16 = vpack.c.bf16 %v235_v13, %v227_v11  ;;  %v9950_v17 = vpack.c.bf16 %v237_v15, %v229_v14  ;;  %v226_v18 = vld [vmem:[%s17072_s23 + $0x80] sm:$0xff]  ;;  %v228_v20 = vld [vmem:[%s17072_s23 + $0x90] sm:$0xff]  ;;  %v243_v23 = vld [vmem:[%s17072_s23 + $0x108] sm:$0xff] }
  0x9f   :  { %9871 = vmatpush1.bf16.msra.mxu0 %v9870_v8  ;;  %v234_v19 = vld [vmem:[%s17072_s23 + $0xc0] sm:$0xff]  ;;  %v236_v22 = vld [vmem:[%s17072_s23 + $0xd0] sm:$0xff]  ;;  %v251_v24 = vld [vmem:[%s17072_s23 + $0x148] sm:$0xff] }
  0xa0   :  { %9949 = vmatpush1.bf16.msra.mxu1 %v9948_v12  ;;  %v9874_v21 = vpack.c.bf16 %v234_v19, %v226_v18  ;;  %9873 = vmatprep.subr.bf16.mxu0 %v9872_v16  ;;  %v9952_v25 = vpack.c.bf16 %v236_v22, %v228_v20  ;;  %v9876_v26 = vpack.c.bf16 %v251_v24, %v243_v23  ;;  %v245_v27 = vld [vmem:[%s17072_s23 + $0x118] sm:$0xff]  ;;  %v242_v29 = vld [vmem:[%s17072_s23 + $0x100] sm:$0xff]  ;;  %v244_v32 = vld [vmem:[%s17072_s23 + $0x110] sm:$0xff] }
  0xa1   :  { %9951 = vmatprep.subr.bf16.mxu1 %v9950_v17  ;;  %v253_v28 = vld [vmem:[%s17072_s23 + $0x158] sm:$0xff]  ;;  %v250_v31 = vld [vmem:[%s17072_s23 + $0x140] sm:$0xff]  ;;  %v252_v33 = vld [vmem:[%s17072_s23 + $0x150] sm:$0xff] }
  0xa2   :  { %v9954_v30 = vpack.c.bf16 %v253_v28, %v245_v27  ;;  %v9878_v34 = vpack.c.bf16 %v250_v31, %v242_v29  ;;  %v259_v35 = vld [vmem:[%s17072_s23 + $0x188] sm:$0xff]  ;;  %v261_v37 = vld [vmem:[%s17072_s23 + $0x198] sm:$0xff]  ;;  %v9956_v38 = vpack.c.bf16 %v252_v33, %v244_v32  ;;  %v258_v41 = vld [vmem:[%s17072_s23 + $0x180] sm:$0xff] }
  0xa3   :  { %9875 = vmatpush1.bf16.msra.mxu0 %v9874_v21  ;;  %v267_v36 = vld [vmem:[%s17072_s23 + $0x1c8] sm:$0xff]  ;;  %v269_v40 = vld [vmem:[%s17072_s23 + $0x1d8] sm:$0xff]  ;;  %v266_v42 = vld [vmem:[%s17072_s23 + $0x1c0] sm:$0xff] }
  0xa4   :  { %9953 = vmatpush1.bf16.msra.mxu1 %v9952_v25  ;;  %9877 = vmatprep.subr.bf16.mxu0 %v9876_v26  ;;  %v9880_v39 = vpack.c.bf16 %v267_v36, %v259_v35  ;;  %v9958_v43 = vpack.c.bf16 %v269_v40, %v261_v37  ;;  %v260_v44 = vld [vmem:[%s17072_s23 + $0x190] sm:$0xff]  ;;  %v275_v46 = vld [vmem:[%s17072_s23 + $0x208] sm:$0xff]  ;;  %v277_v48 = vld [vmem:[%s17072_s23 + $0x218] sm:$0xff]  ;;  %v9882_v50 = vpack.c.bf16 %v266_v42, %v258_v41 }
  0xa5   :  { %9955 = vmatprep.subr.bf16.mxu1 %v9954_v30  ;;  %v268_v45 = vld [vmem:[%s17072_s23 + $0x1d0] sm:$0xff]  ;;  %v283_v47 = vld [vmem:[%s17072_s23 + $0x248] sm:$0xff]  ;;  %v285_v49 = vld [vmem:[%s17072_s23 + $0x258] sm:$0xff] }
  0xa6   :  { %v9960_v51 = vpack.c.bf16 %v268_v45, %v260_v44  ;;  %v9884_v52 = vpack.c.bf16 %v283_v47, %v275_v46  ;;  %v274_v53 = vld [vmem:[%s17072_s23 + $0x200] sm:$0xff]  ;;  %v276_v55 = vld [vmem:[%s17072_s23 + $0x210] sm:$0xff]  ;;  %v9962_v56 = vpack.c.bf16 %v285_v49, %v277_v48  ;;  %v291_v58 = vld [vmem:[%s17072_s23 + $0x288] sm:$0xff]  ;;  %v12326_v46 = vmov 1983009808  }
  0xa7   :  { %9879 = vmatpush1.bf16.msra.mxu0 %v9878_v34  ;;  %v282_v54 = vld [vmem:[%s17072_s23 + $0x240] sm:$0xff]  ;;  %v284_v57 = vld [vmem:[%s17072_s23 + $0x250] sm:$0xff]  ;;  %v299_v59 = vld [vmem:[%s17072_s23 + $0x2c8] sm:$0xff]  ;;  %v517_v47 = vunpack.c.l.s4 %v12326_v46  ;;  %v519_v48 = vlaneseq }
  0xa8   :  { %9957 = vmatpush1.bf16.msra.mxu1 %v9956_v38  ;;  %9881 = vmatprep.subr.bf16.mxu0 %v9880_v39  ;;  %v293_v60 = vld [vmem:[%s17072_s23 + $0x298] sm:$0xff]  ;;  %v9886_v62 = vpack.c.bf16 %v282_v54, %v274_v53  ;;  %v9964_v63 = vpack.c.bf16 %v284_v57, %v276_v55  ;;  %v9888_v0 = vpack.c.bf16 %v299_v59, %v291_v58  ;;  %v290_v1 = vld [vmem:[%s17072_s23 + $0x280] sm:$0xff]  ;;  %v292_v3 = vld [vmem:[%s17072_s23 + $0x290] sm:$0xff] }
  0xa9   :  { %9959 = vmatprep.subr.bf16.mxu1 %v9958_v43  ;;  %v301_v61 = vld [vmem:[%s17072_s23 + $0x2d8] sm:$0xff]  ;;  %v298_v2 = vld [vmem:[%s17072_s23 + $0x2c0] sm:$0xff]  ;;  %v300_v5 = vld [vmem:[%s17072_s23 + $0x2d0] sm:$0xff] }
  0xaa   :  { %v9966_v4 = vpack.c.bf16 %v301_v61, %v293_v60  ;;  %v307_v6 = vld [vmem:[%s17072_s23 + $0x308] sm:$0xff]  ;;  %v309_v8 = vld [vmem:[%s17072_s23 + $0x318] sm:$0xff]  ;;  %v9890_v10 = vpack.c.bf16 %v298_v2, %v290_v1  ;;  %v9968_v11 = vpack.c.bf16 %v300_v5, %v292_v3  ;;  %v306_v13 = vld [vmem:[%s17072_s23 + $0x300] sm:$0xff]  ;;  %v518_v61 = vunpack.c.0.s8 %v517_v47 }
  0xab   :  { %9883 = vmatpush1.bf16.msra.mxu0 %v9882_v50  ;;  %v315_v7 = vld [vmem:[%s17072_s23 + $0x348] sm:$0xff]  ;;  %v317_v9 = vld [vmem:[%s17072_s23 + $0x358] sm:$0xff]  ;;  %v314_v14 = vld [vmem:[%s17072_s23 + $0x340] sm:$0xff] }
  0xac   :  { %9961 = vmatpush1.bf16.msra.mxu1 %v9960_v51  ;;  %9885 = vmatprep.subr.bf16.mxu0 %v9884_v52  ;;  %v9892_v12 = vpack.c.bf16 %v315_v7, %v307_v6  ;;  %v308_v15 = vld [vmem:[%s17072_s23 + $0x310] sm:$0xff]  ;;  %v9970_v16 = vpack.c.bf16 %v317_v9, %v309_v8  ;;  %v323_v18 = vld [vmem:[%s17072_s23 + $0x388] sm:$0xff]  ;;  %v325_v20 = vld [vmem:[%s17072_s23 + $0x398] sm:$0xff]  ;;  %v9894_v22 = vpack.c.bf16 %v314_v14, %v306_v13 }
  0xad   :  { %9963 = vmatprep.subr.bf16.mxu1 %v9962_v56  ;;  %v316_v17 = vld [vmem:[%s17072_s23 + $0x350] sm:$0xff]  ;;  %v331_v19 = vld [vmem:[%s17072_s23 + $0x3c8] sm:$0xff]  ;;  %v333_v21 = vld [vmem:[%s17072_s23 + $0x3d8] sm:$0xff] }
  0xae   :  { %v9972_v23 = vpack.c.bf16 %v316_v17, %v308_v15  ;;  %v9896_v24 = vpack.c.bf16 %v331_v19, %v323_v18  ;;  %v322_v25 = vld [vmem:[%s17072_s23 + $0x380] sm:$0xff]  ;;  %v324_v27 = vld [vmem:[%s17072_s23 + $0x390] sm:$0xff]  ;;  %v9974_v28 = vpack.c.bf16 %v333_v21, %v325_v20  ;;  %v339_v30 = vld [vmem:[%s17072_s23 + $0x408] sm:$0xff] }
  0xaf   :  { %9887 = vmatpush1.bf16.msra.mxu0 %v9886_v62  ;;  %v330_v26 = vld [vmem:[%s17072_s23 + $0x3c0] sm:$0xff]  ;;  %v332_v29 = vld [vmem:[%s17072_s23 + $0x3d0] sm:$0xff]  ;;  %v347_v31 = vld [vmem:[%s17072_s23 + $0x448] sm:$0xff]  ;;  %v12825_v62 = vshrl.u32 %v519_v48, 7 }
  0xb0   :  { %9965 = vmatpush1.bf16.msra.mxu1 %v9964_v63  ;;  %9889 = vmatprep.subr.bf16.mxu0 %v9888_v0  ;;  %v341_v32 = vld [vmem:[%s17072_s23 + $0x418] sm:$0xff]  ;;  %v9898_v34 = vpack.c.bf16 %v330_v26, %v322_v25  ;;  %v9976_v35 = vpack.c.bf16 %v332_v29, %v324_v27  ;;  %v9900_v36 = vpack.c.bf16 %v347_v31, %v339_v30  ;;  %v338_v37 = vld [vmem:[%s17072_s23 + $0x400] sm:$0xff]  ;;  %v340_v39 = vld [vmem:[%s17072_s23 + $0x410] sm:$0xff] }
  0xb1   :  { %9967 = vmatprep.subr.bf16.mxu1 %v9966_v4  ;;  %v349_v33 = vld [vmem:[%s17072_s23 + $0x458] sm:$0xff]  ;;  %v346_v38 = vld [vmem:[%s17072_s23 + $0x440] sm:$0xff]  ;;  %v348_v41 = vld [vmem:[%s17072_s23 + $0x450] sm:$0xff]  ;;  %17073 = vst [vmem:[#allocation25_spill] sm:$0xff] %v12825_v62 }
  0xb2   :  { %v9978_v40 = vpack.c.bf16 %v349_v33, %v341_v32  ;;  %v355_v42 = vld [vmem:[%s17072_s23 + $0x488] sm:$0xff]  ;;  %v357_v44 = vld [vmem:[%s17072_s23 + $0x498] sm:$0xff]  ;;  %v9902_v49 = vpack.c.bf16 %v346_v38, %v338_v37  ;;  %v9980_v50 = vpack.c.bf16 %v348_v41, %v340_v39  ;;  %v354_v52 = vld [vmem:[%s17072_s23 + $0x480] sm:$0xff] }
  0xb3   :  { %9891 = vmatpush1.bf16.msra.mxu0 %v9890_v10  ;;  %v363_v43 = vld [vmem:[%s17072_s23 + $0x4c8] sm:$0xff]  ;;  %v365_v45 = vld [vmem:[%s17072_s23 + $0x4d8] sm:$0xff]  ;;  %v362_v53 = vld [vmem:[%s17072_s23 + $0x4c0] sm:$0xff] }
  0xb4   :  { %9969 = vmatpush1.bf16.msra.mxu1 %v9968_v11  ;;  %9893 = vmatprep.subr.bf16.mxu0 %v9892_v12  ;;  %v9904_v51 = vpack.c.bf16 %v363_v43, %v355_v42  ;;  %v356_v54 = vld [vmem:[%s17072_s23 + $0x490] sm:$0xff]  ;;  %v9982_v55 = vpack.c.bf16 %v365_v45, %v357_v44  ;;  %v371_v57 = vld [vmem:[%s17072_s23 + $0x508] sm:$0xff]  ;;  %v373_v59 = vld [vmem:[%s17072_s23 + $0x518] sm:$0xff]  ;;  %v9906_v63 = vpack.c.bf16 %v362_v53, %v354_v52 }
  0xb5   :  { %9971 = vmatprep.subr.bf16.mxu1 %v9970_v16  ;;  %v364_v56 = vld [vmem:[%s17072_s23 + $0x4d0] sm:$0xff]  ;;  %v379_v58 = vld [vmem:[%s17072_s23 + $0x548] sm:$0xff]  ;;  %v381_v60 = vld [vmem:[%s17072_s23 + $0x558] sm:$0xff]  ;;  %v12852_v11 = vsub.s32 %v518_v61, %v12825_v62 }
  0xb6   :  { %v9984_v0 = vpack.c.bf16 %v364_v56, %v356_v54  ;;  %v9908_v1 = vpack.c.bf16 %v379_v58, %v371_v57  ;;  %v370_v2 = vld [vmem:[%s17072_s23 + $0x500] sm:$0xff]  ;;  %v372_v4 = vld [vmem:[%s17072_s23 + $0x510] sm:$0xff]  ;;  %v9986_v5 = vpack.c.bf16 %v381_v60, %v373_v59  ;;  %v387_v7 = vld [vmem:[%s17072_s23 + $0x588] sm:$0xff] }
  0xb7   :  { %9895 = vmatpush1.bf16.msra.mxu0 %v9894_v22  ;;  %v378_v3 = vld [vmem:[%s17072_s23 + $0x540] sm:$0xff]  ;;  %v380_v6 = vld [vmem:[%s17072_s23 + $0x550] sm:$0xff]  ;;  %v395_v8 = vld [vmem:[%s17072_s23 + $0x5c8] sm:$0xff] }
  0xb8   :  { %9973 = vmatpush1.bf16.msra.mxu1 %v9972_v23  ;;  %9897 = vmatprep.subr.bf16.mxu0 %v9896_v24  ;;  %v389_v9 = vld [vmem:[%s17072_s23 + $0x598] sm:$0xff]  ;;  %v9910_v12 = vpack.c.bf16 %v378_v3, %v370_v2  ;;  %v386_v13 = vld [vmem:[%s17072_s23 + $0x580] sm:$0xff]  ;;  %v9988_v14 = vpack.c.bf16 %v380_v6, %v372_v4  ;;  %v9912_v15 = vpack.c.bf16 %v395_v8, %v387_v7  ;;  %v388_v17 = vld [vmem:[%s17072_s23 + $0x590] sm:$0xff] }
  0xb9   :  { %9975 = vmatprep.subr.bf16.mxu1 %v9974_v28  ;;  %v397_v10 = vld [vmem:[%s17072_s23 + $0x5d8] sm:$0xff]  ;;  %v394_v16 = vld [vmem:[%s17072_s23 + $0x5c0] sm:$0xff]  ;;  %v396_v18 = vld [vmem:[%s17072_s23 + $0x5d0] sm:$0xff] }
  0xba   :  { %v9990_v19 = vpack.c.bf16 %v397_v10, %v389_v9  ;;  %v403_v20 = vld [vmem:[%s17072_s23 + $0x608] sm:$0xff]  ;;  %v12875_v22 = vld [vmem:[%s17074_s17] sm:$0x3f]  ;;  %v405_v23 = vld [vmem:[%s17072_s23 + $0x618] sm:$0xff]  ;;  %v9914_v26 = vpack.c.bf16 %v394_v16, %v386_v13  ;;  %v9992_v27 = vpack.c.bf16 %v396_v18, %v388_v17  ;;  %s17098_s17 = sld [smem:[#allocation33_spill]] }
  0xbb   :  { %9899 = vmatpush1.bf16.msra.mxu0 %v9898_v34  ;;  %v411_v21 = vld [vmem:[%s17072_s23 + $0x648] sm:$0xff]  ;;  %v413_v24 = vld [vmem:[%s17072_s23 + $0x658] sm:$0xff]  ;;  %v12885_v25 = vrot.slane %v12875_v22, %v12852_v11  ;;  %v402_v29 = vld [vmem:[%s17072_s23 + $0x600] sm:$0xff] }
  0xbc   :  { %9977 = vmatpush1.bf16.msra.mxu1 %v9976_v35  ;;  %9901 = vmatprep.subr.bf16.mxu0 %v9900_v36  ;;  %v9916_v28 = vpack.c.bf16 %v411_v21, %v403_v20  ;;  %v410_v30 = vld [vmem:[%s17072_s23 + $0x640] sm:$0xff]  ;;  %v404_v31 = vld [vmem:[%s17072_s23 + $0x610] sm:$0xff]  ;;  %v9994_v33 = vpack.c.bf16 %v413_v24, %v405_v23  ;;  %v419_v35 = vld [vmem:[%s17072_s23 + $0x688] sm:$0xff] }
  0xbd   :  { %9979 = vmatprep.subr.bf16.mxu1 %v9978_v40  ;;  %v12898_v32 = vcombine.high %v12885_v25, %v12885_v25  ;;  %v412_v34 = vld [vmem:[%s17072_s23 + $0x650] sm:$0xff]  ;;  %v427_v36 = vld [vmem:[%s17072_s23 + $0x6c8] sm:$0xff]  ;;  %v421_v37 = vld [vmem:[%s17072_s23 + $0x698] sm:$0xff]  ;;  %v9918_v39 = vpack.c.bf16 %v410_v30, %v402_v29 }
  0xbe   :  { %v429_v38 = vld [vmem:[%s17072_s23 + $0x6d8] sm:$0xff]  ;;  %v9996_v40 = vpack.c.bf16 %v412_v34, %v404_v31  ;;  %v9920_v41 = vpack.c.bf16 %v427_v36, %v419_v35  ;;  %v418_v42 = vld [vmem:[%s17072_s23 + $0x680] sm:$0xff]  ;;  %v420_v44 = vld [vmem:[%s17072_s23 + $0x690] sm:$0xff] }
  0xbf   :  { %9903 = vmatpush1.bf16.msra.mxu0 %v9902_v49  ;;  %625 = vmatprep.mubr.f32.mxu0 %v12898_v32  ;;  %v426_v43 = vld [vmem:[%s17072_s23 + $0x6c0] sm:$0xff]  ;;  %v9998_v45 = vpack.c.bf16 %v429_v38, %v421_v37  ;;  %v428_v46 = vld [vmem:[%s17072_s23 + $0x6d0] sm:$0xff]  ;;  %v435_v47 = vld [vmem:[%s17072_s23 + $0x708] sm:$0xff] }
  0xc0   :  { %9981 = vmatpush1.bf16.msra.mxu1 %v9980_v50  ;;  %9905 = vmatprep.subr.bf16.mxu0 %v9904_v51  ;;  %v443_v48 = vld [vmem:[%s17072_s23 + $0x748] sm:$0xff]  ;;  %v437_v49 = vld [vmem:[%s17072_s23 + $0x718] sm:$0xff]  ;;  %v9922_v51 = vpack.c.bf16 %v426_v43, %v418_v42  ;;  %v10000_v52 = vpack.c.bf16 %v428_v46, %v420_v44  ;;  %v434_v54 = vld [vmem:[%s17072_s23 + $0x700] sm:$0xff] }
  0xc1   :  { %9983 = vmatprep.subr.bf16.mxu1 %v9982_v55  ;;  %767 = vmatprep.mubr.f32.mxu1 %v12898_v32  ;;  %v445_v50 = vld [vmem:[%s17072_s23 + $0x758] sm:$0xff]  ;;  %v9924_v53 = vpack.c.bf16 %v443_v48, %v435_v47  ;;  %v442_v55 = vld [vmem:[%s17072_s23 + $0x740] sm:$0xff]  ;;  %v436_v56 = vld [vmem:[%s17072_s23 + $0x710] sm:$0xff] }
  0xc2   :  { %v10002_v57 = vpack.c.bf16 %v445_v50, %v437_v49  ;;  %v444_v58 = vld [vmem:[%s17072_s23 + $0x750] sm:$0xff]  ;;  %v451_v59 = vld [vmem:[%s17072_s23 + $0x788] sm:$0xff]  ;;  %v453_v61 = vld [vmem:[%s17072_s23 + $0x798] sm:$0xff]  ;;  %v17052_v49 = vmov 0.0  }
  0xc3   :  { %9907 = vmatpush1.bf16.msra.mxu0 %v9906_v63  ;;  %v459_v60 = vld [vmem:[%s17072_s23 + $0x7c8] sm:$0xff]  ;;  %v461_v63 = vld [vmem:[%s17072_s23 + $0x7d8] sm:$0xff]  ;;  %v450_v3 = vld [vmem:[%s17072_s23 + $0x780] sm:$0xff] }
  0xc4   :  { %9985 = vmatpush1.bf16.msra.mxu1 %v9984_v0  ;;  %9909 = vmatprep.subr.bf16.mxu0 %v9908_v1  ;;  %v9926_v0 = vpack.c.bf16 %v442_v55, %v434_v54  ;;  %v10004_v1 = vpack.c.bf16 %v444_v58, %v436_v56  ;;  %v9928_v2 = vpack.c.bf16 %v459_v60, %v451_v59  ;;  %v458_v4 = vld [vmem:[%s17072_s23 + $0x7c0] sm:$0xff]  ;;  %v460_v7 = vld [vmem:[%s17072_s23 + $0x7d0] sm:$0xff]  ;;  %v467_v8 = vld [vmem:[%s17072_s23 + $0x808] sm:$0xff] }
  0xc5   :  { %9987 = vmatprep.subr.bf16.mxu1 %v9986_v5  ;;  %v452_v5 = vld [vmem:[%s17072_s23 + $0x790] sm:$0xff]  ;;  %v10006_v6 = vpack.c.bf16 %v461_v63, %v453_v61  ;;  %v475_v9 = vld [vmem:[%s17072_s23 + $0x848] sm:$0xff]  ;;  %v469_v10 = vld [vmem:[%s17072_s23 + $0x818] sm:$0xff]  ;;  %v9930_v13 = vpack.c.bf16 %v458_v4, %v450_v3  ;;  %v515_v54 = vcombine.high %v12875_v22, %v12875_v22 }
  0xc6   :  { %v466_v16 = vld [vmem:[%s17072_s23 + $0x800] sm:$0xff]  ;;  %v468_v18 = vld [vmem:[%s17072_s23 + $0x810] sm:$0xff]  ;;  %v483_v21 = vld [vmem:[%s17072_s23 + $0x888] sm:$0xff] }
  0xc7   :  { %9911 = vmatpush1.bf16.msra.mxu0 %v9910_v12  ;;  %v477_v12 = vld [vmem:[%s17072_s23 + $0x858] sm:$0xff]  ;;  %v474_v17 = vld [vmem:[%s17072_s23 + $0x840] sm:$0xff]  ;;  %v476_v20 = vld [vmem:[%s17072_s23 + $0x850] sm:$0xff] }
  0xc8   :  { %9989 = vmatpush1.bf16.msra.mxu1 %v9988_v14  ;;  %9913 = vmatprep.subr.bf16.mxu0 %v9912_v15  ;;  %v10008_v14 = vpack.c.bf16 %v460_v7, %v452_v5  ;;  %v9932_v15 = vpack.c.bf16 %v475_v9, %v467_v8  ;;  %v491_v23 = vld [vmem:[%s17072_s23 + $0x8c8] sm:$0xff]  ;;  %v485_v24 = vld [vmem:[%s17072_s23 + $0x898] sm:$0xff]  ;;  %v482_v30 = vld [vmem:[%s17072_s23 + $0x880] sm:$0xff] }
  0xc9   :  { %9991 = vmatprep.subr.bf16.mxu1 %v9990_v19  ;;  %v10010_v19 = vpack.c.bf16 %v477_v12, %v469_v10  ;;  %v9936_v29 = vpack.c.bf16 %v491_v23, %v483_v21  ;;  %v490_v31 = vld [vmem:[%s17072_s23 + $0x8c0] sm:$0xff]  ;;  %v492_v35 = vld [vmem:[%s17072_s23 + $0x8d0] sm:$0xff]  ;;  %v499_v36 = vld [vmem:[%s17072_s23 + $0x908] sm:$0xff] }
  0xca   :  { %v507_v37 = vld [vmem:[%s17072_s23 + $0x948] sm:$0xf]  ;;  %v501_v38 = vld [vmem:[%s17072_s23 + $0x918] sm:$0xff]  ;;  %v498_v44 = vld [vmem:[%s17072_s23 + $0x900] sm:$0xff] }
  0xcb   :  { %9915 = vmatpush1.bf16.msra.mxu0 %v9914_v26  ;;  %v493_v26 = vld [vmem:[%s17072_s23 + $0x8d8] sm:$0xff]  ;;  %v9940_v43 = vpack.c.bf16 %v507_v37, %v499_v36  ;;  %v500_v46 = vld [vmem:[%s17072_s23 + $0x910] sm:$0xff]  ;;  %v215_v50 = vld [vmem:[%s17072_s23 + $0x28] sm:$0xff] }
  0xcc   :  { %9993 = vmatpush1.bf16.msra.mxu1 %v9992_v27  ;;  %9917 = vmatprep.subr.bf16.mxu0 %v9916_v28  ;;  %v9934_v27 = vpack.c.bf16 %v474_v17, %v466_v16  ;;  %v10012_v28 = vpack.c.bf16 %v476_v20, %v468_v18  ;;  %v10014_v34 = vpack.c.bf16 %v493_v26, %v485_v24  ;;  %v508_v48 = vld [vmem:[%s17072_s23 + $0x950] sm:$0xf]  ;;  %v214_v58 = vld [vmem:[%s17072_s23 + $0x20] sm:$0xff]  ;;  %v231_v63 = vld [vmem:[%s17072_s23 + $0xa8] sm:$0xff] }
  0xcd   :  { %9995 = vmatprep.subr.bf16.mxu1 %v9994_v33  ;;  %v484_v33 = vld [vmem:[%s17072_s23 + $0x890] sm:$0xff]  ;;  %v10021_v56 = vpack.c.bf16 %v508_v48, %v500_v46  ;;  %v222_v59 = vld [vmem:[%s17072_s23 + $0x60] sm:$0xff]  ;;  %v241_v3 = vld [vmem:[%s17072_s23 + $0xf8] sm:$0xff] }
  0xce   :  { %v10016_v42 = vpack.c.bf16 %v492_v35, %v484_v33  ;;  %v216_v22 = vld [vmem:[%s17072_s23 + $0x30] sm:$0xff]  ;;  %v10026_v4 = vpack.c.bf16 %v222_v59, %v214_v58  ;;  %v238_v7 = vld [vmem:[%s17072_s23 + $0xe0] sm:$0xff]  ;;  %v247_v12 = vld [vmem:[%s17072_s23 + $0x128] sm:$0xff] }
  0xcf   :  { %9919 = vmatpush1.bf16.msra.mxu0 %v9918_v39  ;;  %v509_v39 = vld [vmem:[%s17072_s23 + $0x958] sm:$0xf]  ;;  %v224_v61 = vld [vmem:[%s17072_s23 + $0x70] sm:$0xff]  ;;  %v254_v20 = vld [vmem:[%s17072_s23 + $0x160] sm:$0xff] }
  0xd0   :  { %9997 = vmatpush1.bf16.msra.mxu1 %v9996_v40  ;;  %9921 = vmatprep.subr.bf16.mxu0 %v9920_v41  ;;  %v9938_v40 = vpack.c.bf16 %v490_v31, %v482_v30  ;;  %v10018_v47 = vpack.c.bf16 %v509_v39, %v501_v38  ;;  %v10104_v5 = vpack.c.bf16 %v224_v61, %v216_v22  ;;  %v232_v8 = vld [vmem:[%s17072_s23 + $0xb0] sm:$0xff]  ;;  %v263_v26 = vld [vmem:[%s17072_s23 + $0x1a8] sm:$0xff]  ;;  %v270_v35 = vld [vmem:[%s17072_s23 + $0x1e0] sm:$0xff] }
  0xd1   :  { %9999 = vmatprep.subr.bf16.mxu1 %v9998_v45  ;;  %v506_v45 = vld [vmem:[%s17072_s23 + $0x940] sm:$0xf]  ;;  %v240_v10 = vld [vmem:[%s17072_s23 + $0xf0] sm:$0xff]  ;;  %v279_v38 = vld [vmem:[%s17072_s23 + $0x228] sm:$0xff] }
  0xd2   :  { %v9943_v55 = vpack.c.bf16 %v506_v45, %v498_v44  ;;  %v10108_v17 = vpack.c.bf16 %v240_v10, %v232_v8  ;;  %v248_v21 = vld [vmem:[%s17072_s23 + $0x130] sm:$0xff]  ;;  %v287_v39 = vld [vmem:[%s17072_s23 + $0x268] sm:$0xff]  ;;  %v278_v46 = vld [vmem:[%s17072_s23 + $0x220] sm:$0xff] }
  0xd3   :  { %9923 = vmatpush1.bf16.msra.mxu0 %v9922_v51  ;;  %v223_v51 = vld [vmem:[%s17072_s23 + $0x68] sm:$0xff]  ;;  %v256_v24 = vld [vmem:[%s17072_s23 + $0x170] sm:$0xff]  ;;  %v10040_v45 = vpack.c.bf16 %v287_v39, %v279_v38  ;;  %v294_v59 = vld [vmem:[%s17072_s23 + $0x2a0] sm:$0xff] }
  0xd4   :  { %10001 = vmatpush1.bf16.msra.mxu1 %v10000_v52  ;;  %9925 = vmatprep.subr.bf16.mxu0 %v9924_v53  ;;  %v217_v52 = vld [vmem:[%s17072_s23 + $0x38] sm:$0xff]  ;;  %v10112_v31 = vpack.c.bf16 %v256_v24, %v248_v21  ;;  %v264_v36 = vld [vmem:[%s17072_s23 + $0x1b0] sm:$0xff]  ;;  %v302_v22 = vld [vmem:[%s17072_s23 + $0x2e0] sm:$0xff] }
  0xd5   :  { %10003 = vmatprep.subr.bf16.mxu1 %v10002_v57  ;;  %v225_v53 = vld [vmem:[%s17072_s23 + $0x78] sm:$0xff]  ;;  %v10024_v57 = vpack.c.bf16 %v223_v51, %v215_v50  ;;  %v272_v37 = vld [vmem:[%s17072_s23 + $0x1f0] sm:$0xff]  ;;  %v318_v8 = vld [vmem:[%s17072_s23 + $0x360] sm:$0xff] }
  0xd6   :  { %v10102_v60 = vpack.c.bf16 %v225_v53, %v217_v52  ;;  %v10116_v44 = vpack.c.bf16 %v272_v37, %v264_v36  ;;  %v280_v48 = vld [vmem:[%s17072_s23 + $0x230] sm:$0xff]  ;;  %v295_v52 = vld [vmem:[%s17072_s23 + $0x2a8] sm:$0xff]  ;;  %v334_v21 = vld [vmem:[%s17072_s23 + $0x3e0] sm:$0xff] }
  0xd7   :  { %9927 = vmatpush1.bf16.msra.mxu0 %v9926_v0  ;;  %v239_v0 = vld [vmem:[%s17072_s23 + $0xe8] sm:$0xff]  ;;  %v288_v51 = vld [vmem:[%s17072_s23 + $0x270] sm:$0xff]  ;;  %v350_v36 = vld [vmem:[%s17072_s23 + $0x460] sm:$0xff] }
  0xd8   :  { %10005 = vmatpush1.bf16.msra.mxu1 %v10004_v1  ;;  %9929 = vmatprep.subr.bf16.mxu0 %v9928_v2  ;;  %v13094_v1 = vrot.slane %v515_v54, %v12852_v11  ;;  %v233_v2 = vld [vmem:[%s17072_s23 + $0xb8] sm:$0xff]  ;;  %v10028_v11 = vpack.c.bf16 %v239_v0, %v231_v63  ;;  %v303_v53 = vld [vmem:[%s17072_s23 + $0x2e8] sm:$0xff]  ;;  %v304_v63 = vld [vmem:[%s17072_s23 + $0x2f0] sm:$0xff] }
  0xd9   :  { %10007 = vmatprep.subr.bf16.mxu1 %v10006_v6  ;;  %v230_v6 = vld [vmem:[%s17072_s23 + $0xa0] sm:$0xff]  ;;  %v10106_v9 = vpack.c.bf16 %v241_v3, %v233_v2  ;;  %v297_v54 = vld [vmem:[%s17072_s23 + $0x2b8] sm:$0xff]  ;;  %v10044_v58 = vpack.c.bf16 %v303_v53, %v295_v52  ;;  %v311_v0 = vld [vmem:[%s17072_s23 + $0x328] sm:$0xff] }
  0xda   :  { %v10030_v16 = vpack.c.bf16 %v238_v7, %v230_v6  ;;  %v319_v2 = vld [vmem:[%s17072_s23 + $0x368] sm:$0xff]  ;;  %v313_v3 = vld [vmem:[%s17072_s23 + $0x338] sm:$0xff]  ;;  %v310_v7 = vld [vmem:[%s17072_s23 + $0x320] sm:$0xff] }
  0xdb   :  { %9931 = vmatpush1.bf16.msra.mxu0 %v9930_v13  ;;  %v255_v13 = vld [vmem:[%s17072_s23 + $0x168] sm:$0xff]  ;;  %v10048_v6 = vpack.c.bf16 %v319_v2, %v311_v0  ;;  %v352_v38 = vld [vmem:[%s17072_s23 + $0x470] sm:$0xff]  ;;  %v2113_v41 = vld [vmem:[#allocation10 + $0x58] sm:$0xff] }
  0xdc   :  { %10009 = vmatpush1.bf16.msra.mxu1 %v10008_v14  ;;  %9933 = vmatprep.subr.bf16.mxu0 %v9932_v15  ;;  %v249_v14 = vld [vmem:[%s17072_s23 + $0x138] sm:$0xff]  ;;  %v10032_v18 = vpack.c.bf16 %v255_v13, %v247_v12  ;;  %v320_v12 = vld [vmem:[%s17072_s23 + $0x370] sm:$0xff]  ;;  %v327_v13 = vld [vmem:[%s17072_s23 + $0x3a8] sm:$0xff] }
  0xdd   :  { %10011 = vmatprep.subr.bf16.mxu1 %v10010_v19  ;;  %v257_v15 = vld [vmem:[%s17072_s23 + $0x178] sm:$0xff]  ;;  %v246_v19 = vld [vmem:[%s17072_s23 + $0x120] sm:$0xff]  ;;  %v359_v39 = vld [vmem:[%s17072_s23 + $0x4a8] sm:$0xff] }
  0xde   :  { %626 = vmatmul.mubr.f32.vlgmr.msra.gmra.mrb[0].mxu0 %v12885_v25  ;;  %v10110_v23 = vpack.c.bf16 %v257_v15, %v249_v14  ;;  %v10034_v30 = vpack.c.bf16 %v254_v20, %v246_v19  ;;  %v335_v14 = vld [vmem:[%s17072_s23 + $0x3e8] sm:$0xff]  ;;  %v329_v15 = vld [vmem:[%s17072_s23 + $0x3b8] sm:$0xff]  ;;  %v326_v20 = vld [vmem:[%s17072_s23 + $0x3a0] sm:$0xff] }
  0xdf   :  { %9935 = vmatpush1.bf16.msra.mxu0 %v9934_v27  ;;  %768 = vmatmul.mubr.f32.vlgmr.msra.gmra.mrb[0].mxu1 %v12885_v25  ;;  %v271_v27 = vld [vmem:[%s17072_s23 + $0x1e8] sm:$0xff]  ;;  %v10052_v19 = vpack.c.bf16 %v335_v14, %v327_v13  ;;  %v368_v52 = vld [vmem:[%s17072_s23 + $0x4f0] sm:$0xff] }
  0xe0   :  { %10013 = vmatpush1.bf16.msra.mxu1 %v10012_v28  ;;  %9937 = vmatprep.subr.bf16.mxu0 %v9936_v29  ;;  %v265_v28 = vld [vmem:[%s17072_s23 + $0x1b8] sm:$0xff]  ;;  %v10036_v33 = vpack.c.bf16 %v271_v27, %v263_v26  ;;  %v336_v26 = vld [vmem:[%s17072_s23 + $0x3f0] sm:$0xff]  ;;  %v343_v27 = vld [vmem:[%s17072_s23 + $0x428] sm:$0xff] }
  0xe1   :  { %10015 = vmatprep.subr.bf16.mxu1 %v10014_v34  ;;  %696 = vmatprep.mubr.f32.mxu0 %v17052_v49  ;;  %v273_v29 = vld [vmem:[%s17072_s23 + $0x1f8] sm:$0xff]  ;;  %v262_v34 = vld [vmem:[%s17072_s23 + $0x1a0] sm:$0xff]  ;;  %v375_v53 = vld [vmem:[%s17072_s23 + $0x528] sm:$0xff] }
  0xe2   :  { %838 = vmatprep.mubr.f32.mxu1 %v17052_v49  ;;  %v384_v0 = vld [vmem:[%s17072_s23 + $0x570] sm:$0xff]  ;;  %v391_v2 = vld [vmem:[%s17072_s23 + $0x5a8] sm:$0xff] }
  0xe3   :  { %9939 = vmatpush1.bf16.msra.mxu0 %v9938_v40  ;;  %v281_v40 = vld [vmem:[%s17072_s23 + $0x238] sm:$0xff]  ;;  %v400_v13 = vld [vmem:[%s17072_s23 + $0x5f0] sm:$0xff]  ;;  %v407_v14 = vld [vmem:[%s17072_s23 + $0x628] sm:$0xff] }
  0xe4   :  { %10017 = vmatpush1.bf16.msra.mxu1 %v10016_v42  ;;  %9942 = vmatprep.subr.msk.bf16.mxu0 %vm13039_vm2, %v9940_v43  ;;  %v289_v42 = vld [vmem:[%s17072_s23 + $0x278] sm:$0xff]  ;;  %v10038_v43 = vpack.c.bf16 %v270_v35, %v262_v34  ;;  %v342_v35 = vld [vmem:[%s17072_s23 + $0x420] sm:$0xff] }
  0xe5   :  { %10020 = vmatprep.subr.msk.bf16.mxu1 %vm13039_vm2, %v10018_v47  ;;  %v286_v47 = vld [vmem:[%s17072_s23 + $0x260] sm:$0xff]  ;;  %v10118_v50 = vpack.c.bf16 %v289_v42, %v281_v40  ;;  %v367_v40 = vld [vmem:[%s17072_s23 + $0x4e8] sm:$0xff]  ;;  %v361_v42 = vld [vmem:[%s17072_s23 + $0x4b8] sm:$0xff] }
  0xe7   :  { %9945 = vmatpush1.bf16.msk.msra.mxu0 %vm13039_vm2, %v9943_v55  ;;  %v305_v55 = vld [vmem:[%s17072_s23 + $0x2f8] sm:$0xff] }
  0xe8   :  { %10023 = vmatpush1.bf16.msk.msra.mxu1 %vm13039_vm2, %v10021_v56  ;;  %10025 = vmatprep.subr.bf16.mxu0 %v10024_v57  ;;  %v10042_v56 = vpack.c.bf16 %v286_v47, %v278_v46  ;;  %v10120_v57 = vpack.c.bf16 %v288_v51, %v280_v48  ;;  %v10122_v61 = vpack.c.bf16 %v305_v55, %v297_v54  ;;  %v358_v47 = vld [vmem:[%s17072_s23 + $0x4a0] sm:$0xff]  ;;  %v383_v54 = vld [vmem:[%s17072_s23 + $0x568] sm:$0xff]  ;;  %v377_v55 = vld [vmem:[%s17072_s23 + $0x538] sm:$0xff] }
  0xe9   :  { %10103 = vmatprep.subr.bf16.mxu1 %v10102_v60  ;;  %v296_v60 = vld [vmem:[%s17072_s23 + $0x2b0] sm:$0xff]  ;;  %v10060_v46 = vpack.c.bf16 %v367_v40, %v359_v39  ;;  %v366_v48 = vld [vmem:[%s17072_s23 + $0x4e0] sm:$0xff]  ;;  %v439_v40 = vld [vmem:[%s17072_s23 + $0x728] sm:$0xff] }
  0xea   :  { %9517 = vmatmul.mubr.msk.f32.vlgmr.msra.gmra.mrb[0].mxu0 %vm533_vm3, %v13094_v1  ;;  %v432_v39 = vld [vmem:[%s17072_s23 + $0x6f0] sm:$0xff] }
  0xeb   :  { %9520 = vmatmul.mubr.msk.f32.vlgmr.msra.gmra.mrb[0].mxu1 %vm533_vm3, %v13094_v1  ;;  %10027 = vmatpush1.bf16.msra.mxu0 %v10026_v4  ;;  %v321_v4 = vld [vmem:[%s17072_s23 + $0x378] sm:$0xff] }
  0xec   :  { %10105 = vmatpush1.bf16.msra.mxu1 %v10104_v5  ;;  %10029 = vmatprep.subr.bf16.mxu0 %v10028_v11  ;;  %v10046_v5 = vpack.c.bf16 %v302_v22, %v294_v59  ;;  %v10124_v11 = vpack.c.bf16 %v304_v63, %v296_v60  ;;  %v10126_v10 = vpack.c.bf16 %v321_v4, %v313_v3  ;;  %v374_v22 = vld [vmem:[%s17072_s23 + $0x520] sm:$0xff]  ;;  %v399_v3 = vld [vmem:[%s17072_s23 + $0x5e8] sm:$0xff]  ;;  %v393_v4 = vld [vmem:[%s17072_s23 + $0x5b8] sm:$0xff] }
  0xed   :  { %10107 = vmatprep.subr.bf16.mxu1 %v10106_v9  ;;  %909 = vmatprep.mubr.f32.mxu0 %v12898_v32  ;;  %v312_v9 = vld [vmem:[%s17072_s23 + $0x330] sm:$0xff]  ;;  %v10064_v59 = vpack.c.bf16 %v383_v54, %v375_v53  ;;  %v382_v60 = vld [vmem:[%s17072_s23 + $0x560] sm:$0xff]  ;;  %v455_v54 = vld [vmem:[%s17072_s23 + $0x7a8] sm:$0xff] }
  0xee   :  { %1051 = vmatprep.mubr.f32.mxu1 %v12898_v32  ;;  %v10114_v32 = vpack.c.bf16 %v273_v29, %v265_v28  ;;  %v351_v28 = vld [vmem:[%s17072_s23 + $0x468] sm:$0xff]  ;;  %v345_v29 = vld [vmem:[%s17072_s23 + $0x438] sm:$0xff]  ;;  %v448_v53 = vld [vmem:[%s17072_s23 + $0x770] sm:$0xff] }
  0xef   :  { %10031 = vmatpush1.bf16.msra.mxu0 %v10030_v16  ;;  %v337_v16 = vld [vmem:[%s17072_s23 + $0x3f8] sm:$0xff]  ;;  %v10056_v34 = vpack.c.bf16 %v351_v28, %v343_v27  ;;  %v416_v27 = vld [vmem:[%s17072_s23 + $0x670] sm:$0xff]  ;;  %v423_v28 = vld [vmem:[%s17072_s23 + $0x6a8] sm:$0xff] }
  0xf0   :  { %10109 = vmatpush1.bf16.msra.mxu1 %v10108_v17  ;;  %10033 = vmatprep.subr.bf16.mxu0 %v10032_v18  ;;  %v10050_v17 = vpack.c.bf16 %v318_v8, %v310_v7  ;;  %v10128_v18 = vpack.c.bf16 %v320_v12, %v312_v9  ;;  %v10130_v24 = vpack.c.bf16 %v337_v16, %v329_v15  ;;  %v390_v8 = vld [vmem:[%s17072_s23 + $0x5a0] sm:$0xff]  ;;  %v415_v15 = vld [vmem:[%s17072_s23 + $0x668] sm:$0xff]  ;;  %v409_v16 = vld [vmem:[%s17072_s23 + $0x638] sm:$0xff] }
  0xf1   :  { %10111 = vmatprep.subr.bf16.mxu1 %v10110_v23  ;;  %v328_v23 = vld [vmem:[%s17072_s23 + $0x3b0] sm:$0xff]  ;;  %v10068_v7 = vpack.c.bf16 %v399_v3, %v391_v2  ;;  %v398_v9 = vld [vmem:[%s17072_s23 + $0x5e0] sm:$0xff]  ;;  %v471_v3 = vld [vmem:[%s17072_s23 + $0x828] sm:$0xff] }
  0xf2   :  { %v464_v2 = vld [vmem:[%s17072_s23 + $0x7f0] sm:$0xff] }
  0xf3   :  { %10035 = vmatpush1.bf16.msra.mxu0 %v10034_v30  ;;  %v353_v30 = vld [vmem:[%s17072_s23 + $0x478] sm:$0xff] }
  0xf4   :  { %10113 = vmatpush1.bf16.msra.mxu1 %v10112_v31  ;;  %10037 = vmatprep.subr.bf16.mxu0 %v10036_v33  ;;  %v10054_v31 = vpack.c.bf16 %v334_v21, %v326_v20  ;;  %v10132_v33 = vpack.c.bf16 %v336_v26, %v328_v23  ;;  %v10134_v37 = vpack.c.bf16 %v353_v30, %v345_v29  ;;  %v406_v21 = vld [vmem:[%s17072_s23 + $0x620] sm:$0xff]  ;;  %v431_v29 = vld [vmem:[%s17072_s23 + $0x6e8] sm:$0xff]  ;;  %v425_v30 = vld [vmem:[%s17072_s23 + $0x6b8] sm:$0xff] }
  0xf5   :  { %10115 = vmatprep.subr.bf16.mxu1 %v10114_v32  ;;  %v344_v32 = vld [vmem:[%s17072_s23 + $0x430] sm:$0xff]  ;;  %v10072_v20 = vpack.c.bf16 %v415_v15, %v407_v14  ;;  %v414_v23 = vld [vmem:[%s17072_s23 + $0x660] sm:$0xff]  ;;  %v487_v15 = vld [vmem:[%s17072_s23 + $0x8a8] sm:$0xff] }
  0xf6   :  { %v480_v14 = vld [vmem:[%s17072_s23 + $0x870] sm:$0xff] }
  0xf7   :  { %10039 = vmatpush1.bf16.msra.mxu0 %v10038_v43  ;;  %v369_v43 = vld [vmem:[%s17072_s23 + $0x4f8] sm:$0xff] }
  0xf8   :  { %10117 = vmatpush1.bf16.msra.mxu1 %v10116_v44  ;;  %10041 = vmatprep.subr.bf16.mxu0 %v10040_v45  ;;  %v10058_v44 = vpack.c.bf16 %v350_v36, %v342_v35  ;;  %v10136_v45 = vpack.c.bf16 %v352_v38, %v344_v32  ;;  %v10138_v51 = vpack.c.bf16 %v369_v43, %v361_v42  ;;  %v422_v36 = vld [vmem:[%s17072_s23 + $0x6a0] sm:$0xff]  ;;  %v447_v42 = vld [vmem:[%s17072_s23 + $0x768] sm:$0xff]  ;;  %v441_v43 = vld [vmem:[%s17072_s23 + $0x738] sm:$0xff] }
  0xf9   :  { %10119 = vmatprep.subr.bf16.mxu1 %v10118_v50  ;;  %v360_v50 = vld [vmem:[%s17072_s23 + $0x4b0] sm:$0xff]  ;;  %v10076_v35 = vpack.c.bf16 %v431_v29, %v423_v28  ;;  %v430_v32 = vld [vmem:[%s17072_s23 + $0x6e0] sm:$0xff]  ;;  %v503_v29 = vld [vmem:[%s17072_s23 + $0x928] sm:$0xff] }
  0xfa   :  { %v496_v28 = vld [vmem:[%s17072_s23 + $0x8f0] sm:$0xff] }
  0xfb   :  { %10043 = vmatpush1.bf16.msra.mxu0 %v10042_v56  ;;  %v385_v56 = vld [vmem:[%s17072_s23 + $0x578] sm:$0xff] }
  0xfc   :  { %10121 = vmatpush1.bf16.msra.mxu1 %v10120_v57  ;;  %10045 = vmatprep.subr.bf16.mxu0 %v10044_v58  ;;  %v10062_v57 = vpack.c.bf16 %v366_v48, %v358_v47  ;;  %v10140_v58 = vpack.c.bf16 %v368_v52, %v360_v50  ;;  %v10142_v63 = vpack.c.bf16 %v385_v56, %v377_v55  ;;  %v438_v48 = vld [vmem:[%s17072_s23 + $0x720] sm:$0xff]  ;;  %v463_v55 = vld [vmem:[%s17072_s23 + $0x7e8] sm:$0xff]  ;;  %v457_v56 = vld [vmem:[%s17072_s23 + $0x7b8] sm:$0xff] }
  0xfd   :  { %10123 = vmatprep.subr.bf16.mxu1 %v10122_v61  ;;  %v376_v61 = vld [vmem:[%s17072_s23 + $0x530] sm:$0xff]  ;;  %v10080_v47 = vpack.c.bf16 %v447_v42, %v439_v40  ;;  %v446_v50 = vld [vmem:[%s17072_s23 + $0x760] sm:$0xff]  ;;  %v178_v40 = vld [vmem:[#allocation7 + $0x8] sm:$0xff] }
  0xfe   :  { %v186_v42 = vld [vmem:[#allocation7 + $0x48] sm:$0xff] }
  0xff   :  { %10047 = vmatpush1.bf16.msra.mxu0 %v10046_v5  ;;  %v401_v5 = vld [vmem:[%s17072_s23 + $0x5f8] sm:$0xff] }
 0x100   :  { %10125 = vmatpush1.bf16.msra.mxu1 %v10124_v11  ;;  %10049 = vmatprep.subr.bf16.mxu0 %v10048_v6  ;;  %v10066_v11 = vpack.c.bf16 %v382_v60, %v374_v22  ;;  %v10144_v6 = vpack.c.bf16 %v384_v0, %v376_v61  ;;  %v10146_v12 = vpack.c.bf16 %v401_v5, %v393_v4  ;;  %v454_v60 = vld [vmem:[%s17072_s23 + $0x7a0] sm:$0xff]  ;;  %v479_v4 = vld [vmem:[%s17072_s23 + $0x868] sm:$0xff]  ;;  %v473_v5 = vld [vmem:[%s17072_s23 + $0x838] sm:$0xff] }
 0x101   :  { %10127 = vmatprep.subr.bf16.mxu1 %v10126_v10  ;;  %v392_v10 = vld [vmem:[%s17072_s23 + $0x5b0] sm:$0xff]  ;;  %v10084_v22 = vpack.c.bf16 %v463_v55, %v455_v54  ;;  %v462_v61 = vld [vmem:[%s17072_s23 + $0x7e0] sm:$0xff]  ;;  %v194_v54 = vld [vmem:[#allocation7 + $0x88] sm:$0xff] }
 0x102   :  { %v202_v55 = vld [vmem:[#allocation7 + $0xc8] sm:$0xf] }
 0x103   :  { %10051 = vmatpush1.bf16.msra.mxu0 %v10050_v17  ;;  %v417_v17 = vld [vmem:[%s17072_s23 + $0x678] sm:$0xff] }
 0x104   :  { %10129 = vmatpush1.bf16.msra.mxu1 %v10128_v18  ;;  %10053 = vmatprep.subr.bf16.mxu0 %v10052_v19  ;;  %v10070_v18 = vpack.c.bf16 %v398_v9, %v390_v8  ;;  %v10148_v19 = vpack.c.bf16 %v400_v13, %v392_v10  ;;  %v10150_v26 = vpack.c.bf16 %v417_v17, %v409_v16  ;;  %v470_v9 = vld [vmem:[%s17072_s23 + $0x820] sm:$0xff]  ;;  %v495_v16 = vld [vmem:[%s17072_s23 + $0x8e8] sm:$0xff]  ;;  %v489_v17 = vld [vmem:[%s17072_s23 + $0x8b8] sm:$0xff] }
 0x105   :  { %10131 = vmatprep.subr.bf16.mxu1 %v10130_v24  ;;  %v408_v24 = vld [vmem:[%s17072_s23 + $0x630] sm:$0xff]  ;;  %v10088_v8 = vpack.c.bf16 %v479_v4, %v471_v3  ;;  %v478_v10 = vld [vmem:[%s17072_s23 + $0x860] sm:$0xff]  ;;  %v182_v3 = vld [vmem:[#allocation7 + $0x28] sm:$0xff] }
 0x106   :  { %v190_v4 = vld [vmem:[#allocation7 + $0x68] sm:$0xff] }
 0x107   :  { %10055 = vmatpush1.bf16.msra.mxu0 %v10054_v31  ;;  %v433_v31 = vld [vmem:[%s17072_s23 + $0x6f8] sm:$0xff] }
 0x108   :  { %10133 = vmatpush1.bf16.msra.mxu1 %v10132_v33  ;;  %10057 = vmatprep.subr.bf16.mxu0 %v10056_v34  ;;  %v10074_v33 = vpack.c.bf16 %v414_v23, %v406_v21  ;;  %v10152_v34 = vpack.c.bf16 %v416_v27, %v408_v24  ;;  %v10154_v38 = vpack.c.bf16 %v433_v31, %v425_v30  ;;  %v486_v23 = vld [vmem:[%s17072_s23 + $0x8a0] sm:$0xff]  ;;  %v511_v30 = vld [vmem:[%s17072_s23 + $0x968] sm:$0xf]  ;;  %v505_v31 = vld [vmem:[%s17072_s23 + $0x938] sm:$0xff] }
 0x109   :  { %10135 = vmatprep.subr.bf16.mxu1 %v10134_v37  ;;  %v424_v37 = vld [vmem:[%s17072_s23 + $0x6b0] sm:$0xff]  ;;  %v10092_v21 = vpack.c.bf16 %v495_v16, %v487_v15  ;;  %v494_v24 = vld [vmem:[%s17072_s23 + $0x8e0] sm:$0xff]  ;;  %v198_v15 = vld [vmem:[#allocation7 + $0xa8] sm:$0xff] }
 0x10a   :  { %v200_v16 = vld [vmem:[#allocation7 + $0xb8] sm:$0xff] }
 0x10b   :  { %10059 = vmatpush1.bf16.msra.mxu0 %v10058_v44  ;;  %v449_v44 = vld [vmem:[%s17072_s23 + $0x778] sm:$0xff] }
 0x10c   :  { %10137 = vmatpush1.bf16.msra.mxu1 %v10136_v45  ;;  %10061 = vmatprep.subr.bf16.mxu0 %v10060_v46  ;;  %v10078_v45 = vpack.c.bf16 %v430_v32, %v422_v36  ;;  %v10156_v46 = vpack.c.bf16 %v432_v39, %v424_v37  ;;  %v10158_v52 = vpack.c.bf16 %v449_v44, %v441_v43  ;;  %v502_v32 = vld [vmem:[%s17072_s23 + $0x920] sm:$0xff]  ;;  %v180_v43 = vld [vmem:[#allocation7 + $0x18] sm:$0xff] }
 0x10d   :  { %10139 = vmatprep.subr.bf16.mxu1 %v10138_v51  ;;  %v440_v51 = vld [vmem:[%s17072_s23 + $0x730] sm:$0xff]  ;;  %v10096_v36 = vpack.c.bf16 %v511_v30, %v503_v29  ;;  %v510_v37 = vld [vmem:[%s17072_s23 + $0x960] sm:$0xf]  ;;  %v188_v44 = vld [vmem:[#allocation7 + $0x58] sm:$0xff] }
 0x10f   :  { %10063 = vmatpush1.bf16.msra.mxu0 %v10062_v57  ;;  %v465_v57 = vld [vmem:[%s17072_s23 + $0x7f8] sm:$0xff] }
 0x110   :  { %10141 = vmatpush1.bf16.msra.mxu1 %v10140_v58  ;;  %10065 = vmatprep.subr.bf16.mxu0 %v10064_v59  ;;  %v10082_v58 = vpack.c.bf16 %v446_v50, %v438_v48  ;;  %v10160_v59 = vpack.c.bf16 %v448_v53, %v440_v51  ;;  %v10162_v0 = vpack.c.bf16 %v465_v57, %v457_v56  ;;  %v177_v48 = vld [vmem:[#allocation7] sm:$0xff]  ;;  %v179_v51 = vld [vmem:[#allocation7 + $0x10] sm:$0xff]  ;;  %v196_v56 = vld [vmem:[#allocation7 + $0x98] sm:$0xff] }
 0x111   :  { %10143 = vmatprep.subr.bf16.mxu1 %v10142_v63  ;;  %v456_v63 = vld [vmem:[%s17072_s23 + $0x7b0] sm:$0xff]  ;;  %v185_v50 = vld [vmem:[#allocation7 + $0x40] sm:$0xff]  ;;  %v204_v57 = vld [vmem:[#allocation7 + $0xd8] sm:$0xf] }
 0x112   :  { %v187_v53 = vld [vmem:[#allocation7 + $0x50] sm:$0xff] }
 0x113   :  { %10067 = vmatpush1.bf16.msra.mxu0 %v10066_v11  ;;  %v481_v11 = vld [vmem:[%s17072_s23 + $0x878] sm:$0xff] }
 0x114   :  { %10145 = vmatpush1.bf16.msra.mxu1 %v10144_v6  ;;  %10069 = vmatprep.subr.bf16.mxu0 %v10068_v7  ;;  %v10086_v6 = vpack.c.bf16 %v462_v61, %v454_v60  ;;  %v10164_v7 = vpack.c.bf16 %v464_v2, %v456_v63  ;;  %v10166_v13 = vpack.c.bf16 %v481_v11, %v473_v5  ;;  %v193_v60 = vld [vmem:[#allocation7 + $0x80] sm:$0xff]  ;;  %v195_v63 = vld [vmem:[#allocation7 + $0x90] sm:$0xff]  ;;  %v184_v5 = vld [vmem:[#allocation7 + $0x38] sm:$0xff] }
 0x115   :  { %10147 = vmatprep.subr.bf16.mxu1 %v10146_v12  ;;  %v472_v12 = vld [vmem:[%s17072_s23 + $0x830] sm:$0xff]  ;;  %v201_v61 = vld [vmem:[#allocation7 + $0xc0] sm:$0xf]  ;;  %v192_v11 = vld [vmem:[#allocation7 + $0x78] sm:$0xff] }
 0x116   :  { %v203_v2 = vld [vmem:[#allocation7 + $0xd0] sm:$0xf] }
 0x117   :  { %10071 = vmatpush1.bf16.msra.mxu0 %v10070_v18  ;;  %v497_v18 = vld [vmem:[%s17072_s23 + $0x8f8] sm:$0xff] }
 0x118   :  { %10149 = vmatpush1.bf16.msra.mxu1 %v10148_v19  ;;  %10073 = vmatprep.subr.bf16.mxu0 %v10072_v20  ;;  %v10090_v19 = vpack.c.bf16 %v478_v10, %v470_v9  ;;  %v10168_v20 = vpack.c.bf16 %v480_v14, %v472_v12  ;;  %v10170_v27 = vpack.c.bf16 %v497_v18, %v489_v17  ;;  %v181_v9 = vld [vmem:[#allocation7 + $0x20] sm:$0xff]  ;;  %v183_v12 = vld [vmem:[#allocation7 + $0x30] sm:$0xff]  ;;  %v208_v17 = vld [vmem:[#allocation7 + $0xf8] sm:$0xf] }
 0x119   :  { %10151 = vmatprep.subr.bf16.mxu1 %v10150_v26  ;;  %v488_v26 = vld [vmem:[%s17072_s23 + $0x8b0] sm:$0xff]  ;;  %v189_v10 = vld [vmem:[#allocation7 + $0x60] sm:$0xff] }
 0x11a   :  { %v191_v14 = vld [vmem:[#allocation7 + $0x70] sm:$0xff]  ;;  %v176_v18 = vld [vmem:[%s17077_s5] sm:$0x3] }
 0x11b   :  { %10075 = vmatpush1.bf16.msra.mxu0 %v10074_v33  ;;  %v513_v33 = vld [vmem:[%s17072_s23 + $0x978] sm:$0xf] }
 0x11c   :  { %10153 = vmatpush1.bf16.msra.mxu1 %v10152_v34  ;;  %10077 = vmatprep.subr.bf16.mxu0 %v10076_v35  ;;  %v10094_v34 = vpack.c.bf16 %v494_v24, %v486_v23  ;;  %v10172_v35 = vpack.c.bf16 %v496_v28, %v488_v26  ;;  %v10174_v39 = vpack.c.bf16 %v513_v33, %v505_v31  ;;  %v197_v23 = vld [vmem:[#allocation7 + $0xa0] sm:$0xff]  ;;  %v207_v28 = vld [vmem:[#allocation7 + $0xf0] sm:$0xf]  ;;  %v2103_v31 = vld [vmem:[#allocation10 + $0x8] sm:$0xff] }
 0x11d   :  { %10155 = vmatprep.subr.bf16.mxu1 %v10154_v38  ;;  %v504_v38 = vld [vmem:[%s17072_s23 + $0x930] sm:$0xff]  ;;  %v205_v24 = vld [vmem:[#allocation7 + $0xe0] sm:$0xf]  ;;  %v10214_v26 = vpack.c.bf16 %v208_v17, %v200_v16  ;;  %v2105_v33 = vld [vmem:[#allocation10 + $0x18] sm:$0xff] }
 0x11e   :  { %v10207_v29 = vpack.c.bf16 %v205_v24, %v197_v23  ;;  %v13626_v23 = vld [vmem:[#allocation10 + $0x158] sm:$0xff] }
 0x11f   :  { %10079 = vmatpush1.bf16.msra.mxu0 %v10078_v45  ;;  %v10099_v45 = vpack.c.bf16 %v510_v37, %v502_v32  ;;  %v2107_v32 = vld [vmem:[#allocation10 + $0x28] sm:$0xff]  ;;  %v2109_v37 = vld [vmem:[#allocation10 + $0x38] sm:$0xff] }
 0x120   :  { %10157 = vmatpush1.bf16.msra.mxu1 %v10156_v46  ;;  %10081 = vmatprep.subr.bf16.mxu0 %v10080_v47  ;;  %v10180_v47 = vpack.c.bf16 %v186_v42, %v178_v40  ;;  %v2108_v40 = vld [vmem:[#allocation10 + $0x30] sm:$0xff]  ;;  %v2111_v42 = vld [vmem:[#allocation10 + $0x48] sm:$0xff] }
 0x121   :  { %10159 = vmatprep.subr.bf16.mxu1 %v10158_v52  ;;  %v10190_v52 = vpack.c.bf16 %v188_v44, %v180_v43  ;;  %v10228_v44 = vpack.c.bf16 %v2113_v41, %v2111_v42 }
 0x123   :  { %10083 = vmatpush1.bf16.msra.mxu0 %v10082_v58  ;;  %v10182_v58 = vpack.c.bf16 %v185_v50, %v177_v48  ;;  %v2117_v48 = vld [vmem:[#allocation10 + $0x78] sm:$0xff] }
 0x124   :  { %10161 = vmatpush1.bf16.msra.mxu1 %v10160_v59  ;;  %10085 = vmatprep.subr.bf16.mxu0 %v10084_v22  ;;  %v10192_v59 = vpack.c.bf16 %v187_v53, %v179_v51  ;;  %v10184_v22 = vpack.c.bf16 %v202_v55, %v194_v54  ;;  %v2116_v53 = vld [vmem:[#allocation10 + $0x70] sm:$0xff]  ;;  %v2119_v54 = vld [vmem:[#allocation10 + $0x88] sm:$0xff]  ;;  %v2121_v55 = vld [vmem:[#allocation10 + $0x98] sm:$0xff] }
 0x125   :  { %10163 = vmatprep.subr.bf16.mxu1 %v10162_v0  ;;  %v10194_v0 = vpack.c.bf16 %v204_v57, %v196_v56  ;;  %v2118_v56 = vld [vmem:[#allocation10 + $0x80] sm:$0xff]  ;;  %v2120_v57 = vld [vmem:[#allocation10 + $0x90] sm:$0xff] }
 0x126   :  { %v10238_v16 = vpack.c.bf16 %v2120_v57, %v2118_v56 }
 0x127   :  { %10087 = vmatpush1.bf16.msra.mxu0 %v10086_v6  ;;  %v10187_v6 = vpack.c.bf16 %v201_v61, %v193_v60  ;;  %v13582_v60 = vld [vmem:[#allocation10 + $0xb0] sm:$0xff]  ;;  %v13584_v61 = vld [vmem:[#allocation10 + $0xc8] sm:$0xff] }
 0x128   :  { %10165 = vmatpush1.bf16.msra.mxu1 %v10164_v7  ;;  %10089 = vmatprep.subr.bf16.mxu0 %v10088_v8  ;;  %v10197_v7 = vpack.c.bf16 %v203_v2, %v195_v63  ;;  %v10200_v8 = vpack.c.bf16 %v190_v4, %v182_v3  ;;  %v13586_v63 = vld [vmem:[#allocation10 + $0xd8] sm:$0xff]  ;;  %v13588_v2 = vld [vmem:[#allocation10 + $0xc0] sm:$0xff]  ;;  %v13590_v3 = vld [vmem:[#allocation10 + $0xd0] sm:$0xff] }
 0x129   :  { %10167 = vmatprep.subr.bf16.mxu1 %v10166_v13  ;;  %v10210_v13 = vpack.c.bf16 %v192_v11, %v184_v5  ;;  %v13592_v4 = vld [vmem:[#allocation10 + $0xe8] sm:$0xff]  ;;  %v13594_v5 = vld [vmem:[#allocation10 + $0xf8] sm:$0xff]  ;;  %v10236_v11 = vpack.c.bf16 %v2121_v55, %v2119_v54 }
 0x12a   :  { %910 = vmatmul.mubr.f32.vlgmr.msra.gmra.mrb[2].mxu0 %v12885_v25  ;;  %v13676_v54 = vld [vmem:[#allocation10 + $0x1a8] sm:$0xff] }
 0x12b   :  { %10091 = vmatpush1.bf16.msra.mxu0 %v10090_v19  ;;  %1052 = vmatmul.mubr.f32.vlgmr.msra.gmra.mrb[2].mxu1 %v12885_v25  ;;  %v512_v25 = vld [vmem:[%s17072_s23 + $0x970] sm:$0xf]  ;;  %v10202_v19 = vpack.c.bf16 %v189_v10, %v181_v9  ;;  %v13602_v9 = vld [vmem:[#allocation10 + $0x118] sm:$0xff]  ;;  %v13604_v10 = vld [vmem:[#allocation10 + $0x100] sm:$0xff] }
 0x12c   :  { %10169 = vmatpush1.bf16.msra.mxu1 %v10168_v20  ;;  %10093 = vmatprep.subr.bf16.mxu0 %v10092_v21  ;;  %v10177_v46 = vpack.c.bf16 %v512_v25, %v504_v38  ;;  %v10212_v20 = vpack.c.bf16 %v191_v14, %v183_v12  ;;  %v2106_v25 = vld [vmem:[#allocation10 + $0x20] sm:$0xff]  ;;  %v13606_v12 = vld [vmem:[#allocation10 + $0x110] sm:$0xff]  ;;  %v13610_v14 = vld [vmem:[#allocation10 + $0x138] sm:$0xff] }
 0x12d   :  { %10171 = vmatprep.subr.bf16.mxu1 %v10170_v27  ;;  %980 = vmatprep.mubr.f32.mxu0 %v17052_v49  ;;  %v199_v27 = vld [vmem:[#allocation7 + $0xb0] sm:$0xff]  ;;  %v10226_v43 = vpack.c.bf16 %v2108_v40, %v2106_v25  ;;  %v13656_v25 = vld [vmem:[#allocation10 + $0x160] sm:$0xff] }
 0x12e   :  { %1122 = vmatprep.mubr.f32.mxu1 %v17052_v49  ;;  %v10217_v30 = vpack.c.bf16 %v207_v28, %v199_v27  ;;  %v10246_v28 = vpack.c.bf16 %v13590_v3, %v13588_v2 }
 0x12f   :  { %10095 = vmatpush1.bf16.msra.mxu0 %v10094_v34  ;;  %v2102_v34 = vld [vmem:[#allocation10] sm:$0xff] }
 0x130   :  { %10173 = vmatpush1.bf16.msra.mxu1 %v10172_v35  ;;  %10098 = vmatprep.subr.msk.bf16.mxu0 %vm13039_vm2, %v10096_v36  ;;  %v10220_v35 = vpack.c.bf16 %v2105_v33, %v2103_v31  ;;  %v2104_v36 = vld [vmem:[#allocation10 + $0x10] sm:$0xff]  ;;  %v13640_v31 = vld [vmem:[#allocation10 + $0x140] sm:$0xff] }
 0x131   :  { %10176 = vmatprep.subr.msk.bf16.mxu1 %vm13039_vm2, %v10174_v39  ;;  %v10222_v38 = vpack.c.bf16 %v2104_v36, %v2102_v34  ;;  %v10224_v39 = vpack.c.bf16 %v2109_v37, %v2107_v32  ;;  %v13642_v33 = vld [vmem:[#allocation10 + $0x150] sm:$0xff]  ;;  %v13644_v34 = vld [vmem:[#allocation10 + $0x168] sm:$0xff] }
 0x133   :  { %10101 = vmatpush1.bf16.msk.msra.mxu0 %vm13039_vm2, %v10099_v45  ;;  %v2110_v45 = vld [vmem:[#allocation10 + $0x40] sm:$0xff] }
 0x134   :  { %10179 = vmatpush1.bf16.msk.msra.mxu1 %vm13039_vm2, %v10177_v46  ;;  %10181 = vmatprep.subr.bf16.mxu0 %v10180_v47  ;;  %v2112_v46 = vld [vmem:[#allocation10 + $0x50] sm:$0xff]  ;;  %v2115_v47 = vld [vmem:[#allocation10 + $0x68] sm:$0xff] }
 0x135   :  { %10191 = vmatprep.subr.bf16.mxu1 %v10190_v52  ;;  %v10230_v50 = vpack.c.bf16 %v2112_v46, %v2110_v45  ;;  %v10232_v51 = vpack.c.bf16 %v2117_v48, %v2115_v47  ;;  %v2114_v52 = vld [vmem:[#allocation10 + $0x60] sm:$0xff]  ;;  %v13664_v45 = vld [vmem:[#allocation10 + $0x188] sm:$0xff]  ;;  %v13666_v46 = vld [vmem:[#allocation10 + $0x198] sm:$0xff] }
 0x136   :  { %9523 = vmatmul.mubr.msk.f32.vlgmr.msra.gmra.mrb[2].mxu0 %vm533_vm3, %v13094_v1 }
 0x137   :  { %9526 = vmatmul.mubr.msk.f32.vlgmr.msra.gmra.mrb[2].mxu1 %vm533_vm3, %v13094_v1  ;;  %10183 = vmatpush1.bf16.msra.mxu0 %v10182_v58  ;;  %v206_v1 = vld [vmem:[#allocation7 + $0xe8] sm:$0xf] }
 0x138   :  { %10193 = vmatpush1.bf16.msra.mxu1 %v10192_v59  ;;  %10186 = vmatprep.subr.msk.bf16.mxu0 %vm13039_vm2, %v10184_v22  ;;  %v10204_v21 = vpack.c.bf16 %v206_v1, %v198_v15  ;;  %v13576_v58 = vld [vmem:[#allocation10 + $0xa8] sm:$0xff]  ;;  %v13578_v59 = vld [vmem:[#allocation10 + $0xb8] sm:$0xff]  ;;  %v13580_v22 = vld [vmem:[#allocation10 + $0xa0] sm:$0xff] }
 0x139   :  { %10196 = vmatprep.subr.msk.bf16.mxu1 %vm13039_vm2, %v10194_v0  ;;  %1221 = vmatprep.mubr.f32.mxu0 %v17052_v49  ;;  %v10234_v0 = vpack.c.bf16 %v2116_v53, %v2114_v52  ;;  %v13612_v15 = vld [vmem:[#allocation10 + $0x120] sm:$0xff]  ;;  %v10240_v17 = vpack.c.bf16 %v13578_v59, %v13576_v58  ;;  %v13674_v53 = vld [vmem:[#allocation10 + $0x190] sm:$0xff]  ;;  %v13682_v59 = vld [vmem:[#allocation10 + $0x1b8] sm:$0xff] }
 0x13a   :  { %1292 = vmatprep.mubr.f32.mxu1 %v17052_v49  ;;  %v13672_v52 = vld [vmem:[#allocation10 + $0x180] sm:$0xff] }
 0x13b   :  { %10189 = vmatpush1.bf16.msk.msra.mxu0 %vm13039_vm2, %v10187_v6  ;;  %v13596_v6 = vld [vmem:[#allocation10 + $0xe0] sm:$0xff] }
 0x13c   :  { %10199 = vmatpush1.bf16.msk.msra.mxu1 %vm13039_vm2, %v10197_v7  ;;  %10201 = vmatprep.subr.bf16.mxu0 %v10200_v8  ;;  %v13598_v7 = vld [vmem:[#allocation10 + $0xf0] sm:$0xff]  ;;  %v13600_v8 = vld [vmem:[#allocation10 + $0x108] sm:$0xff] }
 0x13d   :  { %10211 = vmatprep.subr.bf16.mxu1 %v10210_v13  ;;  %v13608_v13 = vld [vmem:[#allocation10 + $0x128] sm:$0xff] }
 0x13e   :  { %9529 = vmatmul.mubr.msk.f32.vlgmr.msra.gmra.mrb[0].mxu0 %vm1129_vm4, %v176_v18 }
 0x13f   :  { %9532 = vmatmul.mubr.msk.f32.vlgmr.msra.gmra.mrb[0].mxu1 %vm1129_vm4, %v176_v18  ;;  %10203 = vmatpush1.bf16.msra.mxu0 %v10202_v19  ;;  %v10244_v19 = vpack.c.bf16 %v13586_v63, %v13584_v61 }
 0x140   :  { %10213 = vmatpush1.bf16.msra.mxu1 %v10212_v20  ;;  %10206 = vmatprep.subr.msk.bf16.mxu0 %vm13039_vm2, %v10204_v21  ;;  %v13622_v20 = vld [vmem:[#allocation10 + $0x130] sm:$0xff]  ;;  %v13624_v21 = vld [vmem:[#allocation10 + $0x148] sm:$0xff] }
 0x141   :  { %10216 = vmatprep.subr.msk.bf16.mxu1 %vm13039_vm2, %v10214_v26  ;;  %1363 = vmatprep.mubr.f32.mxu0 %v17052_v49 }
 0x142   :  { %1434 = vmatprep.mubr.f32.mxu1 %v17052_v49 }
 0x143   :  { %10209 = vmatpush1.bf16.msk.msra.mxu0 %vm13039_vm2, %v10207_v29  ;;  %v10248_v29 = vpack.c.bf16 %v13594_v5, %v13592_v4 }
 0x144   :  { %10219 = vmatpush1.bf16.msk.msra.mxu1 %vm13039_vm2, %v10217_v30 }
 0x145   :  { %10221 = vmatprep.subr.bf16.mxu1 %v10220_v35 }
 0x146   :  { %9535 = vmatmul.mubr.msk.f32.vlgmr.msra.gmra.mrb[2].mxu0 %vm1129_vm4, %v176_v18 }
 0x147   :  { %9538 = vmatmul.mubr.msk.f32.vlgmr.msra.gmra.mrb[2].mxu1 %vm1129_vm4, %v176_v18  ;;  %1847 = vmatprep.mubr.f32.mxu0 %v17052_v49  ;;  %v10242_v18 = vpack.c.bf16 %v13582_v60, %v13580_v22  ;;  %v13684_v22 = vld [vmem:[#allocation10 + $0x1a0] sm:$0xff]  ;;  %v13686_v60 = vld [vmem:[#allocation10 + $0x1b0] sm:$0xff] }
 0x148   :  { %10223 = vmatpush1.bf16.msra.mxu1 %v10222_v38 }
 0x149   :  { %10225 = vmatprep.subr.bf16.mxu1 %v10224_v39  ;;  %v13654_v39 = vld [vmem:[#allocation10 + $0x178] sm:$0xff] }
 0x14c   :  { %10227 = vmatpush1.bf16.msra.mxu1 %v10226_v43 }
 0x14d   :  { %10229 = vmatprep.subr.bf16.mxu1 %v10228_v44  ;;  %v13662_v44 = vld [vmem:[#allocation10 + $0x170] sm:$0xff] }
 0x150   :  { %10231 = vmatpush1.bf16.msra.mxu1 %v10230_v50 }
 0x151   :  { %10233 = vmatprep.subr.bf16.mxu1 %v10232_v51 }
 0x154   :  { %10235 = vmatpush1.bf16.msra.mxu1 %v10234_v0 }
 0x155   :  { %10237 = vmatprep.subr.bf16.mxu1 %v10236_v11 }
 0x158   :  { %10239 = vmatpush1.bf16.msra.mxu1 %v10238_v16 }
 0x159   :  { %10241 = vmatprep.subr.bf16.mxu1 %v10240_v17 }
 0x15c   :  { %10243 = vmatpush1.bf16.msra.mxu1 %v10242_v18 }
 0x15d   :  { %10245 = vmatprep.subr.bf16.mxu1 %v10244_v19 }
 0x160   :  { %10247 = vmatpush1.bf16.msra.mxu1 %v10246_v28 }
 0x161   :  { %10249 = vmatprep.subr.bf16.mxu1 %v10248_v29 }
 0x211   :  { %v13614_v1 = vpop.f32.mrb[0].mxu0 }
 0x212   :  { %v1442_v24 = vsel %vm1441_vm5, %v13614_v1, 0.0  ;;  %v13630_v26 = vpop.f32.mrb[0].mxu1  ;;  %v13632_v27 = vpop.f32.mrb[1].mxu0 }
 0x213   :  { %v1443_v35 = vrot.slane %v1442_v24, 4  ;;  %v1456_v36 = vsel %vm1441_vm5, %v13630_v26, 0.0  ;;  %v1449_v32 = vsel %vm1441_vm5, %v13632_v27, 0.0  ;;  %v13650_v37 = vpop.f32.mrb[1].mxu1 }
 0x214   :  { %v1457_v40 = vrot.slane %v1456_v36, 4  ;;  %v1450_v42 = vrot.slane %v1449_v32, 4  ;;  %v1463_v41 = vsel %vm1441_vm5, %v13650_v37, 0.0 }
 0x215   :  { %v1444_v47 = vadd.f32 %v1443_v35, %v1442_v24  ;;  %v1464_v48 = vrot.slane %v1463_v41, 4  ;;  %v13692_v24 = vld [vmem:[#allocation10 + $0x1c8] sm:$0xff]  ;;  %v13694_v35 = vld [vmem:[#allocation10 + $0x1d8] sm:$0xff] }
 0x216   :  { %v1458_v55 = vadd.f32 %v1457_v40, %v1456_v36  ;;  %v1451_v56 = vadd.f32 %v1450_v42, %v1449_v32  ;;  %17078 = vst [vmem:[#allocation26_spill] sm:$0xff] %v13692_v24  ;;  %17079 = vst [vmem:[#allocation27_spill] sm:$0xff] %v13694_v35 }
 0x217   :  { %v1445_v0 = vrot.slane %v1444_v47, 2  ;;  %v1465_v11 = vadd.f32 %v1464_v48, %v1463_v41 }
 0x218   :  { %v1459_v36 = vrot.slane %v1458_v55, 2  ;;  %v1452_v32 = vrot.slane %v1451_v56, 2 }
 0x219   :  { %v1446_v49 = vadd.f32 %v1445_v0, %v1444_v47  ;;  %v1466_v41 = vrot.slane %v1465_v11, 2  ;;  %v13700_v48 = vpop.f32.mrb[2].mxu0 }
 0x21a   :  { %v1460_v58 = vadd.f32 %v1459_v36, %v1458_v55  ;;  %v1453_v57 = vadd.f32 %v1452_v32, %v1451_v56  ;;  %v1470_v51 = vsel %vm1441_vm5, %v13700_v48, 0.0  ;;  %v13708_v40 = vpop.f32.mrb[2].mxu1  ;;  %v13710_v50 = vpop.f32.mrb[3].mxu0 }
 0x21b   :  { %v1447_v47 = vrot.slane %v1446_v49, 1  ;;  %v1467_v0 = vadd.f32 %v1466_v41, %v1465_v11  ;;  %v1471_v17 = vrot.slane %v1470_v51, 4  ;;  %v1484_v55 = vsel %vm1441_vm5, %v13708_v40, 0.0  ;;  %v13719_v56 = vpop.f32.mrb[3].mxu1 }
 0x21c   :  { %v1461_v36 = vrot.slane %v1460_v58, 1  ;;  %v1454_v32 = vrot.slane %v1453_v57, 1  ;;  %v1485_v16 = vrot.slane %v1484_v55, 4  ;;  %v1477_v42 = vsel %vm1441_vm5, %v13710_v50, 0.0 }
 0x21d   :  { %v1448_v43 = vadd.f32 %v1447_v47, %v1446_v49  ;;  %v1468_v61 = vrot.slane %v1467_v0, 1  ;;  %v1472_v63 = vadd.f32 %v1471_v17, %v1470_v51  ;;  %v1478_v19 = vrot.slane %v1477_v42, 4 }
 0x21e   :  { %v1462_v11 = vadd.f32 %v1461_v36, %v1460_v58  ;;  %v1455_v41 = vadd.f32 %v1454_v32, %v1453_v57  ;;  %v1486_v18 = vadd.f32 %v1485_v16, %v1484_v55  ;;  %v1491_v38 = vsel %vm1441_vm5, %v13719_v56, 0.0 }
 0x21f   :  { %v1499_v30 = vmul.f32 0.5, %v1448_v43  ;;  %v1469_v62 = vadd.f32 %v1468_v61, %v1467_v0  ;;  %v1473_v49 = vrot.slane %v1472_v63, 2  ;;  %v1479_v47 = vadd.f32 %v1478_v19, %v1477_v42 }
 0x220   :  { %v1501_v51 = vmul.f32 0.5, %v1462_v11  ;;  %v1500_v17 = vmul.f32 0.5, %v1455_v41  ;;  %v1487_v24 = vrot.slane %v1486_v18, 2  ;;  %v1492_v35 = vrot.slane %v1491_v38, 4 }
 0x221   :  { %v13732_v2 = vsub.f32 %v13614_v1, %v1499_v30  ;;  %v1502_v3 = vmul.f32 0.5, %v1469_v62  ;;  %v1474_v28 = vadd.f32 %v1473_v49, %v1472_v63  ;;  %v1480_v57 = vrot.slane %v1479_v47, 2 }
 0x222   :  { %v17080_v58 = vpack.c.bf16 %v13598_v7, %v13596_v6  ;;  %v13738_v4 = vsub.f32 %v13630_v26, %v1501_v51  ;;  %v13741_v5 = vsub.f32 %v13632_v27, %v1500_v17  ;;  %v1488_v29 = vadd.f32 %v1487_v24, %v1486_v18 }
 0x223   :  { %v1493_v43 = vadd.f32 %v1492_v35, %v1491_v38  ;;  %v17081_v16 = vpack.c.bf16 %v13602_v9, %v13600_v8  ;;  %v1515_v62 = vmul.f32 %v13732_v2, %v13732_v2  ;;  %v13749_v1 = vsub.f32 %v13650_v37, %v1502_v3 }
 0x224   :  { %10251 = vmatpush1.bf16.msra.mxu1 %v17080_v58  ;;  %v1475_v6 = vrot.slane %v1474_v28, 1  ;;  %v1481_v7 = vadd.f32 %v1480_v57, %v1479_v47  ;;  %v1517_v26 = vmul.f32 %v13738_v4, %v13738_v4  ;;  %v1516_v27 = vmul.f32 %v13741_v5, %v13741_v5 }
 0x225   :  { %10253 = vmatprep.subr.bf16.mxu1 %v17081_v16  ;;  %v1489_v30 = vrot.slane %v1488_v29, 1  ;;  %v1494_v38 = vrot.slane %v1493_v43, 2  ;;  %v1523_v24 = vsel %vm1441_vm5, %v1515_v62, 0.0  ;;  %v1518_v8 = vmul.f32 %v13749_v1, %v13749_v1 }
 0x226   :  { %v1476_v9 = vadd.f32 %v1475_v6, %v1474_v28  ;;  %v1482_v35 = vrot.slane %v1481_v7, 1  ;;  %v17082_v37 = vpack.c.bf16 %v13606_v12, %v13604_v10  ;;  %v1524_v42 = vrot.slane %v1523_v24, 4 }
 0x227   :  { %v1537_v18 = vsel %vm1441_vm5, %v1517_v26, 0.0  ;;  %v1530_v0 = vsel %vm1441_vm5, %v1516_v27, 0.0  ;;  %v1490_v55 = vadd.f32 %v1489_v30, %v1488_v29  ;;  %v17083_v36 = vpack.c.bf16 %v13610_v14, %v13608_v13 }
 0x228   :  { %10255 = vmatpush1.bf16.msra.mxu1 %v17082_v37  ;;  %v1538_v32 = vrot.slane %v1537_v18, 4  ;;  %v1531_v61 = vrot.slane %v1530_v0, 4  ;;  %v1544_v63 = vsel %vm1441_vm5, %v1518_v8, 0.0  ;;  %v1503_v19 = vmul.f32 0.5, %v1476_v9 }
 0x229   :  { %10257 = vmatprep.subr.bf16.mxu1 %v17083_v36  ;;  %v1525_v11 = vadd.f32 %v1524_v42, %v1523_v24  ;;  %v1545_v41 = vrot.slane %v1544_v63, 4  ;;  %v1505_v49 = vmul.f32 0.5, %v1490_v55  ;;  %v1483_v10 = vadd.f32 %v1482_v35, %v1481_v7 }
 0x22a   :  { %v1539_v12 = vadd.f32 %v1538_v32, %v1537_v18  ;;  %v1532_v47 = vadd.f32 %v1531_v61, %v1530_v0  ;;  %v13768_v51 = vsub.f32 %v13700_v48, %v1503_v19  ;;  %v1495_v17 = vadd.f32 %v1494_v38, %v1493_v43 }
 0x22b   :  { %v17084_v3 = vpack.c.bf16 %v13622_v20, %v13612_v15  ;;  %v1526_v13 = vrot.slane %v1525_v11, 2  ;;  %v1546_v14 = vadd.f32 %v1545_v41, %v1544_v63  ;;  %v13774_v28 = vsub.f32 %v13708_v40, %v1505_v49 }
 0x22c   :  { %v1504_v57 = vmul.f32 0.5, %v1483_v10  ;;  %v17085_v58 = vpack.c.bf16 %v13626_v23, %v13624_v21  ;;  %v1540_v29 = vrot.slane %v1539_v12, 2  ;;  %v1533_v16 = vrot.slane %v1532_v47, 2 }
 0x22d   :  { %10259 = vmatpush1.bf16.msra.mxu1 %v17084_v3  ;;  %v1519_v48 = vmul.f32 %v13768_v51, %v13768_v51  ;;  %v1496_v43 = vrot.slane %v1495_v17, 1  ;;  %v1527_v62 = vadd.f32 %v1526_v13, %v1525_v11  ;;  %v1547_v6 = vrot.slane %v1546_v14, 2 }
 0x22e   :  { %10261 = vmatprep.subr.bf16.mxu1 %v17085_v58  ;;  %v1521_v15 = vmul.f32 %v13774_v28, %v13774_v28  ;;  %v13784_v20 = vsub.f32 %v13710_v50, %v1504_v57  ;;  %v1541_v40 = vadd.f32 %v1540_v29, %v1539_v12  ;;  %v1534_v7 = vadd.f32 %v1533_v16, %v1532_v47  ;;  %v2160_v58 = vld [vmem:[#allocation10 + $0x1d0] sm:$0xff] }
 0x22f   :  { %v1551_v26 = vsel %vm1441_vm5, %v1519_v48, 0.0  ;;  %v1497_v21 = vadd.f32 %v1496_v43, %v1495_v17  ;;  %v17086_v23 = vpack.c.bf16 %v13642_v33, %v13640_v31  ;;  %v1528_v27 = vrot.slane %v1527_v62, 1  ;;  %v2163_v43 = vld [vmem:[#allocation10 + $0x1e8] sm:$0xff] }
 0x230   :  { %v1548_v30 = vadd.f32 %v1547_v6, %v1546_v14  ;;  %v1552_v38 = vrot.slane %v1551_v26, 4  ;;  %v1565_v24 = vsel %vm1441_vm5, %v1521_v15, 0.0  ;;  %v17087_v8 = vpack.c.bf16 %v13654_v39, %v13644_v34 }
 0x231   :  { %10263 = vmatpush1.bf16.msra.mxu1 %v17086_v23  ;;  %v1542_v50 = vrot.slane %v1541_v40, 1  ;;  %v1535_v9 = vrot.slane %v1534_v7, 1  ;;  %v1566_v35 = vrot.slane %v1565_v24, 4  ;;  %v1520_v37 = vmul.f32 %v13784_v20, %v13784_v20 }
 0x232   :  { %10265 = vmatprep.subr.bf16.mxu1 %v17087_v8  ;;  %v1529_v42 = vadd.f32 %v1528_v27, %v1527_v62  ;;  %v1549_v18 = vrot.slane %v1548_v30, 1  ;;  %v1553_v0 = vadd.f32 %v1552_v38, %v1551_v26  ;;  %v1506_v31 = vmul.f32 0.5, %v1497_v21  ;;  %v2165_v62 = vld [vmem:[#allocation10 + $0x1f8] sm:$0xff]  ;;  %v17094_v8 = vld [vmem:[#allocation26_spill] sm:$0xff] }
 0x233   :  { %v1543_v33 = vadd.f32 %v1542_v50, %v1541_v40  ;;  %v1536_v55 = vadd.f32 %v1535_v9, %v1534_v7  ;;  %v1567_v36 = vadd.f32 %v1566_v35, %v1565_v24  ;;  %v1558_v32 = vsel %vm1441_vm5, %v1520_v37, 0.0  ;;  %v17093_v24 = vld [vmem:[#allocation27_spill] sm:$0xff]  ;;  %v2162_v9 = vld [vmem:[#allocation10 + $0x1e0] sm:$0xff] }
 0x234   :  { %v17088_v61 = vpack.c.bf16 %v13662_v44, %v13656_v25  ;;  %v1579_v34 = vmul.f32 0.5, %v1529_v42  ;;  %v1550_v39 = vadd.f32 %v1549_v18, %v1548_v30  ;;  %v1554_v63 = vrot.slane %v1553_v0, 2  ;;  %v2164_v35 = vld [vmem:[#allocation10 + $0x1f0] sm:$0xff] }
 0x235   :  { %v1559_v19 = vrot.slane %v1558_v32, 4  ;;  %v17089_v11 = vpack.c.bf16 %v13666_v46, %v13664_v45  ;;  %v1581_v41 = vmul.f32 0.5, %v1543_v33  ;;  %v1580_v49 = vmul.f32 0.5, %v1536_v55  ;;  %v2158_v46 = vld [vmem:[#allocation10 + $0x1c0] sm:$0xff] }
 0x236   :  { %10267 = vmatpush1.bf16.msra.mxu1 %v17088_v61  ;;  %v1568_v10 = vrot.slane %v1567_v36, 2  ;;  %v13804_v12 = vsub.f32 %v13719_v56, %v1506_v31  ;;  %v1588_v47 = vadd.f32 1e-05, %v1579_v34  ;;  %v1582_v17 = vmul.f32 0.5, %v1550_v39  ;;  %v17096_v34 = vld [vmem:[#allocation25_spill] sm:$0xff] }
 0x237   :  { %10269 = vmatprep.subr.bf16.mxu1 %v17089_v11  ;;  %v1555_v3 = vadd.f32 %v1554_v63, %v1553_v0  ;;  %v1560_v13 = vadd.f32 %v1559_v19, %v1558_v32  ;;  %v1590_v25 = vadd.f32 1e-05, %v1581_v41  ;;  %v1589_v44 = vadd.f32 1e-05, %v1580_v49 }
 0x238   :  { %v1569_v14 = vadd.f32 %v1568_v10, %v1567_v36  ;;  %v1522_v57 = vmul.f32 %v13804_v12, %v13804_v12  ;;  %v17090_v45 = vpack.c.bf16 %v13674_v53, %v13672_v52  ;;  %12033 = vrsqrt.f32 %v1588_v47 }
 0x239   :  { %v1591_v29 = vadd.f32 1e-05, %v1582_v17  ;;  %v1556_v56 = vrot.slane %v1555_v3, 1  ;;  %v1561_v16 = vrot.slane %v1560_v13, 2  ;;  %v17091_v48 = vpack.c.bf16 %v13682_v59, %v13676_v54 }
 0x23a   :  { %10271 = vmatpush1.bf16.msra.mxu1 %v17090_v45  ;;  %12035 = vrsqrt.f32 %v1590_v25  ;;  %v1570_v6 = vrot.slane %v1569_v14, 1  ;;  %v1572_v15 = vsel %vm1441_vm5, %v1522_v57, 0.0  ;;  %v12329_v7 = vmov 1966171168  }
 0x23b   :  { %10273 = vmatprep.subr.bf16.mxu1 %v17091_v48  ;;  %12037 = vrsqrt.f32 %v1589_v44  ;;  %v1557_v40 = vadd.f32 %v1556_v56, %v1555_v3  ;;  %v1562_v52 = vadd.f32 %v1561_v16, %v1560_v13  ;;  %v1573_v53 = vrot.slane %v1572_v15, 4 }
 0x23c   :  { %v1617_v26 = vunpack.c.l.s4 %v12329_v7  ;;  %12039 = vrsqrt.f32 %v1591_v29  ;;  %v17092_v21 = vpack.c.bf16 %v13686_v60, %v13684_v22  ;;  %v10278_v23 = vpack.c.bf16 %v2160_v58, %v2158_v46 }
 0x23d   :  { %v10280_v54 = vpack.c.bf16 %v2165_v62, %v2163_v43  ;;  %v1583_v59 = vmul.f32 0.5, %v1557_v40  ;;  %v1571_v27 = vadd.f32 %v1570_v6, %v1569_v14  ;;  %v1563_v30 = vrot.slane %v1562_v52, 1  ;;  %v1587_v62 = vld [vmem:[%s17097_s8] sm:$0xff] }
 0x23e   :  { %10275 = vmatpush1.bf16.msra.mxu1 %v17092_v21  ;;  %v1574_v38 = vadd.f32 %v1573_v53, %v1572_v15  ;;  %v17095_v50 = vpack.c.bf16 %v17093_v24, %v17094_v8  ;;  %v1618_v0 = vunpack.c.0.s8 %v1617_v26  ;;  %v10282_v31 = vpack.c.bf16 %v2164_v35, %v2162_v9  ;;  %v1712_v15 = vld [vmem:[%s17098_s17] sm:$0xff] }
 0x23f   :  { %v1592_v37 = vadd.f32 1e-05, %v1583_v59  ;;  %v1564_v42 = vadd.f32 %v1563_v30, %v1562_v52  ;;  %v1585_v22 = vmul.f32 0.5, %v1571_v27  ;;  %v1694_v6 = vsub.s32 7, %v17096_v34 }
 0x240   :  { %10277 = vmatprep.subr.bf16.mxu1 %v17095_v50  ;;  %v1575_v18 = vrot.slane %v1574_v38, 2  ;;  %v13822_v39 = vsub.s32 %v1618_v0, %v17096_v34  ;;  %v1678_v52 = vsub.s32 3, %v17096_v34  ;;  %v1674_v53 = vsub.s32 2, %v17096_v34 }
 0x241   :  { %v1584_v60 = vmul.f32 0.5, %v1564_v42  ;;  %12041 = vrsqrt.f32 %v1592_v37  ;;  %v1594_v19 = vadd.f32 1e-05, %v1585_v22  ;;  %v13840_v7 = vsub.s32 1, %v17096_v34 }
 0x242   :  { %10279 = vmatpush1.bf16.msra.mxu1 %v10278_v23  ;;  %v1576_v33 = vadd.f32 %v1575_v18, %v1574_v38  ;;  %v12034_v55 = vpop.eup %12033  ;;  %v13843_v26 = vsub.s32 0, %v17096_v34  ;;  %v1686_v21 = vsub.s32 5, %v17096_v34  ;;  %v1682_v23 = vsub.s32 4, %v17096_v34 }
 0x243   :  { %10281 = vmatprep.subr.bf16.mxu1 %v10280_v54  ;;  %v1593_v36 = vadd.f32 1e-05, %v1584_v60  ;;  %v1690_v54 = vsub.s32 6, %v17096_v34  ;;  %v1729_v27 = vrot.slane %v1712_v15, %v1678_v52  ;;  %v1725_v30 = vrot.slane %v1712_v15, %v1674_v53 }
 0x244   :  { %v1577_v32 = vrot.slane %v1576_v33, 1  ;;  %v12036_v61 = vpop.eup %12035  ;;  %v1721_v38 = vrot.slane %v1712_v15, %v13840_v7  ;;  %v1717_v24 = vrot.slane %v1712_v15, %v13843_v26  ;;  %v1737_v8 = vrot.slane %v1712_v15, %v1686_v21 }
 0x245   :  { %v12038_v63 = vpop.eup %12037  ;;  %12043 = vrsqrt.f32 %v1593_v36 }
 0x246   :  { %10283 = vmatpush1.bf16.msra.mxu1 %v10282_v31  ;;  %v1578_v11 = vadd.f32 %v1577_v32, %v1576_v33  ;;  %v12040_v41 = vpop.eup %12039  ;;  %v1612_v49 = vcombine.low %v12034_v55, %v12038_v63  ;;  %12045 = vrsqrt.f32 %v1594_v19 }
 0x247   :  { %v1613_v10 = vcombine.low %v12036_v61, %v12040_v41 }
 0x248   :  { %v1586_v47 = vmul.f32 0.5, %v1578_v11  ;;  %v1622_v17 = vrot.slane %v1612_v49, %v13822_v39 }
 0x249   :  { %v1629_v3 = vrot.slane %v1613_v10, %v13822_v39 }
 0x24a   :  { %v1595_v13 = vadd.f32 1e-05, %v1586_v47 }
 0x24b   :  { %v1644_v25 = vcombine.low %v1622_v17, %v1629_v3  ;;  %v12042_v44 = vpop.eup %12041  ;;  %v1770_v3 = vld [vmem:[%s17099_s0] sm:$0xff] }
 0x24c   :  { %12047 = vrsqrt.f32 %v1595_v13 }
 0x24d   :  { %v1652_v48 = vrot.slane %v1644_v25, %v13822_v39  ;;  %v1741_v25 = vrot.slane %v1712_v15, %v1690_v54 }
 0x24f   :  { %v12044_v14 = vpop.eup %12043 }
 0x250   :  { %v1614_v57 = vcombine.low %v12042_v44, %v12044_v14  ;;  %v12046_v45 = vpop.eup %12045 }
 0x252   :  { %v1636_v58 = vrot.slane %v1614_v57, %v13822_v39  ;;  %v9546_v57 = vld [vmem:[%s17099_s0 + $0x10] sm:$0xff] }
 0x256   :  { %v12048_v46 = vpop.eup %12047 }
 0x257   :  { %v1615_v29 = vcombine.low %v12046_v45, %v12048_v46  ;;  %v9550_v46 = vld [vmem:[%s17099_s0 + $0x18] sm:$0xff] }
 0x259   :  { %v1643_v56 = vrot.slane %v1615_v29, %v13822_v39  ;;  %v2565_v29 = vld [vmem:[#allocation10 + $0x418] sm:$0xff] }
 0x25b   :  { %v1645_v16 = vcombine.low %v1636_v58, %v1643_v56  ;;  %v2563_v58 = vld [vmem:[#allocation10 + $0x408] sm:$0xff] }
 0x25c   :  { %v10348_v56 = vpack.c.bf16 %v2565_v29, %v2563_v58  ;;  %v2600_v58 = vld [vmem:[#allocation10 + $0x530] sm:$0xff]  ;;  %v2603_v29 = vld [vmem:[#allocation10 + $0x548] sm:$0xff] }
 0x25d   :  { %v1659_v43 = vrot.slane %v1645_v16, %v13822_v39  ;;  %v2562_v16 = vld [vmem:[#allocation10 + $0x400] sm:$0xff] }
 0x25e   :  { %10349 = vmatprep.subr.bf16.mxu1 %v10348_v56  ;;  %v2605_v56 = vld [vmem:[#allocation10 + $0x558] sm:$0xff] }
 0x25f   :  { %v1660_v40 = vcombine.low %v1652_v48, %v1659_v43  ;;  %v2564_v48 = vld [vmem:[#allocation10 + $0x410] sm:$0xff]  ;;  %v2567_v43 = vld [vmem:[#allocation10 + $0x428] sm:$0xff] }
 0x261   :  { %v1662_v59 = vmul.f32 %v1660_v40, %v1587_v62  ;;  %v2569_v62 = vld [vmem:[#allocation10 + $0x438] sm:$0xff] }
 0x263   :  { %v1695_v50 = vrot.slane %v1662_v59, %v1694_v6  ;;  %v1679_v9 = vrot.slane %v1662_v59, %v1678_v52  ;;  %v1675_v35 = vrot.slane %v1662_v59, %v1674_v53  ;;  %v1671_v37 = vrot.slane %v1662_v59, %v13840_v7  ;;  %v2566_v53 = vld [vmem:[#allocation10 + $0x420] sm:$0xff] }
 0x264   :  { %v1667_v42 = vrot.slane %v1662_v59, %v13843_v26  ;;  %v1687_v18 = vrot.slane %v1662_v59, %v1686_v21  ;;  %v1683_v0 = vrot.slane %v1662_v59, %v1682_v23  ;;  %v1691_v31 = vrot.slane %v1662_v59, %v1690_v54  ;;  %v2568_v21 = vld [vmem:[#allocation10 + $0x430] sm:$0xff]  ;;  %v2573_v54 = vld [vmem:[#allocation10 + $0x458] sm:$0xff] }
 0x265   :  { %v1711_v22 = vmul.f32 %v1695_v50, %v13804_v12  ;;  %v1707_v60 = vmul.f32 %v1679_v9, %v13749_v1  ;;  %v1706_v33 = vmul.f32 %v1675_v35, %v13738_v4  ;;  %v1705_v55 = vmul.f32 %v1671_v37, %v13741_v5  ;;  %v9539_v4 = vld [vmem:[%s17099_s0 + $0x8] sm:$0xff]  ;;  %v2574_v35 = vld [vmem:[#allocation10 + $0x460] sm:$0xff]  ;;  %v2576_v37 = vld [vmem:[#allocation10 + $0x470] sm:$0xff] }
 0x266   :  { %v1704_v36 = vmul.f32 %v1667_v42, %v13732_v2  ;;  %v1709_v32 = vmul.f32 %v1687_v18, %v13784_v20  ;;  %v1708_v61 = vmul.f32 %v1683_v0, %v13768_v51  ;;  %v1710_v34 = vmul.f32 %v1691_v31, %v13774_v28  ;;  %v2579_v42 = vld [vmem:[#allocation10 + $0x488] sm:$0xff]  ;;  %v2581_v18 = vld [vmem:[#allocation10 + $0x498] sm:$0xff] }
 0x267   :  { %v1757_v63 = vadd.f32 %v1729_v27, %v1707_v60  ;;  %v1756_v19 = vadd.f32 %v1725_v30, %v1706_v33  ;;  %v1755_v11 = vadd.f32 %v1721_v38, %v1705_v55  ;;  %v1733_v1 = vrot.slane %v1712_v15, %v1682_v23  ;;  %v2571_v23 = vld [vmem:[#allocation10 + $0x448] sm:$0xff]  ;;  %v2570_v30 = vld [vmem:[#allocation10 + $0x440] sm:$0xff]  ;;  %v2572_v38 = vld [vmem:[#allocation10 + $0x450] sm:$0xff] }
 0x268   :  { %v1754_v41 = vadd.f32 %v1717_v24, %v1704_v36  ;;  %v1759_v10 = vadd.f32 %v1737_v8, %v1709_v32  ;;  %v1745_v51 = vrot.slane %v1712_v15, %v1694_v6  ;;  %v17100_v20 = vmov 0.0   ;;  %v2575_v24 = vld [vmem:[#allocation10 + $0x468] sm:$0xff]  ;;  %v2577_v8 = vld [vmem:[#allocation10 + $0x478] sm:$0xff]  ;;  %v2580_v60 = vld [vmem:[#allocation10 + $0x490] sm:$0xff] }
 0x269   :  { %v1765_v49 = vmax.f32 %v1757_v63, 0.0  ;;  %v1764_v12 = vmax.f32 %v1756_v19, 0.0  ;;  %v1763_v2 = vmax.f32 %v1755_v11, 0.0  ;;  %v1758_v47 = vadd.f32 %v1733_v1, %v1708_v61  ;;  %v2583_v33 = vld [vmem:[#allocation10 + $0x4a8] sm:$0xff]  ;;  %v2585_v55 = vld [vmem:[#allocation10 + $0x4b8] sm:$0xff]  ;;  %v2582_v61 = vld [vmem:[#allocation10 + $0x4a0] sm:$0xff] }
 0x26a   :  { %v1762_v5 = vmax.f32 %v1754_v41, 0.0  ;;  %v1767_v28 = vmax.f32 %v1759_v10, 0.0  ;;  %v1761_v17 = vadd.f32 %v1745_v51, %v1711_v22  ;;  %v1760_v14 = vadd.f32 %v1741_v25, %v1710_v34  ;;  %v2578_v22 = vld [vmem:[#allocation10 + $0x480] sm:$0xff]  ;;  %v2584_v34 = vld [vmem:[#allocation10 + $0x4b0] sm:$0xff]  ;;  %v2587_v63 = vld [vmem:[#allocation10 + $0x4c8] sm:$0xff] }
 0x26b   :  { %9540 = vmatprep.subr.msk.mxu0 %vm1441_vm5, %v1765_v49  ;;  %v1766_v13 = vmax.f32 %v1758_v47, 0.0  ;;  %v10350_v15 = vpack.c.bf16 %v2564_v48, %v2562_v16  ;;  %v10352_v52 = vpack.c.bf16 %v2569_v62, %v2567_v43  ;;  %v10354_v59 = vpack.c.bf16 %v2568_v21, %v2566_v53  ;;  %v2589_v19 = vld [vmem:[#allocation10 + $0x4d8] sm:$0xff]  ;;  %v2586_v49 = vld [vmem:[#allocation10 + $0x4c0] sm:$0xff]  ;;  %v2591_v10 = vld [vmem:[#allocation10 + $0x4e8] sm:$0xff] }
 0x26c   :  { %9541 = vmatpush1.msk.msra.mxu0 %vm1441_vm5, %v1764_v12  ;;  %v1769_v44 = vmax.f32 %v1761_v17, 0.0  ;;  %v1768_v45 = vmax.f32 %v1760_v14, 0.0  ;;  %v10356_v27 = vpack.c.bf16 %v2573_v54, %v2571_v23  ;;  %v10358_v50 = vpack.c.bf16 %v2572_v38, %v2570_v30  ;;  %v2588_v12 = vld [vmem:[#allocation10 + $0x4d0] sm:$0xff]  ;;  %v2590_v1 = vld [vmem:[#allocation10 + $0x4e0] sm:$0xff]  ;;  %v2597_v47 = vld [vmem:[#allocation10 + $0x518] sm:$0xff] }
 0x26d   :  { %9542 = vmatmul.mubr.msk.f32.vlgmr.msra.gmra.mrb[4].mxu0 %vm1773_vm6, %v9539_v4  ;;  %9543 = vmatprep.subr.msk.mxu0 %vm1441_vm5, %v1763_v2  ;;  %v10360_v9 = vpack.c.bf16 %v2577_v8, %v2575_v24  ;;  %v10362_v0 = vpack.c.bf16 %v2576_v37, %v2574_v35  ;;  %v10364_v31 = vpack.c.bf16 %v2581_v18, %v2579_v42  ;;  %v2593_v4 = vld [vmem:[#allocation10 + $0x4f8] sm:$0xff]  ;;  %v2592_v51 = vld [vmem:[#allocation10 + $0x4f0] sm:$0xff]  ;;  %v2602_v43 = vld [vmem:[#allocation10 + $0x540] sm:$0xff] }
 0x26e   :  { %9544 = vmatpush1.msk.msra.mxu0 %vm1441_vm5, %v1762_v5  ;;  %1927 = vmatprep.mubr.f32.mxu0 %v17100_v20  ;;  %v10366_v36 = vpack.c.bf16 %v2580_v60, %v2578_v22  ;;  %v10368_v32 = vpack.c.bf16 %v2585_v55, %v2583_v33  ;;  %v10370_v11 = vpack.c.bf16 %v2584_v34, %v2582_v61  ;;  %v2596_v25 = vld [vmem:[#allocation10 + $0x510] sm:$0xff]  ;;  %v2601_v14 = vld [vmem:[#allocation10 + $0x538] sm:$0xff]  ;;  %v2606_v23 = vld [vmem:[#allocation10 + $0x560] sm:$0xff] }
 0x26f   :  { %9547 = vmatprep.subr.msk.mxu0 %vm1441_vm5, %v1767_v28  ;;  %v10372_v41 = vpack.c.bf16 %v2589_v19, %v2587_v63  ;;  %v10374_v2 = vpack.c.bf16 %v2588_v12, %v2586_v49  ;;  %v10376_v5 = vpack.c.bf16 %v2593_v4, %v2591_v10  ;;  %v2595_v28 = vld [vmem:[#allocation10 + $0x508] sm:$0xff]  ;;  %v10378_v17 = vpack.c.bf16 %v2592_v51, %v2590_v1  ;;  %v2604_v62 = vld [vmem:[#allocation10 + $0x550] sm:$0xff]  ;;  %v2610_v24 = vld [vmem:[#allocation10 + $0x580] sm:$0xff] }
 0x270   :  { %v10388_v48 = vpack.c.bf16 %v2605_v56, %v2603_v29  ;;  %v10390_v53 = vpack.c.bf16 %v2604_v62, %v2602_v43  ;;  %v2608_v54 = vld [vmem:[#allocation10 + $0x570] sm:$0xff]  ;;  %v2614_v42 = vld [vmem:[#allocation10 + $0x5a0] sm:$0xff]  ;;  %v2331_v49 = vld [vmem:[#allocation10 + $0x218] sm:$0xff] }
 0x271   :  { %v10394_v30 = vpack.c.bf16 %v2608_v54, %v2606_v23  ;;  %v2612_v8 = vld [vmem:[#allocation10 + $0x590] sm:$0xff]  ;;  %v2618_v33 = vld [vmem:[#allocation10 + $0x5c0] sm:$0xff]  ;;  %v2333_v4 = vld [vmem:[#allocation10 + $0x228] sm:$0xff] }
 0x272   :  { %v10398_v35 = vpack.c.bf16 %v2612_v8, %v2610_v24  ;;  %v2616_v18 = vld [vmem:[#allocation10 + $0x5b0] sm:$0xff]  ;;  %v2622_v63 = vld [vmem:[#allocation10 + $0x5e0] sm:$0xff]  ;;  %v2341_v29 = vld [vmem:[#allocation10 + $0x268] sm:$0xff] }
 0x273   :  { %v10402_v22 = vpack.c.bf16 %v2616_v18, %v2614_v42  ;;  %v2620_v55 = vld [vmem:[#allocation10 + $0x5d0] sm:$0xff]  ;;  %v2328_v12 = vld [vmem:[#allocation10 + $0x200] sm:$0xff]  ;;  %v2343_v56 = vld [vmem:[#allocation10 + $0x278] sm:$0xff] }
 0x274   :  { %v10406_v61 = vpack.c.bf16 %v2620_v55, %v2618_v33  ;;  %v2624_v19 = vld [vmem:[#allocation10 + $0x5f0] sm:$0xff]  ;;  %v2340_v43 = vld [vmem:[#allocation10 + $0x260] sm:$0xff]  ;;  %v2353_v8 = vld [vmem:[#allocation10 + $0x2c8] sm:$0xff] }
 0x275   :  { %9545 = vmatmul.mubr.msk.f32.vlgmr.msra.gmra.mrb[4].mxu0 %vm1773_vm6, %v1770_v3  ;;  %v10380_v3 = vpack.c.bf16 %v2597_v47, %v2595_v28  ;;  %v2330_v10 = vld [vmem:[#allocation10 + $0x210] sm:$0xff]  ;;  %v2237_v28 = vld [vmem:[%s17101_s26] sm:$0xff]  ;;  %v2357_v18 = vld [vmem:[#allocation10 + $0x2e8] sm:$0xff] }
 0x276   :  { %9548 = vmatpush1.msk.msra.mxu0 %vm1441_vm5, %v1766_v13  ;;  %2009 = vmatprep.mubr.f32.mxu0 %v17100_v20  ;;  %v2594_v13 = vld [vmem:[#allocation10 + $0x500] sm:$0xff]  ;;  %v10286_v47 = vpack.c.bf16 %v2330_v10, %v2328_v12  ;;  %v2342_v62 = vld [vmem:[#allocation10 + $0x270] sm:$0xff]  ;;  %v2361_v55 = vld [vmem:[#allocation10 + $0x308] sm:$0xff] }
 0x277   :  { %9551 = vmatprep.subr.msk.mxu0 %vm1441_vm5, %v1769_v44  ;;  %v2599_v44 = vld [vmem:[#allocation10 + $0x528] sm:$0xff]  ;;  %v2344_v23 = vld [vmem:[#allocation10 + $0x280] sm:$0xff]  ;;  %v2346_v54 = vld [vmem:[#allocation10 + $0x290] sm:$0xff] }
 0x278   :  { %v2350_v24 = vld [vmem:[#allocation10 + $0x2b0] sm:$0xff]  ;;  %v2364_v12 = vld [vmem:[#allocation10 + $0x320] sm:$0xff] }
 0x279   :  { %v2354_v42 = vld [vmem:[#allocation10 + $0x2d0] sm:$0xff] }
 0x27a   :  { %v2358_v33 = vld [vmem:[#allocation10 + $0x2f0] sm:$0xff] }
 0x27b   :  { %v2366_v10 = vld [vmem:[#allocation10 + $0x330] sm:$0xff] }
 0x27d   :  { %9549 = vmatmul.mubr.msk.f32.vlgmr.msra.gmra.mrb[4].mxu0 %vm1773_vm6, %v9546_v57  ;;  %v10382_v57 = vpack.c.bf16 %v2596_v25, %v2594_v13  ;;  %v2334_v13 = vld [vmem:[#allocation10 + $0x230] sm:$0xff]  ;;  %v2337_v25 = vld [vmem:[#allocation10 + $0x248] sm:$0xff] }
 0x27e   :  { %9552 = vmatpush1.msk.msra.mxu0 %vm1441_vm5, %v1768_v45  ;;  %2093 = vmatprep.mubr.f32.mxu0 %v17100_v20  ;;  %v10384_v45 = vpack.c.bf16 %v2601_v14, %v2599_v44  ;;  %v2339_v44 = vld [vmem:[#allocation10 + $0x258] sm:$0xff]  ;;  %v2238_v14 = vld [vmem:[%s17101_s26 + $0x8] sm:$0xff] }
 0x285   :  { %9553 = vmatmul.mubr.msk.f32.vlgmr.msra.gmra.mrb[4].mxu0 %vm1773_vm6, %v9550_v46  ;;  %v2598_v46 = vld [vmem:[#allocation10 + $0x520] sm:$0xff] }
 0x286   :  { %2310 = vmatprep.mubr.f32.mxu0 %v17100_v20  ;;  %v10386_v16 = vpack.c.bf16 %v2600_v58, %v2598_v46  ;;  %v2336_v46 = vld [vmem:[#allocation10 + $0x240] sm:$0xff]  ;;  %v2338_v58 = vld [vmem:[#allocation10 + $0x250] sm:$0xff] }
 0x358   :  { %v13888_v6 = vpop.f32.mrb[4].mxu0 }
 0x359   :  { %v13890_v40 = vpop.f32.mrb[5].mxu0 }
 0x35a   :  { %2230 = vmatprep.mubr.f32.mxu1 %v13890_v40 }
 0x35b   :  { %2231 = vmatmul.mubr.f32.vlgmr.msra.gmra.mrb[4].mxu1 %v13888_v6 }
 0x35c   :  { %10351 = vmatpush1.bf16.msra.mxu1 %v10350_v15  ;;  %2690 = vmatprep.mubr.f32.mxu1 %v13890_v40  ;;  %v2607_v15 = vld [vmem:[#allocation10 + $0x568] sm:$0xff] }
 0x35d   :  { %10353 = vmatprep.subr.bf16.mxu1 %v10352_v52  ;;  %v2609_v52 = vld [vmem:[#allocation10 + $0x578] sm:$0xff] }
 0x35e   :  { %v10392_v21 = vpack.c.bf16 %v2609_v52, %v2607_v15  ;;  %v2345_v15 = vld [vmem:[#allocation10 + $0x288] sm:$0xff]  ;;  %v2347_v52 = vld [vmem:[#allocation10 + $0x298] sm:$0xff] }
 0x360   :  { %10355 = vmatpush1.bf16.msra.mxu1 %v10354_v59  ;;  %v2611_v59 = vld [vmem:[#allocation10 + $0x588] sm:$0xff] }
 0x361   :  { %10357 = vmatprep.subr.bf16.mxu1 %v10356_v27  ;;  %v2613_v27 = vld [vmem:[#allocation10 + $0x598] sm:$0xff] }
 0x362   :  { %v10396_v38 = vpack.c.bf16 %v2613_v27, %v2611_v59  ;;  %v2349_v59 = vld [vmem:[#allocation10 + $0x2a8] sm:$0xff]  ;;  %v2351_v27 = vld [vmem:[#allocation10 + $0x2b8] sm:$0xff] }
 0x364   :  { %10359 = vmatpush1.bf16.msra.mxu1 %v10358_v50  ;;  %v2615_v50 = vld [vmem:[#allocation10 + $0x5a8] sm:$0xff] }
 0x365   :  { %10361 = vmatprep.subr.bf16.mxu1 %v10360_v9  ;;  %v2617_v9 = vld [vmem:[#allocation10 + $0x5b8] sm:$0xff] }
 0x366   :  { %v10400_v37 = vpack.c.bf16 %v2617_v9, %v2615_v50  ;;  %v2355_v50 = vld [vmem:[#allocation10 + $0x2d8] sm:$0xff] }
 0x368   :  { %10363 = vmatpush1.bf16.msra.mxu1 %v10362_v0  ;;  %v2619_v0 = vld [vmem:[#allocation10 + $0x5c8] sm:$0xff] }
 0x369   :  { %10365 = vmatprep.subr.bf16.mxu1 %v10364_v31  ;;  %v2621_v31 = vld [vmem:[#allocation10 + $0x5d8] sm:$0xff] }
 0x36a   :  { %v10404_v60 = vpack.c.bf16 %v2621_v31, %v2619_v0  ;;  %v2359_v0 = vld [vmem:[#allocation10 + $0x2f8] sm:$0xff] }
 0x36c   :  { %10367 = vmatpush1.bf16.msra.mxu1 %v10366_v36  ;;  %v2623_v36 = vld [vmem:[#allocation10 + $0x5e8] sm:$0xff] }
 0x36d   :  { %10369 = vmatprep.subr.bf16.mxu1 %v10368_v32  ;;  %v2625_v32 = vld [vmem:[#allocation10 + $0x5f8] sm:$0xff] }
 0x36e   :  { %v10408_v34 = vpack.c.bf16 %v2625_v32, %v2623_v36  ;;  %v2363_v36 = vld [vmem:[#allocation10 + $0x318] sm:$0xff] }
 0x370   :  { %10371 = vmatpush1.bf16.msra.mxu1 %v10370_v11  ;;  %v10410_v11 = vpack.c.bf16 %v2624_v19, %v2622_v63  ;;  %v2362_v63 = vld [vmem:[#allocation10 + $0x310] sm:$0xff]  ;;  %v2365_v19 = vld [vmem:[#allocation10 + $0x328] sm:$0xff] }
 0x371   :  { %10373 = vmatprep.subr.bf16.mxu1 %v10372_v41  ;;  %v2329_v41 = vld [vmem:[#allocation10 + $0x208] sm:$0xff] }
 0x372   :  { %v10284_v1 = vpack.c.bf16 %v2331_v49, %v2329_v41 }
 0x374   :  { %10375 = vmatpush1.bf16.msra.mxu1 %v10374_v2  ;;  %v2335_v2 = vld [vmem:[#allocation10 + $0x238] sm:$0xff] }
 0x375   :  { %10377 = vmatprep.subr.bf16.mxu1 %v10376_v5 }
 0x378   :  { %10379 = vmatpush1.bf16.msra.mxu1 %v10378_v17  ;;  %v10288_v17 = vpack.c.bf16 %v2335_v2, %v2333_v4  ;;  %v2369_v4 = vld [vmem:[#allocation10 + $0x348] sm:$0xff]  ;;  %v2371_v2 = vld [vmem:[#allocation10 + $0x358] sm:$0xff] }
 0x379   :  { %10381 = vmatprep.subr.bf16.mxu1 %v10380_v3  ;;  %v2332_v3 = vld [vmem:[#allocation10 + $0x220] sm:$0xff] }
 0x37c   :  { %10383 = vmatpush1.bf16.msra.mxu1 %v10382_v57  ;;  %v10290_v57 = vpack.c.bf16 %v2334_v13, %v2332_v3 }
 0x37d   :  { %10385 = vmatprep.subr.bf16.mxu1 %v10384_v45  ;;  %v10292_v45 = vpack.c.bf16 %v2339_v44, %v2337_v25  ;;  %v2372_v25 = vld [vmem:[#allocation10 + $0x360] sm:$0xff]  ;;  %v2374_v44 = vld [vmem:[#allocation10 + $0x370] sm:$0xff] }
 0x380   :  { %10387 = vmatpush1.bf16.msra.mxu1 %v10386_v16  ;;  %v10294_v16 = vpack.c.bf16 %v2338_v58, %v2336_v46  ;;  %v2376_v58 = vld [vmem:[#allocation10 + $0x380] sm:$0xff] }
 0x381   :  { %10389 = vmatprep.subr.bf16.mxu1 %v10388_v48  ;;  %v10296_v48 = vpack.c.bf16 %v2343_v56, %v2341_v29  ;;  %v2378_v29 = vld [vmem:[#allocation10 + $0x390] sm:$0xff]  ;;  %v2381_v56 = vld [vmem:[#allocation10 + $0x3a8] sm:$0xff] }
 0x384   :  { %10391 = vmatpush1.bf16.msra.mxu1 %v10390_v53  ;;  %v10298_v53 = vpack.c.bf16 %v2342_v62, %v2340_v43  ;;  %v2380_v62 = vld [vmem:[#allocation10 + $0x3a0] sm:$0xff] }
 0x385   :  { %10393 = vmatprep.subr.bf16.mxu1 %v10392_v21  ;;  %v10300_v21 = vpack.c.bf16 %v2347_v52, %v2345_v15  ;;  %v2382_v15 = vld [vmem:[#allocation10 + $0x3b0] sm:$0xff]  ;;  %v2385_v52 = vld [vmem:[#allocation10 + $0x3c8] sm:$0xff] }
 0x388   :  { %10395 = vmatpush1.bf16.msra.mxu1 %v10394_v30  ;;  %v10302_v30 = vpack.c.bf16 %v2346_v54, %v2344_v23  ;;  %v2384_v54 = vld [vmem:[#allocation10 + $0x3c0] sm:$0xff] }
 0x389   :  { %10397 = vmatprep.subr.bf16.mxu1 %v10396_v38  ;;  %v10304_v38 = vpack.c.bf16 %v2351_v27, %v2349_v59  ;;  %v2386_v59 = vld [vmem:[#allocation10 + $0x3d0] sm:$0xff]  ;;  %v2389_v27 = vld [vmem:[#allocation10 + $0x3e8] sm:$0xff] }
 0x38c   :  { %10399 = vmatpush1.bf16.msra.mxu1 %v10398_v35  ;;  %v10308_v35 = vpack.c.bf16 %v2355_v50, %v2353_v8  ;;  %v2390_v8 = vld [vmem:[#allocation10 + $0x3f0] sm:$0xff] }
 0x38d   :  { %10401 = vmatprep.subr.bf16.mxu1 %v10400_v37  ;;  %v2352_v37 = vld [vmem:[#allocation10 + $0x2c0] sm:$0xff] }
 0x38e   :  { %v10310_v31 = vpack.c.bf16 %v2354_v42, %v2352_v37  ;;  %v2814_v37 = vld [vmem:[%s17102_s1 + $0x8] sm:$0xff]  ;;  %v2816_v42 = vld [vmem:[%s17102_s1 + $0x18] sm:$0xff] }
 0x390   :  { %10403 = vmatpush1.bf16.msra.mxu1 %v10402_v22  ;;  %v10312_v22 = vpack.c.bf16 %v2359_v0, %v2357_v18  ;;  %v2813_v18 = vld [vmem:[%s17102_s1] sm:$0xff]  ;;  %v13921_v0 = vpack.c.bf16 %v2816_v42, %v2814_v37  ;;  %v2851_v37 = vld [vmem:[%s17102_s1 + $0x130] sm:$0xff]  ;;  %v2854_v42 = vld [vmem:[%s17102_s1 + $0x148] sm:$0xff] }
 0x391   :  { %10405 = vmatprep.subr.bf16.mxu1 %v10404_v60  ;;  %v2356_v60 = vld [vmem:[#allocation10 + $0x2e0] sm:$0xff] }
 0x392   :  { %v10314_v32 = vpack.c.bf16 %v2358_v33, %v2356_v60 }
 0x394   :  { %10407 = vmatpush1.bf16.msra.mxu1 %v10406_v61  ;;  %v10316_v61 = vpack.c.bf16 %v2363_v36, %v2361_v55  ;;  %v2817_v55 = vld [vmem:[%s17102_s1 + $0x20] sm:$0xff]  ;;  %v2819_v36 = vld [vmem:[%s17102_s1 + $0x30] sm:$0xff] }
 0x395   :  { %10409 = vmatprep.subr.bf16.mxu1 %v10408_v34  ;;  %v2360_v34 = vld [vmem:[#allocation10 + $0x300] sm:$0xff] }
 0x396   :  { %v10318_v41 = vpack.c.bf16 %v2362_v63, %v2360_v34  ;;  %v13951_v34 = vpack.c.bf16 %v2819_v36, %v2817_v55  ;;  %v2855_v55 = vld [vmem:[%s17102_s1 + $0x150] sm:$0xff] }
 0x398   :  { %10411 = vmatpush1.bf16.msra.mxu1 %v10410_v11  ;;  %v2367_v11 = vld [vmem:[#allocation10 + $0x338] sm:$0xff] }
 0x399   :  { %v10320_v49 = vpack.c.bf16 %v2367_v11, %v2365_v19  ;;  %10477 = vmatprep.subr.bf16.mxu1 %v13921_v0  ;;  %v2821_v19 = vld [vmem:[%s17102_s1 + $0x40] sm:$0xff]  ;;  %v2823_v11 = vld [vmem:[%s17102_s1 + $0x50] sm:$0xff] }
 0x39b   :  { %2691 = vmatmul.mubr.f32.vlgmr.msra.gmra.mrb[6].mxu1 %v13888_v6 }
 0x42e   :  { %v2232_v5 = vpop.f32.mrb[4].mxu1 }
 0x42f   :  { %v2234_v51 = vpop.f32.mrb[5].mxu1 }
 0x430   :  { %2246 = vmatprep.subr.mxu0 %v2234_v51  ;;  %v2368_v51 = vld [vmem:[#allocation10 + $0x340] sm:$0xff] }
 0x431   :  { %2247 = vmatpush1.msra.mxu0 %v2232_v5  ;;  %v10322_v5 = vpack.c.bf16 %v2366_v10, %v2364_v12  ;;  %v13969_v12 = vpack.c.bf16 %v2823_v11, %v2821_v19  ;;  %v9556_v19 = vld [vmem:[%s17101_s26 + $0x10] sm:$0xff]  ;;  %v9557_v11 = vld [vmem:[%s17101_s26 + $0x18] sm:$0xff] }
 0x432   :  { %9554 = vmatmul.mubr.msk.f32.vlgmr.msra.gmra.mrb[6].mxu0 %vm2239_vm7, %v2237_v28  ;;  %10285 = vmatprep.subr.bf16.mxu0 %v10284_v1  ;;  %v10324_v1 = vpack.c.bf16 %v2371_v2, %v2369_v4  ;;  %v2370_v28 = vld [vmem:[#allocation10 + $0x350] sm:$0xff]  ;;  %v2825_v4 = vld [vmem:[%s17102_s1 + $0x60] sm:$0xff] }
 0x433   :  { %10287 = vmatpush1.bf16.msra.mxu0 %v10286_v47  ;;  %2316 = vmatprep.mubr.f32.mxu0 %v17100_v20  ;;  %v2373_v47 = vld [vmem:[#allocation10 + $0x368] sm:$0xff]  ;;  %v10326_v3 = vpack.c.bf16 %v2370_v28, %v2368_v51  ;;  %v2827_v2 = vld [vmem:[%s17102_s1 + $0x70] sm:$0xff] }
 0x434   :  { %10289 = vmatprep.subr.bf16.mxu0 %v10288_v17  ;;  %v2375_v17 = vld [vmem:[#allocation10 + $0x378] sm:$0xff]  ;;  %v13987_v51 = vpack.c.bf16 %v2827_v2, %v2825_v4  ;;  %v2861_v4 = vld [vmem:[%s17102_s1 + $0x180] sm:$0xff]  ;;  %v2863_v2 = vld [vmem:[%s17102_s1 + $0x190] sm:$0xff] }
 0x435   :  { %v10328_v13 = vpack.c.bf16 %v2375_v17, %v2373_v47  ;;  %v2829_v47 = vld [vmem:[%s17102_s1 + $0x80] sm:$0xff]  ;;  %v2831_v17 = vld [vmem:[%s17102_s1 + $0x90] sm:$0xff] }
 0x436   :  { %9555 = vmatmul.mubr.msk.f32.gmra.mrb[8].mxu0 %vm2239_vm7, %v2238_v14  ;;  %v2377_v14 = vld [vmem:[#allocation10 + $0x388] sm:$0xff] }
 0x437   :  { %10291 = vmatpush1.bf16.msra.mxu0 %v10290_v57  ;;  %2456 = vmatprep.mubr.f32.mxu0 %v13890_v40  ;;  %v2348_v40 = vld [vmem:[#allocation10 + $0x2a0] sm:$0xff]  ;;  %v2379_v57 = vld [vmem:[#allocation10 + $0x398] sm:$0xff] }
 0x438   :  { %10293 = vmatprep.subr.bf16.mxu0 %v10292_v45  ;;  %v10306_v9 = vpack.c.bf16 %v2350_v24, %v2348_v40  ;;  %v10330_v45 = vpack.c.bf16 %v2374_v44, %v2372_v25  ;;  %v10332_v46 = vpack.c.bf16 %v2379_v57, %v2377_v14  ;;  %v2388_v24 = vld [vmem:[#allocation10 + $0x3e0] sm:$0xff]  ;;  %v14005_v25 = vpack.c.bf16 %v2831_v17, %v2829_v47  ;;  %v2835_v57 = vld [vmem:[%s17102_s1 + $0xb0] sm:$0xff] }
 0x439   :  { %v10346_v50 = vpack.c.bf16 %v2390_v8, %v2388_v24  ;;  %v2833_v14 = vld [vmem:[%s17102_s1 + $0xa0] sm:$0xff]  ;;  %v2867_v17 = vld [vmem:[%s17102_s1 + $0x1b0] sm:$0xff] }
 0x43a   :  { %v2865_v47 = vld [vmem:[%s17102_s1 + $0x1a0] sm:$0xff] }
 0x43b   :  { %10295 = vmatpush1.bf16.msra.mxu0 %v10294_v16  ;;  %v2383_v16 = vld [vmem:[#allocation10 + $0x3b8] sm:$0xff] }
 0x43c   :  { %10297 = vmatprep.subr.bf16.mxu0 %v10296_v48  ;;  %v10334_v48 = vpack.c.bf16 %v2378_v29, %v2376_v58  ;;  %v10336_v43 = vpack.c.bf16 %v2383_v16, %v2381_v56  ;;  %v14023_v58 = vpack.c.bf16 %v2835_v57, %v2833_v14  ;;  %v2837_v56 = vld [vmem:[%s17102_s1 + $0xc0] sm:$0xff]  ;;  %v2839_v16 = vld [vmem:[%s17102_s1 + $0xd0] sm:$0xff] }
 0x43d   :  { %v2869_v14 = vld [vmem:[%s17102_s1 + $0x1c0] sm:$0xff]  ;;  %v2871_v57 = vld [vmem:[%s17102_s1 + $0x1d0] sm:$0xff] }
 0x43f   :  { %10299 = vmatpush1.bf16.msra.mxu0 %v10298_v53  ;;  %v2387_v53 = vld [vmem:[#allocation10 + $0x3d8] sm:$0xff] }
 0x440   :  { %10301 = vmatprep.subr.bf16.mxu0 %v10300_v21  ;;  %v10338_v21 = vpack.c.bf16 %v2382_v15, %v2380_v62  ;;  %v10340_v23 = vpack.c.bf16 %v2387_v53, %v2385_v52  ;;  %v10438_v62 = vpack.c.bf16 %v2839_v16, %v2837_v56  ;;  %v2841_v52 = vld [vmem:[%s17102_s1 + $0xe0] sm:$0xff]  ;;  %v2843_v53 = vld [vmem:[%s17102_s1 + $0xf0] sm:$0xff] }
 0x441   :  { %v2873_v56 = vld [vmem:[%s17102_s1 + $0x1e0] sm:$0xff]  ;;  %v2875_v16 = vld [vmem:[%s17102_s1 + $0x1f0] sm:$0xff] }
 0x443   :  { %10303 = vmatpush1.bf16.msra.mxu0 %v10302_v30  ;;  %v2391_v30 = vld [vmem:[#allocation10 + $0x3f8] sm:$0xff] }
 0x444   :  { %10305 = vmatprep.subr.bf16.mxu0 %v10304_v38  ;;  %v10342_v38 = vpack.c.bf16 %v2386_v59, %v2384_v54  ;;  %v10344_v40 = vpack.c.bf16 %v2391_v30, %v2389_v27  ;;  %v10442_v54 = vpack.c.bf16 %v2843_v53, %v2841_v52  ;;  %v2845_v27 = vld [vmem:[%s17102_s1 + $0x100] sm:$0xff]  ;;  %v2847_v30 = vld [vmem:[%s17102_s1 + $0x110] sm:$0xff] }
 0x445   :  { %v10446_v24 = vpack.c.bf16 %v2847_v30, %v2845_v27 }
 0x447   :  { %10307 = vmatpush1.bf16.msra.mxu0 %v10306_v9 }
 0x448   :  { %10309 = vmatprep.subr.bf16.mxu0 %v10308_v35 }
 0x44b   :  { %10311 = vmatpush1.bf16.msra.mxu0 %v10310_v31  ;;  %v2818_v31 = vld [vmem:[%s17102_s1 + $0x28] sm:$0xff] }
 0x44c   :  { %10313 = vmatprep.subr.bf16.mxu0 %v10312_v22  ;;  %v2820_v22 = vld [vmem:[%s17102_s1 + $0x38] sm:$0xff] }
 0x44d   :  { %v13934_v33 = vpack.c.bf16 %v2820_v22, %v2818_v31  ;;  %v2853_v22 = vld [vmem:[%s17102_s1 + $0x140] sm:$0xff] }
 0x44e   :  { %v10454_v36 = vpack.c.bf16 %v2855_v55, %v2853_v22  ;;  %v3117_v55 = vld [vmem:[#allocation12 + $0x10] sm:$0xff] }
 0x44f   :  { %10315 = vmatpush1.bf16.msra.mxu0 %v10314_v32  ;;  %v2822_v32 = vld [vmem:[%s17102_s1 + $0x48] sm:$0xff] }
 0x450   :  { %10317 = vmatprep.subr.bf16.mxu0 %v10316_v61  ;;  %v2824_v61 = vld [vmem:[%s17102_s1 + $0x58] sm:$0xff] }
 0x451   :  { %v13953_v63 = vpack.c.bf16 %v2824_v61, %v2822_v32 }
 0x453   :  { %10319 = vmatpush1.bf16.msra.mxu0 %v10318_v41  ;;  %v2826_v41 = vld [vmem:[%s17102_s1 + $0x68] sm:$0xff] }
 0x454   :  { %10321 = vmatprep.subr.bf16.mxu0 %v10320_v49  ;;  %v2828_v49 = vld [vmem:[%s17102_s1 + $0x78] sm:$0xff] }
 0x455   :  { %v13971_v10 = vpack.c.bf16 %v2828_v49, %v2826_v41  ;;  %v9560_v41 = vld [vmem:[%s17101_s26 + $0x20] sm:$0xff]  ;;  %v2862_v49 = vld [vmem:[%s17102_s1 + $0x188] sm:$0xff] }
 0x457   :  { %10323 = vmatpush1.bf16.msra.mxu0 %v10322_v5  ;;  %v2830_v5 = vld [vmem:[%s17102_s1 + $0x88] sm:$0xff] }
 0x458   :  { %10325 = vmatprep.subr.bf16.mxu0 %v10324_v1  ;;  %v2832_v1 = vld [vmem:[%s17102_s1 + $0x98] sm:$0xff] }
 0x459   :  { %v13989_v28 = vpack.c.bf16 %v2832_v1, %v2830_v5  ;;  %v10462_v5 = vpack.c.bf16 %v2863_v2, %v2861_v4  ;;  %v2866_v1 = vld [vmem:[%s17102_s1 + $0x1a8] sm:$0xff]  ;;  %v3127_v4 = vld [vmem:[#allocation12 + $0x60] sm:$0xff]  ;;  %v3129_v2 = vld [vmem:[#allocation12 + $0x70] sm:$0xff] }
 0x45b   :  { %10327 = vmatpush1.bf16.msra.mxu0 %v10326_v3  ;;  %v2834_v3 = vld [vmem:[%s17102_s1 + $0xa8] sm:$0xff] }
 0x45c   :  { %10329 = vmatprep.subr.bf16.mxu0 %v10328_v13  ;;  %v2836_v13 = vld [vmem:[%s17102_s1 + $0xb8] sm:$0xff] }
 0x45d   :  { %v14007_v44 = vpack.c.bf16 %v2836_v13, %v2834_v3  ;;  %v10466_v3 = vpack.c.bf16 %v2867_v17, %v2865_v47  ;;  %v2870_v13 = vld [vmem:[%s17102_s1 + $0x1c8] sm:$0xff]  ;;  %v3131_v47 = vld [vmem:[#allocation12 + $0x80] sm:$0xff]  ;;  %v3133_v17 = vld [vmem:[#allocation12 + $0x90] sm:$0xff] }
 0x45f   :  { %10331 = vmatpush1.bf16.msra.mxu0 %v10330_v45  ;;  %v2838_v45 = vld [vmem:[%s17102_s1 + $0xc8] sm:$0xff] }
 0x460   :  { %10333 = vmatprep.subr.bf16.mxu0 %v10332_v46  ;;  %v2840_v46 = vld [vmem:[%s17102_s1 + $0xd8] sm:$0xff] }
 0x461   :  { %v14025_v29 = vpack.c.bf16 %v2840_v46, %v2838_v45  ;;  %v10470_v45 = vpack.c.bf16 %v2871_v57, %v2869_v14  ;;  %v2874_v46 = vld [vmem:[%s17102_s1 + $0x1e8] sm:$0xff]  ;;  %v3135_v14 = vld [vmem:[#allocation12 + $0xa0] sm:$0xff]  ;;  %v3137_v57 = vld [vmem:[#allocation12 + $0xb0] sm:$0xff] }
 0x463   :  { %10335 = vmatpush1.bf16.msra.mxu0 %v10334_v48  ;;  %v2842_v48 = vld [vmem:[%s17102_s1 + $0xe8] sm:$0xff] }
 0x464   :  { %10337 = vmatprep.subr.bf16.mxu0 %v10336_v43  ;;  %v2844_v43 = vld [vmem:[%s17102_s1 + $0xf8] sm:$0xff] }
 0x465   :  { %v10440_v15 = vpack.c.bf16 %v2844_v43, %v2842_v48  ;;  %v10474_v48 = vpack.c.bf16 %v2875_v16, %v2873_v56  ;;  %v3139_v56 = vld [vmem:[#allocation12 + $0xc0] sm:$0xff]  ;;  %v3141_v16 = vld [vmem:[#allocation12 + $0xd0] sm:$0xff] }
 0x467   :  { %10339 = vmatpush1.bf16.msra.mxu0 %v10338_v21  ;;  %v2846_v21 = vld [vmem:[%s17102_s1 + $0x108] sm:$0xff] }
 0x468   :  { %10341 = vmatprep.subr.bf16.mxu0 %v10340_v23  ;;  %v2848_v23 = vld [vmem:[%s17102_s1 + $0x118] sm:$0xff] }
 0x469   :  { %v10444_v59 = vpack.c.bf16 %v2848_v23, %v2846_v21 }
 0x46b   :  { %10343 = vmatpush1.bf16.msra.mxu0 %v10342_v38  ;;  %v2850_v38 = vld [vmem:[%s17102_s1 + $0x128] sm:$0xff] }
 0x46c   :  { %10345 = vmatprep.subr.bf16.mxu0 %v10344_v40  ;;  %v2852_v40 = vld [vmem:[%s17102_s1 + $0x138] sm:$0xff] }
 0x46d   :  { %v10448_v8 = vpack.c.bf16 %v2852_v40, %v2850_v38 }
 0x46e   :  { %v13906_v9 = vpop.f32.mrb[6].mxu1 }
 0x46f   :  { %v13908_v35 = vpop.f32.mrb[7].mxu1  ;;  %10347 = vmatpush1.bf16.msra.mxu0 %v10346_v50  ;;  %v2849_v50 = vld [vmem:[%s17102_s1 + $0x120] sm:$0xff] }
 0x472   :  { %2457 = vmatmul.mubr.f32.vlgmr.msra.gmra.mrb[10].mxu0 %v13888_v6  ;;  %v2815_v6 = vld [vmem:[%s17102_s1 + $0x10] sm:$0xff] }
 0x473   :  { %2536 = vmatprep.mubr.f32.mxu0 %v17100_v20  ;;  %v13932_v60 = vpack.c.bf16 %v2815_v6, %v2813_v18  ;;  %v2856_v18 = vld [vmem:[%s17102_s1 + $0x158] sm:$0xff]  ;;  %v10450_v6 = vpack.c.bf16 %v2851_v37, %v2849_v50 }
 0x474   :  { %v10452_v31 = vpack.c.bf16 %v2856_v18, %v2854_v42  ;;  %v3116_v18 = vld [vmem:[#allocation12 + $0x8] sm:$0xff] }
 0x475   :  { %10479 = vmatpush1.bf16.msra.mxu1 %v13932_v60 }
 0x476   :  { %10481 = vmatprep.subr.bf16.mxu1 %v13934_v33 }
 0x479   :  { %10483 = vmatpush1.bf16.msra.mxu1 %v13951_v34 }
 0x47a   :  { %10485 = vmatprep.subr.bf16.mxu1 %v13953_v63 }
 0x47d   :  { %10487 = vmatpush1.bf16.msra.mxu1 %v13969_v12 }
 0x47e   :  { %10489 = vmatprep.subr.bf16.mxu1 %v13971_v10 }
 0x481   :  { %10491 = vmatpush1.bf16.msra.mxu1 %v13987_v51 }
 0x482   :  { %10493 = vmatprep.subr.bf16.mxu1 %v13989_v28 }
 0x485   :  { %10495 = vmatpush1.bf16.msra.mxu1 %v14005_v25 }
 0x486   :  { %10497 = vmatprep.subr.bf16.mxu1 %v14007_v44 }
 0x489   :  { %10499 = vmatpush1.bf16.msra.mxu1 %v14023_v58 }
 0x48a   :  { %10501 = vmatprep.subr.bf16.mxu1 %v14025_v29 }
 0x48d   :  { %10503 = vmatpush1.bf16.msra.mxu1 %v10438_v62 }
 0x48e   :  { %10505 = vmatprep.subr.bf16.mxu1 %v10440_v15 }
 0x491   :  { %10507 = vmatpush1.bf16.msra.mxu1 %v10442_v54 }
 0x492   :  { %10509 = vmatprep.subr.bf16.mxu1 %v10444_v59 }
 0x495   :  { %10511 = vmatpush1.bf16.msra.mxu1 %v10446_v24 }
 0x496   :  { %10513 = vmatprep.subr.bf16.mxu1 %v10448_v8 }
 0x499   :  { %10515 = vmatpush1.bf16.msra.mxu1 %v10450_v6 }
 0x49a   :  { %10517 = vmatprep.subr.bf16.mxu1 %v10452_v31 }
 0x49d   :  { %10519 = vmatpush1.bf16.msra.mxu1 %v10454_v36 }
 0x545   :  { %v2458_v32 = vpop.f32.mrb[10].mxu0 }
 0x546   :  { %v2460_v61 = vpop.f32.mrb[11].mxu0 }
 0x547   :  { %2472 = vmatprep.subr.mxu0 %v2460_v61 }
 0x548   :  { %2473 = vmatpush1.msra.mxu0 %v2458_v32  ;;  %v3122_v32 = vld [vmem:[#allocation12 + $0x38] sm:$0xff] }
 0x549   :  { %9558 = vmatmul.mubr.msk.f32.vlgmr.msra.gmra.mrb[6].mxu0 %vm2239_vm7, %v9556_v19  ;;  %2706 = vmatprep.subr.mxu0 %v13908_v35  ;;  %v2858_v35 = vld [vmem:[%s17102_s1 + $0x168] sm:$0xff] }
 0x54a   :  { %2707 = vmatpush1.msra.mxu0 %v13906_v9  ;;  %2542 = vmatprep.mubr.f32.mxu0 %v17100_v20  ;;  %v9561_v9 = vld [vmem:[%s17101_s26 + $0x28] sm:$0xff] }
 0x54b   :  { %10413 = vmatprep.subr.bf16.mxu0 %v13921_v0  ;;  %v2860_v0 = vld [vmem:[%s17102_s1 + $0x178] sm:$0xff] }
 0x54d   :  { %9559 = vmatmul.mubr.msk.f32.gmra.mrb[8].mxu0 %vm2239_vm7, %v9557_v11  ;;  %v3119_v11 = vld [vmem:[#allocation12 + $0x20] sm:$0xff] }
 0x54e   :  { %2770 = vmatprep.mubr.f32.mxu0 %v17100_v20 }
 0x551   :  { %9562 = vmatmul.mubr.msk.f32.vlgmr.msra.gmra.mrb[6].mxu0 %vm2239_vm7, %v9560_v41  ;;  %v3121_v41 = vld [vmem:[#allocation12 + $0x30] sm:$0xff] }
 0x552   :  { %2776 = vmatprep.mubr.f32.mxu0 %v17100_v20  ;;  %10415 = vmatpush1.bf16.msra.mxu0 %v13932_v60  ;;  %v10456_v60 = vpack.c.bf16 %v2860_v0, %v2858_v35  ;;  %v3126_v35 = vld [vmem:[#allocation12 + $0x58] sm:$0xff]  ;;  %v10546_v0 = vpack.c.bf16 %v3121_v41, %v3119_v11 }
 0x553   :  { %10417 = vmatprep.subr.bf16.mxu0 %v13934_v33  ;;  %v2857_v33 = vld [vmem:[%s17102_s1 + $0x160] sm:$0xff] }
 0x554   :  { %10521 = vmatprep.subr.bf16.mxu1 %v10456_v60 }
 0x555   :  { %9563 = vmatmul.mubr.msk.f32.gmra.mrb[8].mxu0 %vm2239_vm7, %v9561_v9  ;;  %v3124_v9 = vld [vmem:[#allocation12 + $0x48] sm:$0xff] }
 0x556   :  { %10419 = vmatpush1.bf16.msra.mxu0 %v13951_v34  ;;  %v2859_v34 = vld [vmem:[%s17102_s1 + $0x170] sm:$0xff] }
 0x557   :  { %10421 = vmatprep.subr.bf16.mxu0 %v13953_v63  ;;  %v10458_v63 = vpack.c.bf16 %v2859_v34, %v2857_v33  ;;  %v3123_v33 = vld [vmem:[#allocation12 + $0x40] sm:$0xff]  ;;  %v3125_v34 = vld [vmem:[#allocation12 + $0x50] sm:$0xff] }
 0x559   :  { %10523 = vmatpush1.bf16.msra.mxu1 %v10458_v63 }
 0x55a   :  { %10423 = vmatpush1.bf16.msra.mxu0 %v13969_v12  ;;  %v2864_v12 = vld [vmem:[%s17102_s1 + $0x198] sm:$0xff] }
 0x55b   :  { %10425 = vmatprep.subr.bf16.mxu0 %v13971_v10  ;;  %v10460_v10 = vpack.c.bf16 %v2864_v12, %v2862_v49  ;;  %v3130_v49 = vld [vmem:[#allocation12 + $0x78] sm:$0xff]  ;;  %v10550_v12 = vpack.c.bf16 %v3125_v34, %v3123_v33 }
 0x55c   :  { %v3150_v33 = vld [vmem:[#allocation12 + $0x118] sm:$0xff] }
 0x55d   :  { %10525 = vmatprep.subr.bf16.mxu1 %v10460_v10 }
 0x55e   :  { %10427 = vmatpush1.bf16.msra.mxu0 %v13987_v51  ;;  %v2868_v51 = vld [vmem:[%s17102_s1 + $0x1b8] sm:$0xff]  ;;  %10527 = vmatpush1.bf16.msra.mxu1 %v10462_v5 }
 0x55f   :  { %10429 = vmatprep.subr.bf16.mxu0 %v13989_v28  ;;  %v10464_v28 = vpack.c.bf16 %v2868_v51, %v2866_v1  ;;  %v3134_v1 = vld [vmem:[#allocation12 + $0x98] sm:$0xff]  ;;  %v10554_v51 = vpack.c.bf16 %v3129_v2, %v3127_v4 }
 0x560   :  { %v3154_v4 = vld [vmem:[#allocation12 + $0x138] sm:$0xff] }
 0x561   :  { %10529 = vmatprep.subr.bf16.mxu1 %v10464_v28 }
 0x562   :  { %10431 = vmatpush1.bf16.msra.mxu0 %v14005_v25  ;;  %v2872_v25 = vld [vmem:[%s17102_s1 + $0x1d8] sm:$0xff]  ;;  %10531 = vmatpush1.bf16.msra.mxu1 %v10466_v3 }
 0x563   :  { %10433 = vmatprep.subr.bf16.mxu0 %v14007_v44  ;;  %v10468_v44 = vpack.c.bf16 %v2872_v25, %v2870_v13  ;;  %v3138_v13 = vld [vmem:[#allocation12 + $0xb8] sm:$0xff]  ;;  %v10558_v25 = vpack.c.bf16 %v3133_v17, %v3131_v47 }
 0x564   :  { %v3158_v47 = vld [vmem:[#allocation12 + $0x158] sm:$0xff] }
 0x565   :  { %10533 = vmatprep.subr.bf16.mxu1 %v10468_v44 }
 0x566   :  { %10435 = vmatpush1.bf16.msra.mxu0 %v14023_v58  ;;  %v2876_v58 = vld [vmem:[%s17102_s1 + $0x1f8] sm:$0xff]  ;;  %10535 = vmatpush1.bf16.msra.mxu1 %v10470_v45 }
 0x567   :  { %10437 = vmatprep.subr.bf16.mxu0 %v14025_v29  ;;  %v10472_v29 = vpack.c.bf16 %v2876_v58, %v2874_v46  ;;  %v3142_v46 = vld [vmem:[#allocation12 + $0xd8] sm:$0xff]  ;;  %v10562_v58 = vpack.c.bf16 %v3137_v57, %v3135_v14 }
 0x568   :  { %v3162_v14 = vld [vmem:[#allocation12 + $0x178] sm:$0xff] }
 0x569   :  { %10537 = vmatprep.subr.bf16.mxu1 %v10472_v29 }
 0x56a   :  { %10439 = vmatpush1.bf16.msra.mxu0 %v10438_v62  ;;  %10539 = vmatpush1.bf16.msra.mxu1 %v10474_v48 }
 0x56b   :  { %10441 = vmatprep.subr.bf16.mxu0 %v10440_v15 }
 0x56e   :  { %10443 = vmatpush1.bf16.msra.mxu0 %v10442_v54 }
 0x56f   :  { %10445 = vmatprep.subr.bf16.mxu0 %v10444_v59 }
 0x572   :  { %10447 = vmatpush1.bf16.msra.mxu0 %v10446_v24 }
 0x573   :  { %10449 = vmatprep.subr.bf16.mxu0 %v10448_v8 }
 0x576   :  { %10451 = vmatpush1.bf16.msra.mxu0 %v10450_v6  ;;  %v3118_v6 = vld [vmem:[#allocation12 + $0x18] sm:$0xff] }
 0x577   :  { %10453 = vmatprep.subr.bf16.mxu0 %v10452_v31  ;;  %v3115_v31 = vld [vmem:[#allocation12] sm:$0xff]  ;;  %v10540_v22 = vpack.c.bf16 %v3118_v6, %v3116_v18 }
 0x578   :  { %v10542_v61 = vpack.c.bf16 %v3117_v55, %v3115_v31 }
 0x57a   :  { %10455 = vmatpush1.bf16.msra.mxu0 %v10454_v36  ;;  %v3120_v36 = vld [vmem:[#allocation12 + $0x28] sm:$0xff] }
 0x57b   :  { %10457 = vmatprep.subr.bf16.mxu0 %v10456_v60  ;;  %v10544_v19 = vpack.c.bf16 %v3122_v32, %v3120_v36  ;;  %v10548_v60 = vpack.c.bf16 %v3126_v35, %v3124_v9 }
 0x57e   :  { %10459 = vmatpush1.bf16.msra.mxu0 %v10458_v63  ;;  %v3128_v63 = vld [vmem:[#allocation12 + $0x68] sm:$0xff] }
 0x57f   :  { %10461 = vmatprep.subr.bf16.mxu0 %v10460_v10  ;;  %v10552_v10 = vpack.c.bf16 %v3130_v49, %v3128_v63  ;;  %v3147_v63 = vld [vmem:[#allocation12 + $0x100] sm:$0xff]  ;;  %v3149_v49 = vld [vmem:[#allocation12 + $0x110] sm:$0xff] }
 0x582   :  { %10463 = vmatpush1.bf16.msra.mxu0 %v10462_v5  ;;  %v3132_v5 = vld [vmem:[#allocation12 + $0x88] sm:$0xff] }
 0x583   :  { %10465 = vmatprep.subr.bf16.mxu0 %v10464_v28  ;;  %v10556_v28 = vpack.c.bf16 %v3134_v1, %v3132_v5  ;;  %v3151_v5 = vld [vmem:[#allocation12 + $0x120] sm:$0xff]  ;;  %v3153_v1 = vld [vmem:[#allocation12 + $0x130] sm:$0xff] }
 0x586   :  { %10467 = vmatpush1.bf16.msra.mxu0 %v10466_v3  ;;  %v3136_v3 = vld [vmem:[#allocation12 + $0xa8] sm:$0xff] }
 0x587   :  { %10469 = vmatprep.subr.bf16.mxu0 %v10468_v44  ;;  %v10560_v44 = vpack.c.bf16 %v3138_v13, %v3136_v3  ;;  %v3155_v3 = vld [vmem:[#allocation12 + $0x140] sm:$0xff]  ;;  %v3157_v13 = vld [vmem:[#allocation12 + $0x150] sm:$0xff] }
 0x58a   :  { %10471 = vmatpush1.bf16.msra.mxu0 %v10470_v45  ;;  %v3140_v45 = vld [vmem:[#allocation12 + $0xc8] sm:$0xff] }
 0x58b   :  { %10473 = vmatprep.subr.bf16.mxu0 %v10472_v29  ;;  %v10564_v29 = vpack.c.bf16 %v3142_v46, %v3140_v45  ;;  %v3159_v45 = vld [vmem:[#allocation12 + $0x160] sm:$0xff]  ;;  %v3161_v46 = vld [vmem:[#allocation12 + $0x170] sm:$0xff] }
 0x58e   :  { %10475 = vmatpush1.bf16.msra.mxu0 %v10474_v48  ;;  %v3144_v48 = vld [vmem:[#allocation12 + $0xe8] sm:$0xff] }
 0x58f   :  { %10541 = vmatprep.subr.bf16.mxu0 %v10540_v22 }
 0x624   :  { %v14177_v43 = vpop.f32.mrb[6].mxu0 }
 0x625   :  { %v14179_v62 = vpop.f32.mrb[7].mxu0 }
 0x628   :  { %v14181_v15 = vpop.f32.mrb[8].mxu0 }
 0x629   :  { %v2799_v52 = vadd.f32 %v14181_v15, %v14177_v43  ;;  %v14185_v53 = vpop.f32.mrb[9].mxu0 }
 0x62a   :  { %v2806_v21 = vadd.f32 %v14185_v53, %v14179_v62 }
 0x62b   :  { %v2800_v23 = vrot.slane %v2799_v52, 4 }
 0x62c   :  { %v2807_v54 = vrot.slane %v2806_v21, 4 }
 0x62d   :  { %v2801_v59 = vadd.f32 %v2800_v23, %v2799_v52  ;;  %v3146_v52 = vld [vmem:[#allocation12 + $0xf8] sm:$0xff] }
 0x62e   :  { %v2808_v27 = vadd.f32 %v2807_v54, %v2806_v21  ;;  %v10566_v21 = vpack.c.bf16 %v3141_v16, %v3139_v56  ;;  %v10568_v23 = vpack.c.bf16 %v3146_v52, %v3144_v48  ;;  %v3143_v54 = vld [vmem:[#allocation12 + $0xe0] sm:$0xff]  ;;  %v3166_v56 = vld [vmem:[#allocation12 + $0x198] sm:$0xff]  ;;  %v3165_v52 = vld [vmem:[#allocation12 + $0x190] sm:$0xff] }
 0x62f   :  { %v2802_v30 = vrot.slane %v2801_v59, 2  ;;  %v3163_v48 = vld [vmem:[#allocation12 + $0x180] sm:$0xff] }
 0x630   :  { %v2809_v38 = vrot.slane %v2808_v27, 2 }
 0x631   :  { %v2803_v40 = vadd.f32 %v2802_v30, %v2801_v59  ;;  %v3145_v59 = vld [vmem:[#allocation12 + $0xf0] sm:$0xff] }
 0x632   :  { %v2810_v24 = vadd.f32 %v2809_v38, %v2808_v27  ;;  %v10570_v27 = vpack.c.bf16 %v3145_v59, %v3143_v54  ;;  %v3170_v54 = vld [vmem:[#allocation12 + $0x1b8] sm:$0xff]  ;;  %v3167_v59 = vld [vmem:[#allocation12 + $0x1a0] sm:$0xff] }
 0x633   :  { %v2804_v8 = vrot.slane %v2803_v40, 1 }
 0x634   :  { %v2811_v50 = vrot.slane %v2810_v24, 1 }
 0x635   :  { %v2805_v42 = vadd.f32 %v2804_v8, %v2803_v40 }
 0x636   :  { %v2812_v37 = vadd.f32 %v2811_v50, %v2810_v24 }
 0x638   :  { %2941 = vmatprep.mubr.f32.mxu0 %v2812_v37 }
 0x639   :  { %2942 = vmatmul.mubr.f32.vlgmr.msra.gmra.mrb[12].mxu0 %v2805_v42 }
 0x63a   :  { %10543 = vmatpush1.bf16.msra.mxu0 %v10542_v61 }
 0x63b   :  { %10545 = vmatprep.subr.bf16.mxu0 %v10544_v19 }
 0x63e   :  { %10547 = vmatpush1.bf16.msra.mxu0 %v10546_v0 }
 0x63f   :  { %10549 = vmatprep.subr.bf16.mxu0 %v10548_v60  ;;  %v3148_v60 = vld [vmem:[#allocation12 + $0x108] sm:$0xff] }
 0x640   :  { %v10572_v34 = vpack.c.bf16 %v3150_v33, %v3148_v60  ;;  %v2978_v60 = vld [vmem:[%s17028_s10] ss:$2 sm:$0x3] }
 0x642   :  { %10551 = vmatpush1.bf16.msra.mxu0 %v10550_v12  ;;  %v10574_v12 = vpack.c.bf16 %v3149_v49, %v3147_v63 }
 0x643   :  { %10553 = vmatprep.subr.bf16.mxu0 %v10552_v10  ;;  %v3152_v10 = vld [vmem:[#allocation12 + $0x128] sm:$0xff] }
 0x644   :  { %v10576_v2 = vpack.c.bf16 %v3154_v4, %v3152_v10 }
 0x646   :  { %10555 = vmatpush1.bf16.msra.mxu0 %v10554_v51  ;;  %v10578_v51 = vpack.c.bf16 %v3153_v1, %v3151_v5 }
 0x647   :  { %10557 = vmatprep.subr.bf16.mxu0 %v10556_v28  ;;  %v3156_v28 = vld [vmem:[#allocation12 + $0x148] sm:$0xff] }
 0x648   :  { %v10580_v17 = vpack.c.bf16 %v3158_v47, %v3156_v28 }
 0x64a   :  { %10559 = vmatpush1.bf16.msra.mxu0 %v10558_v25  ;;  %v10582_v25 = vpack.c.bf16 %v3157_v13, %v3155_v3 }
 0x64b   :  { %10561 = vmatprep.subr.bf16.mxu0 %v10560_v44  ;;  %v3160_v44 = vld [vmem:[#allocation12 + $0x168] sm:$0xff] }
 0x64c   :  { %v10584_v57 = vpack.c.bf16 %v3162_v14, %v3160_v44  ;;  %v3378_v14 = vld [vmem:[#allocation12 + $0x218] sm:$0xff] }
 0x64e   :  { %10563 = vmatpush1.bf16.msra.mxu0 %v10562_v58  ;;  %v10586_v58 = vpack.c.bf16 %v3161_v46, %v3159_v45 }
 0x64f   :  { %10565 = vmatprep.subr.bf16.mxu0 %v10564_v29  ;;  %v3164_v29 = vld [vmem:[#allocation12 + $0x188] sm:$0xff] }
 0x650   :  { %v10588_v16 = vpack.c.bf16 %v3166_v56, %v3164_v29  ;;  %v3375_v56 = vld [vmem:[#allocation12 + $0x200] sm:$0xff] }
 0x652   :  { %10567 = vmatpush1.bf16.msra.mxu0 %v10566_v21  ;;  %v10590_v21 = vpack.c.bf16 %v3165_v52, %v3163_v48  ;;  %v3380_v48 = vld [vmem:[#allocation12 + $0x228] sm:$0xff]  ;;  %v3382_v52 = vld [vmem:[#allocation12 + $0x238] sm:$0xff] }
 0x653   :  { %10569 = vmatprep.subr.bf16.mxu0 %v10568_v23  ;;  %v3168_v23 = vld [vmem:[#allocation12 + $0x1a8] sm:$0xff] }
 0x656   :  { %10571 = vmatpush1.bf16.msra.mxu0 %v10570_v27  ;;  %v10592_v27 = vpack.c.bf16 %v3170_v54, %v3168_v23  ;;  %v10612_v54 = vpack.c.bf16 %v3382_v52, %v3380_v48  ;;  %v3411_v48 = vld [vmem:[#allocation12 + $0x320] sm:$0xff]  ;;  %v3413_v52 = vld [vmem:[#allocation12 + $0x330] sm:$0xff] }
 0x657   :  { %10573 = vmatprep.subr.bf16.mxu0 %v10572_v34  ;;  %v9564_v34 = vld [vmem:[%s17028_s10 + $0x1] ss:$2 sm:$0x3]  ;;  %s17103_s10 = sld [smem:[#allocation38_spill]] }
 0x658   :  { %v3096_v10 = vrot.slane %v9564_v34, %v13840_v7 }
 0x65a   :  { %10575 = vmatpush1.bf16.msra.mxu0 %v10574_v12  ;;  %v3092_v12 = vrot.slane %v9564_v34, %v13843_v26 }
 0x65b   :  { %10577 = vmatprep.subr.bf16.mxu0 %v10576_v2 }
 0x65e   :  { %10579 = vmatpush1.bf16.msra.mxu0 %v10578_v51 }
 0x65f   :  { %10581 = vmatprep.subr.bf16.mxu0 %v10580_v17 }
 0x662   :  { %10583 = vmatpush1.bf16.msra.mxu0 %v10582_v25 }
 0x663   :  { %10585 = vmatprep.subr.bf16.mxu0 %v10584_v57 }
 0x666   :  { %10587 = vmatpush1.bf16.msra.mxu0 %v10586_v58 }
 0x667   :  { %10589 = vmatprep.subr.bf16.mxu0 %v10588_v16  ;;  %v3377_v16 = vld [vmem:[#allocation12 + $0x210] sm:$0xff] }
 0x668   :  { %v10610_v23 = vpack.c.bf16 %v3377_v16, %v3375_v56 }
 0x66a   :  { %10591 = vmatpush1.bf16.msra.mxu0 %v10590_v21  ;;  %v3256_v21 = vld [vmem:[%s17029_s11] sm:$0xff] }
 0x66b   :  { %10593 = vmatprep.subr.bf16.mxu0 %v10592_v27  ;;  %v3381_v27 = vld [vmem:[#allocation12 + $0x230] sm:$0xff] }
 0x70c   :  { %v2943_v30 = vpop.f32.mrb[12].mxu0 }
 0x70d   :  { %v2951_v38 = vrot.slane %v2943_v30, %v13843_v26  ;;  %v2945_v40 = vpop.f32.mrb[13].mxu0  ;;  %v3169_v30 = vld [vmem:[#allocation12 + $0x1b0] sm:$0xff] }
 0x70e   :  { %v2955_v24 = vrot.slane %v2945_v40, %v13843_v26  ;;  %v3174_v40 = vld [vmem:[#allocation12 + $0x1d8] sm:$0xff] }
 0x70f   :  { %v14192_v8 = vsub.f32 %v14177_v43, %v2951_v38  ;;  %v14195_v50 = vsub.f32 %v14181_v15, %v2951_v38  ;;  %v3172_v38 = vld [vmem:[#allocation12 + $0x1c8] sm:$0xff] }
 0x710   :  { %v14198_v37 = vsub.f32 %v14179_v62, %v2955_v24  ;;  %v14201_v42 = vsub.f32 %v14185_v53, %v2955_v24  ;;  %v10594_v24 = vpack.c.bf16 %v3169_v30, %v3167_v59  ;;  %v3379_v59 = vld [vmem:[#allocation12 + $0x220] sm:$0xff]  ;;  %v3384_v30 = vld [vmem:[#allocation12 + $0x248] sm:$0xff] }
 0x711   :  { %v2960_v18 = vmul.f32 %v14192_v8, %v14192_v8  ;;  %v2962_v6 = vmul.f32 %v14195_v50, %v14195_v50 }
 0x712   :  { %v2961_v31 = vmul.f32 %v14198_v37, %v14198_v37  ;;  %v2963_v43 = vmul.f32 %v14201_v42, %v14201_v42  ;;  %10595 = vmatpush1.bf16.msra.mxu0 %v10594_v24  ;;  %v10614_v24 = vpack.c.bf16 %v3381_v27, %v3379_v59  ;;  %v3415_v27 = vld [vmem:[#allocation12 + $0x340] sm:$0xff] }
 0x713   :  { %v2964_v15 = vadd.f32 %v2962_v6, %v2960_v18  ;;  %v10596_v18 = vpack.c.bf16 %v3174_v40, %v3172_v38  ;;  %v3171_v6 = vld [vmem:[#allocation12 + $0x1c0] sm:$0xff]  ;;  %v3386_v38 = vld [vmem:[#allocation12 + $0x258] sm:$0xff]  ;;  %v3257_v40 = vld [vmem:[%s17029_s11 + $0x8] sm:$0xff] }
 0x714   :  { %v2971_v22 = vadd.f32 %v2963_v43, %v2961_v31  ;;  %v3173_v31 = vld [vmem:[#allocation12 + $0x1d0] sm:$0xff]  ;;  %v3176_v43 = vld [vmem:[#allocation12 + $0x1e8] sm:$0xff] }
 0x715   :  { %v2965_v55 = vrot.slane %v2964_v15, 4  ;;  %10597 = vmatprep.subr.bf16.mxu0 %v10596_v18  ;;  %v10616_v18 = vpack.c.bf16 %v3386_v38, %v3384_v30  ;;  %v3417_v30 = vld [vmem:[#allocation12 + $0x350] sm:$0xff]  ;;  %v3420_v38 = vld [vmem:[#allocation12 + $0x368] sm:$0xff] }
 0x716   :  { %v2972_v62 = vrot.slane %v2971_v22, 4 }
 0x717   :  { %v2966_v36 = vadd.f32 %v2965_v55, %v2964_v15  ;;  %v3178_v15 = vld [vmem:[#allocation12 + $0x1f8] sm:$0xff] }
 0x718   :  { %v2973_v32 = vadd.f32 %v2972_v62, %v2971_v22  ;;  %v10598_v22 = vpack.c.bf16 %v3173_v31, %v3171_v6  ;;  %v10600_v55 = vpack.c.bf16 %v3178_v15, %v3176_v43  ;;  %v3175_v62 = vld [vmem:[#allocation12 + $0x1e0] sm:$0xff]  ;;  %v3385_v31 = vld [vmem:[#allocation12 + $0x250] sm:$0xff]  ;;  %v3388_v43 = vld [vmem:[#allocation12 + $0x268] sm:$0xff] }
 0x719   :  { %v2967_v53 = vrot.slane %v2966_v36, 2  ;;  %v3383_v6 = vld [vmem:[#allocation12 + $0x240] sm:$0xff]  ;;  %v3390_v15 = vld [vmem:[#allocation12 + $0x278] sm:$0xff] }
 0x71a   :  { %v2974_v61 = vrot.slane %v2973_v32, 2  ;;  %10599 = vmatpush1.bf16.msra.mxu0 %v10598_v22  ;;  %v3258_v22 = vld [vmem:[%s17029_s11 + $0x10] sm:$0xff] }
 0x71b   :  { %v2968_v19 = vadd.f32 %v2967_v53, %v2966_v36  ;;  %v3177_v36 = vld [vmem:[#allocation12 + $0x1f0] sm:$0xff]  ;;  %10601 = vmatprep.subr.bf16.mxu0 %v10600_v55  ;;  %v10618_v55 = vpack.c.bf16 %v3385_v31, %v3383_v6  ;;  %v3419_v6 = vld [vmem:[#allocation12 + $0x360] sm:$0xff] }
 0x71c   :  { %v2975_v11 = vadd.f32 %v2974_v61, %v2973_v32  ;;  %v10602_v32 = vpack.c.bf16 %v3177_v36, %v3175_v62  ;;  %v10620_v62 = vpack.c.bf16 %v3390_v15, %v3388_v43  ;;  %v3387_v36 = vld [vmem:[#allocation12 + $0x260] sm:$0xff]  ;;  %v3421_v31 = vld [vmem:[#allocation12 + $0x370] sm:$0xff]  ;;  %v3424_v43 = vld [vmem:[#allocation12 + $0x388] sm:$0xff] }
 0x71d   :  { %v2969_v41 = vrot.slane %v2968_v19, 1  ;;  %v3426_v15 = vld [vmem:[#allocation12 + $0x398] sm:$0xff] }
 0x71e   :  { %v2976_v9 = vrot.slane %v2975_v11, 1  ;;  %10603 = vmatpush1.bf16.msra.mxu0 %v10602_v32  ;;  %v3389_v32 = vld [vmem:[#allocation12 + $0x270] sm:$0xff] }
 0x71f   :  { %v2970_v0 = vadd.f32 %v2969_v41, %v2968_v19 }
 0x720   :  { %v2977_v35 = vadd.f32 %v2976_v9, %v2975_v11 }
 0x722   :  { %3043 = vmatprep.mubr.f32.mxu1 %v2977_v35 }
 0x723   :  { %3044 = vmatmul.mubr.f32.vlgmr.msra.gmra.mrb[8].mxu1 %v2970_v0 }
 0x724   :  { %3337 = vmatprep.mubr.f32.mxu1 %v17100_v20 }
 0x7f6   :  { %v3045_v53 = vpop.f32.mrb[8].mxu1 }
 0x7f7   :  { %v3046_v61 = vadd.f32 1e-05, %v3045_v53  ;;  %v3047_v19 = vpop.f32.mrb[9].mxu1  ;;  %v3392_v53 = vld [vmem:[#allocation12 + $0x288] sm:$0xff] }
 0x7f8   :  { %v3048_v11 = vadd.f32 1e-05, %v3047_v19  ;;  %v3259_v19 = vld [vmem:[%s17029_s11 + $0x18] sm:$0xff] }
 0x7f9   :  { %12049 = vrsqrt.f32 %v3046_v61  ;;  %v3394_v61 = vld [vmem:[#allocation12 + $0x298] sm:$0xff] }
 0x7fa   :  { %12051 = vrsqrt.f32 %v3048_v11  ;;  %v10622_v11 = vpack.c.bf16 %v3389_v32, %v3387_v36  ;;  %v3425_v36 = vld [vmem:[#allocation12 + $0x390] sm:$0xff]  ;;  %v3428_v32 = vld [vmem:[#allocation12 + $0x3a8] sm:$0xff] }
 0x803   :  { %v12050_v41 = vpop.eup %12049 }
 0x804   :  { %v12052_v9 = vpop.eup %12051 }
 0x805   :  { %v3054_v35 = vcombine.low %v12050_v41, %v12052_v9  ;;  %v10624_v41 = vpack.c.bf16 %v3394_v61, %v3392_v53  ;;  %v3391_v9 = vld [vmem:[#allocation12 + $0x280] sm:$0xff]  ;;  %v3430_v53 = vld [vmem:[#allocation12 + $0x3b8] sm:$0xff] }
 0x807   :  { %v3061_v0 = vrot.slane %v3054_v35, %v13822_v39  ;;  %v3393_v35 = vld [vmem:[#allocation12 + $0x290] sm:$0xff] }
 0x809   :  { %v3068_v33 = vrot.slane %v3061_v0, %v13822_v39  ;;  %v3396_v0 = vld [vmem:[#allocation12 + $0x2a8] sm:$0xff] }
 0x80b   :  { %v3070_v63 = vmul.f32 %v3068_v33, %v2978_v60  ;;  %v3398_v60 = vld [vmem:[#allocation12 + $0x2b8] sm:$0xff]  ;;  %v10626_v33 = vpack.c.bf16 %v3393_v35, %v3391_v9  ;;  %v3432_v9 = vld [vmem:[#allocation12 + $0x3c8] sm:$0xff] }
 0x80c   :  { %v10628_v34 = vpack.c.bf16 %v3398_v60, %v3396_v0  ;;  %v3434_v35 = vld [vmem:[#allocation12 + $0x3d8] sm:$0xff] }
 0x80d   :  { %v3079_v49 = vrot.slane %v3070_v63, %v13840_v7  ;;  %v3075_v4 = vrot.slane %v3070_v63, %v13843_v26  ;;  %v3395_v63 = vld [vmem:[#allocation12 + $0x2a0] sm:$0xff]  ;;  %v10664_v60 = vpack.c.bf16 %v3434_v35, %v3432_v9 }
 0x80f   :  { %v3083_v2 = vmul.f32 %v3079_v49, %v14198_v37  ;;  %v3082_v5 = vmul.f32 %v3075_v4, %v14192_v8  ;;  %v3085_v1 = vmul.f32 %v3079_v49, %v14201_v42  ;;  %v3084_v51 = vmul.f32 %v3075_v4, %v14195_v50  ;;  %v3376_v42 = vld [vmem:[#allocation12 + $0x208] sm:$0xff]  ;;  %v3397_v49 = vld [vmem:[#allocation12 + $0x2b0] sm:$0xff] }
 0x810   :  { %v10608_v29 = vpack.c.bf16 %v3378_v14, %v3376_v42  ;;  %v10630_v4 = vpack.c.bf16 %v3397_v49, %v3395_v63  ;;  %v3410_v42 = vld [vmem:[#allocation12 + $0x318] sm:$0xff]  ;;  %v3436_v63 = vld [vmem:[#allocation12 + $0x3e8] sm:$0xff] }
 0x811   :  { %v3100_v28 = vadd.f32 %v3096_v10, %v3083_v2  ;;  %v3099_v47 = vadd.f32 %v3092_v12, %v3082_v5  ;;  %v3102_v17 = vadd.f32 %v3096_v10, %v3085_v1  ;;  %v3101_v25 = vadd.f32 %v3092_v12, %v3084_v51  ;;  %v3400_v12 = vld [vmem:[#allocation12 + $0x2c8] sm:$0xff]  ;;  %v3402_v10 = vld [vmem:[#allocation12 + $0x2d8] sm:$0xff]  ;;  %v3399_v5 = vld [vmem:[#allocation12 + $0x2c0] sm:$0xff] }
 0x812   :  { %v10632_v2 = vpack.c.bf16 %v3402_v10, %v3400_v12  ;;  %v3401_v1 = vld [vmem:[#allocation12 + $0x2d0] sm:$0xff]  ;;  %v3404_v51 = vld [vmem:[#allocation12 + $0x2e8] sm:$0xff]  ;;  %v3438_v49 = vld [vmem:[#allocation12 + $0x3f8] sm:$0xff] }
 0x813   :  { %v14228_v3 = vmax.f32 %v3100_v28, 0.0  ;;  %v14230_v13 = vmax.f32 %v3099_v47, 0.0  ;;  %v14233_v44 = vmax.f32 %v3102_v17, 0.0  ;;  %v14237_v8 = vmax.f32 %v3101_v25, 0.0  ;;  %v3406_v28 = vld [vmem:[#allocation12 + $0x2f8] sm:$0xff]  ;;  %v3403_v25 = vld [vmem:[#allocation12 + $0x2e0] sm:$0xff] }
 0x814   :  { %v10634_v47 = vpack.c.bf16 %v3401_v1, %v3399_v5  ;;  %v10636_v17 = vpack.c.bf16 %v3406_v28, %v3404_v51  ;;  %v10668_v10 = vpack.c.bf16 %v3438_v49, %v3436_v63 }
 0x815   :  { %3243 = vmatprep.mubr.f32.mxu0 %v14228_v3 }
 0x816   :  { %3244 = vmatmul.mubr.f32.vlgmr.msra.gmra.mrb[14].mxu0 %v14230_v13 }
 0x817   :  { %3249 = vmatprep.mubr.f32.mxu0 %v14233_v44 }
 0x81a   :  { %3250 = vmatmul.mubr.f32.gmra.mrb[16].mxu0 %v14237_v8 }
 0x81b   :  { %3597 = vmatprep.mubr.f32.mxu0 %v17100_v20 }
 0x8e9   :  { %v3245_v50 = vpop.f32.mrb[14].mxu0 }
 0x8ea   :  { %v3247_v37 = vpop.f32.mrb[15].mxu0 }
 0x8ed   :  { %v3251_v57 = vpop.f32.mrb[16].mxu0 }
 0x8ee   :  { %v10606_v45 = vpack.c.bf16 %v3251_v57, %v3245_v50  ;;  %v3253_v46 = vpop.f32.mrb[17].mxu0  ;;  %v3405_v50 = vld [vmem:[#allocation12 + $0x2f0] sm:$0xff] }
 0x8ef   :  { %v10604_v58 = vpack.c.bf16 %v3253_v46, %v3247_v37  ;;  %v3408_v37 = vld [vmem:[#allocation12 + $0x308] sm:$0xff]  ;;  %v10638_v14 = vpack.c.bf16 %v3405_v50, %v3403_v25  ;;  %v3409_v46 = vld [vmem:[#allocation12 + $0x310] sm:$0xff] }
 0x8f0   :  { %v10640_v57 = vpack.c.bf16 %v3410_v42, %v3408_v37 }
 0x8f1   :  { %10605 = vmatprep.subr.bf16.mxu1 %v10604_v58  ;;  %v3412_v58 = vld [vmem:[#allocation12 + $0x328] sm:$0xff] }
 0x8f2   :  { %10607 = vmatpush1.bf16.msra.mxu1 %v10606_v45  ;;  %v3407_v45 = vld [vmem:[#allocation12 + $0x300] sm:$0xff] }
 0x8f3   :  { %10609 = vmatprep.subr.bf16.mxu1 %v10608_v29  ;;  %v3414_v29 = vld [vmem:[#allocation12 + $0x338] sm:$0xff]  ;;  %v10642_v56 = vpack.c.bf16 %v3409_v46, %v3407_v45 }
 0x8f4   :  { %v10644_v16 = vpack.c.bf16 %v3414_v29, %v3412_v58  ;;  %v3654_v45 = vld [vmem:[#allocation12 + $0x418] sm:$0xff] }
 0x8f5   :  { %9565 = vmatmul.mubr.msk.f32.vlgmr.msra.gmra.mrb[10].mxu1 %vm3260_vm8, %v3256_v21  ;;  %v3416_v21 = vld [vmem:[#allocation12 + $0x348] sm:$0xff] }
 0x8f6   :  { %10611 = vmatpush1.bf16.msra.mxu1 %v10610_v23  ;;  %3343 = vmatprep.mubr.f32.mxu1 %v17100_v20  ;;  %v3418_v23 = vld [vmem:[#allocation12 + $0x358] sm:$0xff] }
 0x8f7   :  { %10613 = vmatprep.subr.bf16.mxu1 %v10612_v54  ;;  %v10646_v54 = vpack.c.bf16 %v3413_v52, %v3411_v48  ;;  %v10648_v59 = vpack.c.bf16 %v3418_v23, %v3416_v21  ;;  %v3651_v48 = vld [vmem:[#allocation12 + $0x400] sm:$0xff]  ;;  %v3653_v52 = vld [vmem:[#allocation12 + $0x410] sm:$0xff]  ;;  %v3656_v21 = vld [vmem:[#allocation12 + $0x428] sm:$0xff] }
 0x8f8   :  { %v3658_v23 = vld [vmem:[#allocation12 + $0x438] sm:$0xff] }
 0x8f9   :  { %9566 = vmatmul.mubr.msk.f32.gmra.mrb[12].mxu1 %vm3260_vm8, %v3257_v40  ;;  %v3422_v40 = vld [vmem:[#allocation12 + $0x378] sm:$0xff] }
 0x8fa   :  { %10615 = vmatpush1.bf16.msra.mxu1 %v10614_v24  ;;  %3349 = vmatprep.mubr.f32.mxu1 %v17100_v20  ;;  %v10650_v24 = vpack.c.bf16 %v3417_v30, %v3415_v27  ;;  %v10680_v27 = vpack.c.bf16 %v3658_v23, %v3656_v21  ;;  %v3655_v30 = vld [vmem:[#allocation12 + $0x420] sm:$0xff] }
 0x8fb   :  { %10617 = vmatprep.subr.bf16.mxu1 %v10616_v18  ;;  %v10652_v18 = vpack.c.bf16 %v3422_v40, %v3420_v38  ;;  %v3657_v38 = vld [vmem:[#allocation12 + $0x430] sm:$0xff]  ;;  %v3660_v40 = vld [vmem:[#allocation12 + $0x448] sm:$0xff]  ;;  %v3683_v23 = vld [vmem:[#allocation12 + $0x500] sm:$0xff] }
 0x8fd   :  { %9567 = vmatmul.mubr.msk.f32.gmra.mrb[14].mxu1 %vm3260_vm8, %v3258_v22  ;;  %v10654_v22 = vpack.c.bf16 %v3421_v31, %v3419_v6  ;;  %v10682_v6 = vpack.c.bf16 %v3657_v38, %v3655_v30 }
 0x8fe   :  { %10619 = vmatpush1.bf16.msra.mxu1 %v10618_v55  ;;  %3355 = vmatprep.mubr.f32.mxu1 %v17100_v20  ;;  %v10656_v55 = vpack.c.bf16 %v3426_v15, %v3424_v43  ;;  %v3659_v43 = vld [vmem:[#allocation12 + $0x440] sm:$0xff]  ;;  %v3661_v15 = vld [vmem:[#allocation12 + $0x450] sm:$0xff] }
 0x8ff   :  { %10621 = vmatprep.subr.bf16.mxu1 %v10620_v62  ;;  %v3423_v62 = vld [vmem:[#allocation12 + $0x380] sm:$0xff] }
 0x900   :  { %v10658_v61 = vpack.c.bf16 %v3425_v36, %v3423_v62  ;;  %v9571_v62 = vld [vmem:[%s17029_s11 + $0x30] sm:$0xff]  ;;  %v10686_v36 = vpack.c.bf16 %v3661_v15, %v3659_v43  ;;  %v3691_v15 = vld [vmem:[#allocation12 + $0x540] sm:$0xff] }
 0x901   :  { %9568 = vmatmul.mubr.msk.f32.gmra.mrb[16].mxu1 %vm3260_vm8, %v3259_v19  ;;  %v10660_v19 = vpack.c.bf16 %v3430_v53, %v3428_v32  ;;  %v3663_v53 = vld [vmem:[#allocation12 + $0x460] sm:$0xff] }
 0x902   :  { %10623 = vmatpush1.bf16.msra.mxu1 %v10622_v11  ;;  %3503 = vmatprep.mubr.f32.mxu1 %v14228_v3  ;;  %v3427_v11 = vld [vmem:[#allocation12 + $0x3a0] sm:$0xff] }
 0x903   :  { %10625 = vmatprep.subr.bf16.mxu1 %v10624_v41  ;;  %v3429_v41 = vld [vmem:[#allocation12 + $0x3b0] sm:$0xff] }
 0x904   :  { %v10662_v0 = vpack.c.bf16 %v3429_v41, %v3427_v11  ;;  %v3670_v11 = vld [vmem:[#allocation12 + $0x498] sm:$0xff] }
 0x905   :  { %v9572_v41 = vld [vmem:[%s17029_s11 + $0x38] sm:$0xff] }
 0x906   :  { %10627 = vmatpush1.bf16.msra.mxu1 %v10626_v33  ;;  %v3431_v33 = vld [vmem:[#allocation12 + $0x3c0] sm:$0xff] }
 0x907   :  { %10629 = vmatprep.subr.bf16.mxu1 %v10628_v34  ;;  %v3433_v34 = vld [vmem:[#allocation12 + $0x3d0] sm:$0xff] }
 0x908   :  { %v10666_v12 = vpack.c.bf16 %v3433_v34, %v3431_v33  ;;  %v3672_v33 = vld [vmem:[#allocation12 + $0x4a8] sm:$0xff]  ;;  %v3674_v34 = vld [vmem:[#allocation12 + $0x4b8] sm:$0xff] }
 0x909   :  { %v10696_v49 = vpack.c.bf16 %v3674_v34, %v3672_v33  ;;  %v3706_v33 = vld [vmem:[#allocation12 + $0x5b8] sm:$0xff] }
 0x90a   :  { %10631 = vmatpush1.bf16.msra.mxu1 %v10630_v4  ;;  %v3435_v4 = vld [vmem:[#allocation12 + $0x3e0] sm:$0xff] }
 0x90b   :  { %10633 = vmatprep.subr.bf16.mxu1 %v10632_v2  ;;  %v3437_v2 = vld [vmem:[#allocation12 + $0x3f0] sm:$0xff] }
 0x90c   :  { %v10670_v5 = vpack.c.bf16 %v3437_v2, %v3435_v4  ;;  %v3676_v4 = vld [vmem:[#allocation12 + $0x4c8] sm:$0xff]  ;;  %v3678_v2 = vld [vmem:[#allocation12 + $0x4d8] sm:$0xff] }
 0x90e   :  { %10635 = vmatpush1.bf16.msra.mxu1 %v10634_v47 }
 0x90f   :  { %10637 = vmatprep.subr.bf16.mxu1 %v10636_v17 }
 0x912   :  { %10639 = vmatpush1.bf16.msra.mxu1 %v10638_v14 }
 0x913   :  { %10641 = vmatprep.subr.bf16.mxu1 %v10640_v57  ;;  %v3652_v57 = vld [vmem:[#allocation12 + $0x408] sm:$0xff] }
 0x916   :  { %10643 = vmatpush1.bf16.msra.mxu1 %v10642_v56 }
 0x917   :  { %10645 = vmatprep.subr.bf16.mxu1 %v10644_v16  ;;  %v10676_v16 = vpack.c.bf16 %v3654_v45, %v3652_v57  ;;  %v3677_v57 = vld [vmem:[#allocation12 + $0x4d0] sm:$0xff]  ;;  %v3680_v45 = vld [vmem:[#allocation12 + $0x4e8] sm:$0xff] }
 0x91a   :  { %10647 = vmatpush1.bf16.msra.mxu1 %v10646_v54  ;;  %v9569_v54 = vld [vmem:[%s17029_s11 + $0x20] sm:$0xff] }
 0x91b   :  { %10649 = vmatprep.subr.bf16.mxu1 %v10648_v59  ;;  %v10678_v59 = vpack.c.bf16 %v3653_v52, %v3651_v48  ;;  %v3686_v48 = vld [vmem:[#allocation12 + $0x518] sm:$0xff] }
 0x91e   :  { %10651 = vmatpush1.bf16.msra.mxu1 %v10650_v24  ;;  %v3662_v24 = vld [vmem:[#allocation12 + $0x458] sm:$0xff] }
 0x91f   :  { %10653 = vmatprep.subr.bf16.mxu1 %v10652_v18  ;;  %v9570_v18 = vld [vmem:[%s17029_s11 + $0x28] sm:$0xff]  ;;  %v10684_v31 = vpack.c.bf16 %v3662_v24, %v3660_v40  ;;  %v3687_v40 = vld [vmem:[#allocation12 + $0x520] sm:$0xff]  ;;  %v3689_v24 = vld [vmem:[#allocation12 + $0x530] sm:$0xff] }
 0x922   :  { %10655 = vmatpush1.bf16.msra.mxu1 %v10654_v22  ;;  %v3664_v22 = vld [vmem:[#allocation12 + $0x468] sm:$0xff] }
 0x923   :  { %10657 = vmatprep.subr.bf16.mxu1 %v10656_v55  ;;  %v3666_v55 = vld [vmem:[#allocation12 + $0x478] sm:$0xff] }
 0x924   :  { %v10688_v32 = vpack.c.bf16 %v3666_v55, %v3664_v22  ;;  %v3693_v22 = vld [vmem:[#allocation12 + $0x550] sm:$0xff]  ;;  %v3696_v55 = vld [vmem:[#allocation12 + $0x568] sm:$0xff] }
 0x926   :  { %10659 = vmatpush1.bf16.msra.mxu1 %v10658_v61  ;;  %v3665_v61 = vld [vmem:[#allocation12 + $0x470] sm:$0xff] }
 0x927   :  { %10661 = vmatprep.subr.bf16.mxu1 %v10660_v19  ;;  %v3668_v19 = vld [vmem:[#allocation12 + $0x488] sm:$0xff]  ;;  %v10690_v9 = vpack.c.bf16 %v3665_v61, %v3663_v53  ;;  %v3695_v53 = vld [vmem:[#allocation12 + $0x560] sm:$0xff]  ;;  %v3697_v61 = vld [vmem:[#allocation12 + $0x570] sm:$0xff] }
 0x928   :  { %v10692_v35 = vpack.c.bf16 %v3670_v11, %v3668_v19  ;;  %v3700_v19 = vld [vmem:[#allocation12 + $0x588] sm:$0xff]  ;;  %v3702_v11 = vld [vmem:[#allocation12 + $0x598] sm:$0xff] }
 0x92a   :  { %10663 = vmatpush1.bf16.msra.mxu1 %v10662_v0  ;;  %v3667_v0 = vld [vmem:[#allocation12 + $0x480] sm:$0xff] }
 0x92b   :  { %10665 = vmatprep.subr.bf16.mxu1 %v10664_v60  ;;  %v3669_v60 = vld [vmem:[#allocation12 + $0x490] sm:$0xff] }
 0x92c   :  { %v10694_v63 = vpack.c.bf16 %v3669_v60, %v3667_v0  ;;  %v3701_v0 = vld [vmem:[#allocation12 + $0x590] sm:$0xff]  ;;  %v3704_v60 = vld [vmem:[#allocation12 + $0x5a8] sm:$0xff] }
 0x92e   :  { %10667 = vmatpush1.bf16.msra.mxu1 %v10666_v12  ;;  %v3671_v12 = vld [vmem:[#allocation12 + $0x4a0] sm:$0xff] }
 0x92f   :  { %10669 = vmatprep.subr.bf16.mxu1 %v10668_v10  ;;  %v3673_v10 = vld [vmem:[#allocation12 + $0x4b0] sm:$0xff] }
 0x932   :  { %10671 = vmatpush1.bf16.msra.mxu1 %v10670_v5  ;;  %v10698_v5 = vpack.c.bf16 %v3673_v10, %v3671_v12  ;;  %v3705_v12 = vld [vmem:[#allocation12 + $0x5b0] sm:$0xff]  ;;  %v3708_v10 = vld [vmem:[#allocation12 + $0x5c8] sm:$0xff] }
 0x935   :  { %3504 = vmatmul.mubr.f32.vlgmr.msra.gmra.mrb[18].mxu1 %v14230_v13 }
 0x936   :  { %3509 = vmatprep.mubr.f32.mxu1 %v14233_v44 }
 0x939   :  { %3510 = vmatmul.mubr.f32.gmra.mrb[20].mxu1 %v14237_v8 }
 0x93a   :  { %3873 = vmatprep.mubr.f32.mxu1 %v17100_v20 }
 0x9c8   :  { %v14265_v1 = vpop.f32.mrb[10].mxu1 }
 0x9c9   :  { %v14267_v51 = vpop.f32.mrb[11].mxu1 }
 0x9cc   :  { %v14269_v28 = vpop.f32.mrb[12].mxu1 }
 0x9cd   :  { %v14271_v47 = vpop.f32.mrb[13].mxu1 }
 0x9d0   :  { %v14273_v17 = vpop.f32.mrb[14].mxu1 }
 0x9d1   :  { %v14275_v25 = vpop.f32.mrb[15].mxu1 }
 0x9d4   :  { %v14277_v50 = vpop.f32.mrb[16].mxu1 }
 0x9d5   :  { %v14279_v37 = vpop.f32.mrb[17].mxu1 }
 0xa08   :  { %v3505_v42 = vpop.f32.mrb[18].mxu1 }
 0xa09   :  { %v3507_v14 = vpop.f32.mrb[19].mxu1 }
 0xa0c   :  { %v3511_v46 = vpop.f32.mrb[20].mxu1 }
 0xa0d   :  { %v10674_v58 = vpack.c.bf16 %v3511_v46, %v3505_v42  ;;  %v3513_v29 = vpop.f32.mrb[21].mxu1  ;;  %v10700_v42 = vpack.c.bf16 %v3678_v2, %v3676_v4  ;;  %v3682_v46 = vld [vmem:[#allocation12 + $0x4f8] sm:$0xff] }
 0xa0e   :  { %v10672_v56 = vpack.c.bf16 %v3513_v29, %v3507_v14  ;;  %v3675_v14 = vld [vmem:[#allocation12 + $0x4c0] sm:$0xff]  ;;  %v10704_v29 = vpack.c.bf16 %v3682_v46, %v3680_v45  ;;  %v3710_v4 = vld [vmem:[#allocation12 + $0x5d8] sm:$0xff] }
 0xa0f   :  { %v3714_v45 = vld [vmem:[#allocation12 + $0x5f8] sm:$0xff] }
 0xa10   :  { %10673 = vmatprep.subr.bf16.mxu0 %v10672_v56  ;;  %v3681_v56 = vld [vmem:[#allocation12 + $0x4f0] sm:$0xff] }
 0xa11   :  { %10675 = vmatpush1.bf16.msra.mxu0 %v10674_v58  ;;  %v10702_v58 = vpack.c.bf16 %v3677_v57, %v3675_v14  ;;  %v3709_v14 = vld [vmem:[#allocation12 + $0x5d0] sm:$0xff]  ;;  %v3712_v57 = vld [vmem:[#allocation12 + $0x5e8] sm:$0xff] }
 0xa12   :  { %10677 = vmatprep.subr.bf16.mxu0 %v10676_v16  ;;  %v3684_v16 = vld [vmem:[#allocation12 + $0x508] sm:$0xff] }
 0xa13   :  { %v10708_v21 = vpack.c.bf16 %v3686_v48, %v3684_v16  ;;  %v3949_v16 = vld [vmem:[%s17031_s13 + $0x8] sm:$0xff]  ;;  %v3951_v48 = vld [vmem:[%s17031_s13 + $0x18] sm:$0xff] }
 0xa14   :  { %9573 = vmatmul.mubr.msk.f32.vlgmr.msra.gmra.mrb[18].mxu0 %vm3260_vm8, %v9569_v54  ;;  %v3685_v54 = vld [vmem:[#allocation12 + $0x510] sm:$0xff] }
 0xa15   :  { %10679 = vmatpush1.bf16.msra.mxu0 %v10678_v59  ;;  %3603 = vmatprep.mubr.f32.mxu0 %v17100_v20  ;;  %v3688_v59 = vld [vmem:[#allocation12 + $0x528] sm:$0xff]  ;;  %v10710_v30 = vpack.c.bf16 %v3685_v54, %v3683_v23 }
 0xa16   :  { %10681 = vmatprep.subr.bf16.mxu0 %v10680_v27  ;;  %v3690_v27 = vld [vmem:[#allocation12 + $0x538] sm:$0xff] }
 0xa17   :  { %v10712_v38 = vpack.c.bf16 %v3690_v27, %v3688_v59  ;;  %v3952_v59 = vld [vmem:[%s17031_s13 + $0x20] sm:$0xff]  ;;  %v3954_v27 = vld [vmem:[%s17031_s13 + $0x30] sm:$0xff] }
 0xa18   :  { %9574 = vmatmul.mubr.msk.f32.gmra.mrb[20].mxu0 %vm3260_vm8, %v9570_v18  ;;  %v3692_v18 = vld [vmem:[#allocation12 + $0x548] sm:$0xff] }
 0xa19   :  { %10683 = vmatpush1.bf16.msra.mxu0 %v10682_v6  ;;  %3609 = vmatprep.mubr.f32.mxu0 %v17100_v20  ;;  %v3694_v6 = vld [vmem:[#allocation12 + $0x558] sm:$0xff] }
 0xa1a   :  { %10685 = vmatprep.subr.bf16.mxu0 %v10684_v31  ;;  %v10714_v31 = vpack.c.bf16 %v3689_v24, %v3687_v40  ;;  %v10716_v43 = vpack.c.bf16 %v3694_v6, %v3692_v18  ;;  %v14343_v40 = vpack.c.bf16 %v3954_v27, %v3952_v59  ;;  %v3956_v18 = vld [vmem:[%s17031_s13 + $0x40] sm:$0xff]  ;;  %v3958_v6 = vld [vmem:[%s17031_s13 + $0x50] sm:$0xff] }
 0xa1c   :  { %9575 = vmatmul.mubr.msk.f32.gmra.mrb[22].mxu0 %vm3260_vm8, %v9571_v62  ;;  %v3698_v62 = vld [vmem:[#allocation12 + $0x578] sm:$0xff] }
 0xa1d   :  { %10687 = vmatpush1.bf16.msra.mxu0 %v10686_v36  ;;  %3615 = vmatprep.mubr.f32.mxu0 %v17100_v20  ;;  %v10718_v36 = vpack.c.bf16 %v3693_v22, %v3691_v15  ;;  %v14361_v15 = vpack.c.bf16 %v3958_v6, %v3956_v18 }
 0xa1e   :  { %10689 = vmatprep.subr.bf16.mxu0 %v10688_v32  ;;  %v10720_v32 = vpack.c.bf16 %v3698_v62, %v3696_v55  ;;  %v3960_v55 = vld [vmem:[%s17031_s13 + $0x60] sm:$0xff]  ;;  %v3962_v62 = vld [vmem:[%s17031_s13 + $0x70] sm:$0xff] }
 0xa20   :  { %9576 = vmatmul.mubr.msk.f32.gmra.mrb[24].mxu0 %vm3260_vm8, %v9572_v41  ;;  %v10722_v41 = vpack.c.bf16 %v3697_v61, %v3695_v53  ;;  %v14379_v53 = vpack.c.bf16 %v3962_v62, %v3960_v55 }
 0xa21   :  { %10691 = vmatpush1.bf16.msra.mxu0 %v10690_v9  ;;  %3779 = vmatprep.mubr.f32.mxu0 %v14228_v3  ;;  %v3679_v3 = vld [vmem:[#allocation12 + $0x4e0] sm:$0xff]  ;;  %v10724_v9 = vpack.c.bf16 %v3702_v11, %v3700_v19  ;;  %v3966_v11 = vld [vmem:[%s17031_s13 + $0x90] sm:$0xff] }
 0xa22   :  { %10693 = vmatprep.subr.bf16.mxu0 %v10692_v35  ;;  %v10706_v52 = vpack.c.bf16 %v3681_v56, %v3679_v3  ;;  %v3699_v35 = vld [vmem:[#allocation12 + $0x580] sm:$0xff]  ;;  %v3713_v3 = vld [vmem:[#allocation12 + $0x5f0] sm:$0xff] }
 0xa23   :  { %v10726_v34 = vpack.c.bf16 %v3701_v0, %v3699_v35  ;;  %v3964_v19 = vld [vmem:[%s17031_s13 + $0x80] sm:$0xff] }
 0xa24   :  { %v14397_v35 = vpack.c.bf16 %v3966_v11, %v3964_v19  ;;  %v3991_v19 = vld [vmem:[%s17031_s13 + $0x158] sm:$0xff] }
 0xa25   :  { %10695 = vmatpush1.bf16.msra.mxu0 %v10694_v63  ;;  %v10728_v63 = vpack.c.bf16 %v3706_v33, %v3704_v60  ;;  %v3968_v60 = vld [vmem:[%s17031_s13 + $0xa0] sm:$0xff]  ;;  %v3970_v33 = vld [vmem:[%s17031_s13 + $0xb0] sm:$0xff] }
 0xa26   :  { %10697 = vmatprep.subr.bf16.mxu0 %v10696_v49  ;;  %v3703_v49 = vld [vmem:[#allocation12 + $0x5a0] sm:$0xff] }
 0xa27   :  { %v10730_v2 = vpack.c.bf16 %v3705_v12, %v3703_v49  ;;  %v14415_v49 = vpack.c.bf16 %v3970_v33, %v3968_v60  ;;  %v3995_v60 = vld [vmem:[%s17031_s13 + $0x178] sm:$0xff] }
 0xa29   :  { %10699 = vmatpush1.bf16.msra.mxu0 %v10698_v5  ;;  %v10732_v5 = vpack.c.bf16 %v3710_v4, %v3708_v10  ;;  %v3972_v10 = vld [vmem:[%s17031_s13 + $0xc0] sm:$0xff]  ;;  %v3974_v4 = vld [vmem:[%s17031_s13 + $0xd0] sm:$0xff] }
 0xa2a   :  { %10701 = vmatprep.subr.bf16.mxu0 %v10700_v42  ;;  %v3707_v42 = vld [vmem:[#allocation12 + $0x5c0] sm:$0xff] }
 0xa2b   :  { %v10734_v46 = vpack.c.bf16 %v3709_v14, %v3707_v42  ;;  %v10770_v42 = vpack.c.bf16 %v3974_v4, %v3972_v10  ;;  %v3999_v10 = vld [vmem:[%s17031_s13 + $0x198] sm:$0xff] }
 0xa2d   :  { %10703 = vmatpush1.bf16.msra.mxu0 %v10702_v58  ;;  %v10736_v58 = vpack.c.bf16 %v3714_v45, %v3712_v57  ;;  %v3976_v57 = vld [vmem:[%s17031_s13 + $0xe0] sm:$0xff]  ;;  %v3978_v45 = vld [vmem:[%s17031_s13 + $0xf0] sm:$0xff] }
 0xa2e   :  { %10705 = vmatprep.subr.bf16.mxu0 %v10704_v29  ;;  %v3711_v29 = vld [vmem:[#allocation12 + $0x5e0] sm:$0xff] }
 0xa2f   :  { %v10738_v56 = vpack.c.bf16 %v3713_v3, %v3711_v29  ;;  %v10774_v29 = vpack.c.bf16 %v3978_v45, %v3976_v57  ;;  %v4003_v57 = vld [vmem:[%s17031_s13 + $0x1b8] sm:$0xff] }
 0xa31   :  { %10707 = vmatpush1.bf16.msra.mxu0 %v10706_v52  ;;  %v3948_v52 = vld [vmem:[%s17031_s13] sm:$0xff] }
 0xa32   :  { %10709 = vmatprep.subr.bf16.mxu0 %v10708_v21  ;;  %v14313_v21 = vpack.c.bf16 %v3951_v48, %v3949_v16 }
 0xa35   :  { %10711 = vmatpush1.bf16.msra.mxu0 %v10710_v30  ;;  %v3957_v30 = vld [vmem:[%s17031_s13 + $0x48] sm:$0xff] }
 0xa36   :  { %10713 = vmatprep.subr.bf16.mxu0 %v10712_v38  ;;  %v3959_v38 = vld [vmem:[%s17031_s13 + $0x58] sm:$0xff] }
 0xa37   :  { %v14345_v24 = vpack.c.bf16 %v3959_v38, %v3957_v30 }
 0xa39   :  { %10715 = vmatpush1.bf16.msra.mxu0 %v10714_v31  ;;  %v3961_v31 = vld [vmem:[%s17031_s13 + $0x68] sm:$0xff] }
 0xa3a   :  { %10717 = vmatprep.subr.bf16.mxu0 %v10716_v43  ;;  %v3963_v43 = vld [vmem:[%s17031_s13 + $0x78] sm:$0xff] }
 0xa3b   :  { %v14363_v22 = vpack.c.bf16 %v3963_v43, %v3961_v31 }
 0xa3d   :  { %10719 = vmatpush1.bf16.msra.mxu0 %v10718_v36  ;;  %v3965_v36 = vld [vmem:[%s17031_s13 + $0x88] sm:$0xff] }
 0xa3e   :  { %10721 = vmatprep.subr.bf16.mxu0 %v10720_v32  ;;  %v3967_v32 = vld [vmem:[%s17031_s13 + $0x98] sm:$0xff] }
 0xa3f   :  { %v14381_v61 = vpack.c.bf16 %v3967_v32, %v3965_v36  ;;  %v3986_v32 = vld [vmem:[%s17031_s13 + $0x130] sm:$0xff] }
 0xa41   :  { %10723 = vmatpush1.bf16.msra.mxu0 %v10722_v41  ;;  %v3969_v41 = vld [vmem:[%s17031_s13 + $0xa8] sm:$0xff] }
 0xa42   :  { %10725 = vmatprep.subr.bf16.mxu0 %v10724_v9  ;;  %v3971_v9 = vld [vmem:[%s17031_s13 + $0xb8] sm:$0xff] }
 0xa43   :  { %v14399_v0 = vpack.c.bf16 %v3971_v9, %v3969_v41  ;;  %v3988_v41 = vld [vmem:[%s17031_s13 + $0x140] sm:$0xff]  ;;  %v3990_v9 = vld [vmem:[%s17031_s13 + $0x150] sm:$0xff] }
 0xa45   :  { %10727 = vmatpush1.bf16.msra.mxu0 %v10726_v34  ;;  %v3973_v34 = vld [vmem:[%s17031_s13 + $0xc8] sm:$0xff] }
 0xa46   :  { %10729 = vmatprep.subr.bf16.mxu0 %v10728_v63  ;;  %v3975_v63 = vld [vmem:[%s17031_s13 + $0xd8] sm:$0xff] }
 0xa47   :  { %v14417_v12 = vpack.c.bf16 %v3975_v63, %v3973_v34  ;;  %v3992_v34 = vld [vmem:[%s17031_s13 + $0x160] sm:$0xff]  ;;  %v3994_v63 = vld [vmem:[%s17031_s13 + $0x170] sm:$0xff] }
 0xa49   :  { %10731 = vmatpush1.bf16.msra.mxu0 %v10730_v2  ;;  %v3977_v2 = vld [vmem:[%s17031_s13 + $0xe8] sm:$0xff] }
 0xa4a   :  { %10733 = vmatprep.subr.bf16.mxu0 %v10732_v5  ;;  %v3979_v5 = vld [vmem:[%s17031_s13 + $0xf8] sm:$0xff] }
 0xa4b   :  { %v10772_v14 = vpack.c.bf16 %v3979_v5, %v3977_v2  ;;  %v3996_v2 = vld [vmem:[%s17031_s13 + $0x180] sm:$0xff]  ;;  %v3998_v5 = vld [vmem:[%s17031_s13 + $0x190] sm:$0xff] }
 0xa4d   :  { %10735 = vmatpush1.bf16.msra.mxu0 %v10734_v46  ;;  %v3981_v46 = vld [vmem:[%s17031_s13 + $0x108] sm:$0xff] }
 0xa4e   :  { %10737 = vmatprep.subr.bf16.mxu0 %v10736_v58  ;;  %v3983_v58 = vld [vmem:[%s17031_s13 + $0x118] sm:$0xff] }
 0xa4f   :  { %v10776_v3 = vpack.c.bf16 %v3983_v58, %v3981_v46  ;;  %v4000_v46 = vld [vmem:[%s17031_s13 + $0x1a0] sm:$0xff]  ;;  %v4002_v58 = vld [vmem:[%s17031_s13 + $0x1b0] sm:$0xff] }
 0xa51   :  { %10739 = vmatpush1.bf16.msra.mxu0 %v10738_v56 }
 0xa52   :  { %10809 = vmatprep.subr.bf16.mxu0 %v14313_v21 }
 0xa54   :  { %3780 = vmatmul.mubr.f32.vlgmr.msra.gmra.mrb[26].mxu0 %v14230_v13  ;;  %v3950_v13 = vld [vmem:[%s17031_s13 + $0x10] sm:$0xff] }
 0xa55   :  { %3785 = vmatprep.mubr.f32.mxu0 %v14233_v44  ;;  %v3953_v44 = vld [vmem:[%s17031_s13 + $0x28] sm:$0xff]  ;;  %v14324_v23 = vpack.c.bf16 %v3950_v13, %v3948_v52 }
 0xa57   :  { %10811 = vmatpush1.bf16.msra.mxu0 %v14324_v23 }
 0xa58   :  { %3786 = vmatmul.mubr.f32.gmra.mrb[28].mxu0 %v14237_v8  ;;  %v3955_v8 = vld [vmem:[%s17031_s13 + $0x38] sm:$0xff] }
 0xa59   :  { %v14326_v54 = vpack.c.bf16 %v3955_v8, %v3953_v44 }
 0xa5b   :  { %10813 = vmatprep.subr.bf16.mxu0 %v14326_v54 }
 0xa5c   :  { %10815 = vmatpush1.bf16.msra.mxu0 %v14343_v40 }
 0xa5d   :  { %10817 = vmatprep.subr.bf16.mxu0 %v14345_v24 }
 0xa60   :  { %10819 = vmatpush1.bf16.msra.mxu0 %v14361_v15 }
 0xa61   :  { %10821 = vmatprep.subr.bf16.mxu0 %v14363_v22 }
 0xa64   :  { %10823 = vmatpush1.bf16.msra.mxu0 %v14379_v53 }
 0xa65   :  { %10825 = vmatprep.subr.bf16.mxu0 %v14381_v61 }
 0xa68   :  { %10827 = vmatpush1.bf16.msra.mxu0 %v14397_v35 }
 0xa69   :  { %10829 = vmatprep.subr.bf16.mxu0 %v14399_v0 }
 0xa6c   :  { %10831 = vmatpush1.bf16.msra.mxu0 %v14415_v49 }
 0xa6d   :  { %10833 = vmatprep.subr.bf16.mxu0 %v14417_v12 }
 0xa70   :  { %10835 = vmatpush1.bf16.msra.mxu0 %v10770_v42 }
 0xa71   :  { %10837 = vmatprep.subr.bf16.mxu0 %v10772_v14 }
 0xa74   :  { %10839 = vmatpush1.bf16.msra.mxu0 %v10774_v29 }
 0xa75   :  { %10841 = vmatprep.subr.bf16.mxu0 %v10776_v3 }
 0xae7   :  { %v3599_v56 = vpop.f32.mrb[18].mxu0 }
 0xae8   :  { %v14446_v16 = vadd.f32 %v3599_v56, %v14265_v1  ;;  %v3601_v48 = vpop.f32.mrb[19].mxu0  ;;  %v4007_v56 = vld [vmem:[%s17031_s13 + $0x1d8] sm:$0xff] }
 0xae9   :  { %v14449_v52 = vadd.f32 %v3601_v48, %v14267_v51 }
 0xaeb   :  { %v3605_v13 = vpop.f32.mrb[20].mxu0 }
 0xaec   :  { %v14452_v44 = vadd.f32 %v3605_v13, %v14269_v28  ;;  %v3607_v8 = vpop.f32.mrb[21].mxu0  ;;  %v4004_v13 = vld [vmem:[%s17031_s13 + $0x1c0] sm:$0xff] }
 0xaed   :  { %v14455_v59 = vadd.f32 %v3607_v8, %v14271_v47  ;;  %v4006_v8 = vld [vmem:[%s17031_s13 + $0x1d0] sm:$0xff] }
 0xaef   :  { %v3611_v27 = vpop.f32.mrb[22].mxu0 }
 0xaf0   :  { %v14458_v30 = vadd.f32 %v3611_v27, %v14273_v17  ;;  %v3613_v38 = vpop.f32.mrb[23].mxu0  ;;  %v9577_v17 = vld [vmem:[%s17029_s11 + $0x40] sm:$0xff]  ;;  %v10802_v27 = vpack.c.bf16 %v4006_v8, %v4004_v13  ;;  %v4295_v13 = vld [vmem:[#allocation13 + $0x68] sm:$0xff]  ;;  %v4297_v8 = vld [vmem:[#allocation13 + $0x78] sm:$0xff] }
 0xaf1   :  { %v14461_v1 = vadd.f32 %v3613_v38, %v14275_v25  ;;  %v9578_v25 = vld [vmem:[%s17029_s11 + $0x48] sm:$0xff] }
 0xaf2   :  { %v4009_v38 = vld [vmem:[%s17031_s13 + $0x1e8] sm:$0xff] }
 0xaf3   :  { %v3617_v18 = vpop.f32.mrb[24].mxu0 }
 0xaf4   :  { %v14464_v51 = vadd.f32 %v3617_v18, %v14277_v50  ;;  %v3619_v6 = vpop.f32.mrb[25].mxu0  ;;  %v9579_v50 = vld [vmem:[%s17029_s11 + $0x50] sm:$0xff]  ;;  %v4011_v18 = vld [vmem:[%s17031_s13 + $0x1f8] sm:$0xff] }
 0xaf5   :  { %v14467_v28 = vadd.f32 %v3619_v6, %v14279_v37  ;;  %v9580_v37 = vld [vmem:[%s17029_s11 + $0x58] sm:$0xff]  ;;  %v10804_v6 = vpack.c.bf16 %v4011_v18, %v4009_v38  ;;  %v10884_v38 = vpack.c.bf16 %v4297_v8, %v4295_v13  ;;  %v4294_v18 = vld [vmem:[#allocation13 + $0x60] sm:$0xff] }
 0xb27   :  { %v3781_v31 = vpop.f32.mrb[26].mxu0 }
 0xb28   :  { %v3783_v43 = vpop.f32.mrb[27].mxu0 }
 0xb2b   :  { %v3787_v47 = vpop.f32.mrb[28].mxu0 }
 0xb2c   :  { %v10742_v55 = vpack.c.bf16 %v3787_v47, %v3781_v31  ;;  %v3789_v62 = vpop.f32.mrb[29].mxu0  ;;  %v4008_v31 = vld [vmem:[%s17031_s13 + $0x1e0] sm:$0xff] }
 0xb2d   :  { %v10740_v36 = vpack.c.bf16 %v3789_v62, %v3783_v43  ;;  %v4010_v43 = vld [vmem:[%s17031_s13 + $0x1f0] sm:$0xff] }
 0xb2e   :  { %v10806_v47 = vpack.c.bf16 %v4010_v43, %v4008_v31  ;;  %v4299_v31 = vld [vmem:[#allocation13 + $0x88] sm:$0xff]  ;;  %v4301_v43 = vld [vmem:[#allocation13 + $0x98] sm:$0xff] }
 0xb2f   :  { %10741 = vmatprep.subr.bf16.mxu1 %v10740_v36 }
 0xb30   :  { %10743 = vmatpush1.bf16.msra.mxu1 %v10742_v55 }
 0xb31   :  { %10745 = vmatprep.subr.bf16.mxu1 %v14313_v21  ;;  %v3980_v21 = vld [vmem:[%s17031_s13 + $0x100] sm:$0xff] }
 0xb33   :  { %9581 = vmatmul.mubr.msk.f32.vlgmr.msra.gmra.mrb[22].mxu1 %vm3260_vm8, %v9577_v17 }
 0xb34   :  { %3879 = vmatprep.mubr.f32.mxu1 %v17100_v20  ;;  %10747 = vmatpush1.bf16.msra.mxu1 %v14324_v23  ;;  %v3982_v23 = vld [vmem:[%s17031_s13 + $0x110] sm:$0xff] }
 0xb35   :  { %10749 = vmatprep.subr.bf16.mxu1 %v14326_v54  ;;  %v10778_v54 = vpack.c.bf16 %v3982_v23, %v3980_v21 }
 0xb37   :  { %9582 = vmatmul.mubr.msk.f32.gmra.mrb[24].mxu1 %vm3260_vm8, %v9578_v25  ;;  %10843 = vmatpush1.bf16.msra.mxu0 %v10778_v54 }
 0xb38   :  { %3885 = vmatprep.mubr.f32.mxu1 %v17100_v20  ;;  %10751 = vmatpush1.bf16.msra.mxu1 %v14343_v40  ;;  %v3985_v40 = vld [vmem:[%s17031_s13 + $0x128] sm:$0xff] }
 0xb39   :  { %10753 = vmatprep.subr.bf16.mxu1 %v14345_v24  ;;  %v3987_v24 = vld [vmem:[%s17031_s13 + $0x138] sm:$0xff] }
 0xb3b   :  { %9583 = vmatmul.mubr.msk.f32.gmra.mrb[26].mxu1 %vm3260_vm8, %v9579_v50 }
 0xb3c   :  { %3891 = vmatprep.mubr.f32.mxu1 %v17100_v20  ;;  %10755 = vmatpush1.bf16.msra.mxu1 %v14361_v15  ;;  %v10780_v15 = vpack.c.bf16 %v3987_v24, %v3985_v40 }
 0xb3d   :  { %10757 = vmatprep.subr.bf16.mxu1 %v14363_v22  ;;  %v3984_v22 = vld [vmem:[%s17031_s13 + $0x120] sm:$0xff] }
 0xb3e   :  { %10845 = vmatprep.subr.bf16.mxu0 %v10780_v15 }
 0xb3f   :  { %9584 = vmatmul.mubr.msk.f32.gmra.mrb[28].mxu1 %vm3260_vm8, %v9580_v37 }
 0xb40   :  { %10759 = vmatpush1.bf16.msra.mxu1 %v14379_v53  ;;  %v10782_v53 = vpack.c.bf16 %v3986_v32, %v3984_v22 }
 0xb41   :  { %10761 = vmatprep.subr.bf16.mxu1 %v14381_v61  ;;  %v3989_v61 = vld [vmem:[%s17031_s13 + $0x148] sm:$0xff] }
 0xb42   :  { %10847 = vmatpush1.bf16.msra.mxu0 %v10782_v53  ;;  %v10784_v11 = vpack.c.bf16 %v3991_v19, %v3989_v61 }
 0xb44   :  { %10763 = vmatpush1.bf16.msra.mxu1 %v14397_v35  ;;  %v10786_v35 = vpack.c.bf16 %v3990_v9, %v3988_v41  ;;  %10849 = vmatprep.subr.bf16.mxu0 %v10784_v11 }
 0xb45   :  { %10765 = vmatprep.subr.bf16.mxu1 %v14399_v0  ;;  %v3993_v0 = vld [vmem:[%s17031_s13 + $0x168] sm:$0xff] }
 0xb46   :  { %10851 = vmatpush1.bf16.msra.mxu0 %v10786_v35  ;;  %v10788_v33 = vpack.c.bf16 %v3995_v60, %v3993_v0 }
 0xb48   :  { %10767 = vmatpush1.bf16.msra.mxu1 %v14415_v49  ;;  %v10790_v49 = vpack.c.bf16 %v3994_v63, %v3992_v34  ;;  %10853 = vmatprep.subr.bf16.mxu0 %v10788_v33 }
 0xb49   :  { %10769 = vmatprep.subr.bf16.mxu1 %v14417_v12  ;;  %v3997_v12 = vld [vmem:[%s17031_s13 + $0x188] sm:$0xff] }
 0xb4a   :  { %10855 = vmatpush1.bf16.msra.mxu0 %v10790_v49  ;;  %v10792_v4 = vpack.c.bf16 %v3999_v10, %v3997_v12  ;;  %v4282_v12 = vld [vmem:[#allocation13] sm:$0xff] }
 0xb4c   :  { %10771 = vmatpush1.bf16.msra.mxu1 %v10770_v42  ;;  %v10794_v42 = vpack.c.bf16 %v3998_v5, %v3996_v2  ;;  %10857 = vmatprep.subr.bf16.mxu0 %v10792_v4  ;;  %v4287_v2 = vld [vmem:[#allocation13 + $0x28] sm:$0xff]  ;;  %v4289_v5 = vld [vmem:[#allocation13 + $0x38] sm:$0xff] }
 0xb4d   :  { %10773 = vmatprep.subr.bf16.mxu1 %v10772_v14  ;;  %v4001_v14 = vld [vmem:[%s17031_s13 + $0x1a8] sm:$0xff] }
 0xb4e   :  { %10859 = vmatpush1.bf16.msra.mxu0 %v10794_v42  ;;  %v10796_v45 = vpack.c.bf16 %v4003_v57, %v4001_v14  ;;  %v10876_v14 = vpack.c.bf16 %v4289_v5, %v4287_v2  ;;  %v4286_v57 = vld [vmem:[#allocation13 + $0x20] sm:$0xff] }
 0xb50   :  { %10775 = vmatpush1.bf16.msra.mxu1 %v10774_v29  ;;  %v10798_v29 = vpack.c.bf16 %v4002_v58, %v4000_v46  ;;  %10861 = vmatprep.subr.bf16.mxu0 %v10796_v45  ;;  %v4291_v46 = vld [vmem:[#allocation13 + $0x48] sm:$0xff]  ;;  %v4293_v58 = vld [vmem:[#allocation13 + $0x58] sm:$0xff] }
 0xb51   :  { %10777 = vmatprep.subr.bf16.mxu1 %v10776_v3  ;;  %v4005_v3 = vld [vmem:[%s17031_s13 + $0x1c8] sm:$0xff] }
 0xb52   :  { %10863 = vmatpush1.bf16.msra.mxu0 %v10798_v29  ;;  %v10800_v48 = vpack.c.bf16 %v4007_v56, %v4005_v3  ;;  %v10880_v3 = vpack.c.bf16 %v4293_v58, %v4291_v46  ;;  %v4290_v56 = vld [vmem:[#allocation13 + $0x40] sm:$0xff] }
 0xb54   :  { %10779 = vmatpush1.bf16.msra.mxu1 %v10778_v54  ;;  %10865 = vmatprep.subr.bf16.mxu0 %v10800_v48 }
 0xb55   :  { %10781 = vmatprep.subr.bf16.mxu1 %v10780_v15 }
 0xb56   :  { %10867 = vmatpush1.bf16.msra.mxu0 %v10802_v27 }
 0xb57   :  { %10869 = vmatprep.subr.bf16.mxu0 %v10804_v6 }
 0xb58   :  { %10783 = vmatpush1.bf16.msra.mxu1 %v10782_v53 }
 0xb59   :  { %10785 = vmatprep.subr.bf16.mxu1 %v10784_v11 }
 0xb5a   :  { %10871 = vmatpush1.bf16.msra.mxu0 %v10806_v47 }
 0xb5c   :  { %10787 = vmatpush1.bf16.msra.mxu1 %v10786_v35 }
 0xb5d   :  { %10789 = vmatprep.subr.bf16.mxu1 %v10788_v33 }
 0xb60   :  { %10791 = vmatpush1.bf16.msra.mxu1 %v10790_v49  ;;  %v4285_v49 = vld [vmem:[#allocation13 + $0x18] sm:$0xff] }
 0xb61   :  { %10793 = vmatprep.subr.bf16.mxu1 %v10792_v4  ;;  %v4284_v4 = vld [vmem:[#allocation13 + $0x10] sm:$0xff] }
 0xb64   :  { %10795 = vmatpush1.bf16.msra.mxu1 %v10794_v42  ;;  %v10874_v42 = vpack.c.bf16 %v4284_v4, %v4282_v12 }
 0xb65   :  { %10797 = vmatprep.subr.bf16.mxu1 %v10796_v45  ;;  %v4288_v45 = vld [vmem:[#allocation13 + $0x30] sm:$0xff] }
 0xb68   :  { %10799 = vmatpush1.bf16.msra.mxu1 %v10798_v29  ;;  %v10878_v29 = vpack.c.bf16 %v4288_v45, %v4286_v57 }
 0xb69   :  { %10801 = vmatprep.subr.bf16.mxu1 %v10800_v48  ;;  %v4292_v48 = vld [vmem:[#allocation13 + $0x50] sm:$0xff] }
 0xb6c   :  { %10803 = vmatpush1.bf16.msra.mxu1 %v10802_v27  ;;  %v10882_v27 = vpack.c.bf16 %v4292_v48, %v4290_v56 }
 0xb6d   :  { %10805 = vmatprep.subr.bf16.mxu1 %v10804_v6  ;;  %v4296_v6 = vld [vmem:[#allocation13 + $0x70] sm:$0xff] }
 0xb70   :  { %10807 = vmatpush1.bf16.msra.mxu1 %v10806_v47  ;;  %v10886_v47 = vpack.c.bf16 %v4296_v6, %v4294_v18 }
 0xc06   :  { %v3875_v55 = vpop.f32.mrb[22].mxu1 }
 0xc07   :  { %v14592_v62 = vadd.f32 %v3875_v55, %v14446_v16  ;;  %v3877_v36 = vpop.f32.mrb[23].mxu1  ;;  %v10888_v55 = vpack.c.bf16 %v4301_v43, %v4299_v31 }
 0xc08   :  { %v14595_v17 = vadd.f32 %v3877_v36, %v14449_v52  ;;  %v4298_v36 = vld [vmem:[#allocation13 + $0x80] sm:$0xff] }
 0xc0a   :  { %v3881_v25 = vpop.f32.mrb[24].mxu1 }
 0xc0b   :  { %v14598_v50 = vadd.f32 %v3881_v25, %v14452_v44  ;;  %v3883_v37 = vpop.f32.mrb[25].mxu1  ;;  %v4300_v25 = vld [vmem:[#allocation13 + $0x90] sm:$0xff] }
 0xc0c   :  { %v14601_v21 = vadd.f32 %v3883_v37, %v14455_v59  ;;  %v4303_v37 = vld [vmem:[#allocation13 + $0xa8] sm:$0xff] }
 0xc0d   :  { %v3930_v52 = vadd.f32 %v14598_v50, %v14592_v62 }
 0xc0e   :  { %v3887_v23 = vpop.f32.mrb[26].mxu1  ;;  %v3939_v24 = vadd.f32 %v14601_v21, %v14595_v17 }
 0xc0f   :  { %v14604_v54 = vadd.f32 %v3887_v23, %v14458_v30  ;;  %v3889_v40 = vpop.f32.mrb[27].mxu1  ;;  %v4305_v23 = vld [vmem:[#allocation13 + $0xb8] sm:$0xff] }
 0xc10   :  { %v14607_v16 = vadd.f32 %v3889_v40, %v14461_v1  ;;  %v10890_v40 = vpack.c.bf16 %v4300_v25, %v4298_v36 }
 0xc11   :  { %v3931_v15 = vadd.f32 %v3930_v52, %v14604_v54  ;;  %v10892_v52 = vpack.c.bf16 %v4305_v23, %v4303_v37  ;;  %v4314_v37 = vld [vmem:[#allocation13 + $0x100] sm:$0xff]  ;;  %v4316_v23 = vld [vmem:[#allocation13 + $0x110] sm:$0xff] }
 0xc12   :  { %v3893_v44 = vpop.f32.mrb[28].mxu1  ;;  %v3940_v30 = vadd.f32 %v3939_v24, %v14607_v16  ;;  %v4302_v24 = vld [vmem:[#allocation13 + $0xa0] sm:$0xff] }
 0xc13   :  { %v14615_v59 = vadd.f32 %v3893_v44, %v14464_v51  ;;  %v3895_v22 = vpop.f32.mrb[29].mxu1  ;;  %v4304_v44 = vld [vmem:[#allocation13 + $0xb0] sm:$0xff] }
 0xc14   :  { %v14619_v32 = vadd.f32 %v3895_v22, %v14467_v28  ;;  %v4283_v28 = vld [vmem:[#allocation13 + $0x8] sm:$0xff]  ;;  %v4309_v22 = vld [vmem:[#allocation13 + $0xd8] sm:$0xff] }
 0xc15   :  { %v3932_v1 = vadd.f32 %v3931_v15, %v14615_v59  ;;  %v10872_v10 = vpack.c.bf16 %v4285_v49, %v4283_v28  ;;  %v4307_v15 = vld [vmem:[#allocation13 + $0xc8] sm:$0xff] }
 0xc16   :  { %v3941_v53 = vadd.f32 %v3940_v30, %v14619_v32  ;;  %v10894_v30 = vpack.c.bf16 %v4304_v44, %v4302_v24  ;;  %v4321_v24 = vld [vmem:[#allocation13 + $0x138] sm:$0xff] }
 0xc17   :  { %v3933_v61 = vrot.slane %v3932_v1, 4  ;;  %10873 = vmatprep.subr.bf16.mxu1 %v10872_v10 }
 0xc18   :  { %v3942_v19 = vrot.slane %v3941_v53, 4 }
 0xc19   :  { %v3934_v11 = vadd.f32 %v3933_v61, %v3932_v1  ;;  %v10896_v1 = vpack.c.bf16 %v4309_v22, %v4307_v15  ;;  %v4308_v61 = vld [vmem:[#allocation13 + $0xd0] sm:$0xff]  ;;  %v4318_v15 = vld [vmem:[#allocation13 + $0x120] sm:$0xff] }
 0xc1a   :  { %v3943_v41 = vadd.f32 %v3942_v19, %v3941_v53  ;;  %v4306_v53 = vld [vmem:[#allocation13 + $0xc0] sm:$0xff]  ;;  %v4311_v19 = vld [vmem:[#allocation13 + $0xe8] sm:$0xff]  ;;  %v4320_v22 = vld [vmem:[#allocation13 + $0x130] sm:$0xff] }
 0xc1b   :  { %v3935_v9 = vrot.slane %v3934_v11, 2 }
 0xc1c   :  { %v3944_v35 = vrot.slane %v3943_v41, 2 }
 0xc1d   :  { %v3936_v0 = vadd.f32 %v3935_v9, %v3934_v11  ;;  %v4313_v11 = vld [vmem:[#allocation13 + $0xf8] sm:$0xff] }
 0xc1e   :  { %v3945_v60 = vadd.f32 %v3944_v35, %v3943_v41  ;;  %v10898_v41 = vpack.c.bf16 %v4308_v61, %v4306_v53  ;;  %v10900_v9 = vpack.c.bf16 %v4313_v11, %v4311_v19  ;;  %v4310_v35 = vld [vmem:[#allocation13 + $0xe0] sm:$0xff]  ;;  %v4325_v53 = vld [vmem:[#allocation13 + $0x158] sm:$0xff]  ;;  %v4324_v11 = vld [vmem:[#allocation13 + $0x150] sm:$0xff] }
 0xc1f   :  { %v3937_v51 = vrot.slane %v3936_v0, 1  ;;  %v4322_v19 = vld [vmem:[#allocation13 + $0x140] sm:$0xff] }
 0xc20   :  { %v3946_v33 = vrot.slane %v3945_v60, 1 }
 0xc21   :  { %v3938_v63 = vadd.f32 %v3937_v51, %v3936_v0  ;;  %v4312_v0 = vld [vmem:[#allocation13 + $0xf0] sm:$0xff]  ;;  %v4317_v51 = vld [vmem:[#allocation13 + $0x118] sm:$0xff] }
 0xc22   :  { %v3947_v34 = vadd.f32 %v3946_v33, %v3945_v60  ;;  %v4315_v60 = vld [vmem:[#allocation13 + $0x108] sm:$0xff]  ;;  %v10902_v33 = vpack.c.bf16 %v4312_v0, %v4310_v35  ;;  %v4329_v35 = vld [vmem:[#allocation13 + $0x178] sm:$0xff] }
 0xc24   :  { %4076 = vmatprep.mubr.f32.mxu1 %v3947_v34  ;;  %v10904_v34 = vpack.c.bf16 %v4317_v51, %v4315_v60  ;;  %v4326_v60 = vld [vmem:[#allocation13 + $0x160] sm:$0xff]  ;;  %v4328_v51 = vld [vmem:[#allocation13 + $0x170] sm:$0xff] }
 0xc25   :  { %4077 = vmatmul.mubr.f32.vlgmr.msra.gmra.mrb[30].mxu1 %v3938_v63 }
 0xc26   :  { %10875 = vmatpush1.bf16.msra.mxu1 %v10874_v42 }
 0xc27   :  { %10877 = vmatprep.subr.bf16.mxu1 %v10876_v14 }
 0xc2a   :  { %10879 = vmatpush1.bf16.msra.mxu1 %v10878_v29 }
 0xc2b   :  { %10881 = vmatprep.subr.bf16.mxu1 %v10880_v3 }
 0xc2e   :  { %10883 = vmatpush1.bf16.msra.mxu1 %v10882_v27 }
 0xc2f   :  { %10885 = vmatprep.subr.bf16.mxu1 %v10884_v38 }
 0xc32   :  { %10887 = vmatpush1.bf16.msra.mxu1 %v10886_v47 }
 0xc33   :  { %10889 = vmatprep.subr.bf16.mxu1 %v10888_v55 }
 0xc36   :  { %10891 = vmatpush1.bf16.msra.mxu1 %v10890_v40  ;;  %v10906_v40 = vpack.c.bf16 %v4316_v23, %v4314_v37 }
 0xc37   :  { %10893 = vmatprep.subr.bf16.mxu1 %v10892_v52  ;;  %v4319_v52 = vld [vmem:[#allocation13 + $0x128] sm:$0xff] }
 0xc38   :  { %v10908_v44 = vpack.c.bf16 %v4321_v24, %v4319_v52  ;;  %v4125_v24 = vld [vmem:[%s17032_s14] ss:$2 sm:$0x3] }
 0xc3a   :  { %10895 = vmatpush1.bf16.msra.mxu1 %v10894_v30  ;;  %v10910_v30 = vpack.c.bf16 %v4320_v22, %v4318_v15  ;;  %v9585_v15 = vld [vmem:[%s17032_s14 + $0x1] ss:$2 sm:$0x3] }
 0xc3b   :  { %10897 = vmatprep.subr.bf16.mxu1 %v10896_v1  ;;  %v4323_v1 = vld [vmem:[#allocation13 + $0x148] sm:$0xff] }
 0xc3c   :  { %v10912_v61 = vpack.c.bf16 %v4325_v53, %v4323_v1  ;;  %v4243_v1 = vrot.slane %v9585_v15, %v13843_v26  ;;  %v4247_v53 = vrot.slane %v9585_v15, %v13840_v7  ;;  %v4982_v15 = vld [vmem:[#allocation13 + $0x4a0] sm:$0xff] }
 0xc3e   :  { %10899 = vmatpush1.bf16.msra.mxu1 %v10898_v41  ;;  %v10914_v41 = vpack.c.bf16 %v4324_v11, %v4322_v19 }
 0xc3f   :  { %10901 = vmatprep.subr.bf16.mxu1 %v10900_v9  ;;  %v4327_v9 = vld [vmem:[#allocation13 + $0x168] sm:$0xff] }
 0xc40   :  { %v10916_v0 = vpack.c.bf16 %v4329_v35, %v4327_v9  ;;  %v4962_v9 = vld [vmem:[#allocation13 + $0x400] sm:$0xff]  ;;  %v4964_v35 = vld [vmem:[#allocation13 + $0x410] sm:$0xff] }
 0xc42   :  { %10903 = vmatpush1.bf16.msra.mxu1 %v10902_v33  ;;  %v10918_v33 = vpack.c.bf16 %v4328_v51, %v4326_v60 }
 0xc43   :  { %10905 = vmatprep.subr.bf16.mxu1 %v10904_v34  ;;  %v4331_v34 = vld [vmem:[#allocation13 + $0x188] sm:$0xff] }
 0xc46   :  { %10907 = vmatpush1.bf16.msra.mxu1 %v10906_v40 }
 0xc47   :  { %10909 = vmatprep.subr.bf16.mxu1 %v10908_v44 }
 0xc4a   :  { %10911 = vmatpush1.bf16.msra.mxu1 %v10910_v30 }
 0xc4b   :  { %10913 = vmatprep.subr.bf16.mxu1 %v10912_v61 }
 0xc4e   :  { %10915 = vmatpush1.bf16.msra.mxu1 %v10914_v41 }
 0xc4f   :  { %10917 = vmatprep.subr.bf16.mxu1 %v10916_v0 }
 0xc52   :  { %10919 = vmatpush1.bf16.msra.mxu1 %v10918_v33 }
 0xcf8   :  { %v4078_v63 = vpop.f32.mrb[30].mxu1 }
 0xcf9   :  { %v4086_v28 = vrot.slane %v4078_v63, %v13843_v26  ;;  %v4080_v49 = vpop.f32.mrb[31].mxu1  ;;  %v4333_v63 = vld [vmem:[#allocation13 + $0x198] sm:$0xff] }
 0xcfa   :  { %v4090_v12 = vrot.slane %v4080_v49, %v13843_v26  ;;  %v4330_v49 = vld [vmem:[#allocation13 + $0x180] sm:$0xff] }
 0xcfb   :  { %v14626_v10 = vsub.f32 %v14592_v62, %v4086_v28  ;;  %v14629_v4 = vsub.f32 %v14598_v50, %v4086_v28  ;;  %v14632_v2 = vsub.f32 %v14604_v54, %v4086_v28  ;;  %v14644_v57 = vsub.f32 %v14615_v59, %v4086_v28 }
 0xcfc   :  { %v14635_v5 = vsub.f32 %v14595_v17, %v4090_v12  ;;  %v14638_v42 = vsub.f32 %v14601_v21, %v4090_v12  ;;  %v14641_v14 = vsub.f32 %v14607_v16, %v4090_v12  ;;  %v14651_v54 = vsub.f32 %v14619_v32, %v4090_v12  ;;  %v4332_v12 = vld [vmem:[#allocation13 + $0x190] sm:$0xff] }
 0xcfd   :  { %v4099_v62 = vmul.f32 %v14626_v10, %v14626_v10  ;;  %v4101_v50 = vmul.f32 %v14629_v4, %v14629_v4  ;;  %v4103_v16 = vmul.f32 %v14632_v2, %v14632_v2  ;;  %v4105_v58 = vmul.f32 %v14644_v57, %v14644_v57 }
 0xcfe   :  { %v4100_v17 = vmul.f32 %v14635_v5, %v14635_v5  ;;  %v4102_v21 = vmul.f32 %v14638_v42, %v14638_v42  ;;  %v4104_v45 = vmul.f32 %v14641_v14, %v14641_v14  ;;  %v4106_v32 = vmul.f32 %v14651_v54, %v14651_v54 }
 0xcff   :  { %v4107_v59 = vadd.f32 %v4101_v50, %v4099_v62  ;;  %v10920_v28 = vpack.c.bf16 %v4333_v63, %v4331_v34  ;;  %v10922_v62 = vpack.c.bf16 %v4332_v12, %v4330_v49  ;;  %v4335_v50 = vld [vmem:[#allocation13 + $0x1a8] sm:$0xff]  ;;  %v4969_v63 = vld [vmem:[#allocation13 + $0x438] sm:$0xff] }
 0xd00   :  { %v4116_v46 = vadd.f32 %v4102_v21, %v4100_v17  ;;  %v4337_v17 = vld [vmem:[#allocation13 + $0x1b8] sm:$0xff]  ;;  %v4967_v34 = vld [vmem:[#allocation13 + $0x428] sm:$0xff] }
 0xd01   :  { %v4108_v29 = vadd.f32 %v4107_v59, %v4103_v16  ;;  %10921 = vmatprep.subr.bf16.mxu1 %v10920_v28  ;;  %v10924_v21 = vpack.c.bf16 %v4337_v17, %v4335_v50  ;;  %v4334_v16 = vld [vmem:[#allocation13 + $0x1a0] sm:$0xff]  ;;  %v4336_v59 = vld [vmem:[#allocation13 + $0x1b0] sm:$0xff] }
 0xd02   :  { %v4117_v3 = vadd.f32 %v4116_v46, %v4104_v45  ;;  %10923 = vmatpush1.bf16.msra.mxu1 %v10922_v62  ;;  %v10926_v45 = vpack.c.bf16 %v4336_v59, %v4334_v16  ;;  %v4339_v46 = vld [vmem:[#allocation13 + $0x1c8] sm:$0xff]  ;;  %v11020_v62 = vpack.c.bf16 %v4969_v63, %v4967_v34  ;;  %v4966_v50 = vld [vmem:[#allocation13 + $0x420] sm:$0xff]  ;;  %v4973_v59 = vld [vmem:[#allocation13 + $0x458] sm:$0xff] }
 0xd03   :  { %v4109_v56 = vadd.f32 %v4108_v29, %v4105_v58  ;;  %v4341_v58 = vld [vmem:[#allocation13 + $0x1d8] sm:$0xff]  ;;  %v4338_v29 = vld [vmem:[#allocation13 + $0x1c0] sm:$0xff]  ;;  %10925 = vmatprep.subr.bf16.mxu1 %v10924_v21  ;;  %v4971_v16 = vld [vmem:[#allocation13 + $0x448] sm:$0xff] }
 0xd04   :  { %v4118_v48 = vadd.f32 %v4117_v3, %v4106_v32  ;;  %v10928_v32 = vpack.c.bf16 %v4341_v58, %v4339_v46  ;;  %v4340_v3 = vld [vmem:[#allocation13 + $0x1d0] sm:$0xff]  ;;  %v11024_v58 = vpack.c.bf16 %v4973_v59, %v4971_v16  ;;  %v4997_v34 = vld [vmem:[#allocation13 + $0x518] sm:$0xff]  ;;  %v5003_v59 = vld [vmem:[#allocation13 + $0x548] sm:$0xff] }
 0xd05   :  { %v4110_v13 = vrot.slane %v4109_v56, 4  ;;  %v5000_v16 = vld [vmem:[#allocation13 + $0x530] sm:$0xff] }
 0xd06   :  { %v4119_v8 = vrot.slane %v4118_v48, 4  ;;  %10927 = vmatpush1.bf16.msra.mxu1 %v10926_v45 }
 0xd07   :  { %v4111_v27 = vadd.f32 %v4110_v13, %v4109_v56  ;;  %v4343_v56 = vld [vmem:[#allocation13 + $0x1e8] sm:$0xff]  ;;  %v10930_v13 = vpack.c.bf16 %v4340_v3, %v4338_v29  ;;  %10929 = vmatprep.subr.bf16.mxu1 %v10928_v32  ;;  %v4970_v29 = vld [vmem:[#allocation13 + $0x440] sm:$0xff]  ;;  %v4972_v32 = vld [vmem:[#allocation13 + $0x450] sm:$0xff] }
 0xd08   :  { %v4120_v38 = vadd.f32 %v4119_v8, %v4118_v48  ;;  %v4345_v48 = vld [vmem:[#allocation13 + $0x1f8] sm:$0xff] }
 0xd09   :  { %v4112_v18 = vrot.slane %v4111_v27, 2  ;;  %v10932_v8 = vpack.c.bf16 %v4345_v48, %v4343_v56 }
 0xd0a   :  { %v4121_v6 = vrot.slane %v4120_v38, 2  ;;  %10931 = vmatpush1.bf16.msra.mxu1 %v10930_v13  ;;  %v4975_v13 = vld [vmem:[#allocation13 + $0x468] sm:$0xff] }
 0xd0b   :  { %v4113_v31 = vadd.f32 %v4112_v18, %v4111_v27  ;;  %v4342_v27 = vld [vmem:[#allocation13 + $0x1e0] sm:$0xff]  ;;  %10933 = vmatprep.subr.bf16.mxu1 %v10932_v8  ;;  %v11026_v8 = vpack.c.bf16 %v4972_v32, %v4970_v29  ;;  %v5004_v29 = vld [vmem:[#allocation13 + $0x550] sm:$0xff]  ;;  %v5007_v32 = vld [vmem:[#allocation13 + $0x568] sm:$0xff] }
 0xd0c   :  { %v4122_v43 = vadd.f32 %v4121_v6, %v4120_v38  ;;  %v4344_v38 = vld [vmem:[#allocation13 + $0x1f0] sm:$0xff]  ;;  %v4963_v6 = vld [vmem:[#allocation13 + $0x408] sm:$0xff] }
 0xd0d   :  { %v4114_v47 = vrot.slane %v4113_v31, 1  ;;  %v10934_v18 = vpack.c.bf16 %v4344_v38, %v4342_v27 }
 0xd0e   :  { %v4123_v55 = vrot.slane %v4122_v43, 1 }
 0xd0f   :  { %v4115_v25 = vadd.f32 %v4114_v47, %v4113_v31  ;;  %10935 = vmatpush1.bf16.msra.mxu1 %v10934_v18  ;;  %v4965_v31 = vld [vmem:[#allocation13 + $0x418] sm:$0xff] }
 0xd10   :  { %v4124_v36 = vadd.f32 %v4123_v55, %v4122_v43  ;;  %v11016_v43 = vpack.c.bf16 %v4965_v31, %v4963_v6  ;;  %v4974_v6 = vld [vmem:[#allocation13 + $0x460] sm:$0xff]  ;;  %v4976_v31 = vld [vmem:[#allocation13 + $0x470] sm:$0xff] }
 0xd12   :  { %4190 = vmatprep.mubr.f32.mxu0 %v4124_v36  ;;  %11017 = vmatprep.subr.bf16.mxu1 %v11016_v43 }
 0xd13   :  { %4191 = vmatmul.mubr.f32.vlgmr.msra.gmra.mrb[30].mxu0 %v4115_v25 }
 0xd14   :  { %4532 = vmatprep.mubr.f32.mxu0 %v17100_v20 }
 0xde6   :  { %v4192_v47 = vpop.f32.mrb[30].mxu0 }
 0xde7   :  { %v4193_v55 = vadd.f32 1e-05, %v4192_v47  ;;  %v4194_v36 = vpop.f32.mrb[31].mxu0  ;;  %v4981_v47 = vld [vmem:[#allocation13 + $0x498] sm:$0xff] }
 0xde8   :  { %v4195_v25 = vadd.f32 1e-05, %v4194_v36 }
 0xde9   :  { %12053 = vrsqrt.f32 %v4193_v55  ;;  %v11030_v55 = vpack.c.bf16 %v4976_v31, %v4974_v6 }
 0xdea   :  { %12055 = vrsqrt.f32 %v4195_v25 }
 0xdf3   :  { %v12054_v37 = vpop.eup %12053 }
 0xdf4   :  { %v12056_v23 = vpop.eup %12055 }
 0xdf5   :  { %v4201_v40 = vcombine.low %v12054_v37, %v12056_v23  ;;  %v4978_v37 = vld [vmem:[#allocation13 + $0x480] sm:$0xff]  ;;  %v4980_v23 = vld [vmem:[#allocation13 + $0x490] sm:$0xff] }
 0xdf7   :  { %v4208_v52 = vrot.slane %v4201_v40, %v13822_v39  ;;  %v4983_v40 = vld [vmem:[#allocation13 + $0x4a8] sm:$0xff] }
 0xdf9   :  { %v4215_v44 = vrot.slane %v4208_v52, %v13822_v39  ;;  %v4985_v52 = vld [vmem:[#allocation13 + $0x4b8] sm:$0xff] }
 0xdfb   :  { %v4217_v22 = vmul.f32 %v4215_v44, %v4125_v24  ;;  %v11034_v24 = vpack.c.bf16 %v4980_v23, %v4978_v37  ;;  %v11036_v44 = vpack.c.bf16 %v4985_v52, %v4983_v40  ;;  %v5014_v40 = vld [vmem:[#allocation13 + $0x5a0] sm:$0xff]  ;;  %v5016_v52 = vld [vmem:[#allocation13 + $0x5b0] sm:$0xff] }
 0xdfd   :  { %v4226_v30 = vrot.slane %v4217_v22, %v13840_v7  ;;  %v4222_v61 = vrot.slane %v4217_v22, %v13843_v26  ;;  %v4984_v22 = vld [vmem:[#allocation13 + $0x4b0] sm:$0xff] }
 0xdff   :  { %v4230_v19 = vmul.f32 %v4226_v30, %v14635_v5  ;;  %v4229_v11 = vmul.f32 %v4222_v61, %v14626_v10  ;;  %v4232_v41 = vmul.f32 %v4226_v30, %v14638_v42  ;;  %v4231_v0 = vmul.f32 %v4222_v61, %v14629_v4  ;;  %v4968_v42 = vld [vmem:[#allocation13 + $0x430] sm:$0xff] }
 0xe00   :  { %v4234_v28 = vmul.f32 %v4226_v30, %v14641_v14  ;;  %v11018_v5 = vpack.c.bf16 %v4964_v35, %v4962_v9  ;;  %v4233_v17 = vmul.f32 %v4222_v61, %v14632_v2  ;;  %v4236_v14 = vmul.f32 %v4226_v30, %v14651_v54  ;;  %v4977_v54 = vld [vmem:[#allocation13 + $0x478] sm:$0xff]  ;;  %v4987_v30 = vld [vmem:[#allocation13 + $0x4c8] sm:$0xff] }
 0xe01   :  { %v4251_v60 = vadd.f32 %v4247_v53, %v4230_v19  ;;  %v4250_v51 = vadd.f32 %v4243_v1, %v4229_v11  ;;  %v4253_v33 = vadd.f32 %v4247_v53, %v4232_v41  ;;  %v4252_v10 = vadd.f32 %v4243_v1, %v4231_v0  ;;  %v4986_v19 = vld [vmem:[#allocation13 + $0x4c0] sm:$0xff]  ;;  %v4988_v11 = vld [vmem:[#allocation13 + $0x4d0] sm:$0xff]  ;;  %v4991_v41 = vld [vmem:[#allocation13 + $0x4e8] sm:$0xff] }
 0xe02   :  { %v4255_v21 = vadd.f32 %v4247_v53, %v4234_v28  ;;  %v11022_v45 = vpack.c.bf16 %v4968_v42, %v4966_v50  ;;  %v4254_v2 = vadd.f32 %v4243_v1, %v4233_v17  ;;  %v4235_v3 = vmul.f32 %v4222_v61, %v14644_v57  ;;  %v4979_v57 = vld [vmem:[#allocation13 + $0x488] sm:$0xff]  ;;  %v4993_v9 = vld [vmem:[#allocation13 + $0x4f8] sm:$0xff] }
 0xe03   :  { %v14683_v49 = vmax.f32 %v4251_v60, 0.0  ;;  %v14685_v12 = vmax.f32 %v4250_v51, 0.0  ;;  %v14689_v4 = vmax.f32 %v4253_v33, 0.0  ;;  %v14694_v46 = vmax.f32 %v4252_v10, 0.0  ;;  %v4990_v60 = vld [vmem:[#allocation13 + $0x4e0] sm:$0xff]  ;;  %v4992_v51 = vld [vmem:[#allocation13 + $0x4f0] sm:$0xff] }
 0xe04   :  { %v14697_v56 = vmax.f32 %v4255_v21, 0.0  ;;  %v4257_v48 = vadd.f32 %v4247_v53, %v4236_v14  ;;  %v14701_v27 = vmax.f32 %v4254_v2, 0.0  ;;  %v11028_v38 = vpack.c.bf16 %v4977_v54, %v4975_v13  ;;  %v4995_v33 = vld [vmem:[#allocation13 + $0x508] sm:$0xff]  ;;  %v5001_v50 = vld [vmem:[#allocation13 + $0x538] sm:$0xff]  ;;  %v4998_v21 = vld [vmem:[#allocation13 + $0x520] sm:$0xff] }
 0xe05   :  { %4410 = vmatprep.mubr.f32.mxu1 %v14683_v49  ;;  %v4256_v18 = vadd.f32 %v4243_v1, %v4235_v3  ;;  %v11032_v25 = vpack.c.bf16 %v4981_v47, %v4979_v57  ;;  %v4989_v1 = vld [vmem:[#allocation13 + $0x4d8] sm:$0xff]  ;;  %v11038_v53 = vpack.c.bf16 %v4984_v22, %v4982_v15  ;;  %v11042_v35 = vpack.c.bf16 %v4988_v11, %v4986_v19  ;;  %v4999_v10 = vld [vmem:[#allocation13 + $0x528] sm:$0xff]  ;;  %v5002_v2 = vld [vmem:[#allocation13 + $0x540] sm:$0xff] }
 0xe06   :  { %4411 = vmatmul.mubr.f32.vlgmr.msra.gmra.mrb[32].mxu1 %v14685_v12  ;;  %v14703_v43 = vmax.f32 %v4257_v48, 0.0  ;;  %v11040_v61 = vpack.c.bf16 %v4989_v1, %v4987_v30  ;;  %v11044_v0 = vpack.c.bf16 %v4993_v9, %v4991_v41  ;;  %v11046_v63 = vpack.c.bf16 %v4992_v51, %v4990_v60  ;;  %v5005_v14 = vld [vmem:[#allocation13 + $0x558] sm:$0xff]  ;;  %v5006_v54 = vld [vmem:[#allocation13 + $0x560] sm:$0xff]  ;;  %v5012_v47 = vld [vmem:[#allocation13 + $0x590] sm:$0xff] }
 0xe07   :  { %11019 = vmatpush1.bf16.msra.mxu1 %v11018_v5  ;;  %4416 = vmatprep.mubr.f32.mxu1 %v14689_v4  ;;  %v14707_v36 = vmax.f32 %v4256_v18, 0.0  ;;  %v11048_v28 = vpack.c.bf16 %v4997_v34, %v4995_v33  ;;  %v4994_v5 = vld [vmem:[#allocation13 + $0x500] sm:$0xff]  ;;  %v11052_v17 = vpack.c.bf16 %v5001_v50, %v4999_v10  ;;  %v5009_v3 = vld [vmem:[#allocation13 + $0x578] sm:$0xff]  ;;  %v11058_v48 = vpack.c.bf16 %v5004_v29, %v5002_v2  ;;  %v5020_v1 = vld [vmem:[#allocation13 + $0x5d0] sm:$0xff] }
 0xe08   :  { %11021 = vmatprep.subr.bf16.mxu1 %v11020_v62  ;;  %v4996_v62 = vld [vmem:[#allocation13 + $0x510] sm:$0xff]  ;;  %v11060_v13 = vpack.c.bf16 %v5009_v3, %v5007_v32  ;;  %v5013_v18 = vld [vmem:[#allocation13 + $0x598] sm:$0xff]  ;;  %v5010_v57 = vld [vmem:[#allocation13 + $0x580] sm:$0xff]  ;;  %v11070_v15 = vpack.c.bf16 %v5016_v52, %v5014_v40 }
 0xe09   :  { %v11050_v42 = vpack.c.bf16 %v4996_v62, %v4994_v5  ;;  %v11066_v37 = vpack.c.bf16 %v5012_v47, %v5010_v57  ;;  %v5018_v30 = vld [vmem:[#allocation13 + $0x5c0] sm:$0xff]  ;;  %v5024_v9 = vld [vmem:[#allocation13 + $0x5f0] sm:$0xff]  ;;  %v4607_v62 = vld [vmem:[#allocation13 + $0x208] sm:$0xff] }
 0xe0a   :  { %4417 = vmatmul.mubr.f32.gmra.mrb[34].mxu1 %v14694_v46  ;;  %v11074_v19 = vpack.c.bf16 %v5020_v1, %v5018_v30  ;;  %v5022_v41 = vld [vmem:[#allocation13 + $0x5e0] sm:$0xff]  ;;  %v4609_v10 = vld [vmem:[#allocation13 + $0x218] sm:$0xff]  ;;  %v4619_v57 = vld [vmem:[#allocation13 + $0x268] sm:$0xff] }
 0xe0b   :  { %11023 = vmatpush1.bf16.msra.mxu1 %v11022_v45  ;;  %4422 = vmatprep.mubr.f32.mxu1 %v14697_v56  ;;  %v11054_v45 = vpack.c.bf16 %v5000_v16, %v4998_v21  ;;  %v10944_v16 = vpack.c.bf16 %v4609_v10, %v4607_v62  ;;  %v4435_v2 = vld [vmem:[%s17033_s15] sm:$0xff]  ;;  %v4621_v47 = vld [vmem:[#allocation13 + $0x278] sm:$0xff]  ;;  %v4620_v40 = vld [vmem:[#allocation13 + $0x270] sm:$0xff] }
 0xe0c   :  { %11025 = vmatprep.subr.bf16.mxu1 %v11024_v58  ;;  %v11056_v58 = vpack.c.bf16 %v5005_v14, %v5003_v59  ;;  %v4606_v59 = vld [vmem:[#allocation13 + $0x200] sm:$0xff]  ;;  %v4608_v14 = vld [vmem:[#allocation13 + $0x210] sm:$0xff]  ;;  %v4623_v52 = vld [vmem:[#allocation13 + $0x288] sm:$0xff] }
 0xe0d   :  { %v10946_v29 = vpack.c.bf16 %v4608_v14, %v4606_v59  ;;  %v4610_v3 = vld [vmem:[#allocation13 + $0x220] sm:$0xff]  ;;  %v4624_v1 = vld [vmem:[#allocation13 + $0x290] sm:$0xff]  ;;  %v4637_v62 = vld [vmem:[#allocation13 + $0x2f8] sm:$0xff] }
 0xe0e   :  { %4423 = vmatmul.mubr.f32.gmra.mrb[36].mxu1 %v14701_v27  ;;  %v4622_v30 = vld [vmem:[#allocation13 + $0x280] sm:$0xff]  ;;  %v4441_v10 = vld [vmem:[%s17033_s15 + $0x30] sm:$0xff]  ;;  %v4641_v59 = vld [vmem:[#allocation13 + $0x318] sm:$0xff] }
 0xe0f   :  { %11027 = vmatpush1.bf16.msra.mxu1 %v11026_v8  ;;  %4428 = vmatprep.mubr.f32.mxu1 %v14703_v43  ;;  %v5008_v8 = vld [vmem:[#allocation13 + $0x570] sm:$0xff]  ;;  %v4442_v14 = vld [vmem:[%s17033_s15 + $0x38] sm:$0xff] }
 0xe10   :  { %11029 = vmatprep.subr.bf16.mxu1 %v11028_v38  ;;  %v5011_v38 = vld [vmem:[#allocation13 + $0x588] sm:$0xff]  ;;  %v11062_v6 = vpack.c.bf16 %v5008_v8, %v5006_v54  ;;  %v4617_v54 = vld [vmem:[#allocation13 + $0x258] sm:$0xff] }
 0xe11   :  { %v11064_v31 = vpack.c.bf16 %v5013_v18, %v5011_v38  ;;  %v4436_v8 = vld [vmem:[%s17033_s15 + $0x8] sm:$0xff] }
 0xe12   :  { %4429 = vmatmul.mubr.f32.gmra.mrb[38].mxu1 %v14707_v36 }
 0xe13   :  { %11031 = vmatpush1.bf16.msra.mxu1 %v11030_v55  ;;  %5090 = vmatprep.mubr.f32.mxu1 %v14683_v49  ;;  %v5015_v55 = vld [vmem:[#allocation13 + $0x5a8] sm:$0xff] }
 0xe14   :  { %11033 = vmatprep.subr.bf16.mxu1 %v11032_v25  ;;  %v5017_v25 = vld [vmem:[#allocation13 + $0x5b8] sm:$0xff] }
 0xe15   :  { %v11068_v23 = vpack.c.bf16 %v5017_v25, %v5015_v55  ;;  %v4437_v55 = vld [vmem:[%s17033_s15 + $0x10] sm:$0xff] }
 0xe17   :  { %11035 = vmatpush1.bf16.msra.mxu1 %v11034_v24  ;;  %v5019_v24 = vld [vmem:[#allocation13 + $0x5c8] sm:$0xff] }
 0xe18   :  { %11037 = vmatprep.subr.bf16.mxu1 %v11036_v44  ;;  %v5021_v44 = vld [vmem:[#allocation13 + $0x5d8] sm:$0xff] }
 0xe19   :  { %v11072_v22 = vpack.c.bf16 %v5021_v44, %v5019_v24  ;;  %v4625_v24 = vld [vmem:[#allocation13 + $0x298] sm:$0xff] }
 0xe1a   :  { %v4438_v44 = vld [vmem:[%s17033_s15 + $0x18] sm:$0xff] }
 0xe1b   :  { %11039 = vmatpush1.bf16.msra.mxu1 %v11038_v53  ;;  %v5023_v53 = vld [vmem:[#allocation13 + $0x5e8] sm:$0xff] }
 0xe1c   :  { %11041 = vmatprep.subr.bf16.mxu1 %v11040_v61  ;;  %v5025_v61 = vld [vmem:[#allocation13 + $0x5f8] sm:$0xff] }
 0xe1d   :  { %v11076_v11 = vpack.c.bf16 %v5025_v61, %v5023_v53  ;;  %v4627_v53 = vld [vmem:[#allocation13 + $0x2a8] sm:$0xff]  ;;  %v4629_v61 = vld [vmem:[#allocation13 + $0x2b8] sm:$0xff] }
 0xe1f   :  { %11043 = vmatpush1.bf16.msra.mxu1 %v11042_v35  ;;  %v11078_v35 = vpack.c.bf16 %v5024_v9, %v5022_v41  ;;  %v10964_v41 = vpack.c.bf16 %v4629_v61, %v4627_v53  ;;  %v4626_v9 = vld [vmem:[#allocation13 + $0x2a0] sm:$0xff]  ;;  %v4661_v53 = vld [vmem:[#allocation13 + $0x3b8] sm:$0xff] }
 0xe20   :  { %11045 = vmatprep.subr.bf16.mxu1 %v11044_v0 }
 0xe23   :  { %11047 = vmatpush1.bf16.msra.mxu1 %v11046_v63 }
 0xe24   :  { %11049 = vmatprep.subr.bf16.mxu1 %v11048_v28 }
 0xe27   :  { %11051 = vmatpush1.bf16.msra.mxu1 %v11050_v42 }
 0xe28   :  { %11053 = vmatprep.subr.bf16.mxu1 %v11052_v17 }
 0xe2b   :  { %11055 = vmatpush1.bf16.msra.mxu1 %v11054_v45  ;;  %v4611_v45 = vld [vmem:[#allocation13 + $0x228] sm:$0xff] }
 0xe2c   :  { %11057 = vmatprep.subr.bf16.mxu1 %v11056_v58  ;;  %v4613_v58 = vld [vmem:[#allocation13 + $0x238] sm:$0xff] }
 0xe2d   :  { %v10948_v32 = vpack.c.bf16 %v4613_v58, %v4611_v45 }
 0xe2f   :  { %11059 = vmatpush1.bf16.msra.mxu1 %v11058_v48  ;;  %v4612_v48 = vld [vmem:[#allocation13 + $0x230] sm:$0xff] }
 0xe30   :  { %11061 = vmatprep.subr.bf16.mxu1 %v11060_v13  ;;  %v4615_v13 = vld [vmem:[#allocation13 + $0x248] sm:$0xff]  ;;  %v10950_v38 = vpack.c.bf16 %v4612_v48, %v4610_v3  ;;  %v4645_v3 = vld [vmem:[#allocation13 + $0x338] sm:$0xff] }
 0xe31   :  { %v10952_v18 = vpack.c.bf16 %v4617_v54, %v4615_v13  ;;  %v4642_v54 = vld [vmem:[#allocation13 + $0x320] sm:$0xff] }
 0xe33   :  { %11063 = vmatpush1.bf16.msra.mxu1 %v11062_v6  ;;  %v4614_v6 = vld [vmem:[#allocation13 + $0x240] sm:$0xff] }
 0xe34   :  { %11065 = vmatprep.subr.bf16.mxu1 %v11064_v31  ;;  %v4616_v31 = vld [vmem:[#allocation13 + $0x250] sm:$0xff] }
 0xe35   :  { %v10954_v25 = vpack.c.bf16 %v4616_v31, %v4614_v6 }
 0xe37   :  { %11067 = vmatpush1.bf16.msra.mxu1 %v11066_v37  ;;  %v10956_v37 = vpack.c.bf16 %v4621_v47, %v4619_v57  ;;  %v4646_v57 = vld [vmem:[#allocation13 + $0x340] sm:$0xff]  ;;  %v4648_v47 = vld [vmem:[#allocation13 + $0x350] sm:$0xff] }
 0xe38   :  { %11069 = vmatprep.subr.bf16.mxu1 %v11068_v23  ;;  %v4618_v23 = vld [vmem:[#allocation13 + $0x260] sm:$0xff] }
 0xe3b   :  { %11071 = vmatpush1.bf16.msra.mxu1 %v11070_v15  ;;  %v10958_v15 = vpack.c.bf16 %v4620_v40, %v4618_v23  ;;  %v4652_v40 = vld [vmem:[#allocation13 + $0x370] sm:$0xff] }
 0xe3c   :  { %11073 = vmatprep.subr.bf16.mxu1 %v11072_v22  ;;  %v10960_v22 = vpack.c.bf16 %v4625_v24, %v4623_v52  ;;  %v4655_v52 = vld [vmem:[#allocation13 + $0x388] sm:$0xff]  ;;  %v4657_v24 = vld [vmem:[#allocation13 + $0x398] sm:$0xff] }
 0xe3f   :  { %11075 = vmatpush1.bf16.msra.mxu1 %v11074_v19  ;;  %v4439_v19 = vld [vmem:[%s17033_s15 + $0x20] sm:$0xff] }
 0xe40   :  { %11077 = vmatprep.subr.bf16.mxu1 %v11076_v11  ;;  %v10962_v11 = vpack.c.bf16 %v4624_v1, %v4622_v30  ;;  %v4656_v30 = vld [vmem:[#allocation13 + $0x390] sm:$0xff]  ;;  %v4659_v1 = vld [vmem:[#allocation13 + $0x3a8] sm:$0xff] }
 0xe43   :  { %11079 = vmatpush1.bf16.msra.mxu1 %v11078_v35  ;;  %v4628_v35 = vld [vmem:[#allocation13 + $0x2b0] sm:$0xff] }
 0xe46   :  { %5091 = vmatmul.mubr.f32.vlgmr.msra.gmra.mrb[40].mxu1 %v14685_v12 }
 0xe47   :  { %5096 = vmatprep.mubr.f32.mxu1 %v14689_v4 }
 0xe4a   :  { %5097 = vmatmul.mubr.f32.gmra.mrb[42].mxu1 %v14694_v46 }
 0xe4b   :  { %5102 = vmatprep.mubr.f32.mxu1 %v14697_v56 }
 0xe4e   :  { %5103 = vmatmul.mubr.f32.gmra.mrb[44].mxu1 %v14701_v27 }
 0xe4f   :  { %5108 = vmatprep.mubr.f32.mxu1 %v14703_v43 }
 0xe52   :  { %5109 = vmatmul.mubr.f32.gmra.mrb[46].mxu1 %v14707_v36 }
 0xed9   :  { %v4412_v0 = vpop.f32.mrb[32].mxu1 }
 0xeda   :  { %v4414_v60 = vpop.f32.mrb[33].mxu1 }
 0xedd   :  { %v4418_v51 = vpop.f32.mrb[34].mxu1 }
 0xede   :  { %v10938_v33 = vpack.c.bf16 %v4418_v51, %v4412_v0  ;;  %v4420_v34 = vpop.f32.mrb[35].mxu1  ;;  %v4631_v0 = vld [vmem:[#allocation13 + $0x2c8] sm:$0xff] }
 0xedf   :  { %v10936_v63 = vpack.c.bf16 %v4420_v34, %v4414_v60  ;;  %v4633_v60 = vld [vmem:[#allocation13 + $0x2d8] sm:$0xff]  ;;  %v4440_v51 = vld [vmem:[%s17033_s15 + $0x28] sm:$0xff] }
 0xee0   :  { %v10968_v34 = vpack.c.bf16 %v4633_v60, %v4631_v0  ;;  %v4663_v0 = vld [vmem:[#allocation13 + $0x3c8] sm:$0xff]  ;;  %v4665_v60 = vld [vmem:[#allocation13 + $0x3d8] sm:$0xff] }
 0xee1   :  { %v4424_v28 = vpop.f32.mrb[36].mxu1  ;;  %10937 = vmatprep.subr.bf16.mxu0 %v10936_v63  ;;  %v4630_v63 = vld [vmem:[#allocation13 + $0x2c0] sm:$0xff] }
 0xee2   :  { %v4426_v5 = vpop.f32.mrb[37].mxu1  ;;  %10939 = vmatpush1.bf16.msra.mxu0 %v10938_v33  ;;  %v10966_v33 = vpack.c.bf16 %v4628_v35, %v4626_v9  ;;  %v4658_v9 = vld [vmem:[#allocation13 + $0x3a0] sm:$0xff]  ;;  %v4660_v35 = vld [vmem:[#allocation13 + $0x3b0] sm:$0xff] }
 0xee5   :  { %v4430_v50 = vpop.f32.mrb[38].mxu1 }
 0xee6   :  { %v10942_v42 = vpack.c.bf16 %v4430_v50, %v4424_v28  ;;  %v4432_v17 = vpop.f32.mrb[39].mxu1  ;;  %v4632_v28 = vld [vmem:[#allocation13 + $0x2d0] sm:$0xff] }
 0xee7   :  { %v10940_v21 = vpack.c.bf16 %v4432_v17, %v4426_v5  ;;  %v4635_v5 = vld [vmem:[#allocation13 + $0x2e8] sm:$0xff]  ;;  %v10970_v50 = vpack.c.bf16 %v4632_v28, %v4630_v63  ;;  %v4634_v17 = vld [vmem:[#allocation13 + $0x2e0] sm:$0xff]  ;;  %v10998_v63 = vpack.c.bf16 %v4660_v35, %v4658_v9 }
 0xee9   :  { %10941 = vmatprep.subr.bf16.mxu0 %v10940_v21  ;;  %v4636_v21 = vld [vmem:[#allocation13 + $0x2f0] sm:$0xff] }
 0xeea   :  { %10943 = vmatpush1.bf16.msra.mxu0 %v10942_v42  ;;  %v10972_v42 = vpack.c.bf16 %v4637_v62, %v4635_v5  ;;  %v10974_v45 = vpack.c.bf16 %v4636_v21, %v4634_v17  ;;  %v11000_v5 = vpack.c.bf16 %v4665_v60, %v4663_v0  ;;  %v4662_v62 = vld [vmem:[#allocation13 + $0x3c0] sm:$0xff] }
 0xeeb   :  { %10945 = vmatprep.subr.bf16.mxu0 %v10944_v16  ;;  %v4639_v16 = vld [vmem:[#allocation13 + $0x308] sm:$0xff] }
 0xeec   :  { %v10976_v58 = vpack.c.bf16 %v4641_v59, %v4639_v16 }
 0xeed   :  { %9586 = vmatmul.mubr.msk.f32.vlgmr.msra.gmra.mrb[32].mxu0 %vm4443_vm9, %v4435_v2  ;;  %v4638_v2 = vld [vmem:[#allocation13 + $0x300] sm:$0xff] }
 0xeee   :  { %10947 = vmatpush1.bf16.msra.mxu0 %v10946_v29  ;;  %4538 = vmatprep.mubr.f32.mxu0 %v17100_v20  ;;  %v4640_v29 = vld [vmem:[#allocation13 + $0x310] sm:$0xff] }
 0xeef   :  { %10949 = vmatprep.subr.bf16.mxu0 %v10948_v32  ;;  %v4643_v32 = vld [vmem:[#allocation13 + $0x328] sm:$0xff]  ;;  %v10978_v48 = vpack.c.bf16 %v4640_v29, %v4638_v2 }
 0xef0   :  { %v10980_v13 = vpack.c.bf16 %v4645_v3, %v4643_v32 }
 0xef1   :  { %9587 = vmatmul.mubr.msk.f32.gmra.mrb[34].mxu0 %vm4443_vm9, %v4436_v8  ;;  %v4644_v8 = vld [vmem:[#allocation13 + $0x330] sm:$0xff] }
 0xef2   :  { %10951 = vmatpush1.bf16.msra.mxu0 %v10950_v38  ;;  %4544 = vmatprep.mubr.f32.mxu0 %v17100_v20  ;;  %v4647_v38 = vld [vmem:[#allocation13 + $0x348] sm:$0xff]  ;;  %v10982_v6 = vpack.c.bf16 %v4644_v8, %v4642_v54  ;;  %v5351_v54 = vld [vmem:[#allocation15] sm:$0xff] }
 0xef3   :  { %10953 = vmatprep.subr.bf16.mxu0 %v10952_v18  ;;  %v4649_v18 = vld [vmem:[#allocation13 + $0x358] sm:$0xff] }
 0xef4   :  { %v10984_v31 = vpack.c.bf16 %v4649_v18, %v4647_v38  ;;  %v5356_v38 = vld [vmem:[#allocation15 + $0x28] sm:$0xff] }
 0xef5   :  { %9588 = vmatmul.mubr.msk.f32.gmra.mrb[36].mxu0 %vm4443_vm9, %v4437_v55  ;;  %v4651_v55 = vld [vmem:[#allocation13 + $0x368] sm:$0xff] }
 0xef6   :  { %10955 = vmatpush1.bf16.msra.mxu0 %v10954_v25  ;;  %4550 = vmatprep.mubr.f32.mxu0 %v17100_v20  ;;  %v4653_v25 = vld [vmem:[#allocation13 + $0x378] sm:$0xff] }
 0xef7   :  { %10957 = vmatprep.subr.bf16.mxu0 %v10956_v37  ;;  %v10986_v37 = vpack.c.bf16 %v4648_v47, %v4646_v57  ;;  %v10988_v23 = vpack.c.bf16 %v4653_v25, %v4651_v55  ;;  %v5359_v57 = vld [vmem:[#allocation15 + $0x40] sm:$0xff]  ;;  %v5361_v47 = vld [vmem:[#allocation15 + $0x50] sm:$0xff]  ;;  %v5364_v55 = vld [vmem:[#allocation15 + $0x68] sm:$0xff] }
 0xef8   :  { %v5366_v25 = vld [vmem:[#allocation15 + $0x78] sm:$0xff] }
 0xef9   :  { %9589 = vmatmul.mubr.msk.f32.gmra.mrb[38].mxu0 %vm4443_vm9, %v4438_v44 }
 0xefa   :  { %10959 = vmatpush1.bf16.msra.mxu0 %v10958_v15  ;;  %4556 = vmatprep.mubr.f32.mxu0 %v17100_v20  ;;  %v10992_v15 = vpack.c.bf16 %v4657_v24, %v4655_v52  ;;  %v5368_v52 = vld [vmem:[#allocation15 + $0x88] sm:$0xff]  ;;  %v5370_v24 = vld [vmem:[#allocation15 + $0x98] sm:$0xff] }
 0xefb   :  { %10961 = vmatprep.subr.bf16.mxu0 %v10960_v22  ;;  %v4654_v22 = vld [vmem:[#allocation13 + $0x380] sm:$0xff] }
 0xefd   :  { %9590 = vmatmul.mubr.msk.f32.gmra.mrb[40].mxu0 %vm4443_vm9, %v4439_v19 }
 0xefe   :  { %10963 = vmatpush1.bf16.msra.mxu0 %v10962_v11  ;;  %4562 = vmatprep.mubr.f32.mxu0 %v17100_v20  ;;  %v10994_v11 = vpack.c.bf16 %v4656_v30, %v4654_v22  ;;  %v5367_v22 = vld [vmem:[#allocation15 + $0x80] sm:$0xff]  ;;  %v5369_v30 = vld [vmem:[#allocation15 + $0x90] sm:$0xff] }
 0xeff   :  { %10965 = vmatprep.subr.bf16.mxu0 %v10964_v41  ;;  %v10996_v41 = vpack.c.bf16 %v4661_v53, %v4659_v1  ;;  %v14817_v1 = vpack.c.bf16 %v5369_v30, %v5367_v22  ;;  %v5392_v30 = vld [vmem:[#allocation15 + $0x148] sm:$0xff] }
 0xf01   :  { %9591 = vmatmul.mubr.msk.f32.gmra.mrb[42].mxu0 %vm4443_vm9, %v4440_v51 }
 0xf02   :  { %10967 = vmatpush1.bf16.msra.mxu0 %v10966_v33  ;;  %4568 = vmatprep.mubr.f32.mxu0 %v17100_v20 }
 0xf03   :  { %10969 = vmatprep.subr.bf16.mxu0 %v10968_v34 }
 0xf05   :  { %9592 = vmatmul.mubr.msk.f32.gmra.mrb[44].mxu0 %vm4443_vm9, %v4441_v10  ;;  %v4664_v10 = vld [vmem:[#allocation13 + $0x3d0] sm:$0xff] }
 0xf06   :  { %10971 = vmatpush1.bf16.msra.mxu0 %v10970_v50  ;;  %4574 = vmatprep.mubr.f32.mxu0 %v17100_v20  ;;  %v4667_v50 = vld [vmem:[#allocation13 + $0x3e8] sm:$0xff]  ;;  %v11002_v16 = vpack.c.bf16 %v4664_v10, %v4662_v62 }
 0xf07   :  { %10973 = vmatprep.subr.bf16.mxu0 %v10972_v42  ;;  %v4669_v42 = vld [vmem:[#allocation13 + $0x3f8] sm:$0xff] }
 0xf08   :  { %v11004_v59 = vpack.c.bf16 %v4669_v42, %v4667_v50  ;;  %v9594_v42 = vld [vmem:[%s17033_s15 + $0x40] sm:$0xff] }
 0xf09   :  { %9593 = vmatmul.mubr.msk.f32.gmra.mrb[46].mxu0 %vm4443_vm9, %v4442_v14  ;;  %v4666_v14 = vld [vmem:[#allocation13 + $0x3e0] sm:$0xff] }
 0xf0a   :  { %10975 = vmatpush1.bf16.msra.mxu0 %v10974_v45  ;;  %4734 = vmatprep.mubr.f32.mxu0 %v14683_v49  ;;  %v4650_v49 = vld [vmem:[#allocation13 + $0x360] sm:$0xff]  ;;  %v4668_v45 = vld [vmem:[#allocation13 + $0x3f0] sm:$0xff] }
 0xf0b   :  { %10977 = vmatprep.subr.bf16.mxu0 %v10976_v58  ;;  %v10990_v44 = vpack.c.bf16 %v4652_v40, %v4650_v49  ;;  %v11006_v32 = vpack.c.bf16 %v4668_v45, %v4666_v14  ;;  %v5363_v49 = vld [vmem:[#allocation15 + $0x60] sm:$0xff]  ;;  %v5365_v40 = vld [vmem:[#allocation15 + $0x70] sm:$0xff]  ;;  %v9613_v14 = vld [vmem:[%s17033_s15 + $0x98] sm:$0xff] }
 0xf0c   :  { %v9614_v45 = vld [vmem:[%s17033_s15 + $0xa0] sm:$0xff] }
 0xf0e   :  { %10979 = vmatpush1.bf16.msra.mxu0 %v10978_v48  ;;  %v5352_v48 = vld [vmem:[#allocation15 + $0x8] sm:$0xff] }
 0xf0f   :  { %10981 = vmatprep.subr.bf16.mxu0 %v10980_v13  ;;  %v5354_v13 = vld [vmem:[#allocation15 + $0x18] sm:$0xff] }
 0xf10   :  { %v14790_v8 = vpack.c.bf16 %v5354_v13, %v5352_v48  ;;  %v5371_v13 = vld [vmem:[#allocation15 + $0xa0] sm:$0xff] }
 0xf12   :  { %10983 = vmatpush1.bf16.msra.mxu0 %v10982_v6  ;;  %11153 = vmatprep.subr.bf16.mxu1 %v14790_v8 }
 0xf13   :  { %10985 = vmatprep.subr.bf16.mxu0 %v10984_v31 }
 0xf16   :  { %10987 = vmatpush1.bf16.msra.mxu0 %v10986_v37  ;;  %v14805_v37 = vpack.c.bf16 %v5361_v47, %v5359_v57  ;;  %v5384_v47 = vld [vmem:[#allocation15 + $0x108] sm:$0xff] }
 0xf17   :  { %10989 = vmatprep.subr.bf16.mxu0 %v10988_v23  ;;  %v14807_v23 = vpack.c.bf16 %v5366_v25, %v5364_v55  ;;  %v5386_v55 = vld [vmem:[#allocation15 + $0x118] sm:$0xff] }
 0xf18   :  { %v11120_v25 = vpack.c.bf16 %v5386_v55, %v5384_v47 }
 0xf19   :  { %v14758_v61 = vpop.f32.mrb[40].mxu1 }
 0xf1a   :  { %v14760_v19 = vpop.f32.mrb[41].mxu1  ;;  %10991 = vmatpush1.bf16.msra.mxu0 %v10990_v44  ;;  %v14811_v44 = vpack.c.bf16 %v5365_v40, %v5363_v49  ;;  %v5388_v40 = vld [vmem:[#allocation15 + $0x128] sm:$0xff] }
 0xf1b   :  { %10993 = vmatprep.subr.bf16.mxu0 %v10992_v15  ;;  %v14813_v15 = vpack.c.bf16 %v5370_v24, %v5368_v52  ;;  %v5390_v52 = vld [vmem:[#allocation15 + $0x138] sm:$0xff] }
 0xf1c   :  { %v11124_v24 = vpack.c.bf16 %v5390_v52, %v5388_v40 }
 0xf1d   :  { %v14762_v51 = vpop.f32.mrb[42].mxu1 }
 0xf1e   :  { %v11082_v33 = vpack.c.bf16 %v14762_v51, %v14758_v61  ;;  %v14766_v34 = vpop.f32.mrb[43].mxu1  ;;  %10995 = vmatpush1.bf16.msra.mxu0 %v10994_v11  ;;  %v9596_v61 = vld [vmem:[%s17033_s15 + $0x50] sm:$0xff]  ;;  %v9598_v51 = vld [vmem:[%s17033_s15 + $0x60] sm:$0xff] }
 0xf1f   :  { %v11080_v28 = vpack.c.bf16 %v14766_v34, %v14760_v19  ;;  %10997 = vmatprep.subr.bf16.mxu0 %v10996_v41  ;;  %v9597_v19 = vld [vmem:[%s17033_s15 + $0x58] sm:$0xff]  ;;  %v9600_v34 = vld [vmem:[%s17033_s15 + $0x70] sm:$0xff] }
 0xf21   :  { %v14770_v17 = vpop.f32.mrb[44].mxu1 }
 0xf22   :  { %v14772_v21 = vpop.f32.mrb[45].mxu1  ;;  %10999 = vmatpush1.bf16.msra.mxu0 %v10998_v63 }
 0xf23   :  { %11001 = vmatprep.subr.bf16.mxu0 %v11000_v5 }
 0xf25   :  { %v14774_v58 = vpop.f32.mrb[46].mxu1 }
 0xf26   :  { %v11086_v2 = vpack.c.bf16 %v14774_v58, %v14770_v17  ;;  %v14778_v29 = vpop.f32.mrb[47].mxu1  ;;  %11003 = vmatpush1.bf16.msra.mxu0 %v11002_v16  ;;  %v9595_v16 = vld [vmem:[%s17033_s15 + $0x48] sm:$0xff]  ;;  %v9610_v17 = vld [vmem:[%s17033_s15 + $0x80] sm:$0xff] }
 0xf27   :  { %v11084_v3 = vpack.c.bf16 %v14778_v29, %v14772_v21  ;;  %11005 = vmatprep.subr.bf16.mxu0 %v11004_v59  ;;  %v9611_v21 = vld [vmem:[%s17033_s15 + $0x88] sm:$0xff]  ;;  %v9612_v59 = vld [vmem:[%s17033_s15 + $0x90] sm:$0xff]  ;;  %v9617_v29 = vld [vmem:[%s17033_s15 + $0xb8] sm:$0xff] }
 0xf28   :  { %v9615_v58 = vld [vmem:[%s17033_s15 + $0xa8] sm:$0xff] }
 0xf2a   :  { %11007 = vmatpush1.bf16.msra.mxu0 %v11006_v32  ;;  %v5372_v32 = vld [vmem:[#allocation15 + $0xa8] sm:$0xff] }
 0xf2d   :  { %4735 = vmatmul.mubr.f32.vlgmr.msra.gmra.mrb[48].mxu0 %v14685_v12  ;;  %v5353_v12 = vld [vmem:[#allocation15 + $0x10] sm:$0xff] }
 0xf2e   :  { %4740 = vmatprep.mubr.f32.mxu0 %v14689_v4  ;;  %v5358_v4 = vld [vmem:[#allocation15 + $0x38] sm:$0xff]  ;;  %v14792_v18 = vpack.c.bf16 %v5353_v12, %v5351_v54  ;;  %v5373_v54 = vld [vmem:[#allocation15 + $0xb0] sm:$0xff]  ;;  %v5376_v12 = vld [vmem:[#allocation15 + $0xc8] sm:$0xff] }
 0xf30   :  { %11155 = vmatpush1.bf16.msra.mxu1 %v14792_v18 }
 0xf31   :  { %4741 = vmatmul.mubr.f32.gmra.mrb[50].mxu0 %v14694_v46  ;;  %v14794_v46 = vpack.c.bf16 %v5358_v4, %v5356_v38  ;;  %v5378_v38 = vld [vmem:[#allocation15 + $0xd8] sm:$0xff] }
 0xf32   :  { %4746 = vmatprep.mubr.f32.mxu0 %v14697_v56  ;;  %v5355_v56 = vld [vmem:[#allocation15 + $0x20] sm:$0xff]  ;;  %v11112_v4 = vpack.c.bf16 %v5378_v38, %v5376_v12 }
 0xf33   :  { %11157 = vmatprep.subr.bf16.mxu1 %v14794_v46 }
 0xf35   :  { %4747 = vmatmul.mubr.f32.gmra.mrb[52].mxu0 %v14701_v27  ;;  %v5357_v27 = vld [vmem:[#allocation15 + $0x30] sm:$0xff] }
 0xf36   :  { %4752 = vmatprep.mubr.f32.mxu0 %v14703_v43  ;;  %v5360_v43 = vld [vmem:[#allocation15 + $0x48] sm:$0xff]  ;;  %v14799_v6 = vpack.c.bf16 %v5357_v27, %v5355_v56 }
 0xf37   :  { %v5380_v27 = vld [vmem:[#allocation15 + $0xe8] sm:$0xff] }
 0xf38   :  { %11159 = vmatpush1.bf16.msra.mxu1 %v14799_v6 }
 0xf39   :  { %4753 = vmatmul.mubr.f32.gmra.mrb[54].mxu0 %v14707_v36  ;;  %v5362_v36 = vld [vmem:[#allocation15 + $0x58] sm:$0xff] }
 0xf3a   :  { %4856 = vmatprep.mubr.f32.mxu0 %v17100_v20  ;;  %v14801_v31 = vpack.c.bf16 %v5362_v36, %v5360_v43  ;;  %v5382_v43 = vld [vmem:[#allocation15 + $0xf8] sm:$0xff] }
 0xf3b   :  { %v11116_v36 = vpack.c.bf16 %v5382_v43, %v5380_v27 }
 0xf3c   :  { %11161 = vmatprep.subr.bf16.mxu1 %v14801_v31 }
 0xf3d   :  { %11163 = vmatpush1.bf16.msra.mxu1 %v14805_v37 }
 0xf3e   :  { %11165 = vmatprep.subr.bf16.mxu1 %v14807_v23 }
 0xf41   :  { %11167 = vmatpush1.bf16.msra.mxu1 %v14811_v44 }
 0xf42   :  { %11169 = vmatprep.subr.bf16.mxu1 %v14813_v15 }
 0xf45   :  { %11171 = vmatpush1.bf16.msra.mxu1 %v14817_v1 }
0x1000   :  { %v4736_v53 = vpop.f32.mrb[48].mxu0 }
0x1001   :  { %v4738_v11 = vpop.f32.mrb[49].mxu0 }
0x1004   :  { %v4742_v41 = vpop.f32.mrb[50].mxu0 }
0x1005   :  { %v11010_v9 = vpack.c.bf16 %v4742_v41, %v4736_v53  ;;  %v4744_v35 = vpop.f32.mrb[51].mxu0  ;;  %v5393_v41 = vld [vmem:[#allocation15 + $0x150] sm:$0xff] }
0x1006   :  { %v11008_v0 = vpack.c.bf16 %v4744_v35, %v4738_v11  ;;  %v5391_v11 = vld [vmem:[#allocation15 + $0x140] sm:$0xff]  ;;  %v5396_v35 = vld [vmem:[#allocation15 + $0x168] sm:$0xff] }
0x1008   :  { %v4748_v60 = vpop.f32.mrb[52].mxu0  ;;  %11009 = vmatprep.subr.bf16.mxu0 %v11008_v0  ;;  %v5398_v0 = vld [vmem:[#allocation15 + $0x178] sm:$0xff] }
0x1009   :  { %v4750_v63 = vpop.f32.mrb[53].mxu0  ;;  %11011 = vmatpush1.bf16.msra.mxu0 %v11010_v9  ;;  %v11130_v9 = vpack.c.bf16 %v5393_v41, %v5391_v11 }
0x100c   :  { %v4754_v5 = vpop.f32.mrb[54].mxu0 }
0x100d   :  { %v11014_v62 = vpack.c.bf16 %v4754_v5, %v4748_v60  ;;  %v4756_v10 = vpop.f32.mrb[55].mxu0  ;;  %v11132_v60 = vpack.c.bf16 %v5398_v0, %v5396_v35  ;;  %v5397_v5 = vld [vmem:[#allocation15 + $0x170] sm:$0xff] }
0x100e   :  { %v11012_v50 = vpack.c.bf16 %v4756_v10, %v4750_v63  ;;  %v5395_v63 = vld [vmem:[#allocation15 + $0x160] sm:$0xff]  ;;  %v5400_v10 = vld [vmem:[#allocation15 + $0x188] sm:$0xff] }
0x1010   :  { %11013 = vmatprep.subr.bf16.mxu0 %v11012_v50  ;;  %v5402_v50 = vld [vmem:[#allocation15 + $0x198] sm:$0xff] }
0x1011   :  { %11015 = vmatpush1.bf16.msra.mxu0 %v11014_v62  ;;  %v11134_v62 = vpack.c.bf16 %v5397_v5, %v5395_v63 }
0x1012   :  { %11081 = vmatprep.subr.bf16.mxu0 %v11080_v28  ;;  %v9601_v28 = vld [vmem:[%s17033_s15 + $0x78] sm:$0xff] }
0x1014   :  { %9602 = vmatmul.mubr.msk.f32.vlgmr.msra.gmra.mrb[32].mxu0 %vm4443_vm9, %v9594_v42  ;;  %v11136_v42 = vpack.c.bf16 %v5402_v50, %v5400_v10 }
0x1015   :  { %11083 = vmatpush1.bf16.msra.mxu0 %v11082_v33  ;;  %4862 = vmatprep.mubr.f32.mxu0 %v17100_v20  ;;  %v9599_v33 = vld [vmem:[%s17033_s15 + $0x68] sm:$0xff] }
0x1016   :  { %11085 = vmatprep.subr.bf16.mxu0 %v11084_v3  ;;  %v5374_v3 = vld [vmem:[#allocation15 + $0xb8] sm:$0xff] }
0x1017   :  { %v11108_v48 = vpack.c.bf16 %v5374_v3, %v5372_v32  ;;  %v5412_v32 = vld [vmem:[#allocation15 + $0x1e8] sm:$0xff]  ;;  %v5414_v3 = vld [vmem:[#allocation15 + $0x1f8] sm:$0xff] }
0x1018   :  { %9603 = vmatmul.mubr.msk.f32.gmra.mrb[34].mxu0 %vm4443_vm9, %v9595_v16  ;;  %v5399_v16 = vld [vmem:[#allocation15 + $0x180] sm:$0xff] }
0x1019   :  { %11087 = vmatpush1.bf16.msra.mxu0 %v11086_v2  ;;  %4868 = vmatprep.mubr.f32.mxu0 %v17100_v20  ;;  %v9616_v2 = vld [vmem:[%s17033_s15 + $0xb0] sm:$0xff] }
0x101a   :  { %11089 = vmatprep.subr.bf16.mxu0 %v14790_v8  ;;  %v11110_v8 = vpack.c.bf16 %v5373_v54, %v5371_v13  ;;  %11173 = vmatprep.subr.bf16.mxu1 %v11108_v48  ;;  %v5411_v13 = vld [vmem:[#allocation15 + $0x1e0] sm:$0xff]  ;;  %v5413_v54 = vld [vmem:[#allocation15 + $0x1f0] sm:$0xff] }
0x101c   :  { %9604 = vmatmul.mubr.msk.f32.gmra.mrb[36].mxu0 %vm4443_vm9, %v9596_v61  ;;  %11175 = vmatpush1.bf16.msra.mxu1 %v11110_v8  ;;  %v5401_v61 = vld [vmem:[#allocation15 + $0x190] sm:$0xff] }
0x101d   :  { %4874 = vmatprep.mubr.f32.mxu0 %v17100_v20  ;;  %11177 = vmatprep.subr.bf16.mxu1 %v11112_v4 }
0x1020   :  { %9605 = vmatmul.mubr.msk.f32.gmra.mrb[38].mxu0 %vm4443_vm9, %v9597_v19  ;;  %v11138_v19 = vpack.c.bf16 %v5401_v61, %v5399_v16 }
0x1021   :  { %4880 = vmatprep.mubr.f32.mxu0 %v17100_v20 }
0x1024   :  { %9606 = vmatmul.mubr.msk.f32.gmra.mrb[40].mxu0 %vm4443_vm9, %v9598_v51  ;;  %v5404_v51 = vld [vmem:[#allocation15 + $0x1a8] sm:$0xff] }
0x1025   :  { %4886 = vmatprep.mubr.f32.mxu0 %v17100_v20 }
0x1028   :  { %9607 = vmatmul.mubr.msk.f32.gmra.mrb[42].mxu0 %vm4443_vm9, %v9599_v33  ;;  %v5406_v33 = vld [vmem:[#allocation15 + $0x1b8] sm:$0xff] }
0x1029   :  { %4892 = vmatprep.mubr.f32.mxu0 %v17100_v20 }
0x102c   :  { %9608 = vmatmul.mubr.msk.f32.gmra.mrb[44].mxu0 %vm4443_vm9, %v9600_v34  ;;  %v11140_v34 = vpack.c.bf16 %v5406_v33, %v5404_v51  ;;  %v5750_v51 = vld [vmem:[#allocation16 + $0x8] sm:$0xff]  ;;  %v5752_v33 = vld [vmem:[#allocation16 + $0x18] sm:$0xff] }
0x102d   :  { %4898 = vmatprep.mubr.f32.mxu0 %v17100_v20 }
0x1030   :  { %9609 = vmatmul.mubr.msk.f32.gmra.mrb[46].mxu0 %vm4443_vm9, %v9601_v28  ;;  %v5403_v28 = vld [vmem:[#allocation15 + $0x1a0] sm:$0xff] }
0x1031   :  { %5212 = vmatprep.mubr.f32.mxu0 %v17100_v20 }
0x1034   :  { %9618 = vmatmul.mubr.msk.f32.vlgmr.msra.gmra.mrb[32].mxu0 %vm4443_vm9, %v9610_v17  ;;  %v5405_v17 = vld [vmem:[#allocation15 + $0x1b0] sm:$0xff] }
0x1035   :  { %5218 = vmatprep.mubr.f32.mxu0 %v17100_v20  ;;  %11091 = vmatpush1.bf16.msra.mxu0 %v14792_v18  ;;  %v5375_v18 = vld [vmem:[#allocation15 + $0xc0] sm:$0xff] }
0x1036   :  { %11093 = vmatprep.subr.bf16.mxu0 %v14794_v46  ;;  %v5377_v46 = vld [vmem:[#allocation15 + $0xd0] sm:$0xff] }
0x1037   :  { %v11114_v56 = vpack.c.bf16 %v5377_v46, %v5375_v18 }
0x1038   :  { %9619 = vmatmul.mubr.msk.f32.gmra.mrb[34].mxu0 %vm4443_vm9, %v9611_v21  ;;  %v11142_v21 = vpack.c.bf16 %v5405_v17, %v5403_v28  ;;  %v11216_v28 = vpack.c.bf16 %v5752_v33, %v5750_v51  ;;  %v5751_v17 = vld [vmem:[#allocation16 + $0x10] sm:$0xff]  ;;  %v5777_v33 = vld [vmem:[#allocation16 + $0xe0] sm:$0xff] }
0x1039   :  { %5224 = vmatprep.mubr.f32.mxu0 %v17100_v20  ;;  %11095 = vmatpush1.bf16.msra.mxu0 %v14799_v6  ;;  %v5379_v6 = vld [vmem:[#allocation15 + $0xe0] sm:$0xff] }
0x103a   :  { %11097 = vmatprep.subr.bf16.mxu0 %v14801_v31  ;;  %11179 = vmatpush1.bf16.msra.mxu1 %v11114_v56  ;;  %v5381_v31 = vld [vmem:[#allocation15 + $0xf0] sm:$0xff] }
0x103b   :  { %v11118_v57 = vpack.c.bf16 %v5381_v31, %v5379_v6  ;;  %11181 = vmatprep.subr.bf16.mxu1 %v11116_v36 }
0x103c   :  { %9620 = vmatmul.mubr.msk.f32.gmra.mrb[36].mxu0 %vm4443_vm9, %v9612_v59  ;;  %v5408_v59 = vld [vmem:[#allocation15 + $0x1c8] sm:$0xff] }
0x103d   :  { %5230 = vmatprep.mubr.f32.mxu0 %v17100_v20  ;;  %11099 = vmatpush1.bf16.msra.mxu0 %v14805_v37  ;;  %v5383_v37 = vld [vmem:[#allocation15 + $0x100] sm:$0xff] }
0x103e   :  { %11101 = vmatprep.subr.bf16.mxu0 %v14807_v23  ;;  %11183 = vmatpush1.bf16.msra.mxu1 %v11118_v57  ;;  %v5385_v23 = vld [vmem:[#allocation15 + $0x110] sm:$0xff] }
0x103f   :  { %v11122_v49 = vpack.c.bf16 %v5385_v23, %v5383_v37  ;;  %11185 = vmatprep.subr.bf16.mxu1 %v11120_v25 }
0x1040   :  { %9621 = vmatmul.mubr.msk.f32.gmra.mrb[38].mxu0 %vm4443_vm9, %v9613_v14  ;;  %v5410_v14 = vld [vmem:[#allocation15 + $0x1d8] sm:$0xff] }
0x1041   :  { %5236 = vmatprep.mubr.f32.mxu0 %v17100_v20  ;;  %11103 = vmatpush1.bf16.msra.mxu0 %v14811_v44  ;;  %v5387_v44 = vld [vmem:[#allocation15 + $0x120] sm:$0xff] }
0x1042   :  { %11105 = vmatprep.subr.bf16.mxu0 %v14813_v15  ;;  %11187 = vmatpush1.bf16.msra.mxu1 %v11122_v49  ;;  %v5389_v15 = vld [vmem:[#allocation15 + $0x130] sm:$0xff] }
0x1043   :  { %v11126_v22 = vpack.c.bf16 %v5389_v15, %v5387_v44  ;;  %11189 = vmatprep.subr.bf16.mxu1 %v11124_v24 }
0x1044   :  { %9622 = vmatmul.mubr.msk.f32.gmra.mrb[40].mxu0 %vm4443_vm9, %v9614_v45  ;;  %v11144_v45 = vpack.c.bf16 %v5410_v14, %v5408_v59  ;;  %v5756_v59 = vld [vmem:[#allocation16 + $0x38] sm:$0xff] }
0x1045   :  { %5242 = vmatprep.mubr.f32.mxu0 %v17100_v20  ;;  %11107 = vmatpush1.bf16.msra.mxu0 %v14817_v1  ;;  %v5394_v1 = vld [vmem:[#allocation15 + $0x158] sm:$0xff] }
0x1046   :  { %11109 = vmatprep.subr.bf16.mxu0 %v11108_v48  ;;  %11191 = vmatpush1.bf16.msra.mxu1 %v11126_v22  ;;  %v11128_v53 = vpack.c.bf16 %v5394_v1, %v5392_v30  ;;  %v11148_v48 = vpack.c.bf16 %v5414_v3, %v5412_v32  ;;  %v5760_v32 = vld [vmem:[#allocation16 + $0x58] sm:$0xff] }
0x1048   :  { %9623 = vmatmul.mubr.msk.f32.gmra.mrb[42].mxu0 %vm4443_vm9, %v9615_v58  ;;  %11193 = vmatprep.subr.bf16.mxu1 %v11128_v53  ;;  %v5407_v58 = vld [vmem:[#allocation15 + $0x1c0] sm:$0xff] }
0x1049   :  { %5248 = vmatprep.mubr.f32.mxu0 %v17100_v20  ;;  %11111 = vmatpush1.bf16.msra.mxu0 %v11110_v8  ;;  %v11150_v8 = vpack.c.bf16 %v5413_v54, %v5411_v13  ;;  %v5757_v13 = vld [vmem:[#allocation16 + $0x40] sm:$0xff]  ;;  %v5759_v54 = vld [vmem:[#allocation16 + $0x50] sm:$0xff] }
0x104a   :  { %11113 = vmatprep.subr.bf16.mxu0 %v11112_v4  ;;  %11195 = vmatpush1.bf16.msra.mxu1 %v11130_v9 }
0x104b   :  { %11197 = vmatprep.subr.bf16.mxu1 %v11132_v60 }
0x104c   :  { %9624 = vmatmul.mubr.msk.f32.gmra.mrb[44].mxu0 %vm4443_vm9, %v9616_v2  ;;  %v5409_v2 = vld [vmem:[#allocation15 + $0x1d0] sm:$0xff] }
0x104d   :  { %5254 = vmatprep.mubr.f32.mxu0 %v17100_v20  ;;  %11115 = vmatpush1.bf16.msra.mxu0 %v11114_v56 }
0x104e   :  { %11117 = vmatprep.subr.bf16.mxu0 %v11116_v36  ;;  %11199 = vmatpush1.bf16.msra.mxu1 %v11134_v62 }
0x104f   :  { %11201 = vmatprep.subr.bf16.mxu1 %v11136_v42 }
0x1050   :  { %9625 = vmatmul.mubr.msk.f32.gmra.mrb[46].mxu0 %vm4443_vm9, %v9617_v29  ;;  %v11146_v29 = vpack.c.bf16 %v5409_v2, %v5407_v58  ;;  %v5753_v58 = vld [vmem:[#allocation16 + $0x20] sm:$0xff]  ;;  %v5755_v2 = vld [vmem:[#allocation16 + $0x30] sm:$0xff] }
0x1051   :  { %11119 = vmatpush1.bf16.msra.mxu0 %v11118_v57  ;;  %v11222_v3 = vpack.c.bf16 %v5755_v2, %v5753_v58 }
0x1052   :  { %11121 = vmatprep.subr.bf16.mxu0 %v11120_v25  ;;  %11203 = vmatpush1.bf16.msra.mxu1 %v11138_v19 }
0x1053   :  { %11205 = vmatprep.subr.bf16.mxu1 %v11140_v34 }
0x1055   :  { %11123 = vmatpush1.bf16.msra.mxu0 %v11122_v49 }
0x1056   :  { %11125 = vmatprep.subr.bf16.mxu0 %v11124_v24  ;;  %11207 = vmatpush1.bf16.msra.mxu1 %v11142_v21 }
0x1057   :  { %11209 = vmatprep.subr.bf16.mxu1 %v11144_v45 }
0x1059   :  { %11127 = vmatpush1.bf16.msra.mxu0 %v11126_v22 }
0x105a   :  { %11129 = vmatprep.subr.bf16.mxu0 %v11128_v53  ;;  %11211 = vmatpush1.bf16.msra.mxu1 %v11146_v29 }
0x105b   :  { %11213 = vmatprep.subr.bf16.mxu1 %v11148_v48 }
0x105d   :  { %11131 = vmatpush1.bf16.msra.mxu0 %v11130_v9 }
0x105e   :  { %11133 = vmatprep.subr.bf16.mxu0 %v11132_v60  ;;  %11215 = vmatpush1.bf16.msra.mxu1 %v11150_v8 }
0x1061   :  { %11135 = vmatpush1.bf16.msra.mxu0 %v11134_v62 }
0x1062   :  { %11137 = vmatprep.subr.bf16.mxu0 %v11136_v42 }
0x1065   :  { %11139 = vmatpush1.bf16.msra.mxu0 %v11138_v19 }
0x1066   :  { %11141 = vmatprep.subr.bf16.mxu0 %v11140_v34  ;;  %v5749_v34 = vld [vmem:[#allocation16] sm:$0xff] }
0x1067   :  { %v11218_v14 = vpack.c.bf16 %v5751_v17, %v5749_v34  ;;  %v5779_v34 = vld [vmem:[#allocation16 + $0xf0] sm:$0xff]  ;;  %v5784_v17 = vld [vmem:[#allocation16 + $0x118] sm:$0xff] }
0x1069   :  { %11143 = vmatpush1.bf16.msra.mxu0 %v11142_v21  ;;  %v5754_v21 = vld [vmem:[#allocation16 + $0x28] sm:$0xff] }
0x106a   :  { %11145 = vmatprep.subr.bf16.mxu0 %v11144_v45  ;;  %v11220_v45 = vpack.c.bf16 %v5756_v59, %v5754_v21  ;;  %v11246_v21 = vpack.c.bf16 %v5779_v34, %v5777_v33 }
0x106d   :  { %11147 = vmatpush1.bf16.msra.mxu0 %v11146_v29  ;;  %v5758_v29 = vld [vmem:[#allocation16 + $0x48] sm:$0xff] }
0x106e   :  { %11149 = vmatprep.subr.bf16.mxu0 %v11148_v48  ;;  %v11224_v48 = vpack.c.bf16 %v5760_v32, %v5758_v29 }
0x1071   :  { %11151 = vmatpush1.bf16.msra.mxu0 %v11150_v8  ;;  %v5762_v8 = vld [vmem:[#allocation16 + $0x68] sm:$0xff] }
0x1072   :  { %11217 = vmatprep.subr.bf16.mxu0 %v11216_v28  ;;  %v5782_v28 = vld [vmem:[#allocation16 + $0x108] sm:$0xff] }
0x1073   :  { %v11248_v59 = vpack.c.bf16 %v5784_v17, %v5782_v28 }
0x1107   :  { %v14921_v12 = vpop.f32.mrb[32].mxu0 }
0x1108   :  { %v14923_v38 = vpop.f32.mrb[33].mxu0 }
0x110b   :  { %v14925_v4 = vpop.f32.mrb[34].mxu0 }
0x110c   :  { %v5325_v18 = vadd.f32 %v14925_v4, %v14921_v12  ;;  %v14929_v46 = vpop.f32.mrb[35].mxu0 }
0x110d   :  { %v5338_v56 = vadd.f32 %v14929_v46, %v14923_v38 }
0x110f   :  { %v14933_v27 = vpop.f32.mrb[36].mxu0 }
0x1110   :  { %v5326_v43 = vadd.f32 %v5325_v18, %v14933_v27  ;;  %v14936_v36 = vpop.f32.mrb[37].mxu0  ;;  %v5764_v18 = vld [vmem:[#allocation16 + $0x78] sm:$0xff] }
0x1111   :  { %v5339_v6 = vadd.f32 %v5338_v56, %v14936_v36  ;;  %v11226_v56 = vpack.c.bf16 %v5759_v54, %v5757_v13 }
0x1113   :  { %v14939_v31 = vpop.f32.mrb[38].mxu0 }
0x1114   :  { %v5327_v57 = vadd.f32 %v5326_v43, %v14939_v31  ;;  %v14942_v47 = vpop.f32.mrb[39].mxu0  ;;  %v11228_v43 = vpack.c.bf16 %v5764_v18, %v5762_v8 }
0x1115   :  { %v5340_v55 = vadd.f32 %v5339_v6, %v14942_v47  ;;  %v5761_v6 = vld [vmem:[#allocation16 + $0x60] sm:$0xff] }
0x1117   :  { %v14945_v25 = vpop.f32.mrb[40].mxu0 }
0x1118   :  { %v5328_v37 = vadd.f32 %v5327_v57, %v14945_v25  ;;  %v14948_v23 = vpop.f32.mrb[41].mxu0  ;;  %v5763_v57 = vld [vmem:[#allocation16 + $0x70] sm:$0xff] }
0x1119   :  { %v5341_v49 = vadd.f32 %v5340_v55, %v14948_v23  ;;  %v5766_v55 = vld [vmem:[#allocation16 + $0x88] sm:$0xff] }
0x111b   :  { %v14951_v40 = vpop.f32.mrb[42].mxu0 }
0x111c   :  { %v5329_v52 = vadd.f32 %v5328_v37, %v14951_v40  ;;  %v14954_v24 = vpop.f32.mrb[43].mxu0  ;;  %v5768_v37 = vld [vmem:[#allocation16 + $0x98] sm:$0xff] }
0x111d   :  { %v5342_v44 = vadd.f32 %v5341_v49, %v14954_v24  ;;  %v11230_v49 = vpack.c.bf16 %v5763_v57, %v5761_v6 }
0x111f   :  { %v14957_v15 = vpop.f32.mrb[44].mxu0 }
0x1120   :  { %v5330_v22 = vadd.f32 %v5329_v52, %v14957_v15  ;;  %v14960_v30 = vpop.f32.mrb[45].mxu0  ;;  %v11232_v52 = vpack.c.bf16 %v5768_v37, %v5766_v55 }
0x1121   :  { %v5343_v1 = vadd.f32 %v5342_v44, %v14960_v30  ;;  %v5765_v44 = vld [vmem:[#allocation16 + $0x80] sm:$0xff] }
0x1123   :  { %v14963_v53 = vpop.f32.mrb[46].mxu0 }
0x1124   :  { %v5331_v11 = vadd.f32 %v5330_v22, %v14963_v53  ;;  %v14966_v41 = vpop.f32.mrb[47].mxu0  ;;  %v5767_v22 = vld [vmem:[#allocation16 + $0x90] sm:$0xff] }
0x1125   :  { %v5344_v9 = vadd.f32 %v5343_v1, %v14966_v41  ;;  %v5770_v1 = vld [vmem:[#allocation16 + $0xa8] sm:$0xff] }
0x1126   :  { %v5332_v35 = vrot.slane %v5331_v11, 4 }
0x1127   :  { %v5345_v0 = vrot.slane %v5344_v9, 4 }
0x1128   :  { %v5333_v60 = vadd.f32 %v5332_v35, %v5331_v11  ;;  %v5772_v11 = vld [vmem:[#allocation16 + $0xb8] sm:$0xff] }
0x1129   :  { %v5346_v63 = vadd.f32 %v5345_v0, %v5344_v9  ;;  %v11234_v9 = vpack.c.bf16 %v5767_v22, %v5765_v44  ;;  %v11236_v35 = vpack.c.bf16 %v5772_v11, %v5770_v1  ;;  %v5769_v0 = vld [vmem:[#allocation16 + $0xa0] sm:$0xff] }
0x112a   :  { %v5334_v5 = vrot.slane %v5333_v60, 2 }
0x112b   :  { %v5347_v62 = vrot.slane %v5346_v63, 2 }
0x112c   :  { %v5335_v10 = vadd.f32 %v5334_v5, %v5333_v60  ;;  %v5771_v60 = vld [vmem:[#allocation16 + $0xb0] sm:$0xff]  ;;  %v5776_v5 = vld [vmem:[#allocation16 + $0xd8] sm:$0xff] }
0x112d   :  { %v5348_v50 = vadd.f32 %v5347_v62, %v5346_v63  ;;  %v5774_v63 = vld [vmem:[#allocation16 + $0xc8] sm:$0xff]  ;;  %v11238_v62 = vpack.c.bf16 %v5771_v60, %v5769_v0 }
0x112e   :  { %v5336_v42 = vrot.slane %v5335_v10, 1 }
0x112f   :  { %v5349_v16 = vrot.slane %v5348_v50, 1 }
0x1130   :  { %v5337_v19 = vadd.f32 %v5336_v42, %v5335_v10  ;;  %v11240_v10 = vpack.c.bf16 %v5776_v5, %v5774_v63  ;;  %v5775_v42 = vld [vmem:[#allocation16 + $0xd0] sm:$0xff] }
0x1131   :  { %v5350_v61 = vadd.f32 %v5349_v16, %v5348_v50  ;;  %v5773_v50 = vld [vmem:[#allocation16 + $0xc0] sm:$0xff]  ;;  %v5778_v16 = vld [vmem:[#allocation16 + $0xe8] sm:$0xff] }
0x1133   :  { %5479 = vmatprep.mubr.f32.mxu0 %v5350_v61  ;;  %v5780_v61 = vld [vmem:[#allocation16 + $0xf8] sm:$0xff] }
0x1134   :  { %5480 = vmatmul.mubr.f32.vlgmr.msra.gmra.mrb[56].mxu0 %v5337_v19  ;;  %v11242_v19 = vpack.c.bf16 %v5775_v42, %v5773_v50  ;;  %v11244_v51 = vpack.c.bf16 %v5780_v61, %v5778_v16 }
0x1135   :  { %11219 = vmatpush1.bf16.msra.mxu0 %v11218_v14 }
0x1136   :  { %11221 = vmatprep.subr.bf16.mxu0 %v11220_v45 }
0x1139   :  { %11223 = vmatpush1.bf16.msra.mxu0 %v11222_v3 }
0x113a   :  { %11225 = vmatprep.subr.bf16.mxu0 %v11224_v48 }
0x113d   :  { %11227 = vmatpush1.bf16.msra.mxu0 %v11226_v56 }
0x113e   :  { %11229 = vmatprep.subr.bf16.mxu0 %v11228_v43 }
0x1141   :  { %11231 = vmatpush1.bf16.msra.mxu0 %v11230_v49 }
0x1142   :  { %11233 = vmatprep.subr.bf16.mxu0 %v11232_v52 }
0x1145   :  { %11235 = vmatpush1.bf16.msra.mxu0 %v11234_v9 }
0x1146   :  { %11237 = vmatprep.subr.bf16.mxu0 %v11236_v35 }
0x1149   :  { %11239 = vmatpush1.bf16.msra.mxu0 %v11238_v62 }
0x114a   :  { %11241 = vmatprep.subr.bf16.mxu0 %v11240_v10 }
0x114d   :  { %11243 = vmatpush1.bf16.msra.mxu0 %v11242_v19 }
0x114e   :  { %11245 = vmatprep.subr.bf16.mxu0 %v11244_v51 }
0x1151   :  { %11247 = vmatpush1.bf16.msra.mxu0 %v11246_v21 }
0x1152   :  { %11249 = vmatprep.subr.bf16.mxu0 %v11248_v59 }
0x1207   :  { %v5481_v14 = vpop.f32.mrb[56].mxu0 }
0x1208   :  { %v5489_v45 = vrot.slane %v5481_v14, %v13843_v26  ;;  %v5483_v58 = vpop.f32.mrb[57].mxu0 }
0x1209   :  { %v5493_v2 = vrot.slane %v5483_v58, %v13843_v26  ;;  %v5781_v58 = vld [vmem:[#allocation16 + $0x100] sm:$0xff] }
0x120a   :  { %v14972_v29 = vsub.f32 %v14921_v12, %v5489_v45  ;;  %v14975_v32 = vsub.f32 %v14925_v4, %v5489_v45  ;;  %v14978_v3 = vsub.f32 %v14933_v27, %v5489_v45  ;;  %v14981_v48 = vsub.f32 %v14939_v31, %v5489_v45 }
0x120b   :  { %v14984_v13 = vsub.f32 %v14923_v38, %v5493_v2  ;;  %v14987_v54 = vsub.f32 %v14929_v46, %v5493_v2  ;;  %v14990_v8 = vsub.f32 %v14936_v36, %v5493_v2  ;;  %v14993_v12 = vsub.f32 %v14942_v47, %v5493_v2 }
0x120c   :  { %v14996_v4 = vsub.f32 %v14948_v23, %v5493_v2  ;;  %v14999_v27 = vsub.f32 %v14954_v24, %v5493_v2  ;;  %v15002_v31 = vsub.f32 %v14960_v30, %v5493_v2  ;;  %v15005_v38 = vsub.f32 %v14966_v41, %v5493_v2  ;;  %v5783_v2 = vld [vmem:[#allocation16 + $0x110] sm:$0xff] }
0x120d   :  { %v5511_v46 = vmul.f32 %v14984_v13, %v14984_v13  ;;  %v5513_v36 = vmul.f32 %v14987_v54, %v14987_v54  ;;  %v5515_v47 = vmul.f32 %v14990_v8, %v14990_v8  ;;  %v15014_v18 = vsub.f32 %v14945_v25, %v5489_v45 }
0x120e   :  { %v15017_v24 = vsub.f32 %v14951_v40, %v5489_v45  ;;  %v15020_v30 = vsub.f32 %v14957_v15, %v5489_v45  ;;  %v15023_v41 = vsub.f32 %v14963_v53, %v5489_v45  ;;  %v5510_v56 = vmul.f32 %v14972_v29, %v14972_v29 }
0x120f   :  { %v5539_v23 = vadd.f32 %v5513_v36, %v5511_v46  ;;  %v5512_v43 = vmul.f32 %v14975_v32, %v14975_v32  ;;  %v5517_v6 = vmul.f32 %v14993_v12, %v14993_v12  ;;  %v5514_v40 = vmul.f32 %v14978_v3, %v14978_v3  ;;  %v5786_v36 = vld [vmem:[#allocation16 + $0x128] sm:$0xff] }
0x1210   :  { %v5519_v15 = vmul.f32 %v14996_v4, %v14996_v4  ;;  %v5516_v53 = vmul.f32 %v14981_v48, %v14981_v48  ;;  %v5521_v49 = vmul.f32 %v14999_v27, %v14999_v27  ;;  %v5518_v44 = vmul.f32 %v15014_v18, %v15014_v18 }
0x1211   :  { %v5540_v25 = vadd.f32 %v5539_v23, %v5515_v47  ;;  %v5526_v57 = vadd.f32 %v5512_v43, %v5510_v56  ;;  %v5523_v1 = vmul.f32 %v15002_v31, %v15002_v31  ;;  %v5520_v9 = vmul.f32 %v15017_v24, %v15017_v24  ;;  %v5788_v47 = vld [vmem:[#allocation16 + $0x138] sm:$0xff]  ;;  %v5785_v56 = vld [vmem:[#allocation16 + $0x120] sm:$0xff]  ;;  %v5787_v43 = vld [vmem:[#allocation16 + $0x130] sm:$0xff] }
0x1212   :  { %v5525_v0 = vmul.f32 %v15005_v38, %v15005_v38  ;;  %v5522_v63 = vmul.f32 %v15020_v30, %v15020_v30  ;;  %v5524_v10 = vmul.f32 %v15023_v41, %v15023_v41  ;;  %v11250_v46 = vpack.c.bf16 %v5783_v2, %v5781_v58  ;;  %v6718_v2 = vld [vmem:[#allocation16 + $0x408] sm:$0xff] }
0x1213   :  { %v5541_v55 = vadd.f32 %v5540_v25, %v5517_v6  ;;  %v5527_v37 = vadd.f32 %v5526_v57, %v5514_v40  ;;  %v11252_v23 = vpack.c.bf16 %v5788_v47, %v5786_v36  ;;  %v11254_v6 = vpack.c.bf16 %v5787_v43, %v5785_v56  ;;  %v5790_v25 = vld [vmem:[#allocation16 + $0x148] sm:$0xff]  ;;  %v5792_v40 = vld [vmem:[#allocation16 + $0x158] sm:$0xff] }
0x1214   :  { %11251 = vmatpush1.bf16.msra.mxu0 %v11250_v46  ;;  %v11256_v57 = vpack.c.bf16 %v5792_v40, %v5790_v25  ;;  %v6720_v46 = vld [vmem:[#allocation16 + $0x418] sm:$0xff] }
0x1215   :  { %v5542_v52 = vadd.f32 %v5541_v55, %v5519_v15  ;;  %v5528_v22 = vadd.f32 %v5527_v37, %v5516_v53  ;;  %11253 = vmatprep.subr.bf16.mxu0 %v11252_v23  ;;  %v5789_v15 = vld [vmem:[#allocation16 + $0x140] sm:$0xff]  ;;  %v5791_v55 = vld [vmem:[#allocation16 + $0x150] sm:$0xff]  ;;  %v5794_v37 = vld [vmem:[#allocation16 + $0x168] sm:$0xff]  ;;  %v11376_v36 = vpack.c.bf16 %v6720_v46, %v6718_v2 }
0x1216   :  { %v11258_v53 = vpack.c.bf16 %v5791_v55, %v5789_v15  ;;  %v5552_v15 = vld [vmem:[%s17036_s18] ss:$2 sm:$0x3] }
0x1217   :  { %v5543_v11 = vadd.f32 %v5542_v52, %v5521_v49  ;;  %v5529_v35 = vadd.f32 %v5528_v22, %v5518_v44  ;;  %v5796_v49 = vld [vmem:[#allocation16 + $0x178] sm:$0xff]  ;;  %v5793_v44 = vld [vmem:[#allocation16 + $0x160] sm:$0xff]  ;;  %v5795_v22 = vld [vmem:[#allocation16 + $0x170] sm:$0xff] }
0x1218   :  { %11255 = vmatpush1.bf16.msra.mxu0 %v11254_v6  ;;  %v11260_v52 = vpack.c.bf16 %v5796_v49, %v5794_v37 }
0x1219   :  { %v5544_v60 = vadd.f32 %v5543_v11, %v5523_v1  ;;  %v5530_v5 = vadd.f32 %v5529_v35, %v5520_v9  ;;  %11257 = vmatprep.subr.bf16.mxu0 %v11256_v57  ;;  %v11262_v1 = vpack.c.bf16 %v5795_v22, %v5793_v44  ;;  %v5798_v11 = vld [vmem:[#allocation16 + $0x188] sm:$0xff]  ;;  %v5800_v9 = vld [vmem:[#allocation16 + $0x198] sm:$0xff] }
0x121a   :  { %v11264_v35 = vpack.c.bf16 %v5800_v9, %v5798_v11 }
0x121b   :  { %v5545_v62 = vadd.f32 %v5544_v60, %v5525_v0  ;;  %v5531_v50 = vadd.f32 %v5530_v5, %v5522_v63  ;;  %v5797_v0 = vld [vmem:[#allocation16 + $0x180] sm:$0xff]  ;;  %v5799_v60 = vld [vmem:[#allocation16 + $0x190] sm:$0xff]  ;;  %v5802_v5 = vld [vmem:[#allocation16 + $0x1a8] sm:$0xff] }
0x121c   :  { %11259 = vmatpush1.bf16.msra.mxu0 %v11258_v53  ;;  %v11266_v63 = vpack.c.bf16 %v5799_v60, %v5797_v0  ;;  %v9626_v53 = vld [vmem:[%s17036_s18 + $0x1] ss:$2 sm:$0x3]  ;;  %v6719_v0 = vld [vmem:[#allocation16 + $0x410] sm:$0xff] }
0x121d   :  { %v5546_v42 = vrot.slane %v5545_v62, 4  ;;  %v5532_v16 = vadd.f32 %v5531_v50, %v5524_v10  ;;  %11261 = vmatprep.subr.bf16.mxu0 %v11260_v52  ;;  %v5801_v50 = vld [vmem:[#allocation16 + $0x1a0] sm:$0xff]  ;;  %v15067_v44 = vrot.slane %v9626_v53, %v13843_v26  ;;  %v15070_v22 = vrot.slane %v9626_v53, %v13840_v7  ;;  %v6736_v53 = vld [vmem:[#allocation16 + $0x498] sm:$0xff] }
0x121f   :  { %v5547_v61 = vadd.f32 %v5546_v42, %v5545_v62  ;;  %v5533_v19 = vrot.slane %v5532_v16, 4  ;;  %v5804_v62 = vld [vmem:[#allocation16 + $0x1b8] sm:$0xff]  ;;  %v5803_v42 = vld [vmem:[#allocation16 + $0x1b0] sm:$0xff] }
0x1220   :  { %11263 = vmatpush1.bf16.msra.mxu0 %v11262_v1  ;;  %v11268_v10 = vpack.c.bf16 %v5804_v62, %v5802_v5 }
0x1221   :  { %v5548_v51 = vrot.slane %v5547_v61, 2  ;;  %v5534_v33 = vadd.f32 %v5533_v19, %v5532_v16  ;;  %11265 = vmatprep.subr.bf16.mxu0 %v11264_v35  ;;  %v11270_v16 = vpack.c.bf16 %v5803_v42, %v5801_v50  ;;  %v5808_v19 = vld [vmem:[#allocation16 + $0x1d8] sm:$0xff]  ;;  %v6717_v35 = vld [vmem:[#allocation16 + $0x400] sm:$0xff] }
0x1222   :  { %v6724_v50 = vld [vmem:[#allocation16 + $0x438] sm:$0xff] }
0x1223   :  { %v5549_v34 = vadd.f32 %v5548_v51, %v5547_v61  ;;  %v5535_v28 = vrot.slane %v5534_v33, 2  ;;  %v5806_v61 = vld [vmem:[#allocation16 + $0x1c8] sm:$0xff]  ;;  %v5805_v51 = vld [vmem:[#allocation16 + $0x1c0] sm:$0xff] }
0x1224   :  { %11267 = vmatpush1.bf16.msra.mxu0 %v11266_v63 }
0x1225   :  { %v5550_v17 = vrot.slane %v5549_v34, 1  ;;  %v5536_v21 = vadd.f32 %v5535_v28, %v5534_v33  ;;  %11269 = vmatprep.subr.bf16.mxu0 %v11268_v10  ;;  %v11272_v33 = vpack.c.bf16 %v5808_v19, %v5806_v61  ;;  %v5810_v28 = vld [vmem:[#allocation16 + $0x1e8] sm:$0xff]  ;;  %v6723_v19 = vld [vmem:[#allocation16 + $0x430] sm:$0xff] }
0x1226   :  { %v6722_v10 = vld [vmem:[#allocation16 + $0x428] sm:$0xff] }
0x1227   :  { %v5551_v59 = vadd.f32 %v5550_v17, %v5549_v34  ;;  %v5537_v14 = vrot.slane %v5536_v21, 1  ;;  %v5807_v34 = vld [vmem:[#allocation16 + $0x1d0] sm:$0xff]  ;;  %v5812_v17 = vld [vmem:[#allocation16 + $0x1f8] sm:$0xff] }
0x1228   :  { %11271 = vmatpush1.bf16.msra.mxu0 %v11270_v16  ;;  %v11380_v16 = vpack.c.bf16 %v6724_v50, %v6722_v10 }
0x1229   :  { %5617 = vmatprep.mubr.f32.mxu1 %v5551_v59  ;;  %v5538_v45 = vadd.f32 %v5537_v14, %v5536_v21  ;;  %v11274_v21 = vpack.c.bf16 %v5807_v34, %v5805_v51  ;;  %v11276_v59 = vpack.c.bf16 %v5812_v17, %v5810_v28  ;;  %v5809_v14 = vld [vmem:[#allocation16 + $0x1e0] sm:$0xff]  ;;  %11273 = vmatprep.subr.bf16.mxu0 %v11272_v33  ;;  %v6728_v28 = vld [vmem:[#allocation16 + $0x458] sm:$0xff] }
0x122b   :  { %5618 = vmatmul.mubr.f32.vlgmr.msra.gmra.mrb[48].mxu1 %v5538_v45  ;;  %v5811_v45 = vld [vmem:[#allocation16 + $0x1f0] sm:$0xff] }
0x122c   :  { %6055 = vmatprep.mubr.f32.mxu1 %v17100_v20  ;;  %11275 = vmatpush1.bf16.msra.mxu0 %v11274_v21  ;;  %v11278_v58 = vpack.c.bf16 %v5811_v45, %v5809_v14  ;;  %v6725_v45 = vld [vmem:[#allocation16 + $0x440] sm:$0xff] }
0x122d   :  { %11277 = vmatprep.subr.bf16.mxu0 %v11276_v59 }
0x1230   :  { %11279 = vmatpush1.bf16.msra.mxu0 %v11278_v58  ;;  %v6727_v58 = vld [vmem:[#allocation16 + $0x450] sm:$0xff] }
0x1231   :  { %11377 = vmatprep.subr.bf16.mxu0 %v11376_v36  ;;  %v6730_v36 = vld [vmem:[#allocation16 + $0x468] sm:$0xff] }
0x12fe   :  { %v5619_v47 = vpop.f32.mrb[48].mxu1 }
0x12ff   :  { %v5620_v23 = vadd.f32 1e-05, %v5619_v47  ;;  %v5621_v56 = vpop.f32.mrb[49].mxu1  ;;  %v6732_v47 = vld [vmem:[#allocation16 + $0x478] sm:$0xff] }
0x1300   :  { %v5622_v43 = vadd.f32 1e-05, %v5621_v56  ;;  %v11386_v56 = vpack.c.bf16 %v6727_v58, %v6725_v45 }
0x1301   :  { %12057 = vrsqrt.f32 %v5620_v23 }
0x1302   :  { %12059 = vrsqrt.f32 %v5622_v43 }
0x130b   :  { %v12058_v6 = vpop.eup %12057 }
0x130c   :  { %v12060_v25 = vpop.eup %12059 }
0x130d   :  { %v5628_v40 = vcombine.low %v12058_v6, %v12060_v25  ;;  %v11388_v6 = vpack.c.bf16 %v6732_v47, %v6730_v36  ;;  %v6729_v25 = vld [vmem:[#allocation16 + $0x460] sm:$0xff] }
0x130f   :  { %v5635_v57 = vrot.slane %v5628_v40, %v13822_v39  ;;  %v6731_v40 = vld [vmem:[#allocation16 + $0x470] sm:$0xff] }
0x1311   :  { %v5642_v55 = vrot.slane %v5635_v57, %v13822_v39 }
0x1313   :  { %v5644_v37 = vmul.f32 %v5642_v55, %v5552_v15  ;;  %v6734_v55 = vld [vmem:[#allocation16 + $0x488] sm:$0xff] }
0x1315   :  { %v15061_v49 = vrot.slane %v5644_v37, %v13843_v26  ;;  %v15064_v52 = vrot.slane %v5644_v37, %v13840_v7 }
0x1317   :  { %v5657_v1 = vmul.f32 %v15064_v52, %v14984_v13  ;;  %v5656_v11 = vmul.f32 %v15061_v49, %v14972_v29  ;;  %v5659_v9 = vmul.f32 %v15064_v52, %v14987_v54  ;;  %v5658_v60 = vmul.f32 %v15061_v49, %v14975_v32  ;;  %v6721_v32 = vld [vmem:[#allocation16 + $0x420] sm:$0xff] }
0x1318   :  { %v5661_v13 = vmul.f32 %v15064_v52, %v14990_v8  ;;  %v11378_v54 = vpack.c.bf16 %v6719_v0, %v6717_v35  ;;  %v5660_v51 = vmul.f32 %v15061_v49, %v14978_v3  ;;  %v6726_v8 = vld [vmem:[#allocation16 + $0x448] sm:$0xff]  ;;  %v5663_v17 = vmul.f32 %v15064_v52, %v14993_v12  ;;  %v6733_v35 = vld [vmem:[#allocation16 + $0x480] sm:$0xff]  ;;  %v6735_v0 = vld [vmem:[#allocation16 + $0x490] sm:$0xff] }
0x1319   :  { %v5686_v63 = vadd.f32 %v15070_v22, %v5657_v1  ;;  %v5685_v5 = vadd.f32 %v15067_v44, %v5656_v11  ;;  %v5688_v62 = vadd.f32 %v15070_v22, %v5659_v9  ;;  %v5687_v61 = vadd.f32 %v15067_v44, %v5658_v60 }
0x131a   :  { %v5690_v34 = vadd.f32 %v15070_v22, %v5661_v13  ;;  %v11382_v21 = vpack.c.bf16 %v6723_v19, %v6721_v32  ;;  %v11384_v3 = vpack.c.bf16 %v6728_v28, %v6726_v8  ;;  %v5689_v14 = vadd.f32 %v15067_v44, %v5660_v51  ;;  %v6742_v51 = vld [vmem:[#allocation16 + $0x4c8] sm:$0xff] }
0x131b   :  { %v15085_v29 = vmax.f32 %v5686_v63, 0.0  ;;  %v15087_v42 = vmax.f32 %v5685_v5, 0.0  ;;  %v15093_v33 = vmax.f32 %v5688_v62, 0.0  ;;  %v15100_v59 = vmax.f32 %v5687_v61, 0.0  ;;  %v6738_v5 = vld [vmem:[#allocation16 + $0x4a8] sm:$0xff]  ;;  %v6740_v62 = vld [vmem:[#allocation16 + $0x4b8] sm:$0xff] }
0x131c   :  { %v5662_v2 = vmul.f32 %v15061_v49, %v14981_v48  ;;  %v15105_v46 = vmax.f32 %v5690_v34, 0.0  ;;  %v5692_v12 = vadd.f32 %v15070_v22, %v5663_v17  ;;  %v5665_v23 = vmul.f32 %v15064_v52, %v14996_v4  ;;  %v6739_v61 = vld [vmem:[#allocation16 + $0x4b0] sm:$0xff]  ;;  %v6744_v34 = vld [vmem:[#allocation16 + $0x4d8] sm:$0xff] }
0x131d   :  { %5877 = vmatprep.mubr.f32.mxu0 %v15085_v29  ;;  %v15112_v43 = vmax.f32 %v5689_v14, 0.0  ;;  %v5664_v57 = vmul.f32 %v15061_v49, %v15014_v18  ;;  %v5667_v37 = vmul.f32 %v15064_v52, %v14999_v27  ;;  %v11390_v1 = vpack.c.bf16 %v6731_v40, %v6729_v25  ;;  %v6743_v14 = vld [vmem:[#allocation16 + $0x4d0] sm:$0xff] }
0x131e   :  { %5878 = vmatmul.mubr.f32.vlgmr.msra.gmra.mrb[58].mxu0 %v15087_v42  ;;  %v5691_v48 = vadd.f32 %v15067_v44, %v5662_v2  ;;  %v15117_v15 = vmax.f32 %v5692_v12, 0.0  ;;  %v5694_v4 = vadd.f32 %v15070_v22, %v5665_v23  ;;  %v11392_v9 = vpack.c.bf16 %v6736_v53, %v6734_v55  ;;  %v6748_v2 = vld [vmem:[#allocation16 + $0x4f8] sm:$0xff]  ;;  %v6754_v55 = vld [vmem:[#allocation16 + $0x528] sm:$0xff] }
0x131f   :  { %11379 = vmatpush1.bf16.msra.mxu0 %v11378_v54  ;;  %5883 = vmatprep.mubr.f32.mxu0 %v15093_v33  ;;  %v5693_v18 = vadd.f32 %v15067_v44, %v5664_v57  ;;  %v5666_v60 = vmul.f32 %v15061_v49, %v15017_v24  ;;  %v5696_v27 = vadd.f32 %v15070_v22, %v5667_v37  ;;  %v6749_v57 = vld [vmem:[#allocation16 + $0x500] sm:$0xff] }
0x1320   :  { %11381 = vmatprep.subr.bf16.mxu0 %v11380_v16  ;;  %v15124_v11 = vmax.f32 %v5691_v48, 0.0  ;;  %v15129_v63 = vmax.f32 %v5694_v4, 0.0  ;;  %v5669_v10 = vmul.f32 %v15064_v52, %v15002_v31  ;;  %v11394_v50 = vpack.c.bf16 %v6735_v0, %v6733_v35  ;;  %v6737_v16 = vld [vmem:[#allocation16 + $0x4a0] sm:$0xff]  ;;  %v6751_v4 = vld [vmem:[#allocation16 + $0x510] sm:$0xff]  ;;  %v6760_v35 = vld [vmem:[#allocation16 + $0x558] sm:$0xff] }
0x1321   :  { %v15136_v13 = vmax.f32 %v5693_v18, 0.0  ;;  %v11396_v54 = vpack.c.bf16 %v6740_v62, %v6738_v5  ;;  %v5695_v24 = vadd.f32 %v15067_v44, %v5666_v60  ;;  %v5668_v32 = vmul.f32 %v15061_v49, %v15020_v30  ;;  %v6758_v18 = vld [vmem:[#allocation16 + $0x548] sm:$0xff]  ;;  %v6759_v5 = vld [vmem:[#allocation16 + $0x550] sm:$0xff] }
0x1322   :  { %5884 = vmatmul.mubr.f32.gmra.mrb[60].mxu0 %v15100_v59  ;;  %v15141_v19 = vmax.f32 %v5696_v27, 0.0  ;;  %v5698_v31 = vadd.f32 %v15070_v22, %v5669_v10  ;;  %v5671_v8 = vmul.f32 %v15064_v52, %v15005_v38  ;;  %v11398_v28 = vpack.c.bf16 %v6739_v61, %v6737_v16  ;;  %v6746_v52 = vld [vmem:[#allocation16 + $0x4e8] sm:$0xff]  ;;  %v6757_v27 = vld [vmem:[#allocation16 + $0x540] sm:$0xff]  ;;  %v6764_v10 = vld [vmem:[#allocation16 + $0x578] sm:$0xff] }
0x1323   :  { %11383 = vmatpush1.bf16.msra.mxu0 %v11382_v21  ;;  %5889 = vmatprep.mubr.f32.mxu0 %v15105_v46  ;;  %v15148_v17 = vmax.f32 %v5695_v24, 0.0  ;;  %v11400_v21 = vpack.c.bf16 %v6744_v34, %v6742_v51  ;;  %v5697_v30 = vadd.f32 %v15067_v44, %v5668_v32  ;;  %v5670_v45 = vmul.f32 %v15061_v49, %v15023_v41  ;;  %v6747_v41 = vld [vmem:[#allocation16 + $0x4f0] sm:$0xff]  ;;  %v6762_v62 = vld [vmem:[#allocation16 + $0x568] sm:$0xff]  ;;  %v6761_v24 = vld [vmem:[#allocation16 + $0x560] sm:$0xff] }
0x1324   :  { %11385 = vmatprep.subr.bf16.mxu0 %v11384_v3  ;;  %v6741_v3 = vld [vmem:[#allocation16 + $0x4c0] sm:$0xff]  ;;  %v15153_v58 = vmax.f32 %v5698_v31, 0.0  ;;  %v5700_v38 = vadd.f32 %v15070_v22, %v5671_v8  ;;  %v11404_v47 = vpack.c.bf16 %v6748_v2, %v6746_v52  ;;  %v6752_v22 = vld [vmem:[#allocation16 + $0x518] sm:$0xff]  ;;  %v11410_v53 = vpack.c.bf16 %v6751_v4, %v6749_v57  ;;  %v6763_v16 = vld [vmem:[#allocation16 + $0x570] sm:$0xff] }
0x1325   :  { %v11402_v12 = vpack.c.bf16 %v6743_v14, %v6741_v3  ;;  %v15158_v36 = vmax.f32 %v5697_v30, 0.0  ;;  %v5699_v23 = vadd.f32 %v15067_v44, %v5670_v45  ;;  %v6756_v44 = vld [vmem:[#allocation16 + $0x538] sm:$0xff]  ;;  %v11416_v60 = vpack.c.bf16 %v6760_v35, %v6758_v18  ;;  %v6766_v61 = vld [vmem:[#allocation16 + $0x588] sm:$0xff]  ;;  %v6765_v34 = vld [vmem:[#allocation16 + $0x580] sm:$0xff] }
0x1326   :  { %5890 = vmatmul.mubr.f32.gmra.mrb[62].mxu0 %v15112_v43  ;;  %v15161_v49 = vmax.f32 %v5700_v38, 0.0  ;;  %v11412_v37 = vpack.c.bf16 %v6756_v44, %v6754_v55  ;;  %v6768_v32 = vld [vmem:[#allocation16 + $0x598] sm:$0xff]  ;;  %v11422_v31 = vpack.c.bf16 %v6763_v16, %v6761_v24  ;;  %v6767_v8 = vld [vmem:[#allocation16 + $0x590] sm:$0xff]  ;;  %v6769_v14 = vld [vmem:[#allocation16 + $0x5a0] sm:$0xff] }
0x1327   :  { %11387 = vmatpush1.bf16.msra.mxu0 %v11386_v56  ;;  %5895 = vmatprep.mubr.f32.mxu0 %v15117_v15  ;;  %v6745_v56 = vld [vmem:[#allocation16 + $0x4e0] sm:$0xff]  ;;  %v15165_v25 = vmax.f32 %v5699_v23, 0.0  ;;  %v11424_v51 = vpack.c.bf16 %v6768_v32, %v6766_v61  ;;  %v11426_v30 = vpack.c.bf16 %v6767_v8, %v6765_v34  ;;  %v6771_v45 = vld [vmem:[#allocation16 + $0x5b0] sm:$0xff]  ;;  %v6774_v38 = vld [vmem:[#allocation16 + $0x5c8] sm:$0xff] }
0x1328   :  { %11389 = vmatprep.subr.bf16.mxu0 %v11388_v6  ;;  %v6750_v6 = vld [vmem:[#allocation16 + $0x508] sm:$0xff]  ;;  %v11406_v48 = vpack.c.bf16 %v6747_v41, %v6745_v56  ;;  %v6776_v52 = vld [vmem:[#allocation16 + $0x5d8] sm:$0xff]  ;;  %v11430_v2 = vpack.c.bf16 %v6771_v45, %v6769_v14  ;;  %v6775_v23 = vld [vmem:[#allocation16 + $0x5d0] sm:$0xff] }
0x1329   :  { %v11408_v40 = vpack.c.bf16 %v6752_v22, %v6750_v6  ;;  %v6778_v56 = vld [vmem:[#allocation16 + $0x5e8] sm:$0xff]  ;;  %v6780_v41 = vld [vmem:[#allocation16 + $0x5f8] sm:$0xff] }
0x132a   :  { %5896 = vmatmul.mubr.f32.gmra.mrb[64].mxu0 %v15124_v11  ;;  %v11436_v22 = vpack.c.bf16 %v6780_v41, %v6778_v56  ;;  %v6202_v32 = vld [vmem:[#allocation16 + $0x208] sm:$0xff]  ;;  %v6208_v45 = vld [vmem:[#allocation16 + $0x238] sm:$0xff] }
0x132b   :  { %11391 = vmatpush1.bf16.msra.mxu0 %v11390_v1  ;;  %5901 = vmatprep.mubr.f32.mxu0 %v15129_v63  ;;  %v6753_v1 = vld [vmem:[#allocation16 + $0x520] sm:$0xff]  ;;  %v6206_v14 = vld [vmem:[#allocation16 + $0x228] sm:$0xff]  ;;  %v6212_v56 = vld [vmem:[#allocation16 + $0x258] sm:$0xff] }
0x132c   :  { %11393 = vmatprep.subr.bf16.mxu0 %v11392_v9  ;;  %v6755_v9 = vld [vmem:[#allocation16 + $0x530] sm:$0xff]  ;;  %v5927_v41 = vld [vmem:[%s17037_s19 + $0x8] sm:$0xff] }
0x132d   :  { %v11414_v0 = vpack.c.bf16 %v6755_v9, %v6753_v1 }
0x132e   :  { %5902 = vmatmul.mubr.f32.gmra.mrb[66].mxu0 %v15136_v13 }
0x132f   :  { %11395 = vmatpush1.bf16.msra.mxu0 %v11394_v50  ;;  %5907 = vmatprep.mubr.f32.mxu0 %v15141_v19  ;;  %v11418_v50 = vpack.c.bf16 %v6759_v5, %v6757_v27 }
0x1330   :  { %11397 = vmatprep.subr.bf16.mxu0 %v11396_v54  ;;  %v11420_v54 = vpack.c.bf16 %v6764_v10, %v6762_v62 }
0x1332   :  { %5908 = vmatmul.mubr.f32.gmra.mrb[68].mxu0 %v15148_v17 }
0x1333   :  { %11399 = vmatpush1.bf16.msra.mxu0 %v11398_v28  ;;  %5913 = vmatprep.mubr.f32.mxu0 %v15153_v58  ;;  %v6770_v28 = vld [vmem:[#allocation16 + $0x5a8] sm:$0xff] }
0x1334   :  { %11401 = vmatprep.subr.bf16.mxu0 %v11400_v21  ;;  %v6772_v21 = vld [vmem:[#allocation16 + $0x5b8] sm:$0xff] }
0x1335   :  { %v11428_v3 = vpack.c.bf16 %v6772_v21, %v6770_v28 }
0x1336   :  { %5914 = vmatmul.mubr.f32.gmra.mrb[70].mxu0 %v15158_v36 }
0x1337   :  { %11403 = vmatpush1.bf16.msra.mxu0 %v11402_v12  ;;  %5919 = vmatprep.mubr.f32.mxu0 %v15161_v49  ;;  %v11432_v12 = vpack.c.bf16 %v6776_v52, %v6774_v38  ;;  %v5926_v38 = vld [vmem:[%s17037_s19] sm:$0xff] }
0x1338   :  { %11405 = vmatprep.subr.bf16.mxu0 %v11404_v47  ;;  %v6773_v47 = vld [vmem:[#allocation16 + $0x5c0] sm:$0xff] }
0x1339   :  { %v11434_v6 = vpack.c.bf16 %v6775_v23, %v6773_v47  ;;  %v6207_v47 = vld [vmem:[#allocation16 + $0x230] sm:$0xff]  ;;  %v6210_v23 = vld [vmem:[#allocation16 + $0x248] sm:$0xff] }
0x133a   :  { %5920 = vmatmul.mubr.f32.gmra.mrb[72].mxu0 %v15165_v25 }
0x133b   :  { %11407 = vmatpush1.bf16.msra.mxu0 %v11406_v48  ;;  %6845 = vmatprep.mubr.f32.mxu0 %v15085_v29  ;;  %v6777_v48 = vld [vmem:[#allocation16 + $0x5e0] sm:$0xff] }
0x133c   :  { %11409 = vmatprep.subr.bf16.mxu0 %v11408_v40  ;;  %v6779_v40 = vld [vmem:[#allocation16 + $0x5f0] sm:$0xff] }
0x133d   :  { %v11438_v57 = vpack.c.bf16 %v6779_v40, %v6777_v48  ;;  %v6209_v48 = vld [vmem:[#allocation16 + $0x240] sm:$0xff]  ;;  %v6211_v40 = vld [vmem:[#allocation16 + $0x250] sm:$0xff] }
0x133f   :  { %11411 = vmatpush1.bf16.msra.mxu0 %v11410_v53 }
0x1340   :  { %11413 = vmatprep.subr.bf16.mxu0 %v11412_v37 }
0x1343   :  { %11415 = vmatpush1.bf16.msra.mxu0 %v11414_v0 }
0x1344   :  { %11417 = vmatprep.subr.bf16.mxu0 %v11416_v60 }
0x1347   :  { %11419 = vmatpush1.bf16.msra.mxu0 %v11418_v50 }
0x1348   :  { %11421 = vmatprep.subr.bf16.mxu0 %v11420_v54 }
0x134b   :  { %11423 = vmatpush1.bf16.msra.mxu0 %v11422_v31  ;;  %v6204_v31 = vld [vmem:[#allocation16 + $0x218] sm:$0xff] }
0x134c   :  { %11425 = vmatprep.subr.bf16.mxu0 %v11424_v51  ;;  %v11296_v21 = vpack.c.bf16 %v6204_v31, %v6202_v32  ;;  %v6226_v32 = vld [vmem:[#allocation16 + $0x2c8] sm:$0xff]  ;;  %v6228_v31 = vld [vmem:[#allocation16 + $0x2d8] sm:$0xff] }
0x134f   :  { %11427 = vmatpush1.bf16.msra.mxu0 %v11426_v30  ;;  %v6201_v30 = vld [vmem:[#allocation16 + $0x200] sm:$0xff] }
0x1350   :  { %11429 = vmatprep.subr.bf16.mxu0 %v11428_v3  ;;  %v6203_v3 = vld [vmem:[#allocation16 + $0x210] sm:$0xff] }
0x1351   :  { %v11298_v52 = vpack.c.bf16 %v6203_v3, %v6201_v30  ;;  %v6230_v30 = vld [vmem:[#allocation16 + $0x2e8] sm:$0xff]  ;;  %v6232_v3 = vld [vmem:[#allocation16 + $0x2f8] sm:$0xff] }
0x1353   :  { %11431 = vmatpush1.bf16.msra.mxu0 %v11430_v2  ;;  %v11300_v2 = vpack.c.bf16 %v6208_v45, %v6206_v14  ;;  %v5932_v14 = vld [vmem:[%s17037_s19 + $0x30] sm:$0xff] }
0x1354   :  { %11433 = vmatprep.subr.bf16.mxu0 %v11432_v12  ;;  %v6205_v12 = vld [vmem:[#allocation16 + $0x220] sm:$0xff] }
0x1357   :  { %11435 = vmatpush1.bf16.msra.mxu0 %v11434_v6  ;;  %v11302_v6 = vpack.c.bf16 %v6207_v47, %v6205_v12  ;;  %v6234_v12 = vld [vmem:[#allocation16 + $0x308] sm:$0xff]  ;;  %v6236_v47 = vld [vmem:[#allocation16 + $0x318] sm:$0xff] }
0x1358   :  { %11437 = vmatprep.subr.bf16.mxu0 %v11436_v22  ;;  %v11304_v22 = vpack.c.bf16 %v6212_v56, %v6210_v23  ;;  %v5933_v23 = vld [vmem:[%s17037_s19 + $0x38] sm:$0xff] }
0x135b   :  { %11439 = vmatpush1.bf16.msra.mxu0 %v11438_v57  ;;  %v6214_v57 = vld [vmem:[#allocation16 + $0x268] sm:$0xff] }
0x135e   :  { %6846 = vmatmul.mubr.f32.vlgmr.msra.gmra.mrb[74].mxu0 %v15087_v42 }
0x135f   :  { %6851 = vmatprep.mubr.f32.mxu0 %v15093_v33 }
0x1362   :  { %6852 = vmatmul.mubr.f32.gmra.mrb[76].mxu0 %v15100_v59 }
0x1363   :  { %6857 = vmatprep.mubr.f32.mxu0 %v15105_v46 }
0x1366   :  { %6858 = vmatmul.mubr.f32.gmra.mrb[78].mxu0 %v15112_v43 }
0x1367   :  { %6863 = vmatprep.mubr.f32.mxu0 %v15117_v15 }
0x136a   :  { %6864 = vmatmul.mubr.f32.gmra.mrb[80].mxu0 %v15124_v11 }
0x136b   :  { %6869 = vmatprep.mubr.f32.mxu0 %v15129_v63 }
0x136e   :  { %6870 = vmatmul.mubr.f32.gmra.mrb[82].mxu0 %v15136_v13 }
0x136f   :  { %6875 = vmatprep.mubr.f32.mxu0 %v15141_v19 }
0x1372   :  { %6876 = vmatmul.mubr.f32.gmra.mrb[84].mxu0 %v15148_v17 }
0x1373   :  { %6881 = vmatprep.mubr.f32.mxu0 %v15153_v58 }
0x1376   :  { %6882 = vmatmul.mubr.f32.gmra.mrb[86].mxu0 %v15158_v36 }
0x1377   :  { %6887 = vmatprep.mubr.f32.mxu0 %v15161_v49 }
0x137a   :  { %6888 = vmatmul.mubr.f32.gmra.mrb[88].mxu0 %v15165_v25 }
0x13f1   :  { %v5879_v4 = vpop.f32.mrb[58].mxu0 }
0x13f2   :  { %v5881_v55 = vpop.f32.mrb[59].mxu0 }
0x13f5   :  { %v5885_v44 = vpop.f32.mrb[60].mxu0 }
0x13f6   :  { %v11282_v53 = vpack.c.bf16 %v5885_v44, %v5879_v4  ;;  %v5887_v37 = vpop.f32.mrb[61].mxu0  ;;  %v6216_v4 = vld [vmem:[#allocation16 + $0x278] sm:$0xff]  ;;  %v11306_v44 = vpack.c.bf16 %v6211_v40, %v6209_v48  ;;  %v6238_v48 = vld [vmem:[#allocation16 + $0x328] sm:$0xff] }
0x13f7   :  { %v11280_v1 = vpack.c.bf16 %v5887_v37, %v5881_v55  ;;  %v5928_v55 = vld [vmem:[%s17037_s19 + $0x10] sm:$0xff]  ;;  %v6213_v37 = vld [vmem:[#allocation16 + $0x260] sm:$0xff]  ;;  %v6240_v40 = vld [vmem:[#allocation16 + $0x338] sm:$0xff] }
0x13f9   :  { %v5891_v9 = vpop.f32.mrb[62].mxu0  ;;  %11281 = vmatprep.subr.bf16.mxu1 %v11280_v1  ;;  %v6215_v1 = vld [vmem:[#allocation16 + $0x270] sm:$0xff] }
0x13fa   :  { %v5893_v18 = vpop.f32.mrb[63].mxu0  ;;  %11283 = vmatpush1.bf16.msra.mxu1 %v11282_v53  ;;  %v11308_v53 = vpack.c.bf16 %v6216_v4, %v6214_v57 }
0x13fd   :  { %v5897_v35 = vpop.f32.mrb[64].mxu0 }
0x13fe   :  { %v11286_v0 = vpack.c.bf16 %v5897_v35, %v5891_v9  ;;  %v5899_v60 = vpop.f32.mrb[65].mxu0  ;;  %v6218_v9 = vld [vmem:[#allocation16 + $0x288] sm:$0xff]  ;;  %v5929_v35 = vld [vmem:[%s17037_s19 + $0x18] sm:$0xff] }
0x13ff   :  { %v11284_v27 = vpack.c.bf16 %v5899_v60, %v5893_v18  ;;  %v6220_v18 = vld [vmem:[#allocation16 + $0x298] sm:$0xff] }
0x1400   :  { %v11312_v60 = vpack.c.bf16 %v6220_v18, %v6218_v9  ;;  %v6242_v9 = vld [vmem:[#allocation16 + $0x348] sm:$0xff]  ;;  %v6244_v18 = vld [vmem:[#allocation16 + $0x358] sm:$0xff] }
0x1401   :  { %v5903_v5 = vpop.f32.mrb[66].mxu0  ;;  %11285 = vmatprep.subr.bf16.mxu1 %v11284_v27  ;;  %v6217_v27 = vld [vmem:[#allocation16 + $0x280] sm:$0xff] }
0x1402   :  { %v5905_v62 = vpop.f32.mrb[67].mxu0  ;;  %11287 = vmatpush1.bf16.msra.mxu1 %v11286_v0  ;;  %v11310_v0 = vpack.c.bf16 %v6215_v1, %v6213_v37  ;;  %v6237_v37 = vld [vmem:[#allocation16 + $0x320] sm:$0xff]  ;;  %v6239_v1 = vld [vmem:[#allocation16 + $0x330] sm:$0xff] }
0x1405   :  { %v5909_v10 = vpop.f32.mrb[68].mxu0 }
0x1406   :  { %v11290_v50 = vpack.c.bf16 %v5909_v10, %v5903_v5  ;;  %v5911_v54 = vpop.f32.mrb[69].mxu0  ;;  %v6219_v5 = vld [vmem:[#allocation16 + $0x290] sm:$0xff]  ;;  %v6224_v10 = vld [vmem:[#allocation16 + $0x2b8] sm:$0xff] }
0x1407   :  { %v11288_v24 = vpack.c.bf16 %v5911_v54, %v5905_v62  ;;  %v6222_v62 = vld [vmem:[#allocation16 + $0x2a8] sm:$0xff]  ;;  %v11314_v54 = vpack.c.bf16 %v6219_v5, %v6217_v27  ;;  %v11334_v5 = vpack.c.bf16 %v6239_v1, %v6237_v37  ;;  %v6260_v1 = vld [vmem:[#allocation16 + $0x3d8] sm:$0xff] }
0x1408   :  { %v5935_v27 = vld [vmem:[%s17037_s19 + $0x48] sm:$0xff] }
0x1409   :  { %v5915_v16 = vpop.f32.mrb[70].mxu0  ;;  %11289 = vmatprep.subr.bf16.mxu1 %v11288_v24  ;;  %v11316_v24 = vpack.c.bf16 %v6224_v10, %v6222_v62  ;;  %v11336_v10 = vpack.c.bf16 %v6244_v18, %v6242_v9  ;;  %v6258_v37 = vld [vmem:[#allocation16 + $0x3c8] sm:$0xff] }
0x140a   :  { %v5917_v61 = vpop.f32.mrb[71].mxu0  ;;  %11291 = vmatpush1.bf16.msra.mxu1 %v11290_v50  ;;  %v5930_v50 = vld [vmem:[%s17037_s19 + $0x20] sm:$0xff] }
0x140d   :  { %v5921_v51 = vpop.f32.mrb[72].mxu0 }
0x140e   :  { %v11294_v34 = vpack.c.bf16 %v5921_v51, %v5915_v16  ;;  %v5923_v8 = vpop.f32.mrb[73].mxu0  ;;  %v6221_v16 = vld [vmem:[#allocation16 + $0x2a0] sm:$0xff]  ;;  %v5931_v51 = vld [vmem:[%s17037_s19 + $0x28] sm:$0xff] }
0x140f   :  { %v11292_v28 = vpack.c.bf16 %v5923_v8, %v5917_v61  ;;  %v6223_v61 = vld [vmem:[#allocation16 + $0x2b0] sm:$0xff]  ;;  %v11320_v8 = vpack.c.bf16 %v6228_v31, %v6226_v32 }
0x1410   :  { %v5936_v31 = vld [vmem:[%s17037_s19 + $0x50] sm:$0xff] }
0x1411   :  { %11293 = vmatprep.subr.bf16.mxu1 %v11292_v28  ;;  %v6225_v28 = vld [vmem:[#allocation16 + $0x2c0] sm:$0xff] }
0x1412   :  { %11295 = vmatpush1.bf16.msra.mxu1 %v11294_v34  ;;  %v11318_v34 = vpack.c.bf16 %v6223_v61, %v6221_v16  ;;  %v6248_v16 = vld [vmem:[#allocation16 + $0x378] sm:$0xff] }
0x1413   :  { %11297 = vmatprep.subr.bf16.mxu1 %v11296_v21  ;;  %v6227_v21 = vld [vmem:[#allocation16 + $0x2d0] sm:$0xff] }
0x1414   :  { %v11322_v45 = vpack.c.bf16 %v6227_v21, %v6225_v28  ;;  %v6247_v28 = vld [vmem:[#allocation16 + $0x370] sm:$0xff]  ;;  %v6250_v21 = vld [vmem:[#allocation16 + $0x388] sm:$0xff] }
0x1415   :  { %9627 = vmatmul.mubr.msk.f32.vlgmr.msra.gmra.mrb[50].mxu1 %vm5942_vm10, %v5926_v38  ;;  %v11324_v38 = vpack.c.bf16 %v6232_v3, %v6230_v30  ;;  %v6252_v30 = vld [vmem:[#allocation16 + $0x398] sm:$0xff] }
0x1416   :  { %11299 = vmatpush1.bf16.msra.mxu1 %v11298_v52  ;;  %6061 = vmatprep.mubr.f32.mxu1 %v17100_v20  ;;  %v6229_v52 = vld [vmem:[#allocation16 + $0x2e0] sm:$0xff] }
0x1417   :  { %11301 = vmatprep.subr.bf16.mxu1 %v11300_v2  ;;  %v6231_v2 = vld [vmem:[#allocation16 + $0x2f0] sm:$0xff] }
0x1418   :  { %v11326_v56 = vpack.c.bf16 %v6231_v2, %v6229_v52 }
0x1419   :  { %9628 = vmatmul.mubr.msk.f32.gmra.mrb[52].mxu1 %vm5942_vm10, %v5927_v41  ;;  %v11328_v41 = vpack.c.bf16 %v6236_v47, %v6234_v12  ;;  %v11344_v12 = vpack.c.bf16 %v6252_v30, %v6250_v21  ;;  %v6249_v47 = vld [vmem:[#allocation16 + $0x380] sm:$0xff] }
0x141a   :  { %11303 = vmatpush1.bf16.msra.mxu1 %v11302_v6  ;;  %6067 = vmatprep.mubr.f32.mxu1 %v17100_v20  ;;  %v6233_v6 = vld [vmem:[#allocation16 + $0x300] sm:$0xff] }
0x141b   :  { %11305 = vmatprep.subr.bf16.mxu1 %v11304_v22  ;;  %v6235_v22 = vld [vmem:[#allocation16 + $0x310] sm:$0xff] }
0x141d   :  { %9629 = vmatmul.mubr.msk.f32.gmra.mrb[54].mxu1 %vm5942_vm10, %v5928_v55  ;;  %v5934_v55 = vld [vmem:[%s17037_s19 + $0x40] sm:$0xff] }
0x141e   :  { %11307 = vmatpush1.bf16.msra.mxu1 %v11306_v44  ;;  %6073 = vmatprep.mubr.f32.mxu1 %v17100_v20  ;;  %v11330_v44 = vpack.c.bf16 %v6235_v22, %v6233_v6 }
0x141f   :  { %11309 = vmatprep.subr.bf16.mxu1 %v11308_v53  ;;  %v11332_v53 = vpack.c.bf16 %v6240_v40, %v6238_v48  ;;  %v5938_v48 = vld [vmem:[%s17037_s19 + $0x60] sm:$0xff] }
0x1421   :  { %9630 = vmatmul.mubr.msk.f32.gmra.mrb[56].mxu1 %vm5942_vm10, %v5929_v35 }
0x1422   :  { %11311 = vmatpush1.bf16.msra.mxu1 %v11310_v0  ;;  %6079 = vmatprep.mubr.f32.mxu1 %v17100_v20 }
0x1423   :  { %11313 = vmatprep.subr.bf16.mxu1 %v11312_v60 }
0x1425   :  { %9631 = vmatmul.mubr.msk.f32.gmra.mrb[58].mxu1 %vm5942_vm10, %v5930_v50  ;;  %v6241_v50 = vld [vmem:[#allocation16 + $0x340] sm:$0xff] }
0x1426   :  { %11315 = vmatpush1.bf16.msra.mxu1 %v11314_v54  ;;  %6085 = vmatprep.mubr.f32.mxu1 %v17100_v20  ;;  %v6243_v54 = vld [vmem:[#allocation16 + $0x350] sm:$0xff] }
0x1427   :  { %11317 = vmatprep.subr.bf16.mxu1 %v11316_v24  ;;  %v6246_v24 = vld [vmem:[#allocation16 + $0x368] sm:$0xff] }
0x1429   :  { %9632 = vmatmul.mubr.msk.f32.gmra.mrb[60].mxu1 %vm5942_vm10, %v5931_v51  ;;  %v11338_v51 = vpack.c.bf16 %v6243_v54, %v6241_v50  ;;  %v11352_v54 = vpack.c.bf16 %v6260_v1, %v6258_v37 }
0x142a   :  { %11319 = vmatpush1.bf16.msra.mxu1 %v11318_v34  ;;  %6091 = vmatprep.mubr.f32.mxu1 %v17100_v20  ;;  %v11340_v34 = vpack.c.bf16 %v6248_v16, %v6246_v24  ;;  %v6257_v24 = vld [vmem:[#allocation16 + $0x3c0] sm:$0xff]  ;;  %v6259_v16 = vld [vmem:[#allocation16 + $0x3d0] sm:$0xff] }
0x142b   :  { %11321 = vmatprep.subr.bf16.mxu1 %v11320_v8  ;;  %v6245_v8 = vld [vmem:[#allocation16 + $0x360] sm:$0xff]  ;;  %v11354_v21 = vpack.c.bf16 %v6259_v16, %v6257_v24  ;;  %v9644_v24 = vld [vmem:[%s17037_s19 + $0x88] sm:$0xff] }
0x142c   :  { %v11342_v52 = vpack.c.bf16 %v6247_v28, %v6245_v8  ;;  %v5940_v28 = vld [vmem:[%s17037_s19 + $0x70] sm:$0xff]  ;;  %v9679_v16 = vld [vmem:[%s17037_s19 + $0x120] sm:$0xff] }
0x142d   :  { %9633 = vmatmul.mubr.msk.f32.gmra.mrb[62].mxu1 %vm5942_vm10, %v5932_v14 }
0x142e   :  { %11323 = vmatpush1.bf16.msra.mxu1 %v11322_v45  ;;  %6097 = vmatprep.mubr.f32.mxu1 %v17100_v20 }
0x142f   :  { %11325 = vmatprep.subr.bf16.mxu1 %v11324_v38  ;;  %v5937_v38 = vld [vmem:[%s17037_s19 + $0x58] sm:$0xff] }
0x1431   :  { %v15222_v57 = vpop.f32.mrb[74].mxu0  ;;  %9634 = vmatmul.mubr.msk.f32.gmra.mrb[64].mxu1 %vm5942_vm10, %v5933_v23  ;;  %v6251_v23 = vld [vmem:[#allocation16 + $0x390] sm:$0xff] }
0x1432   :  { %v15225_v4 = vpop.f32.mrb[75].mxu0  ;;  %11327 = vmatpush1.bf16.msra.mxu1 %v11326_v56  ;;  %6103 = vmatprep.mubr.f32.mxu1 %v17100_v20  ;;  %v6254_v56 = vld [vmem:[#allocation16 + $0x3a8] sm:$0xff]  ;;  %v11346_v40 = vpack.c.bf16 %v6251_v23, %v6249_v47 }
0x1433   :  { %11329 = vmatprep.subr.bf16.mxu1 %v11328_v41  ;;  %v6256_v41 = vld [vmem:[#allocation16 + $0x3b8] sm:$0xff] }
0x1435   :  { %v15231_v35 = vpop.f32.mrb[76].mxu0  ;;  %9635 = vmatmul.mubr.msk.f32.gmra.mrb[66].mxu1 %vm5942_vm10, %v5934_v55  ;;  %v11348_v55 = vpack.c.bf16 %v6256_v41, %v6254_v56  ;;  %v5941_v56 = vld [vmem:[%s17037_s19 + $0x78] sm:$0xff] }
0x1436   :  { %v11442_v0 = vpack.c.bf16 %v15231_v35, %v15222_v57  ;;  %v15236_v60 = vpop.f32.mrb[77].mxu0  ;;  %11331 = vmatpush1.bf16.msra.mxu1 %v11330_v44  ;;  %6109 = vmatprep.mubr.f32.mxu1 %v17100_v20  ;;  %v6253_v44 = vld [vmem:[#allocation16 + $0x3a0] sm:$0xff]  ;;  %v9645_v57 = vld [vmem:[%s17037_s19 + $0x90] sm:$0xff] }
0x1437   :  { %v11440_v62 = vpack.c.bf16 %v15236_v60, %v15225_v4  ;;  %11333 = vmatprep.subr.bf16.mxu1 %v11332_v53  ;;  %v6255_v53 = vld [vmem:[#allocation16 + $0x3b0] sm:$0xff]  ;;  %v9646_v4 = vld [vmem:[%s17037_s19 + $0x98] sm:$0xff]  ;;  %v9647_v35 = vld [vmem:[%s17037_s19 + $0xa0] sm:$0xff] }
0x1438   :  { %v9649_v60 = vld [vmem:[%s17037_s19 + $0xb0] sm:$0xff] }
0x1439   :  { %v15244_v61 = vpop.f32.mrb[78].mxu0  ;;  %9636 = vmatmul.mubr.msk.f32.gmra.mrb[68].mxu1 %vm5942_vm10, %v5935_v27 }
0x143a   :  { %v15247_v32 = vpop.f32.mrb[79].mxu0  ;;  %11335 = vmatpush1.bf16.msra.mxu1 %v11334_v5  ;;  %6115 = vmatprep.mubr.f32.mxu1 %v17100_v20  ;;  %v5939_v5 = vld [vmem:[%s17037_s19 + $0x68] sm:$0xff] }
0x143b   :  { %11337 = vmatprep.subr.bf16.mxu1 %v11336_v10  ;;  %v11350_v10 = vpack.c.bf16 %v6255_v53, %v6253_v44 }
0x143d   :  { %v15253_v3 = vpop.f32.mrb[80].mxu0  ;;  %9637 = vmatmul.mubr.msk.f32.gmra.mrb[70].mxu1 %vm5942_vm10, %v5936_v31  ;;  %v6262_v31 = vld [vmem:[#allocation16 + $0x3e8] sm:$0xff] }
0x143e   :  { %v11446_v14 = vpack.c.bf16 %v15253_v3, %v15244_v61  ;;  %v15258_v45 = vpop.f32.mrb[81].mxu0  ;;  %11339 = vmatpush1.bf16.msra.mxu1 %v11338_v51  ;;  %6121 = vmatprep.mubr.f32.mxu1 %v17100_v20  ;;  %v6264_v51 = vld [vmem:[#allocation16 + $0x3f8] sm:$0xff]  ;;  %v9651_v61 = vld [vmem:[%s17037_s19 + $0xc0] sm:$0xff]  ;;  %v9653_v3 = vld [vmem:[%s17037_s19 + $0xd0] sm:$0xff] }
0x143f   :  { %v11444_v2 = vpack.c.bf16 %v15258_v45, %v15247_v32  ;;  %11341 = vmatprep.subr.bf16.mxu1 %v11340_v34  ;;  %v11356_v30 = vpack.c.bf16 %v6264_v51, %v6262_v31  ;;  %v9652_v32 = vld [vmem:[%s17037_s19 + $0xc8] sm:$0xff]  ;;  %v9655_v45 = vld [vmem:[%s17037_s19 + $0xe0] sm:$0xff]  ;;  %v9681_v51 = vld [vmem:[%s17037_s19 + $0x130] sm:$0xff] }
0x1440   :  { %v9680_v31 = vld [vmem:[%s17037_s19 + $0x128] sm:$0xff] }
0x1441   :  { %v15266_v6 = vpop.f32.mrb[82].mxu0  ;;  %9638 = vmatmul.mubr.msk.f32.gmra.mrb[72].mxu1 %vm5942_vm10, %v5937_v38  ;;  %v6261_v38 = vld [vmem:[#allocation16 + $0x3e0] sm:$0xff] }
0x1442   :  { %v15269_v22 = vpop.f32.mrb[83].mxu0  ;;  %11343 = vmatpush1.bf16.msra.mxu1 %v11342_v52  ;;  %6127 = vmatprep.mubr.f32.mxu1 %v17100_v20  ;;  %v6263_v52 = vld [vmem:[#allocation16 + $0x3f0] sm:$0xff] }
0x1443   :  { %11345 = vmatprep.subr.bf16.mxu1 %v11344_v12  ;;  %v11358_v41 = vpack.c.bf16 %v6263_v52, %v6261_v38  ;;  %v9687_v38 = vld [vmem:[%s17037_s19 + $0x160] sm:$0xff]  ;;  %v9688_v52 = vld [vmem:[%s17037_s19 + $0x168] sm:$0xff] }
0x1445   :  { %v15275_v9 = vpop.f32.mrb[84].mxu0  ;;  %9639 = vmatmul.mubr.msk.f32.gmra.mrb[74].mxu1 %vm5942_vm10, %v5938_v48 }
0x1446   :  { %v11450_v18 = vpack.c.bf16 %v15275_v9, %v15266_v6  ;;  %v15280_v27 = vpop.f32.mrb[85].mxu0  ;;  %11347 = vmatpush1.bf16.msra.mxu1 %v11346_v40  ;;  %6133 = vmatprep.mubr.f32.mxu1 %v17100_v20  ;;  %v9657_v6 = vld [vmem:[%s17037_s19 + $0xf0] sm:$0xff]  ;;  %v9675_v9 = vld [vmem:[%s17037_s19 + $0x100] sm:$0xff] }
0x1447   :  { %v11448_v50 = vpack.c.bf16 %v15280_v27, %v15269_v22  ;;  %11349 = vmatprep.subr.bf16.mxu1 %v11348_v55  ;;  %v9658_v22 = vld [vmem:[%s17037_s19 + $0xf8] sm:$0xff]  ;;  %v9677_v27 = vld [vmem:[%s17037_s19 + $0x110] sm:$0xff] }
0x1449   :  { %v15288_v34 = vpop.f32.mrb[86].mxu0  ;;  %9640 = vmatmul.mubr.msk.f32.gmra.mrb[76].mxu1 %vm5942_vm10, %v5939_v5 }
0x144a   :  { %v15291_v8 = vpop.f32.mrb[87].mxu0  ;;  %11351 = vmatpush1.bf16.msra.mxu1 %v11350_v10  ;;  %6139 = vmatprep.mubr.f32.mxu1 %v17100_v20 }
0x144b   :  { %11353 = vmatprep.subr.bf16.mxu1 %v11352_v54  ;;  %v9643_v54 = vld [vmem:[%s17037_s19 + $0x80] sm:$0xff] }
0x144d   :  { %v15297_v12 = vpop.f32.mrb[88].mxu0  ;;  %9641 = vmatmul.mubr.msk.f32.gmra.mrb[78].mxu1 %vm5942_vm10, %v5940_v28  ;;  %v9684_v28 = vld [vmem:[%s17037_s19 + $0x148] sm:$0xff] }
0x144e   :  { %v11454_v47 = vpack.c.bf16 %v15297_v12, %v15288_v34  ;;  %v15302_v23 = vpop.f32.mrb[89].mxu0  ;;  %11355 = vmatpush1.bf16.msra.mxu1 %v11354_v21  ;;  %6145 = vmatprep.mubr.f32.mxu1 %v17100_v20  ;;  %v9682_v34 = vld [vmem:[%s17037_s19 + $0x138] sm:$0xff]  ;;  %v9685_v21 = vld [vmem:[%s17037_s19 + $0x150] sm:$0xff] }
0x144f   :  { %v11452_v48 = vpack.c.bf16 %v15302_v23, %v15291_v8  ;;  %11357 = vmatprep.subr.bf16.mxu1 %v11356_v30  ;;  %v9683_v8 = vld [vmem:[%s17037_s19 + $0x140] sm:$0xff]  ;;  %v9686_v30 = vld [vmem:[%s17037_s19 + $0x158] sm:$0xff]  ;;  %v9689_v12 = vld [vmem:[%s17037_s19 + $0x170] sm:$0xff] }
0x1450   :  { %v7291_v23 = vld [vmem:[#allocation18 + $0x8] sm:$0xff] }
0x1451   :  { %9642 = vmatmul.mubr.msk.f32.gmra.mrb[80].mxu1 %vm5942_vm10, %v5941_v56  ;;  %v7293_v56 = vld [vmem:[#allocation18 + $0x18] sm:$0xff] }
0x1452   :  { %11359 = vmatpush1.bf16.msra.mxu1 %v11358_v41  ;;  %6329 = vmatprep.mubr.f32.mxu1 %v15085_v29  ;;  %v7290_v41 = vld [vmem:[#allocation18] sm:$0xff] }
0x1455   :  { %6330 = vmatmul.mubr.f32.vlgmr.msra.gmra.mrb[82].mxu1 %v15087_v42 }
0x1456   :  { %6335 = vmatprep.mubr.f32.mxu1 %v15093_v33 }
0x1459   :  { %6336 = vmatmul.mubr.f32.gmra.mrb[84].mxu1 %v15100_v59 }
0x145a   :  { %6341 = vmatprep.mubr.f32.mxu1 %v15105_v46 }
0x145d   :  { %6342 = vmatmul.mubr.f32.gmra.mrb[86].mxu1 %v15112_v43 }
0x145e   :  { %6347 = vmatprep.mubr.f32.mxu1 %v15117_v15 }
0x1461   :  { %6348 = vmatmul.mubr.f32.gmra.mrb[88].mxu1 %v15124_v11 }
0x1462   :  { %6353 = vmatprep.mubr.f32.mxu1 %v15129_v63 }
0x1465   :  { %6354 = vmatmul.mubr.f32.gmra.mrb[90].mxu1 %v15136_v13 }
0x1466   :  { %6359 = vmatprep.mubr.f32.mxu1 %v15141_v19 }
0x1469   :  { %6360 = vmatmul.mubr.f32.gmra.mrb[92].mxu1 %v15148_v17 }
0x146a   :  { %6365 = vmatprep.mubr.f32.mxu1 %v15153_v58 }
0x146d   :  { %6366 = vmatmul.mubr.f32.gmra.mrb[94].mxu1 %v15158_v36 }
0x146e   :  { %6371 = vmatprep.mubr.f32.mxu1 %v15161_v49 }
0x1471   :  { %6372 = vmatmul.mubr.f32.gmra.mrb[96].mxu1 %v15165_v25 }
0x1472   :  { %6507 = vmatprep.mubr.f32.mxu1 %v17100_v20 }
0x1528   :  { %v6331_v29 = vpop.f32.mrb[82].mxu1 }
0x1529   :  { %v6333_v42 = vpop.f32.mrb[83].mxu1 }
0x152c   :  { %v6337_v33 = vpop.f32.mrb[84].mxu1 }
0x152d   :  { %v11362_v59 = vpack.c.bf16 %v6337_v33, %v6331_v29  ;;  %v6339_v46 = vpop.f32.mrb[85].mxu1  ;;  %v7292_v29 = vld [vmem:[#allocation18 + $0x10] sm:$0xff]  ;;  %v7295_v33 = vld [vmem:[#allocation18 + $0x28] sm:$0xff] }
0x152e   :  { %v11360_v43 = vpack.c.bf16 %v6339_v46, %v6333_v42  ;;  %v11458_v42 = vpack.c.bf16 %v7292_v29, %v7290_v41  ;;  %v7294_v46 = vld [vmem:[#allocation18 + $0x20] sm:$0xff]  ;;  %v7332_v29 = vld [vmem:[#allocation18 + $0x150] sm:$0xff] }
0x152f   :  { %v7330_v41 = vld [vmem:[#allocation18 + $0x140] sm:$0xff] }
0x1530   :  { %v6343_v15 = vpop.f32.mrb[86].mxu1  ;;  %11361 = vmatprep.subr.bf16.mxu1 %v11360_v43 }
0x1531   :  { %v6345_v11 = vpop.f32.mrb[87].mxu1  ;;  %11363 = vmatpush1.bf16.msra.mxu1 %v11362_v59  ;;  %v7297_v59 = vld [vmem:[#allocation18 + $0x38] sm:$0xff] }
0x1532   :  { %v11460_v43 = vpack.c.bf16 %v7297_v59, %v7295_v33  ;;  %v7335_v33 = vld [vmem:[#allocation18 + $0x168] sm:$0xff]  ;;  %v7337_v59 = vld [vmem:[#allocation18 + $0x178] sm:$0xff] }
0x1534   :  { %v6349_v63 = vpop.f32.mrb[88].mxu1 }
0x1535   :  { %v11366_v13 = vpack.c.bf16 %v6349_v63, %v6343_v15  ;;  %v6351_v19 = vpop.f32.mrb[89].mxu1  ;;  %v7296_v15 = vld [vmem:[#allocation18 + $0x30] sm:$0xff]  ;;  %v7299_v63 = vld [vmem:[#allocation18 + $0x48] sm:$0xff] }
0x1536   :  { %v11364_v17 = vpack.c.bf16 %v6351_v19, %v6345_v11  ;;  %v11462_v11 = vpack.c.bf16 %v7296_v15, %v7294_v46  ;;  %v7298_v19 = vld [vmem:[#allocation18 + $0x40] sm:$0xff]  ;;  %v7336_v15 = vld [vmem:[#allocation18 + $0x170] sm:$0xff] }
0x1537   :  { %v7334_v46 = vld [vmem:[#allocation18 + $0x160] sm:$0xff] }
0x1538   :  { %v6355_v58 = vpop.f32.mrb[90].mxu1  ;;  %11365 = vmatprep.subr.bf16.mxu1 %v11364_v17 }
0x1539   :  { %v6357_v36 = vpop.f32.mrb[91].mxu1  ;;  %11367 = vmatpush1.bf16.msra.mxu1 %v11366_v13  ;;  %v7301_v13 = vld [vmem:[#allocation18 + $0x58] sm:$0xff] }
0x153a   :  { %v11464_v17 = vpack.c.bf16 %v7301_v13, %v7299_v63  ;;  %v7339_v63 = vld [vmem:[#allocation18 + $0x188] sm:$0xff]  ;;  %v7341_v13 = vld [vmem:[#allocation18 + $0x198] sm:$0xff] }
0x153c   :  { %v6361_v49 = vpop.f32.mrb[92].mxu1 }
0x153d   :  { %v11370_v25 = vpack.c.bf16 %v6361_v49, %v6355_v58  ;;  %v6363_v40 = vpop.f32.mrb[93].mxu1  ;;  %v7300_v58 = vld [vmem:[#allocation18 + $0x50] sm:$0xff]  ;;  %v7303_v49 = vld [vmem:[#allocation18 + $0x68] sm:$0xff] }
0x153e   :  { %v11368_v55 = vpack.c.bf16 %v6363_v40, %v6357_v36  ;;  %v11466_v36 = vpack.c.bf16 %v7300_v58, %v7298_v19  ;;  %v7302_v40 = vld [vmem:[#allocation18 + $0x60] sm:$0xff]  ;;  %v11504_v19 = vpack.c.bf16 %v7341_v13, %v7339_v63  ;;  %v7340_v58 = vld [vmem:[#allocation18 + $0x190] sm:$0xff] }
0x1540   :  { %v6367_v44 = vpop.f32.mrb[94].mxu1  ;;  %11369 = vmatprep.subr.bf16.mxu1 %v11368_v55 }
0x1541   :  { %v6369_v53 = vpop.f32.mrb[95].mxu1  ;;  %11371 = vmatpush1.bf16.msra.mxu1 %v11370_v25  ;;  %v7305_v25 = vld [vmem:[#allocation18 + $0x78] sm:$0xff] }
0x1542   :  { %v11468_v55 = vpack.c.bf16 %v7305_v25, %v7303_v49  ;;  %v7343_v49 = vld [vmem:[#allocation18 + $0x1a8] sm:$0xff]  ;;  %v7345_v25 = vld [vmem:[#allocation18 + $0x1b8] sm:$0xff] }
0x1544   :  { %v6373_v37 = vpop.f32.mrb[96].mxu1 }
0x1545   :  { %v11374_v1 = vpack.c.bf16 %v6373_v37, %v6367_v44  ;;  %v6375_v5 = vpop.f32.mrb[97].mxu1  ;;  %v7304_v44 = vld [vmem:[#allocation18 + $0x70] sm:$0xff]  ;;  %v7307_v37 = vld [vmem:[#allocation18 + $0x88] sm:$0xff] }
0x1546   :  { %v11372_v10 = vpack.c.bf16 %v6375_v5, %v6369_v53  ;;  %v11470_v53 = vpack.c.bf16 %v7304_v44, %v7302_v40  ;;  %v7306_v5 = vld [vmem:[#allocation18 + $0x80] sm:$0xff]  ;;  %v11508_v40 = vpack.c.bf16 %v7345_v25, %v7343_v49  ;;  %v7344_v44 = vld [vmem:[#allocation18 + $0x1b0] sm:$0xff] }
0x1548   :  { %11373 = vmatprep.subr.bf16.mxu1 %v11372_v10 }
0x1549   :  { %11375 = vmatpush1.bf16.msra.mxu1 %v11374_v1  ;;  %v7309_v1 = vld [vmem:[#allocation18 + $0x98] sm:$0xff] }
0x154a   :  { %11441 = vmatprep.subr.bf16.mxu1 %v11440_v62  ;;  %v9650_v62 = vld [vmem:[%s17037_s19 + $0xb8] sm:$0xff]  ;;  %v11472_v10 = vpack.c.bf16 %v7309_v1, %v7307_v37  ;;  %v7347_v37 = vld [vmem:[#allocation18 + $0x1c8] sm:$0xff] }
0x154b   :  { %v7349_v1 = vld [vmem:[#allocation18 + $0x1d8] sm:$0xff] }
0x154c   :  { %9659 = vmatmul.mubr.msk.f32.vlgmr.msra.gmra.mrb[50].mxu1 %vm5942_vm10, %v9643_v54  ;;  %v7308_v54 = vld [vmem:[#allocation18 + $0x90] sm:$0xff] }
0x154d   :  { %11443 = vmatpush1.bf16.msra.mxu1 %v11442_v0  ;;  %6513 = vmatprep.mubr.f32.mxu1 %v17100_v20  ;;  %v9648_v0 = vld [vmem:[%s17037_s19 + $0xa8] sm:$0xff] }
0x154e   :  { %11445 = vmatprep.subr.bf16.mxu1 %v11444_v2  ;;  %v9656_v2 = vld [vmem:[%s17037_s19 + $0xe8] sm:$0xff] }
0x1550   :  { %9660 = vmatmul.mubr.msk.f32.gmra.mrb[52].mxu1 %vm5942_vm10, %v9644_v24  ;;  %v11474_v24 = vpack.c.bf16 %v7308_v54, %v7306_v5  ;;  %v7346_v5 = vld [vmem:[#allocation18 + $0x1c0] sm:$0xff]  ;;  %v7348_v54 = vld [vmem:[#allocation18 + $0x1d0] sm:$0xff] }
0x1551   :  { %11447 = vmatpush1.bf16.msra.mxu1 %v11446_v14  ;;  %6519 = vmatprep.mubr.f32.mxu1 %v17100_v20  ;;  %v9654_v14 = vld [vmem:[%s17037_s19 + $0xd8] sm:$0xff] }
0x1552   :  { %11449 = vmatprep.subr.bf16.mxu1 %v11448_v50  ;;  %v9678_v50 = vld [vmem:[%s17037_s19 + $0x118] sm:$0xff] }
0x1554   :  { %9661 = vmatmul.mubr.msk.f32.gmra.mrb[54].mxu1 %vm5942_vm10, %v9645_v57  ;;  %v7311_v57 = vld [vmem:[#allocation18 + $0xa8] sm:$0xff] }
0x1555   :  { %11451 = vmatpush1.bf16.msra.mxu1 %v11450_v18  ;;  %6525 = vmatprep.mubr.f32.mxu1 %v17100_v20  ;;  %v9676_v18 = vld [vmem:[%s17037_s19 + $0x108] sm:$0xff] }
0x1556   :  { %11453 = vmatprep.subr.bf16.mxu1 %v11452_v48  ;;  %v11456_v48 = vpack.c.bf16 %v7293_v56, %v7291_v23  ;;  %v7331_v23 = vld [vmem:[#allocation18 + $0x148] sm:$0xff]  ;;  %v7333_v56 = vld [vmem:[#allocation18 + $0x158] sm:$0xff] }
0x1558   :  { %9662 = vmatmul.mubr.msk.f32.gmra.mrb[56].mxu1 %vm5942_vm10, %v9646_v4  ;;  %11457 = vmatprep.subr.bf16.mxu0 %v11456_v48  ;;  %v7313_v4 = vld [vmem:[#allocation18 + $0xb8] sm:$0xff] }
0x1559   :  { %11455 = vmatpush1.bf16.msra.mxu1 %v11454_v47  ;;  %6531 = vmatprep.mubr.f32.mxu1 %v17100_v20  ;;  %v9690_v47 = vld [vmem:[%s17037_s19 + $0x178] sm:$0xff] }
0x155a   :  { %11521 = vmatprep.subr.bf16.mxu1 %v11456_v48  ;;  %11459 = vmatpush1.bf16.msra.mxu0 %v11458_v42  ;;  %v11496_v48 = vpack.c.bf16 %v7333_v56, %v7331_v23 }
0x155b   :  { %11461 = vmatprep.subr.bf16.mxu0 %v11460_v43 }
0x155c   :  { %9663 = vmatmul.mubr.msk.f32.gmra.mrb[58].mxu1 %vm5942_vm10, %v9647_v35  ;;  %v7310_v35 = vld [vmem:[#allocation18 + $0xa0] sm:$0xff] }
0x155d   :  { %6537 = vmatprep.mubr.f32.mxu1 %v17100_v20 }
0x155e   :  { %11463 = vmatpush1.bf16.msra.mxu0 %v11462_v11 }
0x155f   :  { %11465 = vmatprep.subr.bf16.mxu0 %v11464_v17 }
0x1560   :  { %9664 = vmatmul.mubr.msk.f32.gmra.mrb[60].mxu1 %vm5942_vm10, %v9648_v0  ;;  %v11476_v0 = vpack.c.bf16 %v7313_v4, %v7311_v57  ;;  %v7353_v57 = vld [vmem:[#allocation18 + $0x1f8] sm:$0xff]  ;;  %v11514_v4 = vpack.c.bf16 %v7348_v54, %v7346_v5 }
0x1561   :  { %6543 = vmatprep.mubr.f32.mxu1 %v17100_v20 }
0x1562   :  { %11467 = vmatpush1.bf16.msra.mxu0 %v11466_v36 }
0x1563   :  { %11469 = vmatprep.subr.bf16.mxu0 %v11468_v55 }
0x1564   :  { %9665 = vmatmul.mubr.msk.f32.gmra.mrb[62].mxu1 %vm5942_vm10, %v9649_v60  ;;  %v7312_v60 = vld [vmem:[#allocation18 + $0xb0] sm:$0xff] }
0x1565   :  { %6549 = vmatprep.mubr.f32.mxu1 %v17100_v20 }
0x1566   :  { %11471 = vmatpush1.bf16.msra.mxu0 %v11470_v53 }
0x1567   :  { %11473 = vmatprep.subr.bf16.mxu0 %v11472_v10 }
0x1568   :  { %9666 = vmatmul.mubr.msk.f32.gmra.mrb[64].mxu1 %vm5942_vm10, %v9650_v62  ;;  %v11478_v62 = vpack.c.bf16 %v7312_v60, %v7310_v35  ;;  %v7352_v60 = vld [vmem:[#allocation18 + $0x1f0] sm:$0xff] }
0x1569   :  { %6555 = vmatprep.mubr.f32.mxu1 %v17100_v20 }
0x156a   :  { %11475 = vmatpush1.bf16.msra.mxu0 %v11474_v24 }
0x156b   :  { %11477 = vmatprep.subr.bf16.mxu0 %v11476_v0 }
0x156c   :  { %9667 = vmatmul.mubr.msk.f32.gmra.mrb[66].mxu1 %vm5942_vm10, %v9651_v61  ;;  %v7315_v61 = vld [vmem:[#allocation18 + $0xc8] sm:$0xff] }
0x156d   :  { %6561 = vmatprep.mubr.f32.mxu1 %v17100_v20 }
0x156e   :  { %11479 = vmatpush1.bf16.msra.mxu0 %v11478_v62 }
0x1570   :  { %9668 = vmatmul.mubr.msk.f32.gmra.mrb[68].mxu1 %vm5942_vm10, %v9652_v32  ;;  %v7317_v32 = vld [vmem:[#allocation18 + $0xd8] sm:$0xff] }
0x1571   :  { %6567 = vmatprep.mubr.f32.mxu1 %v17100_v20 }
0x1574   :  { %9669 = vmatmul.mubr.msk.f32.gmra.mrb[70].mxu1 %vm5942_vm10, %v9653_v3  ;;  %v7314_v3 = vld [vmem:[#allocation18 + $0xc0] sm:$0xff] }
0x1575   :  { %6573 = vmatprep.mubr.f32.mxu1 %v17100_v20 }
0x1578   :  { %9670 = vmatmul.mubr.msk.f32.gmra.mrb[72].mxu1 %vm5942_vm10, %v9654_v14  ;;  %v11480_v14 = vpack.c.bf16 %v7317_v32, %v7315_v61 }
0x1579   :  { %6579 = vmatprep.mubr.f32.mxu1 %v17100_v20 }
0x157a   :  { %11481 = vmatprep.subr.bf16.mxu0 %v11480_v14 }
0x157c   :  { %9671 = vmatmul.mubr.msk.f32.gmra.mrb[74].mxu1 %vm5942_vm10, %v9655_v45  ;;  %v7316_v45 = vld [vmem:[#allocation18 + $0xd0] sm:$0xff] }
0x157d   :  { %6585 = vmatprep.mubr.f32.mxu1 %v17100_v20 }
0x1580   :  { %9672 = vmatmul.mubr.msk.f32.gmra.mrb[76].mxu1 %vm5942_vm10, %v9656_v2  ;;  %v11482_v2 = vpack.c.bf16 %v7316_v45, %v7314_v3 }
0x1581   :  { %6591 = vmatprep.mubr.f32.mxu1 %v17100_v20 }
0x1582   :  { %11483 = vmatpush1.bf16.msra.mxu0 %v11482_v2 }
0x1584   :  { %9673 = vmatmul.mubr.msk.f32.gmra.mrb[78].mxu1 %vm5942_vm10, %v9657_v6  ;;  %v7319_v6 = vld [vmem:[#allocation18 + $0xe8] sm:$0xff] }
0x1585   :  { %6597 = vmatprep.mubr.f32.mxu1 %v17100_v20 }
0x1588   :  { %9674 = vmatmul.mubr.msk.f32.gmra.mrb[80].mxu1 %vm5942_vm10, %v9658_v22  ;;  %v7321_v22 = vld [vmem:[#allocation18 + $0xf8] sm:$0xff] }
0x1589   :  { %7023 = vmatprep.mubr.f32.mxu1 %v17100_v20 }
0x158c   :  { %9691 = vmatmul.mubr.msk.f32.vlgmr.msra.gmra.mrb[50].mxu1 %vm5942_vm10, %v9675_v9  ;;  %v7318_v9 = vld [vmem:[#allocation18 + $0xe0] sm:$0xff] }
0x158d   :  { %7029 = vmatprep.mubr.f32.mxu1 %v17100_v20  ;;  %11523 = vmatpush1.bf16.msra.mxu1 %v11458_v42  ;;  %v11498_v42 = vpack.c.bf16 %v7332_v29, %v7330_v41 }
0x158e   :  { %11525 = vmatprep.subr.bf16.mxu1 %v11460_v43  ;;  %v11500_v43 = vpack.c.bf16 %v7337_v59, %v7335_v33 }
0x1590   :  { %9692 = vmatmul.mubr.msk.f32.gmra.mrb[52].mxu1 %vm5942_vm10, %v9676_v18  ;;  %v11484_v18 = vpack.c.bf16 %v7321_v22, %v7319_v6 }
0x1591   :  { %7035 = vmatprep.mubr.f32.mxu1 %v17100_v20  ;;  %11527 = vmatpush1.bf16.msra.mxu1 %v11462_v11  ;;  %v11502_v11 = vpack.c.bf16 %v7336_v15, %v7334_v46 }
0x1592   :  { %11529 = vmatprep.subr.bf16.mxu1 %v11464_v17  ;;  %11485 = vmatprep.subr.bf16.mxu0 %v11484_v18  ;;  %v7338_v17 = vld [vmem:[#allocation18 + $0x180] sm:$0xff] }
0x1594   :  { %9693 = vmatmul.mubr.msk.f32.gmra.mrb[54].mxu1 %vm5942_vm10, %v9677_v27  ;;  %v7320_v27 = vld [vmem:[#allocation18 + $0xf0] sm:$0xff] }
0x1595   :  { %7041 = vmatprep.mubr.f32.mxu1 %v17100_v20  ;;  %11531 = vmatpush1.bf16.msra.mxu1 %v11466_v36  ;;  %v11506_v36 = vpack.c.bf16 %v7340_v58, %v7338_v17 }
0x1596   :  { %11533 = vmatprep.subr.bf16.mxu1 %v11468_v55  ;;  %v7342_v55 = vld [vmem:[#allocation18 + $0x1a0] sm:$0xff] }
0x1598   :  { %9694 = vmatmul.mubr.msk.f32.gmra.mrb[56].mxu1 %vm5942_vm10, %v9678_v50  ;;  %v11486_v50 = vpack.c.bf16 %v7320_v27, %v7318_v9 }
0x1599   :  { %7047 = vmatprep.mubr.f32.mxu1 %v17100_v20  ;;  %11535 = vmatpush1.bf16.msra.mxu1 %v11470_v53  ;;  %v11510_v53 = vpack.c.bf16 %v7344_v44, %v7342_v55 }
0x159a   :  { %11537 = vmatprep.subr.bf16.mxu1 %v11472_v10  ;;  %11487 = vmatpush1.bf16.msra.mxu0 %v11486_v50  ;;  %v11512_v10 = vpack.c.bf16 %v7349_v1, %v7347_v37 }
0x159c   :  { %9695 = vmatmul.mubr.msk.f32.gmra.mrb[58].mxu1 %vm5942_vm10, %v9679_v16  ;;  %v7323_v16 = vld [vmem:[#allocation18 + $0x108] sm:$0xff] }
0x159d   :  { %7053 = vmatprep.mubr.f32.mxu1 %v17100_v20  ;;  %11539 = vmatpush1.bf16.msra.mxu1 %v11474_v24  ;;  %v7351_v24 = vld [vmem:[#allocation18 + $0x1e8] sm:$0xff] }
0x159e   :  { %11541 = vmatprep.subr.bf16.mxu1 %v11476_v0  ;;  %v11516_v35 = vpack.c.bf16 %v7353_v57, %v7351_v24  ;;  %v7350_v0 = vld [vmem:[#allocation18 + $0x1e0] sm:$0xff] }
0x15a0   :  { %9696 = vmatmul.mubr.msk.f32.gmra.mrb[60].mxu1 %vm5942_vm10, %v9680_v31  ;;  %v7325_v31 = vld [vmem:[#allocation18 + $0x118] sm:$0xff] }
0x15a1   :  { %7059 = vmatprep.mubr.f32.mxu1 %v17100_v20  ;;  %11543 = vmatpush1.bf16.msra.mxu1 %v11478_v62  ;;  %v11518_v62 = vpack.c.bf16 %v7352_v60, %v7350_v0 }
0x15a2   :  { %11545 = vmatprep.subr.bf16.mxu1 %v11480_v14 }
0x15a4   :  { %9697 = vmatmul.mubr.msk.f32.gmra.mrb[62].mxu1 %vm5942_vm10, %v9681_v51  ;;  %v7322_v51 = vld [vmem:[#allocation18 + $0x100] sm:$0xff] }
0x15a5   :  { %7065 = vmatprep.mubr.f32.mxu1 %v17100_v20  ;;  %11547 = vmatpush1.bf16.msra.mxu1 %v11482_v2 }
0x15a6   :  { %11549 = vmatprep.subr.bf16.mxu1 %v11484_v18 }
0x15a8   :  { %9698 = vmatmul.mubr.msk.f32.gmra.mrb[64].mxu1 %vm5942_vm10, %v9682_v34  ;;  %v11488_v34 = vpack.c.bf16 %v7325_v31, %v7323_v16 }
0x15a9   :  { %7071 = vmatprep.mubr.f32.mxu1 %v17100_v20  ;;  %11551 = vmatpush1.bf16.msra.mxu1 %v11486_v50 }
0x15aa   :  { %11489 = vmatprep.subr.bf16.mxu0 %v11488_v34  ;;  %11553 = vmatprep.subr.bf16.mxu1 %v11488_v34 }
0x15ac   :  { %9699 = vmatmul.mubr.msk.f32.gmra.mrb[66].mxu1 %vm5942_vm10, %v9683_v8  ;;  %v7324_v8 = vld [vmem:[#allocation18 + $0x110] sm:$0xff] }
0x15ad   :  { %7077 = vmatprep.mubr.f32.mxu1 %v17100_v20 }
0x15b0   :  { %9700 = vmatmul.mubr.msk.f32.gmra.mrb[68].mxu1 %vm5942_vm10, %v9684_v28  ;;  %v11490_v28 = vpack.c.bf16 %v7324_v8, %v7322_v51 }
0x15b1   :  { %7083 = vmatprep.mubr.f32.mxu1 %v17100_v20 }
0x15b2   :  { %11491 = vmatpush1.bf16.msra.mxu0 %v11490_v28  ;;  %11555 = vmatpush1.bf16.msra.mxu1 %v11490_v28 }
0x15b4   :  { %9701 = vmatmul.mubr.msk.f32.gmra.mrb[70].mxu1 %vm5942_vm10, %v9685_v21  ;;  %v7327_v21 = vld [vmem:[#allocation18 + $0x128] sm:$0xff] }
0x15b5   :  { %7089 = vmatprep.mubr.f32.mxu1 %v17100_v20 }
0x15b8   :  { %9702 = vmatmul.mubr.msk.f32.gmra.mrb[72].mxu1 %vm5942_vm10, %v9686_v30  ;;  %v7329_v30 = vld [vmem:[#allocation18 + $0x138] sm:$0xff] }
0x15b9   :  { %7095 = vmatprep.mubr.f32.mxu1 %v17100_v20 }
0x15bc   :  { %9703 = vmatmul.mubr.msk.f32.gmra.mrb[74].mxu1 %vm5942_vm10, %v9687_v38  ;;  %v7326_v38 = vld [vmem:[#allocation18 + $0x120] sm:$0xff] }
0x15bd   :  { %7101 = vmatprep.mubr.f32.mxu1 %v17100_v20 }
0x15c0   :  { %9704 = vmatmul.mubr.msk.f32.gmra.mrb[76].mxu1 %vm5942_vm10, %v9688_v52  ;;  %v11492_v52 = vpack.c.bf16 %v7329_v30, %v7327_v21 }
0x15c1   :  { %7107 = vmatprep.mubr.f32.mxu1 %v17100_v20 }
0x15c2   :  { %11493 = vmatprep.subr.bf16.mxu0 %v11492_v52  ;;  %11557 = vmatprep.subr.bf16.mxu1 %v11492_v52 }
0x15c4   :  { %9705 = vmatmul.mubr.msk.f32.gmra.mrb[78].mxu1 %vm5942_vm10, %v9689_v12  ;;  %v7328_v12 = vld [vmem:[#allocation18 + $0x130] sm:$0xff] }
0x15c5   :  { %7113 = vmatprep.mubr.f32.mxu1 %v17100_v20 }
0x15c8   :  { %9706 = vmatmul.mubr.msk.f32.gmra.mrb[80].mxu1 %vm5942_vm10, %v9690_v47  ;;  %v11494_v47 = vpack.c.bf16 %v7328_v12, %v7326_v38 }
0x15ca   :  { %11495 = vmatpush1.bf16.msra.mxu0 %v11494_v47  ;;  %11559 = vmatpush1.bf16.msra.mxu1 %v11494_v47 }
0x15cb   :  { %11497 = vmatprep.subr.bf16.mxu0 %v11496_v48  ;;  %11561 = vmatprep.subr.bf16.mxu1 %v11496_v48 }
0x15ce   :  { %11499 = vmatpush1.bf16.msra.mxu0 %v11498_v42  ;;  %11563 = vmatpush1.bf16.msra.mxu1 %v11498_v42 }
0x15cf   :  { %11501 = vmatprep.subr.bf16.mxu0 %v11500_v43  ;;  %11565 = vmatprep.subr.bf16.mxu1 %v11500_v43 }
0x15d2   :  { %11503 = vmatpush1.bf16.msra.mxu0 %v11502_v11  ;;  %11567 = vmatpush1.bf16.msra.mxu1 %v11502_v11 }
0x15d3   :  { %11505 = vmatprep.subr.bf16.mxu0 %v11504_v19  ;;  %11569 = vmatprep.subr.bf16.mxu1 %v11504_v19 }
0x15d6   :  { %11507 = vmatpush1.bf16.msra.mxu0 %v11506_v36  ;;  %11571 = vmatpush1.bf16.msra.mxu1 %v11506_v36 }
0x15d7   :  { %11509 = vmatprep.subr.bf16.mxu0 %v11508_v40  ;;  %11573 = vmatprep.subr.bf16.mxu1 %v11508_v40 }
0x15da   :  { %11511 = vmatpush1.bf16.msra.mxu0 %v11510_v53  ;;  %11575 = vmatpush1.bf16.msra.mxu1 %v11510_v53 }
0x15db   :  { %11513 = vmatprep.subr.bf16.mxu0 %v11512_v10  ;;  %11577 = vmatprep.subr.bf16.mxu1 %v11512_v10 }
0x15de   :  { %11515 = vmatpush1.bf16.msra.mxu0 %v11514_v4  ;;  %11579 = vmatpush1.bf16.msra.mxu1 %v11514_v4 }
0x15df   :  { %11517 = vmatprep.subr.bf16.mxu0 %v11516_v35  ;;  %11581 = vmatprep.subr.bf16.mxu1 %v11516_v35 }
0x15e2   :  { %11519 = vmatpush1.bf16.msra.mxu0 %v11518_v62  ;;  %11583 = vmatpush1.bf16.msra.mxu1 %v11518_v62 }
0x165f   :  { %v15511_v61 = vpop.f32.mrb[50].mxu1 }
0x1660   :  { %v15513_v32 = vpop.f32.mrb[51].mxu1 }
0x1663   :  { %v15515_v3 = vpop.f32.mrb[52].mxu1 }
0x1664   :  { %v7248_v14 = vadd.f32 %v15515_v3, %v15511_v61  ;;  %v15519_v45 = vpop.f32.mrb[53].mxu1 }
0x1665   :  { %v7269_v2 = vadd.f32 %v15519_v45, %v15513_v32 }
0x1667   :  { %v15523_v6 = vpop.f32.mrb[54].mxu1 }
0x1668   :  { %v7249_v22 = vadd.f32 %v7248_v14, %v15523_v6  ;;  %v15526_v9 = vpop.f32.mrb[55].mxu1 }
0x1669   :  { %v7270_v18 = vadd.f32 %v7269_v2, %v15526_v9 }
0x166b   :  { %v15529_v27 = vpop.f32.mrb[56].mxu1 }
0x166c   :  { %v7250_v50 = vadd.f32 %v7249_v22, %v15529_v27  ;;  %v15532_v16 = vpop.f32.mrb[57].mxu1 }
0x166d   :  { %v7271_v31 = vadd.f32 %v7270_v18, %v15532_v16 }
0x166f   :  { %v15535_v51 = vpop.f32.mrb[58].mxu1 }
0x1670   :  { %v7251_v34 = vadd.f32 %v7250_v50, %v15535_v51  ;;  %v15538_v8 = vpop.f32.mrb[59].mxu1 }
0x1671   :  { %v7272_v28 = vadd.f32 %v7271_v31, %v15538_v8 }
0x1673   :  { %v15541_v21 = vpop.f32.mrb[60].mxu1 }
0x1674   :  { %v7252_v30 = vadd.f32 %v7251_v34, %v15541_v21  ;;  %v15544_v38 = vpop.f32.mrb[61].mxu1 }
0x1675   :  { %v7273_v52 = vadd.f32 %v7272_v28, %v15544_v38 }
0x1677   :  { %v15547_v12 = vpop.f32.mrb[62].mxu1 }
0x1678   :  { %v7253_v47 = vadd.f32 %v7252_v30, %v15547_v12  ;;  %v15550_v23 = vpop.f32.mrb[63].mxu1 }
0x1679   :  { %v7274_v56 = vadd.f32 %v7273_v52, %v15550_v23 }
0x167b   :  { %v15553_v41 = vpop.f32.mrb[64].mxu1 }
0x167c   :  { %v7254_v48 = vadd.f32 %v7253_v47, %v15553_v41  ;;  %v15556_v29 = vpop.f32.mrb[65].mxu1 }
0x167d   :  { %v7275_v42 = vadd.f32 %v7274_v56, %v15556_v29 }
0x167f   :  { %v15559_v33 = vpop.f32.mrb[66].mxu1 }
0x1680   :  { %v7255_v59 = vadd.f32 %v7254_v48, %v15559_v33  ;;  %v15562_v46 = vpop.f32.mrb[67].mxu1 }
0x1681   :  { %v7276_v43 = vadd.f32 %v7275_v42, %v15562_v46 }
0x1683   :  { %v15565_v15 = vpop.f32.mrb[68].mxu1 }
0x1684   :  { %v7256_v11 = vadd.f32 %v7255_v59, %v15565_v15  ;;  %v15568_v63 = vpop.f32.mrb[69].mxu1  ;;  %v7817_v59 = vld [vmem:[%s17042_s24 + $0x8] sm:$0xff] }
0x1685   :  { %v7277_v13 = vadd.f32 %v7276_v43, %v15568_v63  ;;  %v7819_v43 = vld [vmem:[%s17042_s24 + $0x18] sm:$0xff] }
0x1687   :  { %v15571_v19 = vpop.f32.mrb[70].mxu1 }
0x1688   :  { %v7257_v17 = vadd.f32 %v7256_v11, %v15571_v19  ;;  %v15574_v58 = vpop.f32.mrb[71].mxu1  ;;  %v7816_v11 = vld [vmem:[%s17042_s24] sm:$0xff] }
0x1689   :  { %v7278_v36 = vadd.f32 %v7277_v13, %v15574_v58  ;;  %v11584_v13 = vpack.c.bf16 %v7819_v43, %v7817_v59  ;;  %v7834_v59 = vld [vmem:[%s17042_s24 + $0x90] sm:$0xff]  ;;  %v7837_v43 = vld [vmem:[%s17042_s24 + $0xa8] sm:$0xff] }
0x168b   :  { %v15577_v49 = vpop.f32.mrb[72].mxu1  ;;  %11585 = vmatprep.subr.bf16.mxu0 %v11584_v13 }
0x168c   :  { %v7258_v25 = vadd.f32 %v7257_v17, %v15577_v49  ;;  %v15580_v40 = vpop.f32.mrb[73].mxu1  ;;  %v7818_v17 = vld [vmem:[%s17042_s24 + $0x10] sm:$0xff] }
0x168d   :  { %v7279_v55 = vadd.f32 %v7278_v36, %v15580_v40  ;;  %v7821_v36 = vld [vmem:[%s17042_s24 + $0x28] sm:$0xff] }
0x168f   :  { %v15583_v44 = vpop.f32.mrb[74].mxu1 }
0x1690   :  { %v7259_v53 = vadd.f32 %v7258_v25, %v15583_v44  ;;  %v15586_v37 = vpop.f32.mrb[75].mxu1  ;;  %v7823_v25 = vld [vmem:[%s17042_s24 + $0x38] sm:$0xff] }
0x1691   :  { %v7280_v1 = vadd.f32 %v7279_v55, %v15586_v37  ;;  %v11586_v55 = vpack.c.bf16 %v7818_v17, %v7816_v11  ;;  %v7839_v11 = vld [vmem:[%s17042_s24 + $0xb8] sm:$0xff] }
0x1692   :  { %v11604_v17 = vpack.c.bf16 %v7839_v11, %v7837_v43 }
0x1693   :  { %v15589_v5 = vpop.f32.mrb[76].mxu1 }
0x1694   :  { %v7260_v10 = vadd.f32 %v7259_v53, %v15589_v5  ;;  %v15592_v54 = vpop.f32.mrb[77].mxu1  ;;  %v11588_v53 = vpack.c.bf16 %v7823_v25, %v7821_v36  ;;  %v7836_v36 = vld [vmem:[%s17042_s24 + $0xa0] sm:$0xff]  ;;  %v7838_v25 = vld [vmem:[%s17042_s24 + $0xb0] sm:$0xff] }
0x1695   :  { %v7281_v24 = vadd.f32 %v7280_v1, %v15592_v54  ;;  %v7820_v1 = vld [vmem:[%s17042_s24 + $0x20] sm:$0xff] }
0x1697   :  { %v15595_v57 = vpop.f32.mrb[78].mxu1 }
0x1698   :  { %v7261_v4 = vadd.f32 %v7260_v10, %v15595_v57  ;;  %v15598_v35 = vpop.f32.mrb[79].mxu1  ;;  %v7822_v10 = vld [vmem:[%s17042_s24 + $0x30] sm:$0xff] }
0x1699   :  { %v7282_v0 = vadd.f32 %v7281_v24, %v15598_v35  ;;  %v7825_v24 = vld [vmem:[%s17042_s24 + $0x48] sm:$0xff] }
0x169b   :  { %v15601_v60 = vpop.f32.mrb[80].mxu1 }
0x169c   :  { %v7262_v62 = vadd.f32 %v7261_v4, %v15601_v60  ;;  %v15604_v14 = vpop.f32.mrb[81].mxu1  ;;  %v7827_v4 = vld [vmem:[%s17042_s24 + $0x58] sm:$0xff] }
0x169d   :  { %v7283_v2 = vadd.f32 %v7282_v0, %v15604_v14  ;;  %v11590_v0 = vpack.c.bf16 %v7822_v10, %v7820_v1  ;;  %v11606_v1 = vpack.c.bf16 %v7838_v25, %v7836_v36 }
0x169e   :  { %v7263_v22 = vrot.slane %v7262_v62, 4 }
0x169f   :  { %v7284_v18 = vrot.slane %v7283_v2, 4 }
0x16a0   :  { %v7264_v50 = vadd.f32 %v7263_v22, %v7262_v62  ;;  %v11592_v62 = vpack.c.bf16 %v7827_v4, %v7825_v24  ;;  %v7826_v22 = vld [vmem:[%s17042_s24 + $0x50] sm:$0xff]  ;;  %v7840_v24 = vld [vmem:[%s17042_s24 + $0xc0] sm:$0xff] }
0x16a1   :  { %v7285_v31 = vadd.f32 %v7284_v18, %v7283_v2  ;;  %v7824_v2 = vld [vmem:[%s17042_s24 + $0x40] sm:$0xff]  ;;  %v7829_v18 = vld [vmem:[%s17042_s24 + $0x68] sm:$0xff]  ;;  %v7842_v4 = vld [vmem:[%s17042_s24 + $0xd0] sm:$0xff] }
0x16a2   :  { %v7265_v34 = vrot.slane %v7264_v50, 2 }
0x16a3   :  { %v7286_v28 = vrot.slane %v7285_v31, 2 }
0x16a4   :  { %v7266_v30 = vadd.f32 %v7265_v34, %v7264_v50  ;;  %v7831_v50 = vld [vmem:[%s17042_s24 + $0x78] sm:$0xff] }
0x16a5   :  { %v7287_v52 = vadd.f32 %v7286_v28, %v7285_v31  ;;  %v11594_v31 = vpack.c.bf16 %v7826_v22, %v7824_v2  ;;  %v11596_v34 = vpack.c.bf16 %v7831_v50, %v7829_v18  ;;  %v7828_v28 = vld [vmem:[%s17042_s24 + $0x60] sm:$0xff]  ;;  %v11610_v2 = vpack.c.bf16 %v7842_v4, %v7840_v24  ;;  %v7846_v50 = vld [vmem:[%s17042_s24 + $0xf0] sm:$0xff] }
0x16a6   :  { %v7267_v47 = vrot.slane %v7266_v30, 1  ;;  %v7844_v18 = vld [vmem:[%s17042_s24 + $0xe0] sm:$0xff] }
0x16a7   :  { %v7288_v56 = vrot.slane %v7287_v52, 1 }
0x16a8   :  { %v7268_v42 = vadd.f32 %v7267_v47, %v7266_v30  ;;  %v7830_v30 = vld [vmem:[%s17042_s24 + $0x70] sm:$0xff]  ;;  %v7835_v47 = vld [vmem:[%s17042_s24 + $0x98] sm:$0xff] }
0x16a9   :  { %v7289_v48 = vadd.f32 %v7288_v56, %v7287_v52  ;;  %v7833_v52 = vld [vmem:[%s17042_s24 + $0x88] sm:$0xff]  ;;  %v11598_v56 = vpack.c.bf16 %v7830_v30, %v7828_v28 }
0x16ab   :  { %7418 = vmatprep.mubr.f32.mxu0 %v7289_v48  ;;  %v11600_v48 = vpack.c.bf16 %v7835_v47, %v7833_v52 }
0x16ac   :  { %7419 = vmatmul.mubr.f32.vlgmr.msra.gmra.mrb[90].mxu0 %v7268_v42  ;;  %v7832_v42 = vld [vmem:[%s17042_s24 + $0x80] sm:$0xff] }
0x16ad   :  { %11587 = vmatpush1.bf16.msra.mxu0 %v11586_v55  ;;  %v11602_v13 = vpack.c.bf16 %v7834_v59, %v7832_v42  ;;  %v7841_v55 = vld [vmem:[%s17042_s24 + $0xc8] sm:$0xff] }
0x16ae   :  { %11589 = vmatprep.subr.bf16.mxu0 %v11588_v53  ;;  %v7843_v53 = vld [vmem:[%s17042_s24 + $0xd8] sm:$0xff] }
0x16af   :  { %v11608_v10 = vpack.c.bf16 %v7843_v53, %v7841_v55 }
0x16b1   :  { %11591 = vmatpush1.bf16.msra.mxu0 %v11590_v0  ;;  %v7845_v0 = vld [vmem:[%s17042_s24 + $0xe8] sm:$0xff] }
0x16b2   :  { %11593 = vmatprep.subr.bf16.mxu0 %v11592_v62  ;;  %v7847_v62 = vld [vmem:[%s17042_s24 + $0xf8] sm:$0xff] }
0x16b3   :  { %v11612_v22 = vpack.c.bf16 %v7847_v62, %v7845_v0 }
0x16b5   :  { %11595 = vmatpush1.bf16.msra.mxu0 %v11594_v31  ;;  %v11614_v31 = vpack.c.bf16 %v7846_v50, %v7844_v18 }
0x16b6   :  { %11597 = vmatprep.subr.bf16.mxu0 %v11596_v34 }
0x16b9   :  { %11599 = vmatpush1.bf16.msra.mxu0 %v11598_v56 }
0x16ba   :  { %11601 = vmatprep.subr.bf16.mxu0 %v11600_v48 }
0x16bd   :  { %11603 = vmatpush1.bf16.msra.mxu0 %v11602_v13 }
0x16be   :  { %11605 = vmatprep.subr.bf16.mxu0 %v11604_v17 }
0x16c1   :  { %11607 = vmatpush1.bf16.msra.mxu0 %v11606_v1 }
0x16c2   :  { %11609 = vmatprep.subr.bf16.mxu0 %v11608_v10 }
0x16c5   :  { %11611 = vmatpush1.bf16.msra.mxu0 %v11610_v2 }
0x16c6   :  { %11613 = vmatprep.subr.bf16.mxu0 %v11612_v22 }
0x16c9   :  { %11615 = vmatpush1.bf16.msra.mxu0 %v11614_v31 }
0x177f   :  { %v7420_v34 = vpop.f32.mrb[90].mxu0 }
0x1780   :  { %v7428_v28 = vrot.slane %v7420_v34, %v13843_v26  ;;  %v7422_v30 = vpop.f32.mrb[91].mxu0 }
0x1781   :  { %v7432_v52 = vrot.slane %v7422_v30, %v13843_v26 }
0x1782   :  { %v15706_v47 = vsub.f32 %v15511_v61, %v7428_v28  ;;  %v15709_v56 = vsub.f32 %v15515_v3, %v7428_v28  ;;  %v15712_v48 = vsub.f32 %v15523_v6, %v7428_v28  ;;  %v15715_v42 = vsub.f32 %v15529_v27, %v7428_v28 }
0x1783   :  { %v15718_v59 = vsub.f32 %v15513_v32, %v7432_v52  ;;  %v15721_v43 = vsub.f32 %v15519_v45, %v7432_v52  ;;  %v15724_v11 = vsub.f32 %v15526_v9, %v7432_v52  ;;  %v15727_v61 = vsub.f32 %v15532_v16, %v7432_v52 }
0x1784   :  { %v15730_v3 = vsub.f32 %v15538_v8, %v7432_v52  ;;  %v15733_v6 = vsub.f32 %v15544_v38, %v7432_v52  ;;  %v15736_v27 = vsub.f32 %v15550_v23, %v7432_v52  ;;  %v15739_v32 = vsub.f32 %v15556_v29, %v7432_v52 }
0x1785   :  { %v15742_v45 = vsub.f32 %v15562_v46, %v7432_v52  ;;  %v15745_v9 = vsub.f32 %v15568_v63, %v7432_v52  ;;  %v15748_v16 = vsub.f32 %v15574_v58, %v7432_v52  ;;  %v15751_v8 = vsub.f32 %v15580_v40, %v7432_v52 }
0x1786   :  { %v15754_v38 = vsub.f32 %v15586_v37, %v7432_v52  ;;  %v15757_v23 = vsub.f32 %v15592_v54, %v7432_v52  ;;  %v15760_v29 = vsub.f32 %v15598_v35, %v7432_v52  ;;  %v15763_v46 = vsub.f32 %v15604_v14, %v7432_v52 }
0x1787   :  { %v7466_v63 = vmul.f32 %v15718_v59, %v15718_v59  ;;  %v7468_v58 = vmul.f32 %v15721_v43, %v15721_v43  ;;  %v7470_v40 = vmul.f32 %v15724_v11, %v15724_v11  ;;  %v7472_v37 = vmul.f32 %v15727_v61, %v15727_v61 }
0x1788   :  { %v15774_v13 = vsub.f32 %v15535_v51, %v7428_v28  ;;  %v15777_v35 = vsub.f32 %v15541_v21, %v7428_v28  ;;  %v15780_v14 = vsub.f32 %v15547_v12, %v7428_v28  ;;  %v15783_v17 = vsub.f32 %v15553_v41, %v7428_v28 }
0x1789   :  { %v7518_v54 = vadd.f32 %v7468_v58, %v7466_v63  ;;  %v15786_v36 = vsub.f32 %v15559_v33, %v7428_v28  ;;  %v15789_v25 = vsub.f32 %v15565_v15, %v7428_v28  ;;  %v15792_v55 = vsub.f32 %v15571_v19, %v7428_v28 }
0x178a   :  { %v15795_v53 = vsub.f32 %v15577_v49, %v7428_v28  ;;  %v15798_v21 = vsub.f32 %v15583_v44, %v7428_v28  ;;  %v15801_v12 = vsub.f32 %v15589_v5, %v7428_v28  ;;  %v15804_v41 = vsub.f32 %v15595_v57, %v7428_v28 }
0x178b   :  { %v7519_v51 = vadd.f32 %v7518_v54, %v7470_v40  ;;  %v15807_v33 = vsub.f32 %v15601_v60, %v7428_v28  ;;  %v7474_v15 = vmul.f32 %v15730_v3, %v15730_v3  ;;  %v7465_v49 = vmul.f32 %v15706_v47, %v15706_v47 }
0x178c   :  { %v7467_v44 = vmul.f32 %v15709_v56, %v15709_v56  ;;  %v7476_v5 = vmul.f32 %v15733_v6, %v15733_v6  ;;  %v7478_v57 = vmul.f32 %v15736_v27, %v15736_v27  ;;  %v7469_v60 = vmul.f32 %v15712_v48, %v15712_v48 }
0x178d   :  { %v7520_v19 = vadd.f32 %v7519_v51, %v7472_v37  ;;  %v7480_v4 = vmul.f32 %v15739_v32, %v15739_v32  ;;  %v7471_v62 = vmul.f32 %v15715_v42, %v15715_v42  ;;  %v7482_v22 = vmul.f32 %v15742_v45, %v15742_v45 }
0x178e   :  { %v7497_v24 = vadd.f32 %v7467_v44, %v7465_v49  ;;  %v7473_v50 = vmul.f32 %v15774_v13, %v15774_v13  ;;  %v7484_v34 = vmul.f32 %v15745_v9, %v15745_v9  ;;  %v7475_v30 = vmul.f32 %v15777_v35, %v15777_v35 }
0x178f   :  { %v7521_v1 = vadd.f32 %v7520_v19, %v7474_v15  ;;  %v7486_v63 = vmul.f32 %v15748_v16, %v15748_v16  ;;  %v7477_v40 = vmul.f32 %v15780_v14, %v15780_v14  ;;  %v7488_v54 = vmul.f32 %v15751_v8, %v15751_v8 }
0x1790   :  { %v7498_v2 = vadd.f32 %v7497_v24, %v7469_v60  ;;  %v7479_v15 = vmul.f32 %v15783_v17, %v15783_v17  ;;  %v7490_v49 = vmul.f32 %v15754_v38, %v15754_v38  ;;  %v7483_v60 = vmul.f32 %v15789_v25, %v15789_v25 }
0x1791   :  { %v7522_v10 = vadd.f32 %v7521_v1, %v7476_v5  ;;  %v7481_v5 = vmul.f32 %v15786_v36, %v15786_v36 }
0x1792   :  { %v7499_v31 = vadd.f32 %v7498_v2, %v7471_v62  ;;  %v7485_v62 = vmul.f32 %v15792_v55, %v15792_v55 }
0x1793   :  { %v7523_v0 = vadd.f32 %v7522_v10, %v7478_v57  ;;  %v7492_v57 = vmul.f32 %v15757_v23, %v15757_v23 }
0x1794   :  { %v7500_v52 = vadd.f32 %v7499_v31, %v7473_v50  ;;  %v7487_v50 = vmul.f32 %v15795_v53, %v15795_v53 }
0x1795   :  { %v7524_v18 = vadd.f32 %v7523_v0, %v7480_v4  ;;  %v7494_v4 = vmul.f32 %v15760_v29, %v15760_v29 }
0x1796   :  { %v7501_v37 = vadd.f32 %v7500_v52, %v7475_v30 }
0x1797   :  { %v7525_v28 = vadd.f32 %v7524_v18, %v7482_v22  ;;  %v7496_v22 = vmul.f32 %v15763_v46, %v15763_v46 }
0x1798   :  { %v7502_v19 = vadd.f32 %v7501_v37, %v7477_v40  ;;  %v7493_v37 = vmul.f32 %v15804_v41, %v15804_v41 }
0x1799   :  { %v7526_v58 = vadd.f32 %v7525_v28, %v7484_v34  ;;  %v7489_v28 = vmul.f32 %v15798_v21, %v15798_v21 }
0x179a   :  { %v7503_v1 = vadd.f32 %v7502_v19, %v7479_v15  ;;  %v7495_v15 = vmul.f32 %v15807_v33, %v15807_v33 }
0x179b   :  { %v7527_v51 = vadd.f32 %v7526_v58, %v7486_v63  ;;  %v7491_v63 = vmul.f32 %v15801_v12, %v15801_v12 }
0x179c   :  { %v7504_v24 = vadd.f32 %v7503_v1, %v7481_v5 }
0x179d   :  { %v7528_v44 = vadd.f32 %v7527_v51, %v7488_v54 }
0x179e   :  { %v7505_v2 = vadd.f32 %v7504_v24, %v7483_v60 }
0x179f   :  { %v7529_v10 = vadd.f32 %v7528_v44, %v7490_v49 }
0x17a0   :  { %v7506_v31 = vadd.f32 %v7505_v2, %v7485_v62  ;;  %v7849_v62 = vld [vmem:[%s17042_s24 + $0x108] sm:$0xff]  ;;  %v7851_v2 = vld [vmem:[%s17042_s24 + $0x118] sm:$0xff] }
0x17a1   :  { %v7530_v0 = vadd.f32 %v7529_v10, %v7492_v57 }
0x17a2   :  { %v7507_v30 = vadd.f32 %v7506_v31, %v7487_v50  ;;  %v7850_v50 = vld [vmem:[%s17042_s24 + $0x110] sm:$0xff] }
0x17a3   :  { %v7531_v18 = vadd.f32 %v7530_v0, %v7494_v4 }
0x17a4   :  { %v7508_v58 = vadd.f32 %v7507_v30, %v7489_v28  ;;  %v7855_v28 = vld [vmem:[%s17042_s24 + $0x138] sm:$0xff] }
0x17a5   :  { %v7532_v34 = vadd.f32 %v7531_v18, %v7496_v22  ;;  %v11616_v22 = vpack.c.bf16 %v7851_v2, %v7849_v62  ;;  %v7848_v18 = vld [vmem:[%s17042_s24 + $0x100] sm:$0xff]  ;;  %v7866_v62 = vld [vmem:[%s17042_s24 + $0x190] sm:$0xff] }
0x17a6   :  { %v7509_v54 = vadd.f32 %v7508_v58, %v7491_v63  ;;  %v11618_v31 = vpack.c.bf16 %v7850_v50, %v7848_v18  ;;  %v7854_v63 = vld [vmem:[%s17042_s24 + $0x130] sm:$0xff]  ;;  %v7871_v18 = vld [vmem:[%s17042_s24 + $0x1b8] sm:$0xff] }
0x17a7   :  { %v7533_v52 = vrot.slane %v7532_v34, 4  ;;  %11617 = vmatprep.subr.bf16.mxu0 %v11616_v22  ;;  %v7869_v22 = vld [vmem:[%s17042_s24 + $0x1a8] sm:$0xff] }
0x17a8   :  { %v7510_v19 = vadd.f32 %v7509_v54, %v7493_v37  ;;  %11619 = vmatpush1.bf16.msra.mxu0 %v11618_v31  ;;  %v7859_v37 = vld [vmem:[%s17042_s24 + $0x158] sm:$0xff]  ;;  %v11636_v50 = vpack.c.bf16 %v7871_v18, %v7869_v22  ;;  %v7868_v31 = vld [vmem:[%s17042_s24 + $0x1a0] sm:$0xff] }
0x17a9   :  { %v7534_v40 = vadd.f32 %v7533_v52, %v7532_v34  ;;  %v7853_v34 = vld [vmem:[%s17042_s24 + $0x128] sm:$0xff]  ;;  %v7852_v52 = vld [vmem:[%s17042_s24 + $0x120] sm:$0xff] }
0x17aa   :  { %v7511_v44 = vadd.f32 %v7510_v19, %v7495_v15  ;;  %v11620_v30 = vpack.c.bf16 %v7855_v28, %v7853_v34  ;;  %v11622_v58 = vpack.c.bf16 %v7854_v63, %v7852_v52  ;;  %v7858_v15 = vld [vmem:[%s17042_s24 + $0x150] sm:$0xff]  ;;  %v7875_v52 = vld [vmem:[%s17042_s24 + $0x1d8] sm:$0xff]  ;;  %v7872_v63 = vld [vmem:[%s17042_s24 + $0x1c0] sm:$0xff] }
0x17ab   :  { %v7535_v51 = vrot.slane %v7534_v40, 2  ;;  %v7870_v34 = vld [vmem:[%s17042_s24 + $0x1b0] sm:$0xff]  ;;  %v7539_v18 = vld [vmem:[%s17040_s22] ss:$2 sm:$0x3] }
0x17ac   :  { %v7512_v1 = vrot.slane %v7511_v44, 4  ;;  %11621 = vmatprep.subr.bf16.mxu0 %v11620_v30  ;;  %v11638_v28 = vpack.c.bf16 %v7870_v34, %v7868_v31  ;;  %v7873_v30 = vld [vmem:[%s17042_s24 + $0x1c8] sm:$0xff]  ;;  %v9707_v31 = vld [vmem:[%s17040_s22 + $0x1] ss:$2 sm:$0x3] }
0x17ad   :  { %v7536_v49 = vadd.f32 %v7535_v51, %v7534_v40  ;;  %11623 = vmatpush1.bf16.msra.mxu0 %v11622_v58  ;;  %v7857_v40 = vld [vmem:[%s17042_s24 + $0x148] sm:$0xff]  ;;  %v7856_v51 = vld [vmem:[%s17042_s24 + $0x140] sm:$0xff]  ;;  %v11640_v58 = vpack.c.bf16 %v7875_v52, %v7873_v30  ;;  %v15980_v30 = vrot.slane %v9707_v31, %v13840_v7 }
0x17ae   :  { %v7513_v10 = vadd.f32 %v7512_v1, %v7511_v44  ;;  %v11624_v54 = vpack.c.bf16 %v7859_v37, %v7857_v40  ;;  %v11626_v19 = vpack.c.bf16 %v7858_v15, %v7856_v51  ;;  %v7863_v44 = vld [vmem:[%s17042_s24 + $0x178] sm:$0xff]  ;;  %v7860_v1 = vld [vmem:[%s17042_s24 + $0x160] sm:$0xff]  ;;  %v7874_v40 = vld [vmem:[%s17042_s24 + $0x1d0] sm:$0xff] }
0x17af   :  { %v7537_v5 = vrot.slane %v7536_v49, 1  ;;  %v7877_v37 = vld [vmem:[%s17042_s24 + $0x1e8] sm:$0xff]  ;;  %v11642_v51 = vpack.c.bf16 %v7874_v40, %v7872_v63 }
0x17b0   :  { %v7514_v60 = vrot.slane %v7513_v10, 2  ;;  %11625 = vmatprep.subr.bf16.mxu0 %v11624_v54  ;;  %v7879_v54 = vld [vmem:[%s17042_s24 + $0x1f8] sm:$0xff] }
0x17b1   :  { %v7538_v57 = vadd.f32 %v7537_v5, %v7536_v49  ;;  %11627 = vmatpush1.bf16.msra.mxu0 %v11626_v19  ;;  %v7861_v49 = vld [vmem:[%s17042_s24 + $0x168] sm:$0xff]  ;;  %v11644_v15 = vpack.c.bf16 %v7879_v54, %v7877_v37  ;;  %v7876_v19 = vld [vmem:[%s17042_s24 + $0x1e0] sm:$0xff] }
0x17b2   :  { %v7515_v24 = vadd.f32 %v7514_v60, %v7513_v10  ;;  %v11628_v5 = vpack.c.bf16 %v7863_v44, %v7861_v49  ;;  %v7865_v60 = vld [vmem:[%s17042_s24 + $0x188] sm:$0xff]  ;;  %v7878_v49 = vld [vmem:[%s17042_s24 + $0x1f0] sm:$0xff]  ;;  %v9708_v37 = vld [vmem:[%s17042_s24 + $0x200] sm:$0xff] }
0x17b3   :  { %7604 = vmatprep.mubr.f32.mxu1 %v7538_v57  ;;  %v7862_v57 = vld [vmem:[%s17042_s24 + $0x170] sm:$0xff]  ;;  %v11646_v44 = vpack.c.bf16 %v7878_v49, %v7876_v19 }
0x17b4   :  { %v7516_v4 = vrot.slane %v7515_v24, 1  ;;  %v11630_v10 = vpack.c.bf16 %v7862_v57, %v7860_v1  ;;  %11629 = vmatprep.subr.bf16.mxu0 %v11628_v5  ;;  %v9709_v5 = vld [vmem:[%s17042_s24 + $0x208] sm:$0xff]  ;;  %v9711_v1 = vld [vmem:[%s17042_s24 + $0x218] sm:$0xff] }
0x17b5   :  { %v11680_v57 = vpack.c.bf16 %v9711_v1, %v9709_v5  ;;  %v9712_v1 = vld [vmem:[%s17042_s24 + $0x220] sm:$0xff] }
0x17b6   :  { %v7517_v0 = vadd.f32 %v7516_v4, %v7515_v24  ;;  %11631 = vmatpush1.bf16.msra.mxu0 %v11630_v10  ;;  %v7867_v24 = vld [vmem:[%s17042_s24 + $0x198] sm:$0xff] }
0x17b7   :  { %v11632_v4 = vpack.c.bf16 %v7867_v24, %v7865_v60 }
0x17b8   :  { %7605 = vmatmul.mubr.f32.vlgmr.msra.gmra.mrb[98].mxu1 %v7517_v0  ;;  %v7864_v0 = vld [vmem:[%s17042_s24 + $0x180] sm:$0xff] }
0x17b9   :  { %8121 = vmatprep.mubr.f32.mxu1 %v17100_v20  ;;  %v11634_v2 = vpack.c.bf16 %v7866_v62, %v7864_v0  ;;  %11633 = vmatprep.subr.bf16.mxu0 %v11632_v4 }
0x17bb   :  { %11635 = vmatpush1.bf16.msra.mxu0 %v11634_v2 }
0x17bc   :  { %11637 = vmatprep.subr.bf16.mxu0 %v11636_v50 }
0x17bf   :  { %11639 = vmatpush1.bf16.msra.mxu0 %v11638_v28  ;;  %v15977_v28 = vrot.slane %v9707_v31, %v13843_v26 }
0x17c0   :  { %11641 = vmatprep.subr.bf16.mxu0 %v11640_v58 }
0x17c3   :  { %11643 = vmatpush1.bf16.msra.mxu0 %v11642_v51  ;;  %v9715_v51 = vld [vmem:[%s17042_s24 + $0x238] sm:$0xff] }
0x17c4   :  { %11645 = vmatprep.subr.bf16.mxu0 %v11644_v15 }
0x17c7   :  { %11647 = vmatpush1.bf16.msra.mxu0 %v11646_v44 }
0x17c8   :  { %11681 = vmatprep.subr.bf16.mxu0 %v11680_v57  ;;  %v9714_v57 = vld [vmem:[%s17042_s24 + $0x230] sm:$0xff] }
0x188b   :  { %v7606_v10 = vpop.f32.mrb[98].mxu1 }
0x188c   :  { %v7607_v60 = vadd.f32 1e-05, %v7606_v10  ;;  %v7608_v24 = vpop.f32.mrb[99].mxu1 }
0x188d   :  { %v7609_v4 = vadd.f32 1e-05, %v7608_v24  ;;  %v9717_v24 = vld [vmem:[%s17042_s24 + $0x248] sm:$0xff] }
0x188e   :  { %12061 = vrsqrt.f32 %v7607_v60 }
0x188f   :  { %12063 = vrsqrt.f32 %v7609_v4  ;;  %v9719_v4 = vld [vmem:[%s17042_s24 + $0x258] sm:$0xff] }
0x1898   :  { %v12062_v0 = vpop.eup %12061 }
0x1899   :  { %v12064_v62 = vpop.eup %12063 }
0x189a   :  { %v7615_v2 = vcombine.low %v12062_v0, %v12064_v62 }
0x189c   :  { %v7622_v22 = vrot.slane %v7615_v2, %v13822_v39 }
0x189e   :  { %v7629_v50 = vrot.slane %v7622_v22, %v13822_v39  ;;  %v11688_v22 = vpack.c.bf16 %v9719_v4, %v9717_v24  ;;  %v9729_v4 = vld [vmem:[%s17042_s24 + $0x2a8] sm:$0xff] }
0x18a0   :  { %v7631_v34 = vmul.f32 %v7629_v50, %v7539_v18  ;;  %v9716_v18 = vld [vmem:[%s17042_s24 + $0x240] sm:$0xff] }
0x18a2   :  { %v15983_v52 = vrot.slane %v7631_v34, %v13843_v26  ;;  %v15986_v63 = vrot.slane %v7631_v34, %v13840_v7  ;;  %v9710_v26 = vld [vmem:[%s17042_s24 + $0x210] sm:$0xff] }
0x18a3   :  { %v11682_v49 = vpack.c.bf16 %v9710_v26, %v9708_v37 }
0x18a4   :  { %v7644_v39 = vmul.f32 %v15986_v63, %v15718_v59  ;;  %v7643_v58 = vmul.f32 %v15983_v52, %v15706_v47  ;;  %v7646_v40 = vmul.f32 %v15986_v63, %v15721_v43  ;;  %v7645_v7 = vmul.f32 %v15983_v52, %v15709_v56  ;;  %v9713_v43 = vld [vmem:[%s17042_s24 + $0x228] sm:$0xff] }
0x18a5   :  { %v7648_v15 = vmul.f32 %v15986_v63, %v15724_v11  ;;  %v11684_v5 = vpack.c.bf16 %v9715_v51, %v9713_v43  ;;  %v7647_v10 = vmul.f32 %v15983_v52, %v15712_v48  ;;  %v7650_v0 = vmul.f32 %v15986_v63, %v15727_v61  ;;  %v9718_v61 = vld [vmem:[%s17042_s24 + $0x250] sm:$0xff]  ;;  %v9725_v51 = vld [vmem:[%s17042_s24 + $0x288] sm:$0xff] }
0x18a6   :  { %v7689_v54 = vadd.f32 %v15980_v30, %v7644_v39  ;;  %v7688_v59 = vadd.f32 %v15977_v28, %v7643_v58  ;;  %v7691_v47 = vadd.f32 %v15980_v30, %v7646_v40  ;;  %v7690_v44 = vadd.f32 %v15977_v28, %v7645_v7  ;;  %v9721_v39 = vld [vmem:[%s17042_s24 + $0x268] sm:$0xff]  ;;  %v9723_v58 = vld [vmem:[%s17042_s24 + $0x278] sm:$0xff] }
0x18a7   :  { %v7693_v60 = vadd.f32 %v15980_v30, %v7648_v15  ;;  %v11686_v48 = vpack.c.bf16 %v9714_v57, %v9712_v1  ;;  %v7692_v2 = vadd.f32 %v15977_v28, %v7647_v10  ;;  %v7649_v50 = vmul.f32 %v15983_v52, %v15715_v42  ;;  %v9727_v15 = vld [vmem:[%s17042_s24 + $0x298] sm:$0xff]  ;;  %v9724_v57 = vld [vmem:[%s17042_s24 + $0x280] sm:$0xff] }
0x18a8   :  { %v16013_v19 = vmax.f32 %v7689_v54, 0.0  ;;  %v16015_v56 = vmax.f32 %v7688_v59, 0.0  ;;  %v16027_v11 = vmax.f32 %v7691_v47, 0.0  ;;  %v16040_v62 = vmax.f32 %v7690_v44, 0.0  ;;  %v9720_v54 = vld [vmem:[%s17042_s24 + $0x260] sm:$0xff] }
0x18a9   :  { %v16051_v31 = vmax.f32 %v7693_v60, 0.0  ;;  %v7695_v34 = vadd.f32 %v15980_v30, %v7650_v0  ;;  %v7652_v40 = vmul.f32 %v15986_v63, %v15730_v3  ;;  %v11690_v42 = vpack.c.bf16 %v9718_v61, %v9716_v18  ;;  %v9722_v3 = vld [vmem:[%s17042_s24 + $0x270] sm:$0xff]  ;;  %v9731_v0 = vld [vmem:[%s17042_s24 + $0x2b8] sm:$0xff]  ;;  %v9728_v61 = vld [vmem:[%s17042_s24 + $0x2a0] sm:$0xff] }
0x18aa   :  { %7944 = vmatprep.mubr.f32.mxu0 %v16013_v19  ;;  %v16064_v37 = vmax.f32 %v7692_v2, 0.0  ;;  %v7694_v26 = vadd.f32 %v15977_v28, %v7649_v50  ;;  %v11692_v7 = vpack.c.bf16 %v9723_v58, %v9721_v39  ;;  %v7651_v59 = vmul.f32 %v15983_v52, %v15774_v13  ;;  %v9733_v58 = vld [vmem:[%s17042_s24 + $0x2c8] sm:$0xff] }
0x18ab   :  { %7945 = vmatmul.mubr.f32.vlgmr.msra.gmra.mrb[92].mxu0 %v16015_v56  ;;  %v16075_v47 = vmax.f32 %v7695_v34, 0.0  ;;  %v7697_v43 = vadd.f32 %v15980_v30, %v7652_v40  ;;  %v11694_v13 = vpack.c.bf16 %v9722_v3, %v9720_v54  ;;  %v11696_v1 = vpack.c.bf16 %v9727_v15, %v9725_v51  ;;  %v9735_v40 = vld [vmem:[%s17042_s24 + $0x2d8] sm:$0xff]  ;;  %v9732_v3 = vld [vmem:[%s17042_s24 + $0x2c0] sm:$0xff]  ;;  %v9737_v15 = vld [vmem:[%s17042_s24 + $0x2e8] sm:$0xff] }
0x18ac   :  { %7950 = vmatprep.mubr.f32.mxu0 %v16027_v11  ;;  %11683 = vmatpush1.bf16.msra.mxu0 %v11682_v49  ;;  %v7654_v49 = vmul.f32 %v15986_v63, %v15733_v6  ;;  %v16088_v44 = vmax.f32 %v7694_v26, 0.0  ;;  %v9726_v6 = vld [vmem:[%s17042_s24 + $0x290] sm:$0xff]  ;;  %v7653_v10 = vmul.f32 %v15983_v52, %v15777_v35  ;;  %v11700_v18 = vpack.c.bf16 %v9731_v0, %v9729_v4  ;;  %v9741_v0 = vld [vmem:[%s17042_s24 + $0x308] sm:$0xff] }
0x18ad   :  { %11685 = vmatprep.subr.bf16.mxu0 %v11684_v5  ;;  %v7696_v5 = vadd.f32 %v15977_v28, %v7651_v59  ;;  %v16099_v60 = vmax.f32 %v7697_v43, 0.0  ;;  %v11698_v35 = vpack.c.bf16 %v9726_v6, %v9724_v57  ;;  %v7655_v50 = vmul.f32 %v15983_v52, %v15780_v14  ;;  %v9736_v6 = vld [vmem:[%s17042_s24 + $0x2e0] sm:$0xff] }
0x18ae   :  { %v7699_v24 = vadd.f32 %v15980_v30, %v7654_v49  ;;  %v11704_v54 = vpack.c.bf16 %v9735_v40, %v9733_v58  ;;  %v7657_v59 = vmul.f32 %v15983_v52, %v15783_v17  ;;  %v9739_v49 = vld [vmem:[%s17042_s24 + $0x2f8] sm:$0xff]  ;;  %v9745_v40 = vld [vmem:[%s17042_s24 + $0x328] sm:$0xff] }
0x18af   :  { %7951 = vmatmul.mubr.f32.gmra.mrb[94].mxu0 %v16040_v62  ;;  %v16112_v2 = vmax.f32 %v7696_v5, 0.0  ;;  %v11708_v57 = vpack.c.bf16 %v9739_v49, %v9737_v15  ;;  %v9749_v49 = vld [vmem:[%s17042_s24 + $0x348] sm:$0xff] }
0x18b0   :  { %7956 = vmatprep.mubr.f32.mxu0 %v16051_v31  ;;  %11687 = vmatpush1.bf16.msra.mxu0 %v11686_v48  ;;  %v7656_v48 = vmul.f32 %v15986_v63, %v15736_v27  ;;  %v9730_v27 = vld [vmem:[%s17042_s24 + $0x2b0] sm:$0xff]  ;;  %v16123_v34 = vmax.f32 %v7699_v24, 0.0 }
0x18b1   :  { %11689 = vmatprep.subr.bf16.mxu0 %v11688_v22  ;;  %v7698_v22 = vadd.f32 %v15977_v28, %v7653_v10  ;;  %v11702_v14 = vpack.c.bf16 %v9730_v27, %v9728_v61  ;;  %v7659_v10 = vmul.f32 %v15983_v52, %v15786_v36  ;;  %v9740_v27 = vld [vmem:[%s17042_s24 + $0x300] sm:$0xff] }
0x18b2   :  { %v7701_v39 = vadd.f32 %v15980_v30, %v7656_v48  ;;  %v9743_v48 = vld [vmem:[%s17042_s24 + $0x318] sm:$0xff] }
0x18b3   :  { %7957 = vmatmul.mubr.f32.gmra.mrb[96].mxu0 %v16064_v37  ;;  %v16136_v26 = vmax.f32 %v7698_v22, 0.0  ;;  %v11712_v61 = vpack.c.bf16 %v9743_v48, %v9741_v0  ;;  %v9753_v48 = vld [vmem:[%s17042_s24 + $0x368] sm:$0xff] }
0x18b4   :  { %7962 = vmatprep.mubr.f32.mxu0 %v16075_v47  ;;  %11691 = vmatpush1.bf16.msra.mxu0 %v11690_v42  ;;  %v7658_v42 = vmul.f32 %v15986_v63, %v15739_v32  ;;  %v9734_v32 = vld [vmem:[%s17042_s24 + $0x2d0] sm:$0xff]  ;;  %v16147_v43 = vmax.f32 %v7701_v39, 0.0 }
0x18b5   :  { %11693 = vmatprep.subr.bf16.mxu0 %v11692_v7  ;;  %v7700_v7 = vadd.f32 %v15977_v28, %v7655_v50  ;;  %v11706_v17 = vpack.c.bf16 %v9734_v32, %v9732_v3  ;;  %v7661_v50 = vmul.f32 %v15983_v52, %v15789_v25  ;;  %v9744_v32 = vld [vmem:[%s17042_s24 + $0x320] sm:$0xff] }
0x18b6   :  { %v7703_v51 = vadd.f32 %v15980_v30, %v7658_v42  ;;  %v9747_v42 = vld [vmem:[%s17042_s24 + $0x338] sm:$0xff] }
0x18b7   :  { %7963 = vmatmul.mubr.f32.gmra.mrb[98].mxu0 %v16088_v44  ;;  %v16160_v5 = vmax.f32 %v7700_v7, 0.0  ;;  %v11716_v3 = vpack.c.bf16 %v9747_v42, %v9745_v40  ;;  %v9757_v42 = vld [vmem:[%s17042_s24 + $0x388] sm:$0xff] }
0x18b8   :  { %7968 = vmatprep.mubr.f32.mxu0 %v16099_v60  ;;  %11695 = vmatpush1.bf16.msra.mxu0 %v11694_v13  ;;  %v7660_v13 = vmul.f32 %v15986_v63, %v15742_v45  ;;  %v9738_v45 = vld [vmem:[%s17042_s24 + $0x2f0] sm:$0xff]  ;;  %v16171_v24 = vmax.f32 %v7703_v51, 0.0 }
0x18b9   :  { %11697 = vmatprep.subr.bf16.mxu0 %v11696_v1  ;;  %v7702_v1 = vadd.f32 %v15977_v28, %v7657_v59  ;;  %v11710_v36 = vpack.c.bf16 %v9738_v45, %v9736_v6  ;;  %v7663_v59 = vmul.f32 %v15983_v52, %v15792_v55  ;;  %v9748_v45 = vld [vmem:[%s17042_s24 + $0x340] sm:$0xff] }
0x18ba   :  { %v7705_v4 = vadd.f32 %v15980_v30, %v7660_v13  ;;  %v9751_v13 = vld [vmem:[%s17042_s24 + $0x358] sm:$0xff] }
0x18bb   :  { %7969 = vmatmul.mubr.f32.gmra.mrb[100].mxu0 %v16112_v2  ;;  %v16184_v22 = vmax.f32 %v7702_v1, 0.0  ;;  %v11720_v6 = vpack.c.bf16 %v9751_v13, %v9749_v49  ;;  %v9761_v13 = vld [vmem:[%s17042_s24 + $0x3a8] sm:$0xff] }
0x18bc   :  { %7974 = vmatprep.mubr.f32.mxu0 %v16123_v34  ;;  %11699 = vmatpush1.bf16.msra.mxu0 %v11698_v35  ;;  %v7662_v35 = vmul.f32 %v15986_v63, %v15745_v9  ;;  %v9742_v9 = vld [vmem:[%s17042_s24 + $0x310] sm:$0xff]  ;;  %v16195_v39 = vmax.f32 %v7705_v4, 0.0 }
0x18bd   :  { %11701 = vmatprep.subr.bf16.mxu0 %v11700_v18  ;;  %v7704_v18 = vadd.f32 %v15977_v28, %v7659_v10  ;;  %v11714_v25 = vpack.c.bf16 %v9742_v9, %v9740_v27  ;;  %v7665_v10 = vmul.f32 %v15983_v52, %v15795_v53  ;;  %v9752_v9 = vld [vmem:[%s17042_s24 + $0x360] sm:$0xff] }
0x18be   :  { %v7707_v58 = vadd.f32 %v15980_v30, %v7662_v35  ;;  %v9755_v35 = vld [vmem:[%s17042_s24 + $0x378] sm:$0xff] }
0x18bf   :  { %7975 = vmatmul.mubr.f32.gmra.mrb[102].mxu0 %v16136_v26  ;;  %v16208_v7 = vmax.f32 %v7704_v18, 0.0  ;;  %v11724_v27 = vpack.c.bf16 %v9755_v35, %v9753_v48  ;;  %v9765_v35 = vld [vmem:[%s17042_s24 + $0x3c8] sm:$0xff] }
0x18c0   :  { %7980 = vmatprep.mubr.f32.mxu0 %v16147_v43  ;;  %11703 = vmatpush1.bf16.msra.mxu0 %v11702_v14  ;;  %v7664_v14 = vmul.f32 %v15986_v63, %v15748_v16  ;;  %v9746_v16 = vld [vmem:[%s17042_s24 + $0x330] sm:$0xff]  ;;  %v16219_v51 = vmax.f32 %v7707_v58, 0.0 }
0x18c1   :  { %11705 = vmatprep.subr.bf16.mxu0 %v11704_v54  ;;  %v7706_v54 = vadd.f32 %v15977_v28, %v7661_v50  ;;  %v11718_v55 = vpack.c.bf16 %v9746_v16, %v9744_v32  ;;  %v7667_v50 = vmul.f32 %v15983_v52, %v15798_v21  ;;  %v9756_v16 = vld [vmem:[%s17042_s24 + $0x380] sm:$0xff] }
0x18c2   :  { %v7709_v15 = vadd.f32 %v15980_v30, %v7664_v14  ;;  %v9759_v14 = vld [vmem:[%s17042_s24 + $0x398] sm:$0xff] }
0x18c3   :  { %7981 = vmatmul.mubr.f32.gmra.mrb[104].mxu0 %v16160_v5  ;;  %v16232_v1 = vmax.f32 %v7706_v54, 0.0  ;;  %v11728_v32 = vpack.c.bf16 %v9759_v14, %v9757_v42  ;;  %v9769_v42 = vld [vmem:[%s17042_s24 + $0x3e8] sm:$0xff]  ;;  %v9771_v14 = vld [vmem:[%s17042_s24 + $0x3f8] sm:$0xff] }
0x18c4   :  { %7986 = vmatprep.mubr.f32.mxu0 %v16171_v24  ;;  %11707 = vmatpush1.bf16.msra.mxu0 %v11706_v17  ;;  %v7666_v17 = vmul.f32 %v15986_v63, %v15751_v8  ;;  %v9750_v8 = vld [vmem:[%s17042_s24 + $0x350] sm:$0xff]  ;;  %v16243_v4 = vmax.f32 %v7709_v15, 0.0 }
0x18c5   :  { %11709 = vmatprep.subr.bf16.mxu0 %v11708_v57  ;;  %v7708_v57 = vadd.f32 %v15977_v28, %v7663_v59  ;;  %v11722_v53 = vpack.c.bf16 %v9750_v8, %v9748_v45  ;;  %v7669_v59 = vmul.f32 %v15983_v52, %v15801_v12  ;;  %v9760_v8 = vld [vmem:[%s17042_s24 + $0x3a0] sm:$0xff] }
0x18c6   :  { %v7711_v0 = vadd.f32 %v15980_v30, %v7666_v17  ;;  %v9763_v17 = vld [vmem:[%s17042_s24 + $0x3b8] sm:$0xff] }
0x18c7   :  { %7987 = vmatmul.mubr.f32.gmra.mrb[106].mxu0 %v16184_v22  ;;  %v16256_v18 = vmax.f32 %v7708_v57, 0.0  ;;  %v11732_v45 = vpack.c.bf16 %v9763_v17, %v9761_v13  ;;  %v9788_v13 = vld [vmem:[%s17042_s24 + $0x400] sm:$0xff]  ;;  %v9790_v17 = vld [vmem:[%s17042_s24 + $0x410] sm:$0xff] }
0x18c8   :  { %7992 = vmatprep.mubr.f32.mxu0 %v16195_v39  ;;  %11711 = vmatpush1.bf16.msra.mxu0 %v11710_v36  ;;  %v7668_v36 = vmul.f32 %v15986_v63, %v15754_v38  ;;  %v9754_v38 = vld [vmem:[%s17042_s24 + $0x370] sm:$0xff]  ;;  %v16267_v58 = vmax.f32 %v7711_v0, 0.0 }
0x18c9   :  { %11713 = vmatprep.subr.bf16.mxu0 %v11712_v61  ;;  %v7710_v61 = vadd.f32 %v15977_v28, %v7665_v10  ;;  %v11726_v21 = vpack.c.bf16 %v9754_v38, %v9752_v9  ;;  %v7671_v10 = vmul.f32 %v15983_v52, %v15804_v41  ;;  %v9764_v38 = vld [vmem:[%s17042_s24 + $0x3c0] sm:$0xff] }
0x18ca   :  { %v7713_v40 = vadd.f32 %v15980_v30, %v7668_v36  ;;  %v9767_v36 = vld [vmem:[%s17042_s24 + $0x3d8] sm:$0xff] }
0x18cb   :  { %7993 = vmatmul.mubr.f32.gmra.mrb[108].mxu0 %v16208_v7  ;;  %v16280_v54 = vmax.f32 %v7710_v61, 0.0  ;;  %v11736_v9 = vpack.c.bf16 %v9767_v36, %v9765_v35 }
0x18cc   :  { %7998 = vmatprep.mubr.f32.mxu0 %v16219_v51  ;;  %11715 = vmatpush1.bf16.msra.mxu0 %v11714_v25  ;;  %v7670_v25 = vmul.f32 %v15986_v63, %v15757_v23  ;;  %v9758_v23 = vld [vmem:[%s17042_s24 + $0x390] sm:$0xff]  ;;  %v16291_v15 = vmax.f32 %v7713_v40, 0.0 }
0x18cd   :  { %11717 = vmatprep.subr.bf16.mxu0 %v11716_v3  ;;  %v7712_v3 = vadd.f32 %v15977_v28, %v7667_v50  ;;  %v11730_v12 = vpack.c.bf16 %v9758_v23, %v9756_v16  ;;  %v9789_v16 = vld [vmem:[%s17042_s24 + $0x408] sm:$0xff]  ;;  %v9791_v23 = vld [vmem:[%s17042_s24 + $0x418] sm:$0xff] }
0x18ce   :  { %v7715_v49 = vadd.f32 %v15980_v30, %v7670_v25 }
0x18cf   :  { %7999 = vmatmul.mubr.f32.gmra.mrb[110].mxu0 %v16232_v1  ;;  %v16304_v57 = vmax.f32 %v7712_v3, 0.0  ;;  %v9770_v3 = vld [vmem:[%s17042_s24 + $0x3f0] sm:$0xff] }
0x18d0   :  { %8004 = vmatprep.mubr.f32.mxu0 %v16243_v4  ;;  %11719 = vmatpush1.bf16.msra.mxu0 %v11718_v55  ;;  %v7672_v55 = vmul.f32 %v15986_v63, %v15760_v29  ;;  %v9762_v29 = vld [vmem:[%s17042_s24 + $0x3b0] sm:$0xff]  ;;  %v16315_v0 = vmax.f32 %v7715_v49, 0.0  ;;  %v11776_v49 = vpack.c.bf16 %v9791_v23, %v9789_v16  ;;  %v9811_v16 = vld [vmem:[%s17042_s24 + $0x4b8] sm:$0xff] }
0x18d1   :  { %11721 = vmatprep.subr.bf16.mxu0 %v11720_v6  ;;  %v7714_v6 = vadd.f32 %v15977_v28, %v7669_v59  ;;  %v11734_v41 = vpack.c.bf16 %v9762_v29, %v9760_v8  ;;  %v9792_v8 = vld [vmem:[%s17042_s24 + $0x420] sm:$0xff]  ;;  %v9794_v29 = vld [vmem:[%s17042_s24 + $0x430] sm:$0xff] }
0x18d2   :  { %v7717_v48 = vadd.f32 %v15980_v30, %v7672_v55  ;;  %v9793_v55 = vld [vmem:[%s17042_s24 + $0x428] sm:$0xff]  ;;  %v11782_v35 = vpack.c.bf16 %v9794_v29, %v9792_v8  ;;  %v9814_v8 = vld [vmem:[%s17042_s24 + $0x4d0] sm:$0xff] }
0x18d3   :  { %8005 = vmatmul.mubr.f32.gmra.mrb[112].mxu0 %v16256_v18  ;;  %v16328_v61 = vmax.f32 %v7714_v6, 0.0  ;;  %v11778_v6 = vpack.c.bf16 %v9790_v17, %v9788_v13  ;;  %v9810_v13 = vld [vmem:[%s17042_s24 + $0x4b0] sm:$0xff]  ;;  %v9813_v17 = vld [vmem:[%s17042_s24 + $0x4c8] sm:$0xff] }
0x18d4   :  { %8010 = vmatprep.mubr.f32.mxu0 %v16267_v58  ;;  %11723 = vmatpush1.bf16.msra.mxu0 %v11722_v53  ;;  %v7674_v53 = vmul.f32 %v15986_v63, %v15763_v46  ;;  %v9766_v46 = vld [vmem:[%s17042_s24 + $0x3d0] sm:$0xff]  ;;  %v7673_v63 = vmul.f32 %v15983_v52, %v15807_v33  ;;  %v16339_v50 = vmax.f32 %v7717_v48, 0.0  ;;  %v9768_v52 = vld [vmem:[%s17042_s24 + $0x3e0] sm:$0xff]  ;;  %v9799_v48 = vld [vmem:[%s17042_s24 + $0x458] sm:$0xff] }
0x18d5   :  { %11725 = vmatprep.subr.bf16.mxu0 %v11724_v27  ;;  %v7716_v27 = vadd.f32 %v15977_v28, %v7671_v10  ;;  %v11738_v25 = vpack.c.bf16 %v9766_v46, %v9764_v38  ;;  %v9797_v10 = vld [vmem:[%s17042_s24 + $0x448] sm:$0xff] }
0x18d6   :  { %v7719_v40 = vadd.f32 %v15980_v30, %v7674_v53  ;;  %v7718_v33 = vadd.f32 %v15977_v28, %v7673_v63  ;;  %v11740_v30 = vpack.c.bf16 %v9771_v14, %v9769_v42  ;;  %v11742_v28 = vpack.c.bf16 %v9770_v3, %v9768_v52  ;;  %v9796_v53 = vld [vmem:[%s17042_s24 + $0x440] sm:$0xff]  ;;  %v9805_v42 = vld [vmem:[%s17042_s24 + $0x488] sm:$0xff]  ;;  %v9807_v14 = vld [vmem:[%s17042_s24 + $0x498] sm:$0xff] }
0x18d7   :  { %8011 = vmatmul.mubr.f32.gmra.mrb[114].mxu0 %v16280_v54  ;;  %v11784_v36 = vpack.c.bf16 %v9799_v48, %v9797_v10  ;;  %v9800_v63 = vld [vmem:[%s17042_s24 + $0x460] sm:$0xff]  ;;  %v9806_v52 = vld [vmem:[%s17042_s24 + $0x490] sm:$0xff]  ;;  %v9809_v3 = vld [vmem:[%s17042_s24 + $0x4a8] sm:$0xff] }
0x18d8   :  { %8016 = vmatprep.mubr.f32.mxu0 %v16291_v15  ;;  %11727 = vmatpush1.bf16.msra.mxu0 %v11726_v21  ;;  %v16350_v21 = vmax.f32 %v7716_v27, 0.0  ;;  %v16369_v59 = vmax.f32 %v7718_v33, 0.0  ;;  %v9801_v27 = vld [vmem:[%s17042_s24 + $0x468] sm:$0xff]  ;;  %v11792_v33 = vpack.c.bf16 %v9807_v14, %v9805_v42  ;;  %v9819_v10 = vld [vmem:[%s17042_s24 + $0x4f8] sm:$0xff] }
0x18d9   :  { %11729 = vmatprep.subr.bf16.mxu0 %v11728_v32  ;;  %v16359_v32 = vmax.f32 %v7719_v40, 0.0  ;;  %v9802_v40 = vld [vmem:[%s17042_s24 + $0x470] sm:$0xff]  ;;  %v9817_v29 = vld [vmem:[%s17042_s24 + $0x4e8] sm:$0xff]  ;;  %v9827_v42 = vld [vmem:[%s17042_s24 + $0x538] sm:$0xff] }
0x18db   :  { %8017 = vmatmul.mubr.f32.gmra.mrb[116].mxu0 %v16304_v57 }
0x18dc   :  { %8022 = vmatprep.mubr.f32.mxu0 %v16315_v0  ;;  %11731 = vmatpush1.bf16.msra.mxu0 %v11730_v12  ;;  %v9795_v12 = vld [vmem:[%s17042_s24 + $0x438] sm:$0xff] }
0x18dd   :  { %11733 = vmatprep.subr.bf16.mxu0 %v11732_v45  ;;  %v11780_v45 = vpack.c.bf16 %v9795_v12, %v9793_v55  ;;  %v9815_v55 = vld [vmem:[%s17042_s24 + $0x4d8] sm:$0xff] }
0x18df   :  { %8023 = vmatmul.mubr.f32.gmra.mrb[118].mxu0 %v16328_v61 }
0x18e0   :  { %8028 = vmatprep.mubr.f32.mxu0 %v16339_v50  ;;  %11735 = vmatpush1.bf16.msra.mxu0 %v11734_v41  ;;  %v9798_v41 = vld [vmem:[%s17042_s24 + $0x450] sm:$0xff] }
0x18e1   :  { %11737 = vmatprep.subr.bf16.mxu0 %v11736_v9  ;;  %v9803_v9 = vld [vmem:[%s17042_s24 + $0x478] sm:$0xff]  ;;  %v11786_v38 = vpack.c.bf16 %v9798_v41, %v9796_v53  ;;  %v9818_v53 = vld [vmem:[%s17042_s24 + $0x4f0] sm:$0xff]  ;;  %v9821_v41 = vld [vmem:[%s17042_s24 + $0x508] sm:$0xff] }
0x18e2   :  { %v11788_v46 = vpack.c.bf16 %v9803_v9, %v9801_v27  ;;  %v9823_v27 = vld [vmem:[%s17042_s24 + $0x518] sm:$0xff] }
0x18e3   :  { %8029 = vmatmul.mubr.f32.gmra.mrb[120].mxu0 %v16350_v21 }
0x18e4   :  { %8034 = vmatprep.mubr.f32.mxu0 %v16359_v32  ;;  %11739 = vmatpush1.bf16.msra.mxu0 %v11738_v25  ;;  %v11790_v25 = vpack.c.bf16 %v9802_v40, %v9800_v63  ;;  %v9822_v63 = vld [vmem:[%s17042_s24 + $0x510] sm:$0xff]  ;;  %v9825_v40 = vld [vmem:[%s17042_s24 + $0x528] sm:$0xff] }
0x18e5   :  { %11741 = vmatprep.subr.bf16.mxu0 %v11740_v30  ;;  %v9804_v30 = vld [vmem:[%s17042_s24 + $0x480] sm:$0xff] }
0x18e6   :  { %v11794_v23 = vpack.c.bf16 %v9806_v52, %v9804_v30  ;;  %v9826_v30 = vld [vmem:[%s17042_s24 + $0x530] sm:$0xff]  ;;  %v9829_v52 = vld [vmem:[%s17042_s24 + $0x548] sm:$0xff] }
0x18e7   :  { %8035 = vmatmul.mubr.f32.gmra.mrb[122].mxu0 %v16369_v59 }
0x18e8   :  { %11743 = vmatpush1.bf16.msra.mxu0 %v11742_v28  ;;  %8411 = vmatprep.mubr.f32.mxu0 %v16013_v19  ;;  %v11796_v28 = vpack.c.bf16 %v9811_v16, %v9809_v3  ;;  %v9831_v3 = vld [vmem:[%s17042_s24 + $0x558] sm:$0xff] }
0x18e9   :  { %11777 = vmatprep.subr.bf16.mxu0 %v11776_v49  ;;  %v9808_v49 = vld [vmem:[%s17042_s24 + $0x4a0] sm:$0xff] }
0x18ea   :  { %v11798_v12 = vpack.c.bf16 %v9810_v13, %v9808_v49  ;;  %v9830_v49 = vld [vmem:[%s17042_s24 + $0x550] sm:$0xff]  ;;  %v9833_v13 = vld [vmem:[%s17042_s24 + $0x568] sm:$0xff] }
0x18eb   :  { %8412 = vmatmul.mubr.f32.vlgmr.msra.gmra.mrb[124].mxu0 %v16015_v56 }
0x18ec   :  { %8417 = vmatprep.mubr.f32.mxu0 %v16027_v11  ;;  %11779 = vmatpush1.bf16.msra.mxu0 %v11778_v6  ;;  %v11800_v6 = vpack.c.bf16 %v9815_v55, %v9813_v17  ;;  %v9835_v17 = vld [vmem:[%s17042_s24 + $0x578] sm:$0xff] }
0x18ed   :  { %11781 = vmatprep.subr.bf16.mxu0 %v11780_v45  ;;  %v9812_v45 = vld [vmem:[%s17042_s24 + $0x4c0] sm:$0xff] }
0x18ee   :  { %v11802_v48 = vpack.c.bf16 %v9814_v8, %v9812_v45  ;;  %v9834_v45 = vld [vmem:[%s17042_s24 + $0x570] sm:$0xff]  ;;  %v9837_v8 = vld [vmem:[%s17042_s24 + $0x588] sm:$0xff] }
0x18ef   :  { %8418 = vmatmul.mubr.f32.gmra.mrb[126].mxu0 %v16040_v62 }
0x18f0   :  { %8423 = vmatprep.mubr.f32.mxu0 %v16051_v31  ;;  %11783 = vmatpush1.bf16.msra.mxu0 %v11782_v35  ;;  %v11804_v35 = vpack.c.bf16 %v9819_v10, %v9817_v29  ;;  %v9839_v29 = vld [vmem:[%s17042_s24 + $0x598] sm:$0xff] }
0x18f1   :  { %11785 = vmatprep.subr.bf16.mxu0 %v11784_v36  ;;  %v9816_v36 = vld [vmem:[%s17042_s24 + $0x4e0] sm:$0xff] }
0x18f2   :  { %v11806_v9 = vpack.c.bf16 %v9818_v53, %v9816_v36  ;;  %v9838_v36 = vld [vmem:[%s17042_s24 + $0x590] sm:$0xff]  ;;  %v9841_v53 = vld [vmem:[%s17042_s24 + $0x5a8] sm:$0xff] }
0x18f3   :  { %8424 = vmatmul.mubr.f32.gmra.mrb[128].mxu0 %v16064_v37 }
0x18f4   :  { %8429 = vmatprep.mubr.f32.mxu0 %v16075_v47  ;;  %11787 = vmatpush1.bf16.msra.mxu0 %v11786_v38  ;;  %v11808_v38 = vpack.c.bf16 %v9823_v27, %v9821_v41  ;;  %v9843_v41 = vld [vmem:[%s17042_s24 + $0x5b8] sm:$0xff] }
0x18f5   :  { %11789 = vmatprep.subr.bf16.mxu0 %v11788_v46  ;;  %v9820_v46 = vld [vmem:[%s17042_s24 + $0x500] sm:$0xff] }
0x18f6   :  { %v11810_v14 = vpack.c.bf16 %v9822_v63, %v9820_v46  ;;  %v9842_v46 = vld [vmem:[%s17042_s24 + $0x5b0] sm:$0xff]  ;;  %v9845_v63 = vld [vmem:[%s17042_s24 + $0x5c8] sm:$0xff] }
0x18f7   :  { %8430 = vmatmul.mubr.f32.gmra.mrb[130].mxu0 %v16088_v44 }
0x18f8   :  { %8435 = vmatprep.mubr.f32.mxu0 %v16099_v60  ;;  %11791 = vmatpush1.bf16.msra.mxu0 %v11790_v25  ;;  %v11812_v25 = vpack.c.bf16 %v9827_v42, %v9825_v40  ;;  %v9847_v40 = vld [vmem:[%s17042_s24 + $0x5d8] sm:$0xff] }
0x18f9   :  { %11793 = vmatprep.subr.bf16.mxu0 %v11792_v33  ;;  %v9824_v33 = vld [vmem:[%s17042_s24 + $0x520] sm:$0xff] }
0x18fa   :  { %v11814_v16 = vpack.c.bf16 %v9826_v30, %v9824_v33  ;;  %v9846_v33 = vld [vmem:[%s17042_s24 + $0x5d0] sm:$0xff]  ;;  %v9849_v30 = vld [vmem:[%s17042_s24 + $0x5e8] sm:$0xff] }
0x18fb   :  { %8436 = vmatmul.mubr.f32.gmra.mrb[132].mxu0 %v16112_v2 }
0x18fc   :  { %8441 = vmatprep.mubr.f32.mxu0 %v16123_v34  ;;  %11795 = vmatpush1.bf16.msra.mxu0 %v11794_v23  ;;  %v11816_v23 = vpack.c.bf16 %v9831_v3, %v9829_v52  ;;  %v9851_v52 = vld [vmem:[%s17042_s24 + $0x5f8] sm:$0xff] }
0x18fd   :  { %11797 = vmatprep.subr.bf16.mxu0 %v11796_v28  ;;  %v9828_v28 = vld [vmem:[%s17042_s24 + $0x540] sm:$0xff] }
0x18fe   :  { %v11818_v55 = vpack.c.bf16 %v9830_v49, %v9828_v28  ;;  %v9850_v28 = vld [vmem:[%s17042_s24 + $0x5f0] sm:$0xff] }
0x18ff   :  { %8442 = vmatmul.mubr.f32.gmra.mrb[134].mxu0 %v16136_v26 }
0x1900   :  { %8447 = vmatprep.mubr.f32.mxu0 %v16147_v43  ;;  %11799 = vmatpush1.bf16.msra.mxu0 %v11798_v12  ;;  %v11820_v12 = vpack.c.bf16 %v9835_v17, %v9833_v13 }
0x1901   :  { %11801 = vmatprep.subr.bf16.mxu0 %v11800_v6  ;;  %v9832_v6 = vld [vmem:[%s17042_s24 + $0x560] sm:$0xff] }
0x1902   :  { %v11822_v10 = vpack.c.bf16 %v9834_v45, %v9832_v6 }
0x1903   :  { %8448 = vmatmul.mubr.f32.gmra.mrb[136].mxu0 %v16160_v5 }
0x1904   :  { %8453 = vmatprep.mubr.f32.mxu0 %v16171_v24  ;;  %11803 = vmatpush1.bf16.msra.mxu0 %v11802_v48  ;;  %v11824_v48 = vpack.c.bf16 %v9839_v29, %v9837_v8 }
0x1905   :  { %11805 = vmatprep.subr.bf16.mxu0 %v11804_v35  ;;  %v9836_v35 = vld [vmem:[%s17042_s24 + $0x580] sm:$0xff] }
0x1906   :  { %v11826_v27 = vpack.c.bf16 %v9838_v36, %v9836_v35 }
0x1907   :  { %8454 = vmatmul.mubr.f32.gmra.mrb[138].mxu0 %v16184_v22 }
0x1908   :  { %8459 = vmatprep.mubr.f32.mxu0 %v16195_v39  ;;  %11807 = vmatpush1.bf16.msra.mxu0 %v11806_v9  ;;  %v11828_v9 = vpack.c.bf16 %v9843_v41, %v9841_v53 }
0x1909   :  { %11809 = vmatprep.subr.bf16.mxu0 %v11808_v38  ;;  %v9840_v38 = vld [vmem:[%s17042_s24 + $0x5a0] sm:$0xff] }
0x190a   :  { %v11830_v42 = vpack.c.bf16 %v9842_v46, %v9840_v38 }
0x190b   :  { %8460 = vmatmul.mubr.f32.gmra.mrb[140].mxu0 %v16208_v7 }
0x190c   :  { %8465 = vmatprep.mubr.f32.mxu0 %v16219_v51  ;;  %11811 = vmatpush1.bf16.msra.mxu0 %v11810_v14  ;;  %v11832_v14 = vpack.c.bf16 %v9847_v40, %v9845_v63  ;;  %v8041_v63 = vld [vmem:[%s17103_s10] sm:$0xff] }
0x190d   :  { %11813 = vmatprep.subr.bf16.mxu0 %v11812_v25  ;;  %v9844_v25 = vld [vmem:[%s17042_s24 + $0x5c0] sm:$0xff] }
0x190e   :  { %v11834_v3 = vpack.c.bf16 %v9846_v33, %v9844_v25  ;;  %v8042_v25 = vld [vmem:[%s17103_s10 + $0x8] sm:$0xff] }
0x190f   :  { %8466 = vmatmul.mubr.f32.gmra.mrb[142].mxu0 %v16232_v1 }
0x1910   :  { %8471 = vmatprep.mubr.f32.mxu0 %v16243_v4  ;;  %11815 = vmatpush1.bf16.msra.mxu0 %v11814_v16  ;;  %v11836_v16 = vpack.c.bf16 %v9851_v52, %v9849_v30 }
0x1911   :  { %11817 = vmatprep.subr.bf16.mxu0 %v11816_v23  ;;  %v9848_v23 = vld [vmem:[%s17042_s24 + $0x5e0] sm:$0xff] }
0x1912   :  { %v11838_v49 = vpack.c.bf16 %v9850_v28, %v9848_v23 }
0x1913   :  { %8472 = vmatmul.mubr.f32.gmra.mrb[144].mxu0 %v16256_v18 }
0x1914   :  { %8477 = vmatprep.mubr.f32.mxu0 %v16267_v58  ;;  %11819 = vmatpush1.bf16.msra.mxu0 %v11818_v55 }
0x1915   :  { %11821 = vmatprep.subr.bf16.mxu0 %v11820_v12 }
0x1917   :  { %8478 = vmatmul.mubr.f32.gmra.mrb[146].mxu0 %v16280_v54 }
0x1918   :  { %8483 = vmatprep.mubr.f32.mxu0 %v16291_v15  ;;  %11823 = vmatpush1.bf16.msra.mxu0 %v11822_v10 }
0x1919   :  { %11825 = vmatprep.subr.bf16.mxu0 %v11824_v48 }
0x191b   :  { %8484 = vmatmul.mubr.f32.gmra.mrb[148].mxu0 %v16304_v57 }
0x191c   :  { %8489 = vmatprep.mubr.f32.mxu0 %v16315_v0  ;;  %11827 = vmatpush1.bf16.msra.mxu0 %v11826_v27 }
0x191d   :  { %11829 = vmatprep.subr.bf16.mxu0 %v11828_v9 }
0x191f   :  { %8490 = vmatmul.mubr.f32.gmra.mrb[150].mxu0 %v16328_v61 }
0x1920   :  { %8495 = vmatprep.mubr.f32.mxu0 %v16339_v50  ;;  %11831 = vmatpush1.bf16.msra.mxu0 %v11830_v42 }
0x1921   :  { %11833 = vmatprep.subr.bf16.mxu0 %v11832_v14 }
0x1923   :  { %8496 = vmatmul.mubr.f32.gmra.mrb[152].mxu0 %v16350_v21 }
0x1924   :  { %8501 = vmatprep.mubr.f32.mxu0 %v16359_v32  ;;  %11835 = vmatpush1.bf16.msra.mxu0 %v11834_v3  ;;  %v8043_v3 = vld [vmem:[%s17103_s10 + $0x10] sm:$0xff] }
0x1925   :  { %11837 = vmatprep.subr.bf16.mxu0 %v11836_v16 }
0x1927   :  { %8502 = vmatmul.mubr.f32.gmra.mrb[154].mxu0 %v16369_v59 }
0x1928   :  { %11839 = vmatpush1.bf16.msra.mxu0 %v11838_v49  ;;  %8943 = vmatprep.mubr.f32.mxu0 %v16013_v19  ;;  %v8044_v49 = vld [vmem:[%s17103_s10 + $0x18] sm:$0xff] }
0x192b   :  { %8944 = vmatmul.mubr.f32.vlgmr.msra.gmra.mrb[156].mxu0 %v16015_v56 }
0x192c   :  { %8949 = vmatprep.mubr.f32.mxu0 %v16027_v11 }
0x192f   :  { %8950 = vmatmul.mubr.f32.gmra.mrb[158].mxu0 %v16040_v62 }
0x1930   :  { %8955 = vmatprep.mubr.f32.mxu0 %v16051_v31 }
0x1933   :  { %8956 = vmatmul.mubr.f32.gmra.mrb[160].mxu0 %v16064_v37 }
0x1934   :  { %8961 = vmatprep.mubr.f32.mxu0 %v16075_v47 }
0x1937   :  { %8962 = vmatmul.mubr.f32.gmra.mrb[162].mxu0 %v16088_v44 }
0x1938   :  { %8967 = vmatprep.mubr.f32.mxu0 %v16099_v60 }
0x193b   :  { %8968 = vmatmul.mubr.f32.gmra.mrb[164].mxu0 %v16112_v2 }
0x193c   :  { %8973 = vmatprep.mubr.f32.mxu0 %v16123_v34 }
0x193f   :  { %8974 = vmatmul.mubr.f32.gmra.mrb[166].mxu0 %v16136_v26 }
0x1940   :  { %8979 = vmatprep.mubr.f32.mxu0 %v16147_v43 }
0x1943   :  { %8980 = vmatmul.mubr.f32.gmra.mrb[168].mxu0 %v16160_v5 }
0x1944   :  { %8985 = vmatprep.mubr.f32.mxu0 %v16171_v24 }
0x1947   :  { %8986 = vmatmul.mubr.f32.gmra.mrb[170].mxu0 %v16184_v22 }
0x1948   :  { %8991 = vmatprep.mubr.f32.mxu0 %v16195_v39 }
0x194b   :  { %8992 = vmatmul.mubr.f32.gmra.mrb[172].mxu0 %v16208_v7 }
0x194c   :  { %8997 = vmatprep.mubr.f32.mxu0 %v16219_v51 }
0x194f   :  { %8998 = vmatmul.mubr.f32.gmra.mrb[174].mxu0 %v16232_v1 }
0x1950   :  { %9003 = vmatprep.mubr.f32.mxu0 %v16243_v4 }
0x1953   :  { %9004 = vmatmul.mubr.f32.gmra.mrb[176].mxu0 %v16256_v18 }
0x1954   :  { %9009 = vmatprep.mubr.f32.mxu0 %v16267_v58 }
0x1957   :  { %9010 = vmatmul.mubr.f32.gmra.mrb[178].mxu0 %v16280_v54 }
0x1958   :  { %9015 = vmatprep.mubr.f32.mxu0 %v16291_v15 }
0x195b   :  { %9016 = vmatmul.mubr.f32.gmra.mrb[180].mxu0 %v16304_v57 }
0x195c   :  { %9021 = vmatprep.mubr.f32.mxu0 %v16315_v0 }
0x195f   :  { %9022 = vmatmul.mubr.f32.gmra.mrb[182].mxu0 %v16328_v61 }
0x1960   :  { %9027 = vmatprep.mubr.f32.mxu0 %v16339_v50 }
0x1963   :  { %9028 = vmatmul.mubr.f32.gmra.mrb[184].mxu0 %v16350_v21 }
0x1964   :  { %9033 = vmatprep.mubr.f32.mxu0 %v16359_v32 }
0x1967   :  { %9034 = vmatmul.mubr.f32.gmra.mrb[186].mxu0 %v16369_v59 }
0x197e   :  { %v7946_v19 = vpop.f32.mrb[92].mxu0 }
0x197f   :  { %v7948_v56 = vpop.f32.mrb[93].mxu0 }
0x1982   :  { %v7952_v11 = vpop.f32.mrb[94].mxu0 }
0x1983   :  { %v11650_v62 = vpack.c.bf16 %v7952_v11, %v7946_v19  ;;  %v7954_v31 = vpop.f32.mrb[95].mxu0 }
0x1984   :  { %v11648_v37 = vpack.c.bf16 %v7954_v31, %v7948_v56 }
0x1986   :  { %v7958_v47 = vpop.f32.mrb[96].mxu0  ;;  %11649 = vmatprep.subr.bf16.mxu1 %v11648_v37 }
0x1987   :  { %v7960_v44 = vpop.f32.mrb[97].mxu0  ;;  %11651 = vmatpush1.bf16.msra.mxu1 %v11650_v62  ;;  %v8045_v62 = vld [vmem:[%s17103_s10 + $0x20] sm:$0xff] }
0x198a   :  { %v7964_v60 = vpop.f32.mrb[98].mxu0 }
0x198b   :  { %v11654_v2 = vpack.c.bf16 %v7964_v60, %v7958_v47  ;;  %v7966_v34 = vpop.f32.mrb[99].mxu0 }
0x198c   :  { %v11652_v26 = vpack.c.bf16 %v7966_v34, %v7960_v44  ;;  %v8046_v44 = vld [vmem:[%s17103_s10 + $0x28] sm:$0xff] }
0x198e   :  { %v7970_v43 = vpop.f32.mrb[100].mxu0  ;;  %11653 = vmatprep.subr.bf16.mxu1 %v11652_v26  ;;  %v8047_v26 = vld [vmem:[%s17103_s10 + $0x30] sm:$0xff] }
0x198f   :  { %v7972_v5 = vpop.f32.mrb[101].mxu0  ;;  %11655 = vmatpush1.bf16.msra.mxu1 %v11654_v2 }
0x1992   :  { %v7976_v24 = vpop.f32.mrb[102].mxu0 }
0x1993   :  { %v11658_v22 = vpack.c.bf16 %v7976_v24, %v7970_v43  ;;  %v7978_v39 = vpop.f32.mrb[103].mxu0 }
0x1994   :  { %v11656_v7 = vpack.c.bf16 %v7978_v39, %v7972_v5 }
0x1996   :  { %v7982_v51 = vpop.f32.mrb[104].mxu0  ;;  %11657 = vmatprep.subr.bf16.mxu1 %v11656_v7 }
0x1997   :  { %v7984_v1 = vpop.f32.mrb[105].mxu0  ;;  %11659 = vmatpush1.bf16.msra.mxu1 %v11658_v22  ;;  %v8048_v22 = vld [vmem:[%s17103_s10 + $0x38] sm:$0xff] }
0x199a   :  { %v7988_v4 = vpop.f32.mrb[106].mxu0 }
0x199b   :  { %v11662_v18 = vpack.c.bf16 %v7988_v4, %v7982_v51  ;;  %v7990_v58 = vpop.f32.mrb[107].mxu0 }
0x199c   :  { %v11660_v54 = vpack.c.bf16 %v7990_v58, %v7984_v1  ;;  %v8049_v1 = vld [vmem:[%s17103_s10 + $0x40] sm:$0xff] }
0x199e   :  { %v7994_v15 = vpop.f32.mrb[108].mxu0  ;;  %11661 = vmatprep.subr.bf16.mxu1 %v11660_v54  ;;  %v8050_v54 = vld [vmem:[%s17103_s10 + $0x48] sm:$0xff] }
0x199f   :  { %v7996_v57 = vpop.f32.mrb[109].mxu0  ;;  %11663 = vmatpush1.bf16.msra.mxu1 %v11662_v18 }
0x19a2   :  { %v8000_v0 = vpop.f32.mrb[110].mxu0 }
0x19a3   :  { %v11666_v61 = vpack.c.bf16 %v8000_v0, %v7994_v15  ;;  %v8002_v50 = vpop.f32.mrb[111].mxu0 }
0x19a4   :  { %v11664_v21 = vpack.c.bf16 %v8002_v50, %v7996_v57 }
0x19a6   :  { %v8006_v32 = vpop.f32.mrb[112].mxu0  ;;  %11665 = vmatprep.subr.bf16.mxu1 %v11664_v21 }
0x19a7   :  { %v8008_v59 = vpop.f32.mrb[113].mxu0  ;;  %11667 = vmatpush1.bf16.msra.mxu1 %v11666_v61  ;;  %v8051_v61 = vld [vmem:[%s17103_s10 + $0x50] sm:$0xff] }
0x19aa   :  { %v8012_v13 = vpop.f32.mrb[114].mxu0 }
0x19ab   :  { %v11670_v17 = vpack.c.bf16 %v8012_v13, %v8006_v32  ;;  %v8014_v55 = vpop.f32.mrb[115].mxu0 }
0x19ac   :  { %v11668_v12 = vpack.c.bf16 %v8014_v55, %v8008_v59  ;;  %v8052_v59 = vld [vmem:[%s17103_s10 + $0x58] sm:$0xff] }
0x19ae   :  { %v8018_v6 = vpop.f32.mrb[116].mxu0  ;;  %11669 = vmatprep.subr.bf16.mxu1 %v11668_v12  ;;  %v8053_v12 = vld [vmem:[%s17103_s10 + $0x60] sm:$0xff] }
0x19af   :  { %v8020_v45 = vpop.f32.mrb[117].mxu0  ;;  %11671 = vmatpush1.bf16.msra.mxu1 %v11670_v17 }
0x19b2   :  { %v8024_v8 = vpop.f32.mrb[118].mxu0 }
0x19b3   :  { %v11674_v29 = vpack.c.bf16 %v8024_v8, %v8018_v6  ;;  %v8026_v10 = vpop.f32.mrb[119].mxu0 }
0x19b4   :  { %v11672_v48 = vpack.c.bf16 %v8026_v10, %v8020_v45 }
0x19b6   :  { %v8030_v35 = vpop.f32.mrb[120].mxu0  ;;  %11673 = vmatprep.subr.bf16.mxu1 %v11672_v48 }
0x19b7   :  { %v8032_v36 = vpop.f32.mrb[121].mxu0  ;;  %11675 = vmatpush1.bf16.msra.mxu1 %v11674_v29  ;;  %v8054_v29 = vld [vmem:[%s17103_s10 + $0x68] sm:$0xff] }
0x19ba   :  { %v8036_v53 = vpop.f32.mrb[122].mxu0 }
0x19bb   :  { %v11678_v41 = vpack.c.bf16 %v8036_v53, %v8030_v35  ;;  %v8038_v27 = vpop.f32.mrb[123].mxu0 }
0x19bc   :  { %v11676_v9 = vpack.c.bf16 %v8038_v27, %v8032_v36  ;;  %v8055_v36 = vld [vmem:[%s17103_s10 + $0x70] sm:$0xff] }
0x19be   :  { %11677 = vmatprep.subr.bf16.mxu1 %v11676_v9  ;;  %v8413_v38 = vpop.f32.mrb[124].mxu0  ;;  %v8056_v9 = vld [vmem:[%s17103_s10 + $0x78] sm:$0xff] }
0x19bf   :  { %11679 = vmatpush1.bf16.msra.mxu1 %v11678_v41  ;;  %v8415_v46 = vpop.f32.mrb[125].mxu0 }
0x19c2   :  { %8122 = vmatmul.mubr.f32.vlgmr.msra.gmra.mrb[100].mxu1 %v8041_v63  ;;  %v8419_v40 = vpop.f32.mrb[126].mxu0 }
0x19c3   :  { %v11746_v42 = vpack.c.bf16 %v8419_v40, %v8413_v38  ;;  %v8421_v14 = vpop.f32.mrb[127].mxu0  ;;  %8127 = vmatprep.mubr.f32.mxu1 %v17100_v20  ;;  %v9772_v40 = vld [vmem:[%s17103_s10 + $0x80] sm:$0xff] }
0x19c4   :  { %v11744_v33 = vpack.c.bf16 %v8421_v14, %v8415_v46 }
0x19c6   :  { %8128 = vmatmul.mubr.f32.gmra.mrb[102].mxu1 %v8042_v25  ;;  %v8425_v30 = vpop.f32.mrb[128].mxu0  ;;  %11745 = vmatprep.subr.bf16.mxu1 %v11744_v33  ;;  %v9773_v33 = vld [vmem:[%s17103_s10 + $0x88] sm:$0xff] }
0x19c7   :  { %v8427_v52 = vpop.f32.mrb[129].mxu0  ;;  %11747 = vmatpush1.bf16.msra.mxu1 %v11746_v42  ;;  %8133 = vmatprep.mubr.f32.mxu1 %v17100_v20 }
0x19ca   :  { %8134 = vmatmul.mubr.f32.gmra.mrb[104].mxu1 %v8043_v3  ;;  %v8431_v16 = vpop.f32.mrb[130].mxu0 }
0x19cb   :  { %v11750_v23 = vpack.c.bf16 %v8431_v16, %v8425_v30  ;;  %v8433_v28 = vpop.f32.mrb[131].mxu0  ;;  %8139 = vmatprep.mubr.f32.mxu1 %v17100_v20  ;;  %v9774_v16 = vld [vmem:[%s17103_s10 + $0x90] sm:$0xff] }
0x19cc   :  { %v11748_v19 = vpack.c.bf16 %v8433_v28, %v8427_v52 }
0x19ce   :  { %8140 = vmatmul.mubr.f32.gmra.mrb[106].mxu1 %v8044_v49  ;;  %v8437_v56 = vpop.f32.mrb[132].mxu0  ;;  %11749 = vmatprep.subr.bf16.mxu1 %v11748_v19  ;;  %v9775_v19 = vld [vmem:[%s17103_s10 + $0x98] sm:$0xff] }
0x19cf   :  { %v8439_v11 = vpop.f32.mrb[133].mxu0  ;;  %11751 = vmatpush1.bf16.msra.mxu1 %v11750_v23  ;;  %8145 = vmatprep.mubr.f32.mxu1 %v17100_v20 }
0x19d2   :  { %8146 = vmatmul.mubr.f32.gmra.mrb[108].mxu1 %v8045_v62  ;;  %v8443_v31 = vpop.f32.mrb[134].mxu0 }
0x19d3   :  { %v11754_v37 = vpack.c.bf16 %v8443_v31, %v8437_v56  ;;  %v8445_v47 = vpop.f32.mrb[135].mxu0  ;;  %8151 = vmatprep.mubr.f32.mxu1 %v17100_v20  ;;  %v9776_v31 = vld [vmem:[%s17103_s10 + $0xa0] sm:$0xff] }
0x19d4   :  { %v11752_v60 = vpack.c.bf16 %v8445_v47, %v8439_v11 }
0x19d6   :  { %8152 = vmatmul.mubr.f32.gmra.mrb[110].mxu1 %v8046_v44  ;;  %v8449_v2 = vpop.f32.mrb[136].mxu0  ;;  %11753 = vmatprep.subr.bf16.mxu1 %v11752_v60  ;;  %v9777_v60 = vld [vmem:[%s17103_s10 + $0xa8] sm:$0xff] }
0x19d7   :  { %v8451_v34 = vpop.f32.mrb[137].mxu0  ;;  %11755 = vmatpush1.bf16.msra.mxu1 %v11754_v37  ;;  %8157 = vmatprep.mubr.f32.mxu1 %v17100_v20 }
0x19da   :  { %8158 = vmatmul.mubr.f32.gmra.mrb[112].mxu1 %v8047_v26  ;;  %v8455_v43 = vpop.f32.mrb[138].mxu0 }
0x19db   :  { %v11758_v5 = vpack.c.bf16 %v8455_v43, %v8449_v2  ;;  %v8457_v24 = vpop.f32.mrb[139].mxu0  ;;  %8163 = vmatprep.mubr.f32.mxu1 %v17100_v20  ;;  %v9778_v43 = vld [vmem:[%s17103_s10 + $0xb0] sm:$0xff] }
0x19dc   :  { %v11756_v39 = vpack.c.bf16 %v8457_v24, %v8451_v34 }
0x19de   :  { %8164 = vmatmul.mubr.f32.gmra.mrb[114].mxu1 %v8048_v22  ;;  %v8461_v7 = vpop.f32.mrb[140].mxu0  ;;  %11757 = vmatprep.subr.bf16.mxu1 %v11756_v39  ;;  %v9779_v39 = vld [vmem:[%s17103_s10 + $0xb8] sm:$0xff] }
0x19df   :  { %v8463_v51 = vpop.f32.mrb[141].mxu0  ;;  %11759 = vmatpush1.bf16.msra.mxu1 %v11758_v5  ;;  %8169 = vmatprep.mubr.f32.mxu1 %v17100_v20 }
0x19e2   :  { %8170 = vmatmul.mubr.f32.gmra.mrb[116].mxu1 %v8049_v1  ;;  %v8467_v4 = vpop.f32.mrb[142].mxu0 }
0x19e3   :  { %v11762_v18 = vpack.c.bf16 %v8467_v4, %v8461_v7  ;;  %v8469_v58 = vpop.f32.mrb[143].mxu0  ;;  %8175 = vmatprep.mubr.f32.mxu1 %v17100_v20  ;;  %v9780_v4 = vld [vmem:[%s17103_s10 + $0xc0] sm:$0xff] }
0x19e4   :  { %v11760_v15 = vpack.c.bf16 %v8469_v58, %v8463_v51 }
0x19e6   :  { %8176 = vmatmul.mubr.f32.gmra.mrb[118].mxu1 %v8050_v54  ;;  %v8473_v57 = vpop.f32.mrb[144].mxu0  ;;  %11761 = vmatprep.subr.bf16.mxu1 %v11760_v15  ;;  %v9781_v15 = vld [vmem:[%s17103_s10 + $0xc8] sm:$0xff] }
0x19e7   :  { %v8475_v0 = vpop.f32.mrb[145].mxu0  ;;  %11763 = vmatpush1.bf16.msra.mxu1 %v11762_v18  ;;  %8181 = vmatprep.mubr.f32.mxu1 %v17100_v20 }
0x19ea   :  { %8182 = vmatmul.mubr.f32.gmra.mrb[120].mxu1 %v8051_v61  ;;  %v8479_v50 = vpop.f32.mrb[146].mxu0 }
0x19eb   :  { %v11766_v21 = vpack.c.bf16 %v8479_v50, %v8473_v57  ;;  %v8481_v32 = vpop.f32.mrb[147].mxu0  ;;  %8187 = vmatprep.mubr.f32.mxu1 %v17100_v20  ;;  %v9782_v50 = vld [vmem:[%s17103_s10 + $0xd0] sm:$0xff] }
0x19ec   :  { %v11764_v13 = vpack.c.bf16 %v8481_v32, %v8475_v0 }
0x19ee   :  { %8188 = vmatmul.mubr.f32.gmra.mrb[122].mxu1 %v8052_v59  ;;  %v8485_v17 = vpop.f32.mrb[148].mxu0  ;;  %11765 = vmatprep.subr.bf16.mxu1 %v11764_v13  ;;  %v9783_v13 = vld [vmem:[%s17103_s10 + $0xd8] sm:$0xff] }
0x19ef   :  { %v8487_v55 = vpop.f32.mrb[149].mxu0  ;;  %11767 = vmatpush1.bf16.msra.mxu1 %v11766_v21  ;;  %8193 = vmatprep.mubr.f32.mxu1 %v17100_v20 }
0x19f2   :  { %8194 = vmatmul.mubr.f32.gmra.mrb[124].mxu1 %v8053_v12  ;;  %v8491_v6 = vpop.f32.mrb[150].mxu0 }
0x19f3   :  { %v11770_v45 = vpack.c.bf16 %v8491_v6, %v8485_v17  ;;  %v8493_v8 = vpop.f32.mrb[151].mxu0  ;;  %8199 = vmatprep.mubr.f32.mxu1 %v17100_v20  ;;  %v9784_v6 = vld [vmem:[%s17103_s10 + $0xe0] sm:$0xff] }
0x19f4   :  { %v11768_v10 = vpack.c.bf16 %v8493_v8, %v8487_v55 }
0x19f6   :  { %8200 = vmatmul.mubr.f32.gmra.mrb[126].mxu1 %v8054_v29  ;;  %v8497_v48 = vpop.f32.mrb[152].mxu0  ;;  %11769 = vmatprep.subr.bf16.mxu1 %v11768_v10  ;;  %v9785_v10 = vld [vmem:[%s17103_s10 + $0xe8] sm:$0xff] }
0x19f7   :  { %v8499_v35 = vpop.f32.mrb[153].mxu0  ;;  %11771 = vmatpush1.bf16.msra.mxu1 %v11770_v45  ;;  %8205 = vmatprep.mubr.f32.mxu1 %v17100_v20 }
0x19fa   :  { %8206 = vmatmul.mubr.f32.gmra.mrb[128].mxu1 %v8055_v36  ;;  %v8503_v53 = vpop.f32.mrb[154].mxu0 }
0x19fb   :  { %v11774_v41 = vpack.c.bf16 %v8503_v53, %v8497_v48  ;;  %v8505_v27 = vpop.f32.mrb[155].mxu0  ;;  %8211 = vmatprep.mubr.f32.mxu1 %v17100_v20  ;;  %v9786_v53 = vld [vmem:[%s17103_s10 + $0xf0] sm:$0xff] }
0x19fc   :  { %v11772_v38 = vpack.c.bf16 %v8505_v27, %v8499_v35 }
0x19fe   :  { %8212 = vmatmul.mubr.f32.gmra.mrb[130].mxu1 %v8056_v9  ;;  %11773 = vmatprep.subr.bf16.mxu1 %v11772_v38  ;;  %v8945_v46 = vpop.f32.mrb[156].mxu0  ;;  %v9787_v38 = vld [vmem:[%s17103_s10 + $0xf8] sm:$0xff] }
0x19ff   :  { %11775 = vmatpush1.bf16.msra.mxu1 %v11774_v41  ;;  %v8947_v63 = vpop.f32.mrb[157].mxu0  ;;  %8589 = vmatprep.mubr.f32.mxu1 %v17100_v20 }
0x1a02   :  { %8590 = vmatmul.mubr.f32.vlgmr.msra.gmra.mrb[132].mxu1 %v9772_v40  ;;  %v8951_v42 = vpop.f32.mrb[158].mxu0  ;;  %v9853_v40 = vld [vmem:[%s17103_s10 + $0x108] sm:$0xff] }
0x1a03   :  { %v11842_v14 = vpack.c.bf16 %v8951_v42, %v8945_v46  ;;  %v8953_v25 = vpop.f32.mrb[159].mxu0  ;;  %8595 = vmatprep.mubr.f32.mxu1 %v17100_v20  ;;  %v9854_v42 = vld [vmem:[%s17103_s10 + $0x110] sm:$0xff] }
0x1a04   :  { %v11840_v30 = vpack.c.bf16 %v8953_v25, %v8947_v63  ;;  %v9852_v63 = vld [vmem:[%s17103_s10 + $0x100] sm:$0xff] }
0x1a05   :  { %v9856_v25 = vld [vmem:[%s17103_s10 + $0x120] sm:$0xff] }
0x1a06   :  { %8596 = vmatmul.mubr.f32.gmra.mrb[134].mxu1 %v9773_v33  ;;  %v8957_v52 = vpop.f32.mrb[160].mxu0  ;;  %11841 = vmatprep.subr.bf16.mxu1 %v11840_v30  ;;  %v9857_v33 = vld [vmem:[%s17103_s10 + $0x128] sm:$0xff]  ;;  %v9858_v30 = vld [vmem:[%s17103_s10 + $0x130] sm:$0xff] }
0x1a07   :  { %v8959_v3 = vpop.f32.mrb[161].mxu0  ;;  %11843 = vmatpush1.bf16.msra.mxu1 %v11842_v14  ;;  %8601 = vmatprep.mubr.f32.mxu1 %v17100_v20  ;;  %v9855_v14 = vld [vmem:[%s17103_s10 + $0x118] sm:$0xff] }
0x1a0a   :  { %8602 = vmatmul.mubr.f32.gmra.mrb[136].mxu1 %v9774_v16  ;;  %v8963_v23 = vpop.f32.mrb[162].mxu0  ;;  %v9861_v16 = vld [vmem:[%s17103_s10 + $0x148] sm:$0xff] }
0x1a0b   :  { %v11846_v28 = vpack.c.bf16 %v8963_v23, %v8957_v52  ;;  %v8965_v49 = vpop.f32.mrb[163].mxu0  ;;  %8607 = vmatprep.mubr.f32.mxu1 %v17100_v20  ;;  %v9859_v52 = vld [vmem:[%s17103_s10 + $0x138] sm:$0xff]  ;;  %v9862_v23 = vld [vmem:[%s17103_s10 + $0x150] sm:$0xff] }
0x1a0c   :  { %v11844_v56 = vpack.c.bf16 %v8965_v49, %v8959_v3  ;;  %v9860_v3 = vld [vmem:[%s17103_s10 + $0x140] sm:$0xff] }
0x1a0d   :  { %v9864_v49 = vld [vmem:[%s17103_s10 + $0x160] sm:$0xff] }
0x1a0e   :  { %8608 = vmatmul.mubr.f32.gmra.mrb[138].mxu1 %v9775_v19  ;;  %v8969_v11 = vpop.f32.mrb[164].mxu0  ;;  %11845 = vmatprep.subr.bf16.mxu1 %v11844_v56  ;;  %v9865_v19 = vld [vmem:[%s17103_s10 + $0x168] sm:$0xff]  ;;  %v9866_v56 = vld [vmem:[%s17103_s10 + $0x170] sm:$0xff] }
0x1a0f   :  { %v8971_v62 = vpop.f32.mrb[165].mxu0  ;;  %11847 = vmatpush1.bf16.msra.mxu1 %v11846_v28  ;;  %8613 = vmatprep.mubr.f32.mxu1 %v17100_v20  ;;  %v9863_v28 = vld [vmem:[%s17103_s10 + $0x158] sm:$0xff] }
0x1a12   :  { %8614 = vmatmul.mubr.f32.gmra.mrb[140].mxu1 %v9776_v31  ;;  %v8975_v37 = vpop.f32.mrb[166].mxu0 }
0x1a13   :  { %v11850_v47 = vpack.c.bf16 %v8975_v37, %v8969_v11  ;;  %v8977_v44 = vpop.f32.mrb[167].mxu0  ;;  %8619 = vmatprep.mubr.f32.mxu1 %v17100_v20  ;;  %v9867_v11 = vld [vmem:[%s17103_s10 + $0x178] sm:$0xff] }
0x1a14   :  { %v11848_v2 = vpack.c.bf16 %v8977_v44, %v8971_v62 }
0x1a16   :  { %8620 = vmatmul.mubr.f32.gmra.mrb[142].mxu1 %v9777_v60  ;;  %v8981_v34 = vpop.f32.mrb[168].mxu0  ;;  %11849 = vmatprep.subr.bf16.mxu1 %v11848_v2 }
0x1a17   :  { %v8983_v26 = vpop.f32.mrb[169].mxu0  ;;  %11851 = vmatpush1.bf16.msra.mxu1 %v11850_v47  ;;  %8625 = vmatprep.mubr.f32.mxu1 %v17100_v20 }
0x1a1a   :  { %8626 = vmatmul.mubr.f32.gmra.mrb[144].mxu1 %v9778_v43  ;;  %v8987_v5 = vpop.f32.mrb[170].mxu0 }
0x1a1b   :  { %v11854_v24 = vpack.c.bf16 %v8987_v5, %v8981_v34  ;;  %v8989_v22 = vpop.f32.mrb[171].mxu0  ;;  %8631 = vmatprep.mubr.f32.mxu1 %v17100_v20 }
0x1a1c   :  { %v11852_v7 = vpack.c.bf16 %v8989_v22, %v8983_v26 }
0x1a1e   :  { %8632 = vmatmul.mubr.f32.gmra.mrb[146].mxu1 %v9779_v39  ;;  %v8993_v51 = vpop.f32.mrb[172].mxu0  ;;  %11853 = vmatprep.subr.bf16.mxu1 %v11852_v7 }
0x1a1f   :  { %v8995_v1 = vpop.f32.mrb[173].mxu0  ;;  %11855 = vmatpush1.bf16.msra.mxu1 %v11854_v24  ;;  %8637 = vmatprep.mubr.f32.mxu1 %v17100_v20 }
0x1a22   :  { %8638 = vmatmul.mubr.f32.gmra.mrb[148].mxu1 %v9780_v4  ;;  %v8999_v18 = vpop.f32.mrb[174].mxu0 }
0x1a23   :  { %v11858_v58 = vpack.c.bf16 %v8999_v18, %v8993_v51  ;;  %v9001_v54 = vpop.f32.mrb[175].mxu0  ;;  %8643 = vmatprep.mubr.f32.mxu1 %v17100_v20 }
0x1a24   :  { %v11856_v57 = vpack.c.bf16 %v9001_v54, %v8995_v1 }
0x1a26   :  { %8644 = vmatmul.mubr.f32.gmra.mrb[150].mxu1 %v9781_v15  ;;  %v9005_v0 = vpop.f32.mrb[176].mxu0  ;;  %11857 = vmatprep.subr.bf16.mxu1 %v11856_v57 }
0x1a27   :  { %v9007_v61 = vpop.f32.mrb[177].mxu0  ;;  %11859 = vmatpush1.bf16.msra.mxu1 %v11858_v58  ;;  %8649 = vmatprep.mubr.f32.mxu1 %v17100_v20 }
0x1a2a   :  { %8650 = vmatmul.mubr.f32.gmra.mrb[152].mxu1 %v9782_v50  ;;  %v9011_v21 = vpop.f32.mrb[178].mxu0 }
0x1a2b   :  { %v11862_v32 = vpack.c.bf16 %v9011_v21, %v9005_v0  ;;  %v9013_v59 = vpop.f32.mrb[179].mxu0  ;;  %8655 = vmatprep.mubr.f32.mxu1 %v17100_v20 }
0x1a2c   :  { %v11860_v17 = vpack.c.bf16 %v9013_v59, %v9007_v61 }
0x1a2e   :  { %8656 = vmatmul.mubr.f32.gmra.mrb[154].mxu1 %v9783_v13  ;;  %v9017_v55 = vpop.f32.mrb[180].mxu0  ;;  %11861 = vmatprep.subr.bf16.mxu1 %v11860_v17 }
0x1a2f   :  { %v9019_v12 = vpop.f32.mrb[181].mxu0  ;;  %11863 = vmatpush1.bf16.msra.mxu1 %v11862_v32  ;;  %8661 = vmatprep.mubr.f32.mxu1 %v17100_v20 }
0x1a32   :  { %8662 = vmatmul.mubr.f32.gmra.mrb[156].mxu1 %v9784_v6  ;;  %v9023_v45 = vpop.f32.mrb[182].mxu0 }
0x1a33   :  { %v11866_v8 = vpack.c.bf16 %v9023_v45, %v9017_v55  ;;  %v9025_v29 = vpop.f32.mrb[183].mxu0  ;;  %8667 = vmatprep.mubr.f32.mxu1 %v17100_v20 }
0x1a34   :  { %v11864_v48 = vpack.c.bf16 %v9025_v29, %v9019_v12 }
0x1a36   :  { %8668 = vmatmul.mubr.f32.gmra.mrb[158].mxu1 %v9785_v10  ;;  %v9029_v35 = vpop.f32.mrb[184].mxu0  ;;  %11865 = vmatprep.subr.bf16.mxu1 %v11864_v48 }
0x1a37   :  { %v9031_v36 = vpop.f32.mrb[185].mxu0  ;;  %11867 = vmatpush1.bf16.msra.mxu1 %v11866_v8  ;;  %8673 = vmatprep.mubr.f32.mxu1 %v17100_v20 }
0x1a3a   :  { %8674 = vmatmul.mubr.f32.gmra.mrb[160].mxu1 %v9786_v53  ;;  %v9035_v41 = vpop.f32.mrb[186].mxu0 }
0x1a3b   :  { %v11870_v27 = vpack.c.bf16 %v9035_v41, %v9029_v35  ;;  %v9037_v9 = vpop.f32.mrb[187].mxu0  ;;  %8679 = vmatprep.mubr.f32.mxu1 %v17100_v20 }
0x1a3c   :  { %v11868_v46 = vpack.c.bf16 %v9037_v9, %v9031_v36 }
0x1a3e   :  { %8680 = vmatmul.mubr.f32.gmra.mrb[162].mxu1 %v9787_v38  ;;  %11869 = vmatprep.subr.bf16.mxu1 %v11868_v46 }
0x1a3f   :  { %11871 = vmatpush1.bf16.msra.mxu1 %v11870_v27  ;;  %9121 = vmatprep.mubr.f32.mxu1 %v17100_v20 }
0x1a42   :  { %9122 = vmatmul.mubr.f32.vlgmr.msra.gmra.mrb[164].mxu1 %v9852_v63 }
0x1a43   :  { %9127 = vmatprep.mubr.f32.mxu1 %v17100_v20 }
0x1a46   :  { %9128 = vmatmul.mubr.f32.gmra.mrb[166].mxu1 %v9853_v40 }
0x1a47   :  { %9133 = vmatprep.mubr.f32.mxu1 %v17100_v20 }
0x1a4a   :  { %9134 = vmatmul.mubr.f32.gmra.mrb[168].mxu1 %v9854_v42 }
0x1a4b   :  { %9139 = vmatprep.mubr.f32.mxu1 %v17100_v20 }
0x1a4e   :  { %9140 = vmatmul.mubr.f32.gmra.mrb[170].mxu1 %v9855_v14 }
0x1a4f   :  { %9145 = vmatprep.mubr.f32.mxu1 %v17100_v20 }
0x1a52   :  { %9146 = vmatmul.mubr.f32.gmra.mrb[172].mxu1 %v9856_v25 }
0x1a53   :  { %9151 = vmatprep.mubr.f32.mxu1 %v17100_v20 }
0x1a56   :  { %9152 = vmatmul.mubr.f32.gmra.mrb[174].mxu1 %v9857_v33 }
0x1a57   :  { %9157 = vmatprep.mubr.f32.mxu1 %v17100_v20 }
0x1a5a   :  { %9158 = vmatmul.mubr.f32.gmra.mrb[176].mxu1 %v9858_v30 }
0x1a5b   :  { %9163 = vmatprep.mubr.f32.mxu1 %v17100_v20 }
0x1a5e   :  { %9164 = vmatmul.mubr.f32.gmra.mrb[178].mxu1 %v9859_v52 }
0x1a5f   :  { %9169 = vmatprep.mubr.f32.mxu1 %v17100_v20 }
0x1a62   :  { %9170 = vmatmul.mubr.f32.gmra.mrb[180].mxu1 %v9860_v3 }
0x1a63   :  { %9175 = vmatprep.mubr.f32.mxu1 %v17100_v20 }
0x1a66   :  { %9176 = vmatmul.mubr.f32.gmra.mrb[182].mxu1 %v9861_v16 }
0x1a67   :  { %9181 = vmatprep.mubr.f32.mxu1 %v17100_v20 }
0x1a6a   :  { %9182 = vmatmul.mubr.f32.gmra.mrb[184].mxu1 %v9862_v23 }
0x1a6b   :  { %9187 = vmatprep.mubr.f32.mxu1 %v17100_v20 }
0x1a6e   :  { %9188 = vmatmul.mubr.f32.gmra.mrb[186].mxu1 %v9863_v28 }
0x1a6f   :  { %9193 = vmatprep.mubr.f32.mxu1 %v17100_v20 }
0x1a72   :  { %9194 = vmatmul.mubr.f32.gmra.mrb[188].mxu1 %v9864_v49 }
0x1a73   :  { %9199 = vmatprep.mubr.f32.mxu1 %v17100_v20 }
0x1a76   :  { %9200 = vmatmul.mubr.f32.gmra.mrb[190].mxu1 %v9865_v19 }
0x1a77   :  { %9205 = vmatprep.mubr.f32.mxu1 %v17100_v20 }
0x1a7a   :  { %9206 = vmatmul.mubr.f32.gmra.mrb[192].mxu1 %v9866_v56 }
0x1a7b   :  { %9211 = vmatprep.mubr.f32.mxu1 %v17100_v20 }
0x1a7e   :  { %9212 = vmatmul.mubr.f32.gmra.mrb[194].mxu1 %v9867_v11 }
0x1a95   :  { %v8123_v62 = vpop.f32.mrb[100].mxu1 }
0x1a96   :  { %v8125_v31 = vpop.f32.mrb[101].mxu1 }
0x1a97   :  { %8219 = vst.msk [vmem:[#allocation6 + $0x8] sm:$0xff] %vm5942_vm10, %v8125_v31 }
0x1a99   :  { %v8129_v37 = vpop.f32.mrb[102].mxu1 }
0x1a9a   :  { %v8131_v47 = vpop.f32.mrb[103].mxu1 }
0x1a9b   :  { %8221 = vst.msk [vmem:[#allocation6 + $0x18] sm:$0xff] %vm5942_vm10, %v8131_v47 }
0x1a9d   :  { %v8135_v44 = vpop.f32.mrb[104].mxu1 }
0x1a9e   :  { %v8137_v60 = vpop.f32.mrb[105].mxu1  ;;  %v8687_v45 = vld [vmem:[#allocation6 + $0x8] sm:$0xff] }
0x1a9f   :  { %8223 = vst.msk [vmem:[#allocation6 + $0x28] sm:$0xff] %vm5942_vm10, %v8137_v60 }
0x1aa1   :  { %v8141_v2 = vpop.f32.mrb[106].mxu1 }
0x1aa2   :  { %v8143_v34 = vpop.f32.mrb[107].mxu1  ;;  %v8689_v35 = vld [vmem:[#allocation6 + $0x18] sm:$0xff] }
0x1aa3   :  { %8225 = vst.msk [vmem:[#allocation6 + $0x38] sm:$0xff] %vm5942_vm10, %v8143_v34 }
0x1aa5   :  { %v8147_v20 = vpop.f32.mrb[108].mxu1 }
0x1aa6   :  { %v8149_v26 = vpop.f32.mrb[109].mxu1  ;;  %v8691_v9 = vld [vmem:[#allocation6 + $0x28] sm:$0xff] }
0x1aa7   :  { %8227 = vst.msk [vmem:[#allocation6 + $0x48] sm:$0xff] %vm5942_vm10, %v8149_v26 }
0x1aa9   :  { %v16818_v43 = vpop.f32.mrb[110].mxu1 }
0x1aaa   :  { %v8155_v5 = vpop.f32.mrb[111].mxu1  ;;  %v8693_v42 = vld [vmem:[#allocation6 + $0x38] sm:$0xff] }
0x1aab   :  { %8229 = vst.msk [vmem:[#allocation6 + $0x58] sm:$0xff] %vm5942_vm10, %v8155_v5 }
0x1aad   :  { %v16821_v24 = vpop.f32.mrb[112].mxu1 }
0x1aae   :  { %v8161_v22 = vpop.f32.mrb[113].mxu1  ;;  %v8695_v52 = vld [vmem:[#allocation6 + $0x48] sm:$0xff] }
0x1aaf   :  { %8231 = vst.msk [vmem:[#allocation6 + $0x68] sm:$0xff] %vm5942_vm10, %v8161_v22 }
0x1ab1   :  { %v16824_v39 = vpop.f32.mrb[114].mxu1 }
0x1ab2   :  { %v8167_v7 = vpop.f32.mrb[115].mxu1  ;;  %v8697_v49 = vld [vmem:[#allocation6 + $0x58] sm:$0xff] }
0x1ab3   :  { %8233 = vst.msk [vmem:[#allocation6 + $0x78] sm:$0xff] %vm5942_vm10, %v8167_v7 }
0x1ab5   :  { %v16827_v51 = vpop.f32.mrb[116].mxu1 }
0x1ab6   :  { %v8173_v1 = vpop.f32.mrb[117].mxu1  ;;  %v8699_v31 = vld [vmem:[#allocation6 + $0x68] sm:$0xff] }
0x1ab7   :  { %8235 = vst.msk [vmem:[#allocation6 + $0x88] sm:$0xff] %vm5942_vm10, %v8173_v1 }
0x1ab9   :  { %v16830_v4 = vpop.f32.mrb[118].mxu1 }
0x1aba   :  { %v8179_v18 = vpop.f32.mrb[119].mxu1 }
0x1abb   :  { %8237 = vst.msk [vmem:[#allocation6 + $0x98] sm:$0xff] %vm5942_vm10, %v8179_v18 }
0x1abd   :  { %v16833_v58 = vpop.f32.mrb[120].mxu1 }
0x1abe   :  { %v8185_v54 = vpop.f32.mrb[121].mxu1  ;;  %v8703_v5 = vld [vmem:[#allocation6 + $0x88] sm:$0xff] }
0x1abf   :  { %8239 = vst.msk [vmem:[#allocation6 + $0xa8] sm:$0xff] %vm5942_vm10, %v8185_v54 }
0x1ac1   :  { %v16836_v15 = vpop.f32.mrb[122].mxu1 }
0x1ac2   :  { %v8191_v57 = vpop.f32.mrb[123].mxu1  ;;  %v8705_v1 = vld [vmem:[#allocation6 + $0x98] sm:$0xff] }
0x1ac3   :  { %8241 = vst.msk [vmem:[#allocation6 + $0xb8] sm:$0xff] %vm5942_vm10, %v8191_v57 }
0x1ac5   :  { %v16839_v0 = vpop.f32.mrb[124].mxu1 }
0x1ac6   :  { %v8197_v61 = vpop.f32.mrb[125].mxu1 }
0x1ac7   :  { %8243 = vst.msk [vmem:[#allocation6 + $0xc8] sm:$0xff] %vm5942_vm10, %v8197_v61  ;;  %v8707_v61 = vld [vmem:[#allocation6 + $0xa8] sm:$0xff] }
0x1ac9   :  { %v16842_v50 = vpop.f32.mrb[126].mxu1 }
0x1aca   :  { %v8203_v21 = vpop.f32.mrb[127].mxu1 }
0x1acb   :  { %8245 = vst.msk [vmem:[#allocation6 + $0xd8] sm:$0xff] %vm5942_vm10, %v8203_v21 }
0x1acd   :  { %v16845_v32 = vpop.f32.mrb[128].mxu1 }
0x1ace   :  { %v8209_v59 = vpop.f32.mrb[129].mxu1 }
0x1acf   :  { %8247 = vst.msk [vmem:[#allocation6 + $0xe8] sm:$0xff] %vm5942_vm10, %v8209_v59 }
0x1ad1   :  { %v16848_v13 = vpop.f32.mrb[130].mxu1 }
0x1ad2   :  { %v8215_v17 = vpop.f32.mrb[131].mxu1 }
0x1ad3   :  { %8249 = vst.msk [vmem:[#allocation6 + $0xf8] sm:$0xff] %vm5942_vm10, %v8215_v17 }
0x1ad5   :  { %v8591_v55 = vpop.f32.mrb[132].mxu1 }
0x1ad6   :  { %v16851_v12 = vadd.f32 %v8591_v55, %v8123_v62  ;;  %v8593_v6 = vpop.f32.mrb[133].mxu1  ;;  %v8709_v55 = vld [vmem:[#allocation6 + $0xb8] sm:$0xff] }
0x1ad7   :  { %v8719_v8 = vadd.f32 %v8687_v45, %v8593_v6 }
0x1ad9   :  { %8751 = vst.msk [vmem:[#allocation6 + $0x8] sm:$0xff] %vm5942_vm10, %v8719_v8  ;;  %v8597_v29 = vpop.f32.mrb[134].mxu1 }
0x1ada   :  { %v16854_v10 = vadd.f32 %v8597_v29, %v8129_v37  ;;  %v8599_v48 = vpop.f32.mrb[135].mxu1  ;;  %v8711_v29 = vld [vmem:[#allocation6 + $0xc8] sm:$0xff] }
0x1adb   :  { %v8721_v36 = vadd.f32 %v8689_v35, %v8599_v48 }
0x1add   :  { %8753 = vst.msk [vmem:[#allocation6 + $0x18] sm:$0xff] %vm5942_vm10, %v8721_v36  ;;  %v8603_v53 = vpop.f32.mrb[136].mxu1 }
0x1ade   :  { %v16857_v41 = vadd.f32 %v8603_v53, %v8135_v44  ;;  %v8605_v27 = vpop.f32.mrb[137].mxu1  ;;  %v8713_v53 = vld [vmem:[#allocation6 + $0xd8] sm:$0xff] }
0x1adf   :  { %v8723_v38 = vadd.f32 %v8691_v9, %v8605_v27 }
0x1ae1   :  { %8755 = vst.msk [vmem:[#allocation6 + $0x28] sm:$0xff] %vm5942_vm10, %v8723_v38  ;;  %v8609_v46 = vpop.f32.mrb[138].mxu1 }
0x1ae2   :  { %v16860_v63 = vadd.f32 %v8609_v46, %v8141_v2  ;;  %v8611_v40 = vpop.f32.mrb[139].mxu1  ;;  %v8701_v2 = vld [vmem:[#allocation6 + $0x78] sm:$0xff]  ;;  %v8715_v46 = vld [vmem:[#allocation6 + $0xe8] sm:$0xff] }
0x1ae3   :  { %v8725_v14 = vadd.f32 %v8693_v42, %v8611_v40 }
0x1ae5   :  { %8757 = vst.msk [vmem:[#allocation6 + $0x38] sm:$0xff] %vm5942_vm10, %v8725_v14  ;;  %v8615_v25 = vpop.f32.mrb[140].mxu1 }
0x1ae6   :  { %v16863_v33 = vadd.f32 %v8615_v25, %v8147_v20  ;;  %v8617_v30 = vpop.f32.mrb[141].mxu1  ;;  %v8717_v25 = vld [vmem:[#allocation6 + $0xf8] sm:$0xff] }
0x1ae7   :  { %v8727_v3 = vadd.f32 %v8695_v52, %v8617_v30 }
0x1ae9   :  { %8759 = vst.msk [vmem:[#allocation6 + $0x48] sm:$0xff] %vm5942_vm10, %v8727_v3  ;;  %v8621_v16 = vpop.f32.mrb[142].mxu1 }
0x1aea   :  { %v16867_v23 = vadd.f32 %v8621_v16, %v16818_v43  ;;  %v8623_v28 = vpop.f32.mrb[143].mxu1 }
0x1aeb   :  { %v8729_v19 = vadd.f32 %v8697_v49, %v8623_v28 }
0x1aed   :  { %8761 = vst.msk [vmem:[#allocation6 + $0x58] sm:$0xff] %vm5942_vm10, %v8729_v19  ;;  %v8627_v56 = vpop.f32.mrb[144].mxu1 }
0x1aee   :  { %v16871_v11 = vadd.f32 %v8627_v56, %v16821_v24  ;;  %v8629_v62 = vpop.f32.mrb[145].mxu1 }
0x1aef   :  { %v8731_v37 = vadd.f32 %v8699_v31, %v8629_v62 }
0x1af1   :  { %8763 = vst.msk [vmem:[#allocation6 + $0x68] sm:$0xff] %vm5942_vm10, %v8731_v37  ;;  %v8633_v47 = vpop.f32.mrb[146].mxu1 }
0x1af2   :  { %v16875_v44 = vadd.f32 %v8633_v47, %v16824_v39  ;;  %v8635_v60 = vpop.f32.mrb[147].mxu1 }
0x1af3   :  { %v8733_v34 = vadd.f32 %v8701_v2, %v8635_v60 }
0x1af5   :  { %8765 = vst.msk [vmem:[#allocation6 + $0x78] sm:$0xff] %vm5942_vm10, %v8733_v34  ;;  %v8639_v20 = vpop.f32.mrb[148].mxu1 }
0x1af6   :  { %v16879_v26 = vadd.f32 %v8639_v20, %v16827_v51  ;;  %v8641_v43 = vpop.f32.mrb[149].mxu1 }
0x1af7   :  { %v8735_v24 = vadd.f32 %v8703_v5, %v8641_v43  ;;  %v9225_v5 = vld [vmem:[#allocation6 + $0x38] sm:$0xff] }
0x1af9   :  { %8767 = vst.msk [vmem:[#allocation6 + $0x88] sm:$0xff] %vm5942_vm10, %v8735_v24  ;;  %v8645_v22 = vpop.f32.mrb[150].mxu1 }
0x1afa   :  { %v16883_v7 = vadd.f32 %v8645_v22, %v16830_v4  ;;  %v8647_v39 = vpop.f32.mrb[151].mxu1 }
0x1afb   :  { %v8737_v18 = vadd.f32 %v8705_v1, %v8647_v39 }
0x1afd   :  { %8769 = vst.msk [vmem:[#allocation6 + $0x98] sm:$0xff] %vm5942_vm10, %v8737_v18  ;;  %v8651_v54 = vpop.f32.mrb[152].mxu1 }
0x1afe   :  { %v16887_v57 = vadd.f32 %v8651_v54, %v16833_v58  ;;  %v8653_v51 = vpop.f32.mrb[153].mxu1  ;;  %v9227_v54 = vld [vmem:[#allocation6 + $0x48] sm:$0xff] }
0x1aff   :  { %v8739_v21 = vadd.f32 %v8707_v61, %v8653_v51 }
0x1b01   :  { %8771 = vst.msk [vmem:[#allocation6 + $0xa8] sm:$0xff] %vm5942_vm10, %v8739_v21  ;;  %v8657_v59 = vpop.f32.mrb[154].mxu1 }
0x1b02   :  { %v16891_v17 = vadd.f32 %v8657_v59, %v16836_v15  ;;  %v8659_v4 = vpop.f32.mrb[155].mxu1 }
0x1b03   :  { %v8741_v6 = vadd.f32 %v8709_v55, %v8659_v4  ;;  %v9229_v55 = vld [vmem:[#allocation6 + $0x58] sm:$0xff] }
0x1b05   :  { %8773 = vst.msk [vmem:[#allocation6 + $0xb8] sm:$0xff] %vm5942_vm10, %v8741_v6  ;;  %v8663_v45 = vpop.f32.mrb[156].mxu1 }
0x1b06   :  { %v16895_v8 = vadd.f32 %v8663_v45, %v16839_v0  ;;  %v8665_v58 = vpop.f32.mrb[157].mxu1 }
0x1b07   :  { %v8743_v48 = vadd.f32 %v8711_v29, %v8665_v58 }
0x1b09   :  { %8775 = vst.msk [vmem:[#allocation6 + $0xc8] sm:$0xff] %vm5942_vm10, %v8743_v48  ;;  %v8669_v35 = vpop.f32.mrb[158].mxu1 }
0x1b0a   :  { %v16899_v36 = vadd.f32 %v8669_v35, %v16842_v50  ;;  %v8671_v15 = vpop.f32.mrb[159].mxu1  ;;  %v9231_v35 = vld [vmem:[#allocation6 + $0x68] sm:$0xff] }
0x1b0b   :  { %v8745_v27 = vadd.f32 %v8713_v53, %v8671_v15 }
0x1b0d   :  { %8777 = vst.msk [vmem:[#allocation6 + $0xd8] sm:$0xff] %vm5942_vm10, %v8745_v27  ;;  %v8675_v9 = vpop.f32.mrb[160].mxu1 }
0x1b0e   :  { %v16903_v38 = vadd.f32 %v8675_v9, %v16845_v32  ;;  %v8677_v0 = vpop.f32.mrb[161].mxu1  ;;  %v9219_v32 = vld [vmem:[#allocation6 + $0x8] sm:$0xff] }
0x1b0f   :  { %v8747_v40 = vadd.f32 %v8715_v46, %v8677_v0 }
0x1b11   :  { %8779 = vst.msk [vmem:[#allocation6 + $0xe8] sm:$0xff] %vm5942_vm10, %v8747_v40  ;;  %v8681_v42 = vpop.f32.mrb[162].mxu1  ;;  %v9233_v40 = vld [vmem:[#allocation6 + $0x78] sm:$0xff] }
0x1b12   :  { %v16907_v14 = vadd.f32 %v8681_v42, %v16848_v13  ;;  %v8683_v50 = vpop.f32.mrb[163].mxu1  ;;  %v9221_v13 = vld [vmem:[#allocation6 + $0x18] sm:$0xff] }
0x1b13   :  { %v8749_v30 = vadd.f32 %v8717_v25, %v8683_v50 }
0x1b15   :  { %8781 = vst.msk [vmem:[#allocation6 + $0xf8] sm:$0xff] %vm5942_vm10, %v8749_v30  ;;  %v9123_v52 = vpop.f32.mrb[164].mxu1 }
0x1b16   :  { %v9250_v3 = vadd.f32 %v9123_v52, %v16851_v12  ;;  %v9125_v16 = vpop.f32.mrb[165].mxu1  ;;  %v9223_v12 = vld [vmem:[#allocation6 + $0x28] sm:$0xff] }
0x1b17   :  { %v9251_v28 = vadd.f32 %v9219_v32, %v9125_v16  ;;  %v9235_v16 = vld [vmem:[#allocation6 + $0x88] sm:$0xff] }
0x1b18   :  { %12065 = vtanh.f32 %v9250_v3 }
0x1b19   :  { %9283 = vst.msk [vmem:[#allocation6 + $0x8] sm:$0xff] %vm5942_vm10, %v9251_v28  ;;  %v9129_v49 = vpop.f32.mrb[166].mxu1 }
0x1b1a   :  { %v9252_v19 = vadd.f32 %v9129_v49, %v16854_v10  ;;  %v9131_v56 = vpop.f32.mrb[167].mxu1 }
0x1b1b   :  { %v9253_v62 = vadd.f32 %v9221_v13, %v9131_v56 }
0x1b1c   :  { %12067 = vtanh.f32 %v9252_v19 }
0x1b1d   :  { %9285 = vst.msk [vmem:[#allocation6 + $0x18] sm:$0xff] %vm5942_vm10, %v9253_v62  ;;  %v9135_v31 = vpop.f32.mrb[168].mxu1  ;;  %v9237_v62 = vld [vmem:[#allocation6 + $0x98] sm:$0xff] }
0x1b1e   :  { %v9254_v37 = vadd.f32 %v9135_v31, %v16857_v41  ;;  %v9137_v47 = vpop.f32.mrb[169].mxu1 }
0x1b1f   :  { %v9255_v60 = vadd.f32 %v9223_v12, %v9137_v47 }
0x1b20   :  { %v9315_v2 = vld [vmem:[#allocation6 + $0x8] sm:$0xff]  ;;  %12069 = vtanh.f32 %v9254_v37 }
0x1b21   :  { %12071 = vtanh.f32 %v9315_v2  ;;  %9287 = vst.msk [vmem:[#allocation6 + $0x28] sm:$0xff] %vm5942_vm10, %v9255_v60  ;;  %v9141_v34 = vpop.f32.mrb[170].mxu1 }
0x1b22   :  { %v12066_v20 = vpop.eup %12065  ;;  %v9256_v10 = vadd.f32 %v9141_v34, %v16860_v63  ;;  %v9143_v43 = vpop.f32.mrb[171].mxu1  ;;  %v9239_v34 = vld [vmem:[#allocation6 + $0xa8] sm:$0xff] }
0x1b23   :  { %v9257_v24 = vadd.f32 %v9225_v5, %v9143_v43  ;;  %9403 = vrot.lane.b32.xlu0 %v12066_v20, %s12322_s3  ;;  %9378 = vst.msk [vmem:[#allocation19] sm:$0xff] %vm5942_vm10, %v12066_v20 }
0x1b24   :  { %v9317_v41 = vld [vmem:[#allocation6 + $0x18] sm:$0xff]  ;;  %12073 = vtanh.f32 %v9256_v10 }
0x1b25   :  { %12075 = vtanh.f32 %v9317_v41  ;;  %9289 = vst.msk [vmem:[#allocation6 + $0x38] sm:$0xff] %vm5942_vm10, %v9257_v24  ;;  %v9147_v22 = vpop.f32.mrb[172].mxu1 }
0x1b26   :  { %v12068_v39 = vpop.eup %12067  ;;  %v9258_v1 = vadd.f32 %v9147_v22, %v16863_v33  ;;  %v9149_v18 = vpop.f32.mrb[173].mxu1  ;;  %v9241_v22 = vld [vmem:[#allocation6 + $0xb8] sm:$0xff] }
0x1b27   :  { %v9259_v51 = vadd.f32 %v9227_v54, %v9149_v18  ;;  %9405 = vrot.lane.b32.xlu0 %v12068_v39, %s12322_s3  ;;  %9379 = vst.msk [vmem:[#allocation19 + $0x8] sm:$0xff] %vm5942_vm10, %v12068_v39 }
0x1b28   :  { %v9319_v63 = vld [vmem:[#allocation6 + $0x28] sm:$0xff]  ;;  %12077 = vtanh.f32 %v9258_v1 }
0x1b29   :  { %12079 = vtanh.f32 %v9319_v63  ;;  %9291 = vst.msk [vmem:[#allocation6 + $0x48] sm:$0xff] %vm5942_vm10, %v9259_v51  ;;  %v9153_v61 = vpop.f32.mrb[174].mxu1 }
0x1b2a   :  { %v12070_v21 = vpop.eup %12069  ;;  %v9260_v59 = vadd.f32 %v9153_v61, %v16867_v23  ;;  %v9155_v4 = vpop.f32.mrb[175].mxu1  ;;  %v9243_v61 = vld [vmem:[#allocation6 + $0xc8] sm:$0xff] }
0x1b2b   :  { %v12072_v6 = vpop.eup %12071  ;;  %v9261_v33 = vadd.f32 %v9229_v55, %v9155_v4  ;;  %9407 = vrot.lane.b32.xlu1 %v12070_v21, %s12322_s3  ;;  %9380 = vst.msk [vmem:[#allocation19 + $0x10] sm:$0xff] %vm5942_vm10, %v12070_v21 }
0x1b2c   :  { %9478 = vst.msk [vmem:[#allocation19 + $0x80] sm:$0xff] %vm5942_vm10, %v12072_v6  ;;  %v9321_v45 = vld [vmem:[#allocation6 + $0x38] sm:$0xff]  ;;  %12081 = vtanh.f32 %v9260_v59 }
0x1b2d   :  { %12083 = vtanh.f32 %v9321_v45  ;;  %9293 = vst.msk [vmem:[#allocation6 + $0x58] sm:$0xff] %vm5942_vm10, %v9261_v33  ;;  %v9159_v58 = vpop.f32.mrb[176].mxu1  ;;  %v9245_v45 = vld [vmem:[#allocation6 + $0xd8] sm:$0xff] }
0x1b2e   :  { %v12074_v29 = vpop.eup %12073  ;;  %v9262_v48 = vadd.f32 %v9159_v58, %v16871_v11  ;;  %v9161_v23 = vpop.f32.mrb[177].mxu1 }
0x1b2f   :  { %v12076_v15 = vpop.eup %12075  ;;  %v9263_v53 = vadd.f32 %v9231_v35, %v9161_v23  ;;  %9409 = vrot.lane.b32.xlu1 %v12074_v29, %s12322_s3  ;;  %9381 = vst.msk [vmem:[#allocation19 + $0x18] sm:$0xff] %vm5942_vm10, %v12074_v29 }
0x1b30   :  { %9479 = vst.msk [vmem:[#allocation19 + $0x88] sm:$0xff] %vm5942_vm10, %v12076_v15  ;;  %v9323_v27 = vld [vmem:[#allocation6 + $0x48] sm:$0xff]  ;;  %12085 = vtanh.f32 %v9262_v48 }
0x1b31   :  { %12087 = vtanh.f32 %v9323_v27  ;;  %9295 = vst.msk [vmem:[#allocation6 + $0x68] sm:$0xff] %vm5942_vm10, %v9263_v53  ;;  %v9165_v9 = vpop.f32.mrb[178].mxu1  ;;  %v9247_v53 = vld [vmem:[#allocation6 + $0xe8] sm:$0xff] }
0x1b32   :  { %v12078_v0 = vpop.eup %12077  ;;  %v9264_v46 = vadd.f32 %v9165_v9, %v16875_v44  ;;  %v9167_v11 = vpop.f32.mrb[179].mxu1 }
0x1b33   :  { %v12080_v42 = vpop.eup %12079  ;;  %v9265_v50 = vadd.f32 %v9233_v40, %v9167_v11  ;;  %9411 = vrot.lane.b32.xlu0 %v12078_v0, %s12322_s3  ;;  %9382 = vst.msk [vmem:[#allocation19 + $0x20] sm:$0xff] %vm5942_vm10, %v12078_v0 }
0x1b34   :  { %9480 = vst.msk [vmem:[#allocation19 + $0x90] sm:$0xff] %vm5942_vm10, %v12080_v42  ;;  %v9325_v25 = vld [vmem:[#allocation6 + $0x58] sm:$0xff]  ;;  %12089 = vtanh.f32 %v9264_v46 }
0x1b35   :  { %12091 = vtanh.f32 %v9325_v25  ;;  %9297 = vst.msk [vmem:[#allocation6 + $0x78] sm:$0xff] %vm5942_vm10, %v9265_v50  ;;  %v9171_v30 = vpop.f32.mrb[180].mxu1  ;;  %v9249_v42 = vld [vmem:[#allocation6 + $0xf8] sm:$0xff] }
0x1b36   :  { %v12082_v52 = vpop.eup %12081  ;;  %v9266_v3 = vadd.f32 %v9171_v30, %v16879_v26  ;;  %v9173_v44 = vpop.f32.mrb[181].mxu1 }
0x1b37   :  { %v12084_v32 = vpop.eup %12083  ;;  %v9267_v28 = vadd.f32 %v9235_v16, %v9173_v44  ;;  %9413 = vrot.lane.b32.xlu1 %v12082_v52, %s12322_s3  ;;  %9383 = vst.msk [vmem:[#allocation19 + $0x28] sm:$0xff] %vm5942_vm10, %v12082_v52 }
0x1b38   :  { %9481 = vst.msk [vmem:[#allocation19 + $0x98] sm:$0xff] %vm5942_vm10, %v12084_v32  ;;  %v9327_v49 = vld [vmem:[#allocation6 + $0x68] sm:$0xff]  ;;  %12093 = vtanh.f32 %v9266_v3 }
0x1b39   :  { %12095 = vtanh.f32 %v9327_v49  ;;  %9299 = vst.msk [vmem:[#allocation6 + $0x88] sm:$0xff] %vm5942_vm10, %v9267_v28  ;;  %v9177_v19 = vpop.f32.mrb[182].mxu1 }
0x1b3a   :  { %v12086_v56 = vpop.eup %12085  ;;  %v9268_v13 = vadd.f32 %v9177_v19, %v16883_v7  ;;  %v9179_v26 = vpop.f32.mrb[183].mxu1 }
0x1b3b   :  { %v12088_v31 = vpop.eup %12087  ;;  %v9269_v37 = vadd.f32 %v9237_v62, %v9179_v26  ;;  %9415 = vrot.lane.b32.xlu0 %v12086_v56, %s12322_s3  ;;  %9384 = vst.msk [vmem:[#allocation19 + $0x30] sm:$0xff] %vm5942_vm10, %v12086_v56 }
0x1b3c   :  { %9482 = vst.msk [vmem:[#allocation19 + $0xa0] sm:$0xff] %vm5942_vm10, %v12088_v31  ;;  %v9329_v47 = vld [vmem:[#allocation6 + $0x78] sm:$0xff]  ;;  %12097 = vtanh.f32 %v9268_v13 }
0x1b3d   :  { %12099 = vtanh.f32 %v9329_v47  ;;  %9301 = vst.msk [vmem:[#allocation6 + $0x98] sm:$0xff] %vm5942_vm10, %v9269_v37  ;;  %v9183_v12 = vpop.f32.mrb[184].mxu1 }
0x1b3e   :  { %v12090_v60 = vpop.eup %12089  ;;  %v9270_v2 = vadd.f32 %v9183_v12, %v16887_v57  ;;  %v9185_v7 = vpop.f32.mrb[185].mxu1 }
0x1b3f   :  { %v12092_v20 = vpop.eup %12091  ;;  %v9271_v10 = vadd.f32 %v9239_v34, %v9185_v7  ;;  %9417 = vrot.lane.b32.xlu1 %v12090_v60, %s12322_s3  ;;  %9385 = vst.msk [vmem:[#allocation19 + $0x38] sm:$0xff] %vm5942_vm10, %v12090_v60 }
0x1b40   :  { %9483 = vst.msk [vmem:[#allocation19 + $0xa8] sm:$0xff] %vm5942_vm10, %v12092_v20  ;;  %v9331_v43 = vld [vmem:[#allocation6 + $0x88] sm:$0xff]  ;;  %12101 = vtanh.f32 %v9270_v2 }
0x1b41   :  { %12103 = vtanh.f32 %v9331_v43  ;;  %9303 = vst.msk [vmem:[#allocation6 + $0xa8] sm:$0xff] %vm5942_vm10, %v9271_v10  ;;  %v9189_v5 = vpop.f32.mrb[186].mxu1 }
0x1b42   :  { %v12094_v24 = vpop.eup %12093  ;;  %v9272_v41 = vadd.f32 %v9189_v5, %v16891_v17  ;;  %v9191_v57 = vpop.f32.mrb[187].mxu1 }
0x1b43   :  { %v12096_v39 = vpop.eup %12095  ;;  %v9273_v1 = vadd.f32 %v9241_v22, %v9191_v57  ;;  %9444 = vrot.lane.b32.xlu0 %v12094_v24, %s12322_s3  ;;  %9387 = vst.msk [vmem:[#allocation19 + $0xc0] sm:$0xff] %vm5942_vm10, %v12094_v24 }
0x1b44   :  { %9484 = vst.msk [vmem:[#allocation19 + $0xb0] sm:$0xff] %vm5942_vm10, %v12096_v39  ;;  %v9333_v18 = vld [vmem:[#allocation6 + $0x98] sm:$0xff]  ;;  %12105 = vtanh.f32 %v9272_v41 }
0x1b45   :  { %12107 = vtanh.f32 %v9333_v18  ;;  %9305 = vst.msk [vmem:[#allocation6 + $0xb8] sm:$0xff] %vm5942_vm10, %v9273_v1  ;;  %v9195_v54 = vpop.f32.mrb[188].mxu1 }
0x1b46   :  { %v12098_v51 = vpop.eup %12097  ;;  %v9274_v63 = vadd.f32 %v9195_v54, %v16895_v8  ;;  %v9197_v17 = vpop.f32.mrb[189].mxu1 }
0x1b47   :  { %v12100_v21 = vpop.eup %12099  ;;  %v9275_v59 = vadd.f32 %v9243_v61, %v9197_v17  ;;  %9446 = vrot.lane.b32.xlu1 %v12098_v51, %s12322_s3  ;;  %9388 = vst.msk [vmem:[#allocation19 + $0xc8] sm:$0xff] %vm5942_vm10, %v12098_v51 }
0x1b48   :  { %9485 = vst.msk [vmem:[#allocation19 + $0xb8] sm:$0xff] %vm5942_vm10, %v12100_v21  ;;  %v9335_v4 = vld [vmem:[#allocation6 + $0xa8] sm:$0xff]  ;;  %12109 = vtanh.f32 %v9274_v63 }
0x1b49   :  { %12111 = vtanh.f32 %v9335_v4  ;;  %9307 = vst.msk [vmem:[#allocation6 + $0xc8] sm:$0xff] %vm5942_vm10, %v9275_v59  ;;  %v9201_v55 = vpop.f32.mrb[190].mxu1 }
0x1b4a   :  { %v12102_v6 = vpop.eup %12101  ;;  %v9276_v33 = vadd.f32 %v9201_v55, %v16899_v36  ;;  %v9203_v8 = vpop.f32.mrb[191].mxu1 }
0x1b4b   :  { %v12104_v58 = vpop.eup %12103  ;;  %v9277_v29 = vadd.f32 %v9245_v45, %v9203_v8  ;;  %9448 = vrot.lane.b32.xlu0 %v12102_v6, %s12322_s3  ;;  %9389 = vst.msk [vmem:[#allocation19 + $0xd0] sm:$0xff] %vm5942_vm10, %v12102_v6 }
0x1b4c   :  { %9487 = vst.msk [vmem:[#allocation19 + $0x140] sm:$0xff] %vm5942_vm10, %v12104_v58  ;;  %v9337_v48 = vld [vmem:[#allocation6 + $0xb8] sm:$0xff]  ;;  %12113 = vtanh.f32 %v9276_v33 }
0x1b4d   :  { %12115 = vtanh.f32 %v9337_v48  ;;  %9309 = vst.msk [vmem:[#allocation6 + $0xd8] sm:$0xff] %vm5942_vm10, %v9277_v29  ;;  %v9207_v23 = vpop.f32.mrb[192].mxu1 }
0x1b4e   :  { %v12106_v35 = vpop.eup %12105  ;;  %v9278_v15 = vadd.f32 %v9207_v23, %v16903_v38  ;;  %v9209_v36 = vpop.f32.mrb[193].mxu1 }
0x1b4f   :  { %v12108_v27 = vpop.eup %12107  ;;  %v9279_v9 = vadd.f32 %v9247_v53, %v9209_v36  ;;  %9450 = vrot.lane.b32.xlu1 %v12106_v35, %s12322_s3  ;;  %9390 = vst.msk [vmem:[#allocation19 + $0xd8] sm:$0xff] %vm5942_vm10, %v12106_v35 }
0x1b50   :  { %9488 = vst.msk [vmem:[#allocation19 + $0x148] sm:$0xff] %vm5942_vm10, %v12108_v27  ;;  %v9339_v0 = vld [vmem:[#allocation6 + $0xc8] sm:$0xff]  ;;  %12117 = vtanh.f32 %v9278_v15 }
0x1b51   :  { %12119 = vtanh.f32 %v9339_v0  ;;  %9311 = vst.msk [vmem:[#allocation6 + $0xe8] sm:$0xff] %vm5942_vm10, %v9279_v9  ;;  %v9213_v46 = vpop.f32.mrb[194].mxu1 }
0x1b52   :  { %v12110_v11 = vpop.eup %12109  ;;  %v9280_v40 = vadd.f32 %v9213_v46, %v16907_v14  ;;  %v9215_v38 = vpop.f32.mrb[195].mxu1 }
0x1b53   :  { %v12112_v50 = vpop.eup %12111  ;;  %v9281_v25 = vadd.f32 %v9249_v42, %v9215_v38  ;;  %9452 = vrot.lane.b32.xlu0 %v12110_v11, %s12322_s3  ;;  %9391 = vst.msk [vmem:[#allocation19 + $0xe0] sm:$0xff] %vm5942_vm10, %v12110_v11 }
0x1b54   :  { %9489 = vst.msk [vmem:[#allocation19 + $0x150] sm:$0xff] %vm5942_vm10, %v12112_v50  ;;  %v9341_v30 = vld [vmem:[#allocation6 + $0xd8] sm:$0xff]  ;;  %12121 = vtanh.f32 %v9280_v40 }
0x1b55   :  { %12123 = vtanh.f32 %v9341_v30  ;;  %9313 = vst.msk [vmem:[#allocation6 + $0xf8] sm:$0xff] %vm5942_vm10, %v9281_v25 }
0x1b56   :  { %v12114_v52 = vpop.eup %12113 }
0x1b57   :  { %v12116_v3 = vpop.eup %12115  ;;  %9454 = vrot.lane.b32.xlu1 %v12114_v52, %s12322_s3  ;;  %9392 = vst.msk [vmem:[#allocation19 + $0xe8] sm:$0xff] %vm5942_vm10, %v12114_v52 }
0x1b58   :  { %9490 = vst.msk [vmem:[#allocation19 + $0x158] sm:$0xff] %vm5942_vm10, %v12116_v3  ;;  %v9343_v14 = vld [vmem:[#allocation6 + $0xe8] sm:$0xff] }
0x1b59   :  { %12125 = vtanh.f32 %v9343_v14 }
0x1b5a   :  { %v12118_v44 = vpop.eup %12117 }
0x1b5b   :  { %v12120_v16 = vpop.eup %12119  ;;  %9456 = vrot.lane.b32.xlu0 %v12118_v44, %s12322_s3  ;;  %9393 = vst.msk [vmem:[#allocation19 + $0xf0] sm:$0xff] %vm5942_vm10, %v12118_v44 }
0x1b5c   :  { %9491 = vst.msk [vmem:[#allocation19 + $0x160] sm:$0xff] %vm5942_vm10, %v12120_v16  ;;  %v9345_v32 = vld [vmem:[#allocation6 + $0xf8] sm:$0xff] }
0x1b5d   :  { %12127 = vtanh.f32 %v9345_v32 }
0x1b5e   :  { %v12122_v28 = vpop.eup %12121 }
0x1b5f   :  { %v12124_v49 = vpop.eup %12123  ;;  %9458 = vrot.lane.b32.xlu1 %v12122_v28, %s12322_s3  ;;  %9394 = vst.msk [vmem:[#allocation19 + $0xf8] sm:$0xff] %vm5942_vm10, %v12122_v28  ;;  %s12330_s3 = smov [#allocation19]  }
0x1b60   :  { %9492 = vst.msk [vmem:[#allocation19 + $0x168] sm:$0xff] %vm5942_vm10, %v12124_v49  ;;  %s9500_s10 = sshll.u32 %s12330_s3, 4  ;;  %s9501_s10 = int_to_ptr.vmem [resolvable:$true] %s9500_s10 }
0x1b61   :  { %s12283_s22 = scalar_lea.vmem %s9501_s10, 6144  ;;  %p12288_p1 = scmp.lt.s32.totalorder %s9501_s10, %s9501_s10 }
0x1b62   :  { %p12284_p0 = scmp.ne.s32.totalorder %s9501_s10, %s12283_s22  ;;  %p12289_p2 = scmp.lt.s32.totalorder %s12283_s22, %s12283_s22 }
0x1b63   :  { %v12126_v19 = vpop.eup %12125 }
0x1b64   :  { %9493 = vst.msk [vmem:[#allocation19 + $0x170] sm:$0xff] %vm5942_vm10, %v12126_v19  ;;  %p12290_p3 = por %p12289_p2, %p12288_p1 }
0x1b66   :  { %p12291_p4 = pnand %p12290_p3, %p12284_p0 }
0x1b67   :  { %v12128_v56 = vpop.eup %12127 }
0x1b68   :  { %9494 = vst.msk [vmem:[#allocation19 + $0x178] sm:$0xff] %vm5942_vm10, %v12128_v56 }
0x1b95   :  { %v9404_v13 = vpop.permute.xlu0 %9403 }
0x1b96   :  { %9428 = vst.msk [vmem:[#allocation19 + $0x40] sm:$0xff] %vm5942_vm10, %v9404_v13 }
0x1b99   :  { %v9406_v26 = vpop.permute.xlu0 %9405 }
0x1b9a   :  { %9429 = vst.msk [vmem:[#allocation19 + $0x48] sm:$0xff] %vm5942_vm10, %v9406_v26 }
0x1b9d   :  { %v9408_v62 = vpop.permute.xlu1 %9407 }
0x1b9e   :  { %9430 = vst.msk [vmem:[#allocation19 + $0x50] sm:$0xff] %vm5942_vm10, %v9408_v62 }
0x1ba1   :  { %v9410_v31 = vpop.permute.xlu1 %9409 }
0x1ba2   :  { %9431 = vst.msk [vmem:[#allocation19 + $0x58] sm:$0xff] %vm5942_vm10, %v9410_v31 }
0x1ba5   :  { %v9412_v37 = vpop.permute.xlu0 %9411 }
0x1ba6   :  { %9432 = vst.msk [vmem:[#allocation19 + $0x60] sm:$0xff] %vm5942_vm10, %v9412_v37 }
0x1ba9   :  { %v9414_v47 = vpop.permute.xlu1 %9413 }
0x1baa   :  { %9433 = vst.msk [vmem:[#allocation19 + $0x68] sm:$0xff] %vm5942_vm10, %v9414_v47 }
0x1bad   :  { %v9416_v12 = vpop.permute.xlu0 %9415 }
0x1bae   :  { %9434 = vst.msk [vmem:[#allocation19 + $0x70] sm:$0xff] %vm5942_vm10, %v9416_v12 }
0x1bb1   :  { %v9418_v60 = vpop.permute.xlu1 %9417 }
0x1bb2   :  { %9435 = vst.msk [vmem:[#allocation19 + $0x78] sm:$0xff] %vm5942_vm10, %v9418_v60 }
0x1bb5   :  { %v9445_v2 = vpop.permute.xlu0 %9444 }
0x1bb6   :  { %9469 = vst.msk [vmem:[#allocation19 + $0x100] sm:$0xff] %vm5942_vm10, %v9445_v2 }
0x1bb9   :  { %v9447_v7 = vpop.permute.xlu1 %9446 }
0x1bba   :  { %9470 = vst.msk [vmem:[#allocation19 + $0x108] sm:$0xff] %vm5942_vm10, %v9447_v7 }
0x1bbd   :  { %v9449_v34 = vpop.permute.xlu0 %9448 }
0x1bbe   :  { %9471 = vst.msk [vmem:[#allocation19 + $0x110] sm:$0xff] %vm5942_vm10, %v9449_v34 }
0x1bc1   :  { %v9451_v20 = vpop.permute.xlu1 %9450 }
0x1bc2   :  { %9472 = vst.msk [vmem:[#allocation19 + $0x118] sm:$0xff] %vm5942_vm10, %v9451_v20 }
0x1bc5   :  { %v9453_v10 = vpop.permute.xlu0 %9452 }
0x1bc6   :  { %9473 = vst.msk [vmem:[#allocation19 + $0x120] sm:$0xff] %vm5942_vm10, %v9453_v10 }
0x1bc9   :  { %v9455_v43 = vpop.permute.xlu1 %9454 }
0x1bca   :  { %9474 = vst.msk [vmem:[#allocation19 + $0x128] sm:$0xff] %vm5942_vm10, %v9455_v43 }
0x1bcd   :  { %v9457_v5 = vpop.permute.xlu0 %9456 }
0x1bce   :  { %9475 = vst.msk [vmem:[#allocation19 + $0x130] sm:$0xff] %vm5942_vm10, %v9457_v5 }
0x1bd1   :  { %v9459_v24 = vpop.permute.xlu1 %9458 }
0x1bd2   :  { %9476 = vst.msk [vmem:[#allocation19 + $0x138] sm:$0xff] %vm5942_vm10, %v9459_v24 }
0x1bd3   :  { %12294 = shalt.err (!%p12291_p4)
}
0x1bd4   :  { %s17104_s6 = sld [smem:[#allocation39_spill]] }
0x1bda   :  { %s12295_s29 = scalar_lea.hbm %s17104_s6, 6144 }
0x1bdb   :  { %p12296_p5 = scmp.ne.s32.totalorder %s17104_s6, %s12295_s29  ;;  %p12299_p6 = scmp.lt.u32.totalorder %s12295_s29, %s17104_s6 }
0x1bdd   :  { %p12301_p7 = pnand %p12299_p6, %p12296_p5 }
0x1bdf   :  { %12304 = shalt.err (!%p12301_p7)
}
0x1be0   :  { %s12331_s30 = smov 128   ;;  %s12332_s23 = smov 8  }
0x1be1   :  { %9506 = dma.vmem_to_hbm [thread:$0]  %s9501_s10, 6144, %s17104_s6, [#allocation9], %s12331_s30, %s12331_s30, %s12332_s23  }
0x1be2   :  { %12313 = dma.done.wait [#allocation9], 6144  }
0x1be3   :  { %12314 = vsyncadd [#allocation9], 4294961152 }
0x1be4   :  { %9510 = vsyncpa [#allocation8], 1 }
0x1be5   :  { %9511 = vsyncpa [#allocation11], 1 }
0x1be6   :  { %9512 = vsyncpa [#allocation14], 1 }
0x1be7   :  { %9513 = vsyncpa [#allocation17], 1 }
0x1be8   :  { %9514 = vsyncpa [#allocation9], 1 }

</bundles_post_ra>
